<compile_context>
chip_gen: v5e
topology: v5e:2x2
jax: 0.10.0
libtpu: 0.0.40
codegen_flags: <defaults>
</compile_context>

<pallas_src>
import functools
import math

import jax
import jax.numpy as jnp
from jax.experimental import pallas as pl
from jax.experimental.pallas import tpu as pltpu


def _cdiv(a, b):
    return -(-a // b)


def _round_up(x, m):
    return ((x + m - 1) // m) * m


def _choose_tiles(L, B):
    """Pick (tile rows T, tile count n, padded length Lr, matmul row chunk SUB)."""
    if L <= 128:
        T = _round_up(max(L, 32), 32)     # halo blocks are 32 rows -> T % 32 == 0
        n = 1
    else:
        n = _cdiv(L, 1024)                # big tiles amortize ~0.35us/step overhead
        if B * n < 2:                     # keep both v7x TensorCores busy
            n = 2
        T = _round_up(_cdiv(L, n), 128)
        n = _cdiv(L, T)
    Lr = n * T
    SUB = T if T <= 128 else 128          # f32 accumulator stays <= (128, 256)
    return T, n, Lr, SUB


def _vmem_limit_bytes(T, Cin):
    est = (2 * T * Cin * 2                # input tile, double buffered (bf16)
           + 4 * 32 * Cin * 2             # halo blocks
           + 2 * T * 256 * 4              # f32 output tile, double buffered
           + 2 * (5 * Cin * 256 + 3 * 5 * 256 * 256) * 2   # weights
           + 8 * 256 * 4                  # biases
           + (T + 64) * (Cin + 2 * 256) * 2)               # VMEM window scratch
    return max(32 * 1024 * 1024, min(2 * est, 56 * 1024 * 1024))


# ---------------------------------------------------------------------------
# One "same"-padded K=5 conv layer over an in-VMEM window, as 5 shifted MXU
# matmuls per row chunk, fused with bias + ReLU.
# ---------------------------------------------------------------------------
def _conv5_layer(src_ref, w_ref, b_ref, write, *, lo, nrows, sub):
    """y[i] = relu(b + sum_k src[lo + i - 2 + k] @ w[k])  for i in [0, nrows).

    Keeps the chained `acc = acc + dot(...)` accumulation so Mosaic can hold
    the 5-tap sum in the MXU result buffer (MRB on v7x) rather than popping and
    VPU-adding each tap.  `write(i0, c, y_chunk)` stores one row chunk.
    """
    bias = b_ref[...]
    i0 = 0
    while i0 < nrows:                     # statically unrolled chunk loop
        c = min(sub, nrows - i0)
        base = lo + i0 - 2
        acc = jnp.dot(src_ref[base:base + c, :], w_ref[0],
                      preferred_element_type=jnp.float32)
        for k in range(1, 5):
            acc = acc + jnp.dot(src_ref[base + k:base + k + c, :], w_ref[k],
                                preferred_element_type=jnp.float32)
        acc = jnp.maximum(acc + bias, 0.0)
        write(i0, c, acc)
        i0 += c


# ---------------------------------------------------------------------------
# Fused 4-layer kernel.  Window coordinate p corresponds to row j*T + p - 32.
#   x window      : positions [0, T+64)
#   intermediates : computed at positions [16, T+48)  (16-row-aligned writes)
#   output        : positions [32, T+32) == rows [j*T, j*T + T)
# Uncomputed window edges hold stale data but can never propagate into the
# kept output rows (checked range analysis: out<-[30,T+34)<-[28,T+36)<-[26,T+38)).
# ---------------------------------------------------------------------------
def _decnn_fused_kernel(x_ref, lh_ref, rh_ref,
                        wA_ref, bA_ref, w3_ref, b3_ref,
                        w4_ref, b4_ref, w5_ref, b5_ref,
                        o_ref, xw_ref, ha_ref, hb_ref, *, T, SUB, L, Cin):
    j = pl.program_id(1)
    n = pl.num_programs(1)

    # ---- stage the haloed input window: xw[p] = x[row j*T + p - 32] ----
    xw_ref[32:32 + T, :] = x_ref[0]
    xw_ref[0:32, :] = lh_ref[0]
    xw_ref[32 + T:64 + T, :] = rh_ref[0]

    @pl.when(j == 0)                      # rows < 0 -> "same" zero padding
    def _():
        xw_ref[0:32, :] = jnp.zeros((32, Cin), xw_ref.dtype)

    @pl.when(j == n - 1)                  # rows >= Lr -> zero padding
    def _():
        xw_ref[32 + T:64 + T, :] = jnp.zeros((32, Cin), xw_ref.dtype)

    def fix_boundaries(buf_ref):
        # Each conv layer treats rows outside [0, L) of its *input* as zero
        # padding, so zero those rows of the just-computed activation before
        # the next layer consumes them.  Left edge only at j == 0; right edge
        # only on the (at most two) tiles whose halo reaches past L.
        cw = buf_ref.shape[-1]

        @pl.when(j == 0)
        def _():
            buf_ref[0:32, :] = jnp.zeros((32, cw), buf_ref.dtype)

        @pl.when((j + 1) * T + 8 > L)
        def _():
            rows = (j * T - 32) + jax.lax.broadcasted_iota(
                jnp.int32, (T + 64, 1), 0)
            v = buf_ref[...]
            buf_ref[...] = jnp.where(rows < L, v, jnp.zeros_like(v))

    def wr_ha(i0, c, v):
        ha_ref[16 + i0:16 + i0 + c, :] = v.astype(ha_ref.dtype)

    def wr_hb(i0, c, v):
        hb_ref[16 + i0:16 + i0 + c, :] = v.astype(hb_ref.dtype)

    def wr_out(i0, c, v):
        o_ref[0, i0:i0 + c, :] = v.astype(o_ref.dtype)

    # layer 1: fused conv1(K=5) ++ conv2(K=3 as taps 1..3) : Cin -> 256, +relu
    _conv5_layer(xw_ref, wA_ref, bA_ref, wr_ha, lo=16, nrows=T + 32, sub=SUB)
    fix_boundaries(ha_ref)
    # (dropout == identity at inference)
    # layer 2: conv3 : 256 -> 256, +relu
    _conv5_layer(ha_ref, w3_ref, b3_ref, wr_hb, lo=16, nrows=T + 32, sub=SUB)
    fix_boundaries(hb_ref)
    # layer 3: conv4 : 256 -> 256, +relu  (ping-pong back into ha's buffer)
    _conv5_layer(hb_ref, w4_ref, b4_ref, wr_ha, lo=16, nrows=T + 32, sub=SUB)
    fix_boundaries(ha_ref)
    # layer 4: conv5 : 256 -> 256, +relu -> output rows [j*T, j*T + T)
    _conv5_layer(ha_ref, w5_ref, b5_ref, wr_out, lo=32, nrows=T, sub=SUB)


def _decnn_fused(x, prep, *, L, T, SUB):
    """x: (B, n*T, Cin) bf16, rows >= L zero.  Returns (B, n*T, 256) f32."""
    B, Lr, Cin = x.shape
    n = Lr // T
    blk = T // 32                 # halo blocks are 32 rows
    nblk = n * blk

    kernel = functools.partial(_decnn_fused_kernel, T=T, SUB=SUB, L=L, Cin=Cin)
    return pl.pallas_call(
        kernel,
        out_shape=jax.ShapeDtypeStruct((B, Lr, 256), jnp.float32),
        grid=(B, n),
        in_specs=[
            # current tile
            pl.BlockSpec((1, T, Cin), lambda b, j: (b, j, 0)),
            # 32-row left halo (clamped to block 0; zeroed in-kernel at j==0)
            pl.BlockSpec((1, 32, Cin),
                         lambda b, j: (b, jnp.maximum(j * blk - 1, 0), 0)),
            # 32-row right halo (clamped; zeroed in-kernel at j==n-1)
            pl.BlockSpec((1, 32, Cin),
                         lambda b, j: (b, jnp.minimum((j + 1) * blk, nblk - 1), 0)),
            # weights + biases: constant block index -> DMA'd once, VMEM-resident
            pl.BlockSpec((5, Cin, 256), lambda b, j: (0, 0, 0)),
            pl.BlockSpec((1, 256), lambda b, j: (0, 0)),
            pl.BlockSpec((5, 256, 256), lambda b, j: (0, 0, 0)),
            pl.BlockSpec((1, 256), lambda b, j: (0, 0)),
            pl.BlockSpec((5, 256, 256), lambda b, j: (0, 0, 0)),
            pl.BlockSpec((1, 256), lambda b, j: (0, 0)),
            pl.BlockSpec((5, 256, 256), lambda b, j: (0, 0, 0)),
            pl.BlockSpec((1, 256), lambda b, j: (0, 0)),
        ],
        out_specs=pl.BlockSpec((1, T, 256), lambda b, j: (b, j, 0)),
        scratch_shapes=[
            pltpu.VMEM((T + 64, Cin), jnp.bfloat16),   # haloed x window
            pltpu.VMEM((T + 64, 256), jnp.bfloat16),   # activation ping
            pltpu.VMEM((T + 64, 256), jnp.bfloat16),   # activation pong
        ],
        compiler_params=pltpu.CompilerParams(
            dimension_semantics=("parallel", "parallel"),
            vmem_limit_bytes=_vmem_limit_bytes(T, Cin)),
    )(x, x, x,
      prep["wA"], prep["bA"], prep["w3"], prep["b3"],
      prep["w4"], prep["b4"], prep["w5"], prep["b5"])


# ---------------------------------------------------------------------------
# Weight prep (done ONCE, outside jit): fuse conv1/conv2 and cast to bf16.
# conv2 (K=3, pad=1) is embedded as taps 1..3 of a 5-tap kernel so
# relu(cat(conv1(x), conv2(x))) becomes one K=5, Cout=256 conv.
# ---------------------------------------------------------------------------
def prepare_params(params):
    w2e = jnp.pad(params["w2"], ((1, 1), (0, 0), (0, 0)))
    prep = {
        "wA": jnp.concatenate([params["w1"], w2e], axis=2).astype(jnp.bfloat16),
        "bA": jnp.concatenate([params["b1"], params["b2"]])[None, :].astype(jnp.float32),
    }
    for i in (3, 4, 5):
        prep[f"w{i}"] = params[f"w{i}"].astype(jnp.bfloat16)
        prep[f"b{i}"] = params[f"b{i}"][None, :].astype(jnp.float32)
    return prep


def decnn_conv_forward(prep, inputs_ncl):
    """inputs_ncl: (B, input_dim, L), the PyTorch Conv1d input layout.
    Returns (B, L, 256), matching `x_conv.transpose(1, 2)` in PyTorch."""
    B, _, L = inputs_ncl.shape
    T, n, Lr, SUB = _choose_tiles(L, B)

    x = jnp.transpose(inputs_ncl, (0, 2, 1)).astype(jnp.bfloat16)
    if Lr > L:
        x = jnp.pad(x, ((0, 0), (0, Lr - L), (0, 0)))

    h = _decnn_fused(x, prep, L=L, T=T, SUB=SUB)
    return h[:, :L, :] if Lr > L else h


# ---------------------------------------------------------------------------
# Pure-JAX reference with the same bf16-in / f32-accumulate math.
# ---------------------------------------------------------------------------
def _conv_ref(x, w, b, padding, out_dtype):
    B, L, Cin = x.shape
    K, _, Cout = w.shape
    xp = jnp.pad(x, ((0, 0), (padding, padding), (0, 0)))
    acc = jnp.zeros((B, L, Cout), jnp.float32)
    for k in range(K):
        acc = acc + jnp.einsum("blc,co->blo", xp[:, k:k + L, :], w[k],
                               preferred_element_type=jnp.float32)
    acc = acc + b[None, None, :]
    acc = jnp.maximum(acc, 0.0)
    return acc.astype(out_dtype)


def decnn_conv_ref(params, inputs_ncl):
    x = jnp.transpose(inputs_ncl, (0, 2, 1)).astype(jnp.bfloat16)
    h1 = _conv_ref(x, params["w1"].astype(jnp.bfloat16), params["b1"], 2, jnp.float32)
    h2 = _conv_ref(x, params["w2"].astype(jnp.bfloat16), params["b2"], 1, jnp.float32)
    h = jnp.concatenate([h1, h2], axis=-1).astype(jnp.bfloat16)
    h = _conv_ref(h, params["w3"].astype(jnp.bfloat16), params["b3"], 2, jnp.bfloat16)
    h = _conv_ref(h, params["w4"].astype(jnp.bfloat16), params["b4"], 2, jnp.bfloat16)
    h = _conv_ref(h, params["w5"].astype(jnp.bfloat16), params["b5"], 2, jnp.float32)
    return h


# ---------------------------------------------------------------------------
# Deterministic parameter init (PyTorch Conv1d default: U(+/- 1/sqrt(Cin*K))).
# Weights stored as (K, Cin, Cout) == torch weight (Cout, Cin, K) transposed.
# ---------------------------------------------------------------------------
def init_params(key, input_dim):
    def conv_init(k, ksz, cin, cout):
        kw, kb = jax.random.split(k)
        bound = 1.0 / math.sqrt(cin * ksz)
        w = jax.random.uniform(kw, (ksz, cin, cout), jnp.float32, -bound, bound)
        b = jax.random.uniform(kb, (cout,), jnp.float32, -bound, bound)
        return w, b

    keys = jax.random.split(key, 5)
    params = {}
    params["w1"], params["b1"] = conv_init(keys[0], 5, input_dim, 128)
    params["w2"], params["b2"] = conv_init(keys[1], 3, input_dim, 128)
    params["w3"], params["b3"] = conv_init(keys[2], 5, 256, 256)
    params["w4"], params["b4"] = conv_init(keys[3], 5, 256, 256)
    params["w5"], params["b5"] = conv_init(keys[4], 5, 256, 256)
    return params


if __name__ == "__main__":
    key = jax.random.PRNGKey(0)
    k_param, k_in, k_in2 = jax.random.split(key, 3)

    B, input_dim, L = 2, 16, 16   # small NCL input, like the PyTorch Conv1d
    params = init_params(k_param, input_dim)
    prep = prepare_params(params)          # fused/cast weights, hoisted out of jit

    fwd = jax.jit(decnn_conv_forward)

    inputs = jax.random.normal(k_in, (B, input_dim, L), jnp.float32)
    out = jax.block_until_ready(fwd(prep, inputs))
    ref = decnn_conv_ref(params, inputs)
    assert out.shape == (B, L, 256), out.shape
    err = float(jnp.max(jnp.abs(out - ref)))
    assert jnp.allclose(out, ref, atol=2e-2, rtol=2e-2), f"mismatch: {err}"

    # second shape: multi-tile grid + ragged length exercises halos and the
    # boundary/row>=L masking paths (B=1 also exercises the n>=2 tile split).
    B2, L2 = 1, 200
    inputs2 = jax.random.normal(k_in2, (B2, input_dim, L2), jnp.float32)
    out2 = jax.block_until_ready(fwd(prep, inputs2))
    ref2 = decnn_conv_ref(params, inputs2)
    assert out2.shape == (B2, L2, 256), out2.shape
    err2 = float(jnp.max(jnp.abs(out2 - ref2)))
    assert jnp.allclose(out2, ref2, atol=2e-2, rtol=2e-2), f"mismatch: {err2}"

    print("KERNEL_OK")
</pallas_src>

<mosaic_0001>
module attributes {stable_mosaic.version = 11 : i64} {
  func.func @_decnn_fused_kernel(%arg0: i32, %arg1: i32, %arg2: memref<1x32x16xbf16, #tpu.memory_space<vmem>>, %arg3: memref<1x32x16xbf16, #tpu.memory_space<vmem>>, %arg4: memref<1x32x16xbf16, #tpu.memory_space<vmem>>, %arg5: memref<5x16x256xbf16, #tpu.memory_space<vmem>>, %arg6: memref<1x256xf32, #tpu.memory_space<vmem>>, %arg7: memref<5x256x256xbf16, #tpu.memory_space<vmem>>, %arg8: memref<1x256xf32, #tpu.memory_space<vmem>>, %arg9: memref<5x256x256xbf16, #tpu.memory_space<vmem>>, %arg10: memref<1x256xf32, #tpu.memory_space<vmem>>, %arg11: memref<5x256x256xbf16, #tpu.memory_space<vmem>>, %arg12: memref<1x256xf32, #tpu.memory_space<vmem>>, %arg13: memref<1x32x256xf32, #tpu.memory_space<vmem>>, %arg14: memref<96x16xbf16, #tpu.memory_space<vmem>>, %arg15: memref<96x256xbf16, #tpu.memory_space<vmem>>, %arg16: memref<96x256xbf16, #tpu.memory_space<vmem>>) attributes {dimension_semantics = [#tpu.dimension_semantics<parallel>, #tpu.dimension_semantics<parallel>], iteration_bounds = array<i64: 2, 1>, scalar_prefetch = 0 : i64, scratch_operands = 3 : i64, tpu.core_type = #tpu.core_type<tc>, window_params = [{transform_indices = @transform_0, window_bounds = array<i64: 1, 32, 16>}, {transform_indices = @transform_1, window_bounds = array<i64: 1, 32, 16>}, {transform_indices = @transform_2, window_bounds = array<i64: 1, 32, 16>}, {pipeline_mode = #tpu.pipeline_mode<synchronous>, transform_indices = @transform_3, window_bounds = array<i64: 5, 16, 256>}, {pipeline_mode = #tpu.pipeline_mode<synchronous>, transform_indices = @transform_4, window_bounds = array<i64: 1, 256>}, {pipeline_mode = #tpu.pipeline_mode<synchronous>, transform_indices = @transform_5, window_bounds = array<i64: 5, 256, 256>}, {pipeline_mode = #tpu.pipeline_mode<synchronous>, transform_indices = @transform_6, window_bounds = array<i64: 1, 256>}, {pipeline_mode = #tpu.pipeline_mode<synchronous>, transform_indices = @transform_7, window_bounds = array<i64: 5, 256, 256>}, {pipeline_mode = #tpu.pipeline_mode<synchronous>, transform_indices = @transform_8, window_bounds = array<i64: 1, 256>}, {pipeline_mode = #tpu.pipeline_mode<synchronous>, transform_indices = @transform_9, window_bounds = array<i64: 5, 256, 256>}, {pipeline_mode = #tpu.pipeline_mode<synchronous>, transform_indices = @transform_10, window_bounds = array<i64: 1, 256>}, {transform_indices = @transform_11, window_bounds = array<i64: 1, 32, 256>}]} {
    %c0 = arith.constant 0 : index
    %c0_0 = arith.constant 0 : index
    %c0_1 = arith.constant 0 : index
    %0 = vector.load %arg2[%c0, %c0_0, %c0_1] : memref<1x32x16xbf16, #tpu.memory_space<vmem>>, vector<1x32x16xbf16>
    %1 = vector.shape_cast %0 : vector<1x32x16xbf16> to vector<32x16xbf16>
    %c32 = arith.constant 32 : index
    %c0_2 = arith.constant 0 : index
    %2 = vector.load %arg14[%c32, %c0_2] : memref<96x16xbf16, #tpu.memory_space<vmem>>, vector<32x16xbf16>
    tpu.vector_store %arg14[%c32, %c0_2], %1 {strides = array<i32>} : memref<96x16xbf16, #tpu.memory_space<vmem>>, vector<32x16xbf16>,
    %c0_3 = arith.constant 0 : index
    %c0_4 = arith.constant 0 : index
    %c0_5 = arith.constant 0 : index
    %3 = vector.load %arg3[%c0_3, %c0_4, %c0_5] : memref<1x32x16xbf16, #tpu.memory_space<vmem>>, vector<1x32x16xbf16>
    %4 = vector.shape_cast %3 : vector<1x32x16xbf16> to vector<32x16xbf16>
    %c0_6 = arith.constant 0 : index
    %c0_7 = arith.constant 0 : index
    %5 = vector.load %arg14[%c0_6, %c0_7] : memref<96x16xbf16, #tpu.memory_space<vmem>>, vector<32x16xbf16>
    tpu.vector_store %arg14[%c0_6, %c0_7], %4 {strides = array<i32>} : memref<96x16xbf16, #tpu.memory_space<vmem>>, vector<32x16xbf16>,
    %c0_8 = arith.constant 0 : index
    %c0_9 = arith.constant 0 : index
    %c0_10 = arith.constant 0 : index
    %6 = vector.load %arg4[%c0_8, %c0_9, %c0_10] : memref<1x32x16xbf16, #tpu.memory_space<vmem>>, vector<1x32x16xbf16>
    %7 = vector.shape_cast %6 : vector<1x32x16xbf16> to vector<32x16xbf16>
    %c64 = arith.constant 64 : index
    %c0_11 = arith.constant 0 : index
    %8 = vector.load %arg14[%c64, %c0_11] : memref<96x16xbf16, #tpu.memory_space<vmem>>, vector<32x16xbf16>
    tpu.vector_store %arg14[%c64, %c0_11], %7 {strides = array<i32>} : memref<96x16xbf16, #tpu.memory_space<vmem>>, vector<32x16xbf16>,
    %c0_i32 = arith.constant 0 : i32
    %9 = arith.cmpi eq, %arg1, %c0_i32 : i32
    %10 = arith.extui %9 : i1 to i32
    %c0_i32_12 = arith.constant 0 : i32
    %11 = arith.cmpi ne, %10, %c0_i32_12 : i32
    scf.if %11 {
      %cst_253 = arith.constant 0.000000e+00 : bf16
      %257 = vector.broadcast %cst_253 : bf16 to vector<32x16xbf16>
      %c0_254 = arith.constant 0 : index
      %c0_255 = arith.constant 0 : index
      %258 = vector.load %arg14[%c0_254, %c0_255] : memref<96x16xbf16, #tpu.memory_space<vmem>>, vector<32x16xbf16>
      tpu.vector_store %arg14[%c0_254, %c0_255], %257 {strides = array<i32>} : memref<96x16xbf16, #tpu.memory_space<vmem>>, vector<32x16xbf16>,
    } else {
    }
    %c0_i32_13 = arith.constant 0 : i32
    %12 = arith.cmpi eq, %arg1, %c0_i32_13 : i32
    %13 = arith.extui %12 : i1 to i32
    %c0_i32_14 = arith.constant 0 : i32
    %14 = arith.cmpi ne, %13, %c0_i32_14 : i32
    scf.if %14 {
      %cst_253 = arith.constant 0.000000e+00 : bf16
      %257 = vector.broadcast %cst_253 : bf16 to vector<32x16xbf16>
      %c64_254 = arith.constant 64 : index
      %c0_255 = arith.constant 0 : index
      %258 = vector.load %arg14[%c64_254, %c0_255] : memref<96x16xbf16, #tpu.memory_space<vmem>>, vector<32x16xbf16>
      tpu.vector_store %arg14[%c64_254, %c0_255], %257 {strides = array<i32>} : memref<96x16xbf16, #tpu.memory_space<vmem>>, vector<32x16xbf16>,
    } else {
    }
    %c0_15 = arith.constant 0 : index
    %c0_16 = arith.constant 0 : index
    %15 = vector.load %arg6[%c0_15, %c0_16] : memref<1x256xf32, #tpu.memory_space<vmem>>, vector<1x256xf32>
    %c14 = arith.constant 14 : index
    %c0_17 = arith.constant 0 : index
    %16 = vector.load %arg14[%c14, %c0_17] : memref<96x16xbf16, #tpu.memory_space<vmem>>, vector<32x16xbf16>
    %c0_18 = arith.constant 0 : index
    %c0_19 = arith.constant 0 : index
    %c0_20 = arith.constant 0 : index
    %17 = vector.load %arg5[%c0_18, %c0_19, %c0_20] : memref<5x16x256xbf16, #tpu.memory_space<vmem>>, vector<1x16x256xbf16>
    %18 = vector.shape_cast %17 : vector<1x16x256xbf16> to vector<16x256xbf16>
    %cst = arith.constant dense<0.000000e+00> : vector<32x256xf32>
    %19 = tpu.matmul %16, %18, %cst {dimension_numbers = #tpu.dot_dimension_numbers<[1], [0], [0], [1], [0, 0, 1, 1], [], []>} : vector<32x16xbf16>, vector<16x256xbf16>, vector<32x256xf32> -> vector<32x256xf32>
    %c15 = arith.constant 15 : index
    %c0_21 = arith.constant 0 : index
    %20 = vector.load %arg14[%c15, %c0_21] : memref<96x16xbf16, #tpu.memory_space<vmem>>, vector<32x16xbf16>
    %c1 = arith.constant 1 : index
    %c0_22 = arith.constant 0 : index
    %c0_23 = arith.constant 0 : index
    %21 = vector.load %arg5[%c1, %c0_22, %c0_23] : memref<5x16x256xbf16, #tpu.memory_space<vmem>>, vector<1x16x256xbf16>
    %22 = vector.shape_cast %21 : vector<1x16x256xbf16> to vector<16x256xbf16>
    %cst_24 = arith.constant dense<0.000000e+00> : vector<32x256xf32>
    %23 = tpu.matmul %20, %22, %cst_24 {dimension_numbers = #tpu.dot_dimension_numbers<[1], [0], [0], [1], [0, 0, 1, 1], [], []>} : vector<32x16xbf16>, vector<16x256xbf16>, vector<32x256xf32> -> vector<32x256xf32>
    %24 = arith.addf %19, %23 : vector<32x256xf32>
    %c16 = arith.constant 16 : index
    %c0_25 = arith.constant 0 : index
    %25 = vector.load %arg14[%c16, %c0_25] : memref<96x16xbf16, #tpu.memory_space<vmem>>, vector<32x16xbf16>
    %c2 = arith.constant 2 : index
    %c0_26 = arith.constant 0 : index
    %c0_27 = arith.constant 0 : index
    %26 = vector.load %arg5[%c2, %c0_26, %c0_27] : memref<5x16x256xbf16, #tpu.memory_space<vmem>>, vector<1x16x256xbf16>
    %27 = vector.shape_cast %26 : vector<1x16x256xbf16> to vector<16x256xbf16>
    %cst_28 = arith.constant dense<0.000000e+00> : vector<32x256xf32>
    %28 = tpu.matmul %25, %27, %cst_28 {dimension_numbers = #tpu.dot_dimension_numbers<[1], [0], [0], [1], [0, 0, 1, 1], [], []>} : vector<32x16xbf16>, vector<16x256xbf16>, vector<32x256xf32> -> vector<32x256xf32>
    %29 = arith.addf %24, %28 : vector<32x256xf32>
    %c17 = arith.constant 17 : index
    %c0_29 = arith.constant 0 : index
    %30 = vector.load %arg14[%c17, %c0_29] : memref<96x16xbf16, #tpu.memory_space<vmem>>, vector<32x16xbf16>
    %c3 = arith.constant 3 : index
    %c0_30 = arith.constant 0 : index
    %c0_31 = arith.constant 0 : index
    %31 = vector.load %arg5[%c3, %c0_30, %c0_31] : memref<5x16x256xbf16, #tpu.memory_space<vmem>>, vector<1x16x256xbf16>
    %32 = vector.shape_cast %31 : vector<1x16x256xbf16> to vector<16x256xbf16>
    %cst_32 = arith.constant dense<0.000000e+00> : vector<32x256xf32>
    %33 = tpu.matmul %30, %32, %cst_32 {dimension_numbers = #tpu.dot_dimension_numbers<[1], [0], [0], [1], [0, 0, 1, 1], [], []>} : vector<32x16xbf16>, vector<16x256xbf16>, vector<32x256xf32> -> vector<32x256xf32>
    %34 = arith.addf %29, %33 : vector<32x256xf32>
    %c18 = arith.constant 18 : index
    %c0_33 = arith.constant 0 : index
    %35 = vector.load %arg14[%c18, %c0_33] : memref<96x16xbf16, #tpu.memory_space<vmem>>, vector<32x16xbf16>
    %c4 = arith.constant 4 : index
    %c0_34 = arith.constant 0 : index
    %c0_35 = arith.constant 0 : index
    %36 = vector.load %arg5[%c4, %c0_34, %c0_35] : memref<5x16x256xbf16, #tpu.memory_space<vmem>>, vector<1x16x256xbf16>
    %37 = vector.shape_cast %36 : vector<1x16x256xbf16> to vector<16x256xbf16>
    %cst_36 = arith.constant dense<0.000000e+00> : vector<32x256xf32>
    %38 = tpu.matmul %35, %37, %cst_36 {dimension_numbers = #tpu.dot_dimension_numbers<[1], [0], [0], [1], [0, 0, 1, 1], [], []>} : vector<32x16xbf16>, vector<16x256xbf16>, vector<32x256xf32> -> vector<32x256xf32>
    %39 = arith.addf %34, %38 : vector<32x256xf32>
    %40 = vector.broadcast %15 : vector<1x256xf32> to vector<32x256xf32>
    %41 = arith.addf %39, %40 : vector<32x256xf32>
    %cst_37 = arith.constant 0.000000e+00 : f32
    %42 = vector.broadcast %cst_37 : f32 to vector<32x256xf32>
    %43 = arith.maximumf %41, %42 : vector<32x256xf32>
    %44 = arith.truncf %43 : vector<32x256xf32> to vector<32x256xbf16>
    %c16_38 = arith.constant 16 : index
    %c0_39 = arith.constant 0 : index
    %45 = vector.load %arg15[%c16_38, %c0_39] : memref<96x256xbf16, #tpu.memory_space<vmem>>, vector<32x256xbf16>
    tpu.vector_store %arg15[%c16_38, %c0_39], %44 {strides = array<i32>} : memref<96x256xbf16, #tpu.memory_space<vmem>>, vector<32x256xbf16>,
    %c46 = arith.constant 46 : index
    %c0_40 = arith.constant 0 : index
    %46 = vector.load %arg14[%c46, %c0_40] : memref<96x16xbf16, #tpu.memory_space<vmem>>, vector<32x16xbf16>
    %c0_41 = arith.constant 0 : index
    %c0_42 = arith.constant 0 : index
    %c0_43 = arith.constant 0 : index
    %47 = vector.load %arg5[%c0_41, %c0_42, %c0_43] : memref<5x16x256xbf16, #tpu.memory_space<vmem>>, vector<1x16x256xbf16>
    %48 = vector.shape_cast %47 : vector<1x16x256xbf16> to vector<16x256xbf16>
    %cst_44 = arith.constant dense<0.000000e+00> : vector<32x256xf32>
    %49 = tpu.matmul %46, %48, %cst_44 {dimension_numbers = #tpu.dot_dimension_numbers<[1], [0], [0], [1], [0, 0, 1, 1], [], []>} : vector<32x16xbf16>, vector<16x256xbf16>, vector<32x256xf32> -> vector<32x256xf32>
    %c47 = arith.constant 47 : index
    %c0_45 = arith.constant 0 : index
    %50 = vector.load %arg14[%c47, %c0_45] : memref<96x16xbf16, #tpu.memory_space<vmem>>, vector<32x16xbf16>
    %c1_46 = arith.constant 1 : index
    %c0_47 = arith.constant 0 : index
    %c0_48 = arith.constant 0 : index
    %51 = vector.load %arg5[%c1_46, %c0_47, %c0_48] : memref<5x16x256xbf16, #tpu.memory_space<vmem>>, vector<1x16x256xbf16>
    %52 = vector.shape_cast %51 : vector<1x16x256xbf16> to vector<16x256xbf16>
    %cst_49 = arith.constant dense<0.000000e+00> : vector<32x256xf32>
    %53 = tpu.matmul %50, %52, %cst_49 {dimension_numbers = #tpu.dot_dimension_numbers<[1], [0], [0], [1], [0, 0, 1, 1], [], []>} : vector<32x16xbf16>, vector<16x256xbf16>, vector<32x256xf32> -> vector<32x256xf32>
    %54 = arith.addf %49, %53 : vector<32x256xf32>
    %c48 = arith.constant 48 : index
    %c0_50 = arith.constant 0 : index
    %55 = vector.load %arg14[%c48, %c0_50] : memref<96x16xbf16, #tpu.memory_space<vmem>>, vector<32x16xbf16>
    %c2_51 = arith.constant 2 : index
    %c0_52 = arith.constant 0 : index
    %c0_53 = arith.constant 0 : index
    %56 = vector.load %arg5[%c2_51, %c0_52, %c0_53] : memref<5x16x256xbf16, #tpu.memory_space<vmem>>, vector<1x16x256xbf16>
    %57 = vector.shape_cast %56 : vector<1x16x256xbf16> to vector<16x256xbf16>
    %cst_54 = arith.constant dense<0.000000e+00> : vector<32x256xf32>
    %58 = tpu.matmul %55, %57, %cst_54 {dimension_numbers = #tpu.dot_dimension_numbers<[1], [0], [0], [1], [0, 0, 1, 1], [], []>} : vector<32x16xbf16>, vector<16x256xbf16>, vector<32x256xf32> -> vector<32x256xf32>
    %59 = arith.addf %54, %58 : vector<32x256xf32>
    %c49 = arith.constant 49 : index
    %c0_55 = arith.constant 0 : index
    %60 = vector.load %arg14[%c49, %c0_55] : memref<96x16xbf16, #tpu.memory_space<vmem>>, vector<32x16xbf16>
    %c3_56 = arith.constant 3 : index
    %c0_57 = arith.constant 0 : index
    %c0_58 = arith.constant 0 : index
    %61 = vector.load %arg5[%c3_56, %c0_57, %c0_58] : memref<5x16x256xbf16, #tpu.memory_space<vmem>>, vector<1x16x256xbf16>
    %62 = vector.shape_cast %61 : vector<1x16x256xbf16> to vector<16x256xbf16>
    %cst_59 = arith.constant dense<0.000000e+00> : vector<32x256xf32>
    %63 = tpu.matmul %60, %62, %cst_59 {dimension_numbers = #tpu.dot_dimension_numbers<[1], [0], [0], [1], [0, 0, 1, 1], [], []>} : vector<32x16xbf16>, vector<16x256xbf16>, vector<32x256xf32> -> vector<32x256xf32>
    %64 = arith.addf %59, %63 : vector<32x256xf32>
    %c50 = arith.constant 50 : index
    %c0_60 = arith.constant 0 : index
    %65 = vector.load %arg14[%c50, %c0_60] : memref<96x16xbf16, #tpu.memory_space<vmem>>, vector<32x16xbf16>
    %c4_61 = arith.constant 4 : index
    %c0_62 = arith.constant 0 : index
    %c0_63 = arith.constant 0 : index
    %66 = vector.load %arg5[%c4_61, %c0_62, %c0_63] : memref<5x16x256xbf16, #tpu.memory_space<vmem>>, vector<1x16x256xbf16>
    %67 = vector.shape_cast %66 : vector<1x16x256xbf16> to vector<16x256xbf16>
    %cst_64 = arith.constant dense<0.000000e+00> : vector<32x256xf32>
    %68 = tpu.matmul %65, %67, %cst_64 {dimension_numbers = #tpu.dot_dimension_numbers<[1], [0], [0], [1], [0, 0, 1, 1], [], []>} : vector<32x16xbf16>, vector<16x256xbf16>, vector<32x256xf32> -> vector<32x256xf32>
    %69 = arith.addf %64, %68 : vector<32x256xf32>
    %70 = vector.broadcast %15 : vector<1x256xf32> to vector<32x256xf32>
    %71 = arith.addf %69, %70 : vector<32x256xf32>
    %cst_65 = arith.constant 0.000000e+00 : f32
    %72 = vector.broadcast %cst_65 : f32 to vector<32x256xf32>
    %73 = arith.maximumf %71, %72 : vector<32x256xf32>
    %74 = arith.truncf %73 : vector<32x256xf32> to vector<32x256xbf16>
    %c48_66 = arith.constant 48 : index
    %c0_67 = arith.constant 0 : index
    %75 = vector.load %arg15[%c48_66, %c0_67] : memref<96x256xbf16, #tpu.memory_space<vmem>>, vector<32x256xbf16>
    tpu.vector_store %arg15[%c48_66, %c0_67], %74 {strides = array<i32>} : memref<96x256xbf16, #tpu.memory_space<vmem>>, vector<32x256xbf16>,
    %c0_i32_68 = arith.constant 0 : i32
    %76 = arith.cmpi eq, %arg1, %c0_i32_68 : i32
    %77 = arith.extui %76 : i1 to i32
    %c0_i32_69 = arith.constant 0 : i32
    %78 = arith.cmpi ne, %77, %c0_i32_69 : i32
    scf.if %78 {
      %cst_253 = arith.constant 0.000000e+00 : bf16
      %257 = vector.broadcast %cst_253 : bf16 to vector<32x256xbf16>
      %c0_254 = arith.constant 0 : index
      %c0_255 = arith.constant 0 : index
      %258 = vector.load %arg15[%c0_254, %c0_255] : memref<96x256xbf16, #tpu.memory_space<vmem>>, vector<32x256xbf16>
      tpu.vector_store %arg15[%c0_254, %c0_255], %257 {strides = array<i32>} : memref<96x256xbf16, #tpu.memory_space<vmem>>, vector<32x256xbf16>,
    } else {
    }
    %c1_i32 = arith.constant 1 : i32
    %79 = arith.addi %arg1, %c1_i32 : i32
    %c32_i32 = arith.constant 32 : i32
    %80 = arith.muli %79, %c32_i32 : i32
    %c8_i32 = arith.constant 8 : i32
    %81 = arith.addi %80, %c8_i32 : i32
    %c16_i32 = arith.constant 16 : i32
    %82 = arith.cmpi sgt, %81, %c16_i32 : i32
    %83 = arith.extui %82 : i1 to i32
    %c0_i32_70 = arith.constant 0 : i32
    %84 = arith.cmpi ne, %83, %c0_i32_70 : i32
    scf.if %84 {
      %c32_i32_253 = arith.constant 32 : i32
      %257 = arith.muli %arg1, %c32_i32_253 : i32
      %c32_i32_254 = arith.constant 32 : i32
      %258 = arith.subi %257, %c32_i32_254 : i32
      %259 = tpu.iota {dimensions = array<i32: 0>} : vector<96x1xi32>
      %260 = vector.broadcast %258 : i32 to vector<96x1xi32>
      %261 = arith.addi %260, %259 : vector<96x1xi32>
      %c0_255 = arith.constant 0 : index
      %c0_256 = arith.constant 0 : index
      %262 = vector.load %arg15[%c0_255, %c0_256] : memref<96x256xbf16, #tpu.memory_space<vmem>>, vector<96x256xbf16>
      %c16_i32_257 = arith.constant 16 : i32
      %263 = vector.broadcast %c16_i32_257 : i32 to vector<96x1xi32>
      %264 = arith.cmpi slt, %261, %263 : vector<96x1xi32>
      %cst_258 = arith.constant 0.000000e+00 : bf16
      %265 = vector.broadcast %cst_258 : bf16 to vector<96x256xbf16>
      %266 = vector.shape_cast %264 : vector<96x1xi1> to vector<96x1xi1>
      %267 = vector.broadcast %266 : vector<96x1xi1> to vector<96x256xi1>
      %268 = arith.select %267, %262, %265 : vector<96x256xi1>, vector<96x256xbf16>
      %c0_259 = arith.constant 0 : index
      %c0_260 = arith.constant 0 : index
      %269 = vector.load %arg15[%c0_259, %c0_260] : memref<96x256xbf16, #tpu.memory_space<vmem>>, vector<96x256xbf16>
      tpu.vector_store %arg15[%c0_259, %c0_260], %268 {strides = array<i32>} : memref<96x256xbf16, #tpu.memory_space<vmem>>, vector<96x256xbf16>,
    } else {
    }
    %c0_71 = arith.constant 0 : index
    %c0_72 = arith.constant 0 : index
    %85 = vector.load %arg8[%c0_71, %c0_72] : memref<1x256xf32, #tpu.memory_space<vmem>>, vector<1x256xf32>
    %c14_73 = arith.constant 14 : index
    %c0_74 = arith.constant 0 : index
    %86 = vector.load %arg15[%c14_73, %c0_74] : memref<96x256xbf16, #tpu.memory_space<vmem>>, vector<32x256xbf16>
    %c0_75 = arith.constant 0 : index
    %c0_76 = arith.constant 0 : index
    %c0_77 = arith.constant 0 : index
    %87 = vector.load %arg7[%c0_75, %c0_76, %c0_77] : memref<5x256x256xbf16, #tpu.memory_space<vmem>>, vector<1x256x256xbf16>
    %88 = vector.shape_cast %87 : vector<1x256x256xbf16> to vector<256x256xbf16>
    %cst_78 = arith.constant dense<0.000000e+00> : vector<32x256xf32>
    %89 = tpu.matmul %86, %88, %cst_78 {dimension_numbers = #tpu.dot_dimension_numbers<[1], [0], [0], [1], [0, 0, 1, 1], [], []>} : vector<32x256xbf16>, vector<256x256xbf16>, vector<32x256xf32> -> vector<32x256xf32>
    %c15_79 = arith.constant 15 : index
    %c0_80 = arith.constant 0 : index
    %90 = vector.load %arg15[%c15_79, %c0_80] : memref<96x256xbf16, #tpu.memory_space<vmem>>, vector<32x256xbf16>
    %c1_81 = arith.constant 1 : index
    %c0_82 = arith.constant 0 : index
    %c0_83 = arith.constant 0 : index
    %91 = vector.load %arg7[%c1_81, %c0_82, %c0_83] : memref<5x256x256xbf16, #tpu.memory_space<vmem>>, vector<1x256x256xbf16>
    %92 = vector.shape_cast %91 : vector<1x256x256xbf16> to vector<256x256xbf16>
    %cst_84 = arith.constant dense<0.000000e+00> : vector<32x256xf32>
    %93 = tpu.matmul %90, %92, %cst_84 {dimension_numbers = #tpu.dot_dimension_numbers<[1], [0], [0], [1], [0, 0, 1, 1], [], []>} : vector<32x256xbf16>, vector<256x256xbf16>, vector<32x256xf32> -> vector<32x256xf32>
    %94 = arith.addf %89, %93 : vector<32x256xf32>
    %c16_85 = arith.constant 16 : index
    %c0_86 = arith.constant 0 : index
    %95 = vector.load %arg15[%c16_85, %c0_86] : memref<96x256xbf16, #tpu.memory_space<vmem>>, vector<32x256xbf16>
    %c2_87 = arith.constant 2 : index
    %c0_88 = arith.constant 0 : index
    %c0_89 = arith.constant 0 : index
    %96 = vector.load %arg7[%c2_87, %c0_88, %c0_89] : memref<5x256x256xbf16, #tpu.memory_space<vmem>>, vector<1x256x256xbf16>
    %97 = vector.shape_cast %96 : vector<1x256x256xbf16> to vector<256x256xbf16>
    %cst_90 = arith.constant dense<0.000000e+00> : vector<32x256xf32>
    %98 = tpu.matmul %95, %97, %cst_90 {dimension_numbers = #tpu.dot_dimension_numbers<[1], [0], [0], [1], [0, 0, 1, 1], [], []>} : vector<32x256xbf16>, vector<256x256xbf16>, vector<32x256xf32> -> vector<32x256xf32>
    %99 = arith.addf %94, %98 : vector<32x256xf32>
    %c17_91 = arith.constant 17 : index
    %c0_92 = arith.constant 0 : index
    %100 = vector.load %arg15[%c17_91, %c0_92] : memref<96x256xbf16, #tpu.memory_space<vmem>>, vector<32x256xbf16>
    %c3_93 = arith.constant 3 : index
    %c0_94 = arith.constant 0 : index
    %c0_95 = arith.constant 0 : index
    %101 = vector.load %arg7[%c3_93, %c0_94, %c0_95] : memref<5x256x256xbf16, #tpu.memory_space<vmem>>, vector<1x256x256xbf16>
    %102 = vector.shape_cast %101 : vector<1x256x256xbf16> to vector<256x256xbf16>
    %cst_96 = arith.constant dense<0.000000e+00> : vector<32x256xf32>
    %103 = tpu.matmul %100, %102, %cst_96 {dimension_numbers = #tpu.dot_dimension_numbers<[1], [0], [0], [1], [0, 0, 1, 1], [], []>} : vector<32x256xbf16>, vector<256x256xbf16>, vector<32x256xf32> -> vector<32x256xf32>
    %104 = arith.addf %99, %103 : vector<32x256xf32>
    %c18_97 = arith.constant 18 : index
    %c0_98 = arith.constant 0 : index
    %105 = vector.load %arg15[%c18_97, %c0_98] : memref<96x256xbf16, #tpu.memory_space<vmem>>, vector<32x256xbf16>
    %c4_99 = arith.constant 4 : index
    %c0_100 = arith.constant 0 : index
    %c0_101 = arith.constant 0 : index
    %106 = vector.load %arg7[%c4_99, %c0_100, %c0_101] : memref<5x256x256xbf16, #tpu.memory_space<vmem>>, vector<1x256x256xbf16>
    %107 = vector.shape_cast %106 : vector<1x256x256xbf16> to vector<256x256xbf16>
    %cst_102 = arith.constant dense<0.000000e+00> : vector<32x256xf32>
    %108 = tpu.matmul %105, %107, %cst_102 {dimension_numbers = #tpu.dot_dimension_numbers<[1], [0], [0], [1], [0, 0, 1, 1], [], []>} : vector<32x256xbf16>, vector<256x256xbf16>, vector<32x256xf32> -> vector<32x256xf32>
    %109 = arith.addf %104, %108 : vector<32x256xf32>
    %110 = vector.broadcast %85 : vector<1x256xf32> to vector<32x256xf32>
    %111 = arith.addf %109, %110 : vector<32x256xf32>
    %cst_103 = arith.constant 0.000000e+00 : f32
    %112 = vector.broadcast %cst_103 : f32 to vector<32x256xf32>
    %113 = arith.maximumf %111, %112 : vector<32x256xf32>
    %114 = arith.truncf %113 : vector<32x256xf32> to vector<32x256xbf16>
    %c16_104 = arith.constant 16 : index
    %c0_105 = arith.constant 0 : index
    %115 = vector.load %arg16[%c16_104, %c0_105] : memref<96x256xbf16, #tpu.memory_space<vmem>>, vector<32x256xbf16>
    tpu.vector_store %arg16[%c16_104, %c0_105], %114 {strides = array<i32>} : memref<96x256xbf16, #tpu.memory_space<vmem>>, vector<32x256xbf16>,
    %c46_106 = arith.constant 46 : index
    %c0_107 = arith.constant 0 : index
    %116 = vector.load %arg15[%c46_106, %c0_107] : memref<96x256xbf16, #tpu.memory_space<vmem>>, vector<32x256xbf16>
    %c0_108 = arith.constant 0 : index
    %c0_109 = arith.constant 0 : index
    %c0_110 = arith.constant 0 : index
    %117 = vector.load %arg7[%c0_108, %c0_109, %c0_110] : memref<5x256x256xbf16, #tpu.memory_space<vmem>>, vector<1x256x256xbf16>
    %118 = vector.shape_cast %117 : vector<1x256x256xbf16> to vector<256x256xbf16>
    %cst_111 = arith.constant dense<0.000000e+00> : vector<32x256xf32>
    %119 = tpu.matmul %116, %118, %cst_111 {dimension_numbers = #tpu.dot_dimension_numbers<[1], [0], [0], [1], [0, 0, 1, 1], [], []>} : vector<32x256xbf16>, vector<256x256xbf16>, vector<32x256xf32> -> vector<32x256xf32>
    %c47_112 = arith.constant 47 : index
    %c0_113 = arith.constant 0 : index
    %120 = vector.load %arg15[%c47_112, %c0_113] : memref<96x256xbf16, #tpu.memory_space<vmem>>, vector<32x256xbf16>
    %c1_114 = arith.constant 1 : index
    %c0_115 = arith.constant 0 : index
    %c0_116 = arith.constant 0 : index
    %121 = vector.load %arg7[%c1_114, %c0_115, %c0_116] : memref<5x256x256xbf16, #tpu.memory_space<vmem>>, vector<1x256x256xbf16>
    %122 = vector.shape_cast %121 : vector<1x256x256xbf16> to vector<256x256xbf16>
    %cst_117 = arith.constant dense<0.000000e+00> : vector<32x256xf32>
    %123 = tpu.matmul %120, %122, %cst_117 {dimension_numbers = #tpu.dot_dimension_numbers<[1], [0], [0], [1], [0, 0, 1, 1], [], []>} : vector<32x256xbf16>, vector<256x256xbf16>, vector<32x256xf32> -> vector<32x256xf32>
    %124 = arith.addf %119, %123 : vector<32x256xf32>
    %c48_118 = arith.constant 48 : index
    %c0_119 = arith.constant 0 : index
    %125 = vector.load %arg15[%c48_118, %c0_119] : memref<96x256xbf16, #tpu.memory_space<vmem>>, vector<32x256xbf16>
    %c2_120 = arith.constant 2 : index
    %c0_121 = arith.constant 0 : index
    %c0_122 = arith.constant 0 : index
    %126 = vector.load %arg7[%c2_120, %c0_121, %c0_122] : memref<5x256x256xbf16, #tpu.memory_space<vmem>>, vector<1x256x256xbf16>
    %127 = vector.shape_cast %126 : vector<1x256x256xbf16> to vector<256x256xbf16>
    %cst_123 = arith.constant dense<0.000000e+00> : vector<32x256xf32>
    %128 = tpu.matmul %125, %127, %cst_123 {dimension_numbers = #tpu.dot_dimension_numbers<[1], [0], [0], [1], [0, 0, 1, 1], [], []>} : vector<32x256xbf16>, vector<256x256xbf16>, vector<32x256xf32> -> vector<32x256xf32>
    %129 = arith.addf %124, %128 : vector<32x256xf32>
    %c49_124 = arith.constant 49 : index
    %c0_125 = arith.constant 0 : index
    %130 = vector.load %arg15[%c49_124, %c0_125] : memref<96x256xbf16, #tpu.memory_space<vmem>>, vector<32x256xbf16>
    %c3_126 = arith.constant 3 : index
    %c0_127 = arith.constant 0 : index
    %c0_128 = arith.constant 0 : index
    %131 = vector.load %arg7[%c3_126, %c0_127, %c0_128] : memref<5x256x256xbf16, #tpu.memory_space<vmem>>, vector<1x256x256xbf16>
    %132 = vector.shape_cast %131 : vector<1x256x256xbf16> to vector<256x256xbf16>
    %cst_129 = arith.constant dense<0.000000e+00> : vector<32x256xf32>
    %133 = tpu.matmul %130, %132, %cst_129 {dimension_numbers = #tpu.dot_dimension_numbers<[1], [0], [0], [1], [0, 0, 1, 1], [], []>} : vector<32x256xbf16>, vector<256x256xbf16>, vector<32x256xf32> -> vector<32x256xf32>
    %134 = arith.addf %129, %133 : vector<32x256xf32>
    %c50_130 = arith.constant 50 : index
    %c0_131 = arith.constant 0 : index
    %135 = vector.load %arg15[%c50_130, %c0_131] : memref<96x256xbf16, #tpu.memory_space<vmem>>, vector<32x256xbf16>
    %c4_132 = arith.constant 4 : index
    %c0_133 = arith.constant 0 : index
    %c0_134 = arith.constant 0 : index
    %136 = vector.load %arg7[%c4_132, %c0_133, %c0_134] : memref<5x256x256xbf16, #tpu.memory_space<vmem>>, vector<1x256x256xbf16>
    %137 = vector.shape_cast %136 : vector<1x256x256xbf16> to vector<256x256xbf16>
    %cst_135 = arith.constant dense<0.000000e+00> : vector<32x256xf32>
    %138 = tpu.matmul %135, %137, %cst_135 {dimension_numbers = #tpu.dot_dimension_numbers<[1], [0], [0], [1], [0, 0, 1, 1], [], []>} : vector<32x256xbf16>, vector<256x256xbf16>, vector<32x256xf32> -> vector<32x256xf32>
    %139 = arith.addf %134, %138 : vector<32x256xf32>
    %140 = vector.broadcast %85 : vector<1x256xf32> to vector<32x256xf32>
    %141 = arith.addf %139, %140 : vector<32x256xf32>
    %cst_136 = arith.constant 0.000000e+00 : f32
    %142 = vector.broadcast %cst_136 : f32 to vector<32x256xf32>
    %143 = arith.maximumf %141, %142 : vector<32x256xf32>
    %144 = arith.truncf %143 : vector<32x256xf32> to vector<32x256xbf16>
    %c48_137 = arith.constant 48 : index
    %c0_138 = arith.constant 0 : index
    %145 = vector.load %arg16[%c48_137, %c0_138] : memref<96x256xbf16, #tpu.memory_space<vmem>>, vector<32x256xbf16>
    tpu.vector_store %arg16[%c48_137, %c0_138], %144 {strides = array<i32>} : memref<96x256xbf16, #tpu.memory_space<vmem>>, vector<32x256xbf16>,
    %c0_i32_139 = arith.constant 0 : i32
    %146 = arith.cmpi eq, %arg1, %c0_i32_139 : i32
    %147 = arith.extui %146 : i1 to i32
    %c0_i32_140 = arith.constant 0 : i32
    %148 = arith.cmpi ne, %147, %c0_i32_140 : i32
    scf.if %148 {
      %cst_253 = arith.constant 0.000000e+00 : bf16
      %257 = vector.broadcast %cst_253 : bf16 to vector<32x256xbf16>
      %c0_254 = arith.constant 0 : index
      %c0_255 = arith.constant 0 : index
      %258 = vector.load %arg16[%c0_254, %c0_255] : memref<96x256xbf16, #tpu.memory_space<vmem>>, vector<32x256xbf16>
      tpu.vector_store %arg16[%c0_254, %c0_255], %257 {strides = array<i32>} : memref<96x256xbf16, #tpu.memory_space<vmem>>, vector<32x256xbf16>,
    } else {
    }
    %c1_i32_141 = arith.constant 1 : i32
    %149 = arith.addi %arg1, %c1_i32_141 : i32
    %c32_i32_142 = arith.constant 32 : i32
    %150 = arith.muli %149, %c32_i32_142 : i32
    %c8_i32_143 = arith.constant 8 : i32
    %151 = arith.addi %150, %c8_i32_143 : i32
    %c16_i32_144 = arith.constant 16 : i32
    %152 = arith.cmpi sgt, %151, %c16_i32_144 : i32
    %153 = arith.extui %152 : i1 to i32
    %c0_i32_145 = arith.constant 0 : i32
    %154 = arith.cmpi ne, %153, %c0_i32_145 : i32
    scf.if %154 {
      %c32_i32_253 = arith.constant 32 : i32
      %257 = arith.muli %arg1, %c32_i32_253 : i32
      %c32_i32_254 = arith.constant 32 : i32
      %258 = arith.subi %257, %c32_i32_254 : i32
      %259 = tpu.iota {dimensions = array<i32: 0>} : vector<96x1xi32>
      %260 = vector.broadcast %258 : i32 to vector<96x1xi32>
      %261 = arith.addi %260, %259 : vector<96x1xi32>
      %c0_255 = arith.constant 0 : index
      %c0_256 = arith.constant 0 : index
      %262 = vector.load %arg16[%c0_255, %c0_256] : memref<96x256xbf16, #tpu.memory_space<vmem>>, vector<96x256xbf16>
      %c16_i32_257 = arith.constant 16 : i32
      %263 = vector.broadcast %c16_i32_257 : i32 to vector<96x1xi32>
      %264 = arith.cmpi slt, %261, %263 : vector<96x1xi32>
      %cst_258 = arith.constant 0.000000e+00 : bf16
      %265 = vector.broadcast %cst_258 : bf16 to vector<96x256xbf16>
      %266 = vector.shape_cast %264 : vector<96x1xi1> to vector<96x1xi1>
      %267 = vector.broadcast %266 : vector<96x1xi1> to vector<96x256xi1>
      %268 = arith.select %267, %262, %265 : vector<96x256xi1>, vector<96x256xbf16>
      %c0_259 = arith.constant 0 : index
      %c0_260 = arith.constant 0 : index
      %269 = vector.load %arg16[%c0_259, %c0_260] : memref<96x256xbf16, #tpu.memory_space<vmem>>, vector<96x256xbf16>
      tpu.vector_store %arg16[%c0_259, %c0_260], %268 {strides = array<i32>} : memref<96x256xbf16, #tpu.memory_space<vmem>>, vector<96x256xbf16>,
    } else {
    }
    %c0_146 = arith.constant 0 : index
    %c0_147 = arith.constant 0 : index
    %155 = vector.load %arg10[%c0_146, %c0_147] : memref<1x256xf32, #tpu.memory_space<vmem>>, vector<1x256xf32>
    %c14_148 = arith.constant 14 : index
    %c0_149 = arith.constant 0 : index
    %156 = vector.load %arg16[%c14_148, %c0_149] : memref<96x256xbf16, #tpu.memory_space<vmem>>, vector<32x256xbf16>
    %c0_150 = arith.constant 0 : index
    %c0_151 = arith.constant 0 : index
    %c0_152 = arith.constant 0 : index
    %157 = vector.load %arg9[%c0_150, %c0_151, %c0_152] : memref<5x256x256xbf16, #tpu.memory_space<vmem>>, vector<1x256x256xbf16>
    %158 = vector.shape_cast %157 : vector<1x256x256xbf16> to vector<256x256xbf16>
    %cst_153 = arith.constant dense<0.000000e+00> : vector<32x256xf32>
    %159 = tpu.matmul %156, %158, %cst_153 {dimension_numbers = #tpu.dot_dimension_numbers<[1], [0], [0], [1], [0, 0, 1, 1], [], []>} : vector<32x256xbf16>, vector<256x256xbf16>, vector<32x256xf32> -> vector<32x256xf32>
    %c15_154 = arith.constant 15 : index
    %c0_155 = arith.constant 0 : index
    %160 = vector.load %arg16[%c15_154, %c0_155] : memref<96x256xbf16, #tpu.memory_space<vmem>>, vector<32x256xbf16>
    %c1_156 = arith.constant 1 : index
    %c0_157 = arith.constant 0 : index
    %c0_158 = arith.constant 0 : index
    %161 = vector.load %arg9[%c1_156, %c0_157, %c0_158] : memref<5x256x256xbf16, #tpu.memory_space<vmem>>, vector<1x256x256xbf16>
    %162 = vector.shape_cast %161 : vector<1x256x256xbf16> to vector<256x256xbf16>
    %cst_159 = arith.constant dense<0.000000e+00> : vector<32x256xf32>
    %163 = tpu.matmul %160, %162, %cst_159 {dimension_numbers = #tpu.dot_dimension_numbers<[1], [0], [0], [1], [0, 0, 1, 1], [], []>} : vector<32x256xbf16>, vector<256x256xbf16>, vector<32x256xf32> -> vector<32x256xf32>
    %164 = arith.addf %159, %163 : vector<32x256xf32>
    %c16_160 = arith.constant 16 : index
    %c0_161 = arith.constant 0 : index
    %165 = vector.load %arg16[%c16_160, %c0_161] : memref<96x256xbf16, #tpu.memory_space<vmem>>, vector<32x256xbf16>
    %c2_162 = arith.constant 2 : index
    %c0_163 = arith.constant 0 : index
    %c0_164 = arith.constant 0 : index
    %166 = vector.load %arg9[%c2_162, %c0_163, %c0_164] : memref<5x256x256xbf16, #tpu.memory_space<vmem>>, vector<1x256x256xbf16>
    %167 = vector.shape_cast %166 : vector<1x256x256xbf16> to vector<256x256xbf16>
    %cst_165 = arith.constant dense<0.000000e+00> : vector<32x256xf32>
    %168 = tpu.matmul %165, %167, %cst_165 {dimension_numbers = #tpu.dot_dimension_numbers<[1], [0], [0], [1], [0, 0, 1, 1], [], []>} : vector<32x256xbf16>, vector<256x256xbf16>, vector<32x256xf32> -> vector<32x256xf32>
    %169 = arith.addf %164, %168 : vector<32x256xf32>
    %c17_166 = arith.constant 17 : index
    %c0_167 = arith.constant 0 : index
    %170 = vector.load %arg16[%c17_166, %c0_167] : memref<96x256xbf16, #tpu.memory_space<vmem>>, vector<32x256xbf16>
    %c3_168 = arith.constant 3 : index
    %c0_169 = arith.constant 0 : index
    %c0_170 = arith.constant 0 : index
    %171 = vector.load %arg9[%c3_168, %c0_169, %c0_170] : memref<5x256x256xbf16, #tpu.memory_space<vmem>>, vector<1x256x256xbf16>
    %172 = vector.shape_cast %171 : vector<1x256x256xbf16> to vector<256x256xbf16>
    %cst_171 = arith.constant dense<0.000000e+00> : vector<32x256xf32>
    %173 = tpu.matmul %170, %172, %cst_171 {dimension_numbers = #tpu.dot_dimension_numbers<[1], [0], [0], [1], [0, 0, 1, 1], [], []>} : vector<32x256xbf16>, vector<256x256xbf16>, vector<32x256xf32> -> vector<32x256xf32>
    %174 = arith.addf %169, %173 : vector<32x256xf32>
    %c18_172 = arith.constant 18 : index
    %c0_173 = arith.constant 0 : index
    %175 = vector.load %arg16[%c18_172, %c0_173] : memref<96x256xbf16, #tpu.memory_space<vmem>>, vector<32x256xbf16>
    %c4_174 = arith.constant 4 : index
    %c0_175 = arith.constant 0 : index
    %c0_176 = arith.constant 0 : index
    %176 = vector.load %arg9[%c4_174, %c0_175, %c0_176] : memref<5x256x256xbf16, #tpu.memory_space<vmem>>, vector<1x256x256xbf16>
    %177 = vector.shape_cast %176 : vector<1x256x256xbf16> to vector<256x256xbf16>
    %cst_177 = arith.constant dense<0.000000e+00> : vector<32x256xf32>
    %178 = tpu.matmul %175, %177, %cst_177 {dimension_numbers = #tpu.dot_dimension_numbers<[1], [0], [0], [1], [0, 0, 1, 1], [], []>} : vector<32x256xbf16>, vector<256x256xbf16>, vector<32x256xf32> -> vector<32x256xf32>
    %179 = arith.addf %174, %178 : vector<32x256xf32>
    %180 = vector.broadcast %155 : vector<1x256xf32> to vector<32x256xf32>
    %181 = arith.addf %179, %180 : vector<32x256xf32>
    %cst_178 = arith.constant 0.000000e+00 : f32
    %182 = vector.broadcast %cst_178 : f32 to vector<32x256xf32>
    %183 = arith.maximumf %181, %182 : vector<32x256xf32>
    %184 = arith.truncf %183 : vector<32x256xf32> to vector<32x256xbf16>
    %c16_179 = arith.constant 16 : index
    %c0_180 = arith.constant 0 : index
    %185 = vector.load %arg15[%c16_179, %c0_180] : memref<96x256xbf16, #tpu.memory_space<vmem>>, vector<32x256xbf16>
    tpu.vector_store %arg15[%c16_179, %c0_180], %184 {strides = array<i32>} : memref<96x256xbf16, #tpu.memory_space<vmem>>, vector<32x256xbf16>,
    %c46_181 = arith.constant 46 : index
    %c0_182 = arith.constant 0 : index
    %186 = vector.load %arg16[%c46_181, %c0_182] : memref<96x256xbf16, #tpu.memory_space<vmem>>, vector<32x256xbf16>
    %c0_183 = arith.constant 0 : index
    %c0_184 = arith.constant 0 : index
    %c0_185 = arith.constant 0 : index
    %187 = vector.load %arg9[%c0_183, %c0_184, %c0_185] : memref<5x256x256xbf16, #tpu.memory_space<vmem>>, vector<1x256x256xbf16>
    %188 = vector.shape_cast %187 : vector<1x256x256xbf16> to vector<256x256xbf16>
    %cst_186 = arith.constant dense<0.000000e+00> : vector<32x256xf32>
    %189 = tpu.matmul %186, %188, %cst_186 {dimension_numbers = #tpu.dot_dimension_numbers<[1], [0], [0], [1], [0, 0, 1, 1], [], []>} : vector<32x256xbf16>, vector<256x256xbf16>, vector<32x256xf32> -> vector<32x256xf32>
    %c47_187 = arith.constant 47 : index
    %c0_188 = arith.constant 0 : index
    %190 = vector.load %arg16[%c47_187, %c0_188] : memref<96x256xbf16, #tpu.memory_space<vmem>>, vector<32x256xbf16>
    %c1_189 = arith.constant 1 : index
    %c0_190 = arith.constant 0 : index
    %c0_191 = arith.constant 0 : index
    %191 = vector.load %arg9[%c1_189, %c0_190, %c0_191] : memref<5x256x256xbf16, #tpu.memory_space<vmem>>, vector<1x256x256xbf16>
    %192 = vector.shape_cast %191 : vector<1x256x256xbf16> to vector<256x256xbf16>
    %cst_192 = arith.constant dense<0.000000e+00> : vector<32x256xf32>
    %193 = tpu.matmul %190, %192, %cst_192 {dimension_numbers = #tpu.dot_dimension_numbers<[1], [0], [0], [1], [0, 0, 1, 1], [], []>} : vector<32x256xbf16>, vector<256x256xbf16>, vector<32x256xf32> -> vector<32x256xf32>
    %194 = arith.addf %189, %193 : vector<32x256xf32>
    %c48_193 = arith.constant 48 : index
    %c0_194 = arith.constant 0 : index
    %195 = vector.load %arg16[%c48_193, %c0_194] : memref<96x256xbf16, #tpu.memory_space<vmem>>, vector<32x256xbf16>
    %c2_195 = arith.constant 2 : index
    %c0_196 = arith.constant 0 : index
    %c0_197 = arith.constant 0 : index
    %196 = vector.load %arg9[%c2_195, %c0_196, %c0_197] : memref<5x256x256xbf16, #tpu.memory_space<vmem>>, vector<1x256x256xbf16>
    %197 = vector.shape_cast %196 : vector<1x256x256xbf16> to vector<256x256xbf16>
    %cst_198 = arith.constant dense<0.000000e+00> : vector<32x256xf32>
    %198 = tpu.matmul %195, %197, %cst_198 {dimension_numbers = #tpu.dot_dimension_numbers<[1], [0], [0], [1], [0, 0, 1, 1], [], []>} : vector<32x256xbf16>, vector<256x256xbf16>, vector<32x256xf32> -> vector<32x256xf32>
    %199 = arith.addf %194, %198 : vector<32x256xf32>
    %c49_199 = arith.constant 49 : index
    %c0_200 = arith.constant 0 : index
    %200 = vector.load %arg16[%c49_199, %c0_200] : memref<96x256xbf16, #tpu.memory_space<vmem>>, vector<32x256xbf16>
    %c3_201 = arith.constant 3 : index
    %c0_202 = arith.constant 0 : index
    %c0_203 = arith.constant 0 : index
    %201 = vector.load %arg9[%c3_201, %c0_202, %c0_203] : memref<5x256x256xbf16, #tpu.memory_space<vmem>>, vector<1x256x256xbf16>
    %202 = vector.shape_cast %201 : vector<1x256x256xbf16> to vector<256x256xbf16>
    %cst_204 = arith.constant dense<0.000000e+00> : vector<32x256xf32>
    %203 = tpu.matmul %200, %202, %cst_204 {dimension_numbers = #tpu.dot_dimension_numbers<[1], [0], [0], [1], [0, 0, 1, 1], [], []>} : vector<32x256xbf16>, vector<256x256xbf16>, vector<32x256xf32> -> vector<32x256xf32>
    %204 = arith.addf %199, %203 : vector<32x256xf32>
    %c50_205 = arith.constant 50 : index
    %c0_206 = arith.constant 0 : index
    %205 = vector.load %arg16[%c50_205, %c0_206] : memref<96x256xbf16, #tpu.memory_space<vmem>>, vector<32x256xbf16>
    %c4_207 = arith.constant 4 : index
    %c0_208 = arith.constant 0 : index
    %c0_209 = arith.constant 0 : index
    %206 = vector.load %arg9[%c4_207, %c0_208, %c0_209] : memref<5x256x256xbf16, #tpu.memory_space<vmem>>, vector<1x256x256xbf16>
    %207 = vector.shape_cast %206 : vector<1x256x256xbf16> to vector<256x256xbf16>
    %cst_210 = arith.constant dense<0.000000e+00> : vector<32x256xf32>
    %208 = tpu.matmul %205, %207, %cst_210 {dimension_numbers = #tpu.dot_dimension_numbers<[1], [0], [0], [1], [0, 0, 1, 1], [], []>} : vector<32x256xbf16>, vector<256x256xbf16>, vector<32x256xf32> -> vector<32x256xf32>
    %209 = arith.addf %204, %208 : vector<32x256xf32>
    %210 = vector.broadcast %155 : vector<1x256xf32> to vector<32x256xf32>
    %211 = arith.addf %209, %210 : vector<32x256xf32>
    %cst_211 = arith.constant 0.000000e+00 : f32
    %212 = vector.broadcast %cst_211 : f32 to vector<32x256xf32>
    %213 = arith.maximumf %211, %212 : vector<32x256xf32>
    %214 = arith.truncf %213 : vector<32x256xf32> to vector<32x256xbf16>
    %c48_212 = arith.constant 48 : index
    %c0_213 = arith.constant 0 : index
    %215 = vector.load %arg15[%c48_212, %c0_213] : memref<96x256xbf16, #tpu.memory_space<vmem>>, vector<32x256xbf16>
    tpu.vector_store %arg15[%c48_212, %c0_213], %214 {strides = array<i32>} : memref<96x256xbf16, #tpu.memory_space<vmem>>, vector<32x256xbf16>,
    %c0_i32_214 = arith.constant 0 : i32
    %216 = arith.cmpi eq, %arg1, %c0_i32_214 : i32
    %217 = arith.extui %216 : i1 to i32
    %c0_i32_215 = arith.constant 0 : i32
    %218 = arith.cmpi ne, %217, %c0_i32_215 : i32
    scf.if %218 {
      %cst_253 = arith.constant 0.000000e+00 : bf16
      %257 = vector.broadcast %cst_253 : bf16 to vector<32x256xbf16>
      %c0_254 = arith.constant 0 : index
      %c0_255 = arith.constant 0 : index
      %258 = vector.load %arg15[%c0_254, %c0_255] : memref<96x256xbf16, #tpu.memory_space<vmem>>, vector<32x256xbf16>
      tpu.vector_store %arg15[%c0_254, %c0_255], %257 {strides = array<i32>} : memref<96x256xbf16, #tpu.memory_space<vmem>>, vector<32x256xbf16>,
    } else {
    }
    %c1_i32_216 = arith.constant 1 : i32
    %219 = arith.addi %arg1, %c1_i32_216 : i32
    %c32_i32_217 = arith.constant 32 : i32
    %220 = arith.muli %219, %c32_i32_217 : i32
    %c8_i32_218 = arith.constant 8 : i32
    %221 = arith.addi %220, %c8_i32_218 : i32
    %c16_i32_219 = arith.constant 16 : i32
    %222 = arith.cmpi sgt, %221, %c16_i32_219 : i32
    %223 = arith.extui %222 : i1 to i32
    %c0_i32_220 = arith.constant 0 : i32
    %224 = arith.cmpi ne, %223, %c0_i32_220 : i32
    scf.if %224 {
      %c32_i32_253 = arith.constant 32 : i32
      %257 = arith.muli %arg1, %c32_i32_253 : i32
      %c32_i32_254 = arith.constant 32 : i32
      %258 = arith.subi %257, %c32_i32_254 : i32
      %259 = tpu.iota {dimensions = array<i32: 0>} : vector<96x1xi32>
      %260 = vector.broadcast %258 : i32 to vector<96x1xi32>
      %261 = arith.addi %260, %259 : vector<96x1xi32>
      %c0_255 = arith.constant 0 : index
      %c0_256 = arith.constant 0 : index
      %262 = vector.load %arg15[%c0_255, %c0_256] : memref<96x256xbf16, #tpu.memory_space<vmem>>, vector<96x256xbf16>
      %c16_i32_257 = arith.constant 16 : i32
      %263 = vector.broadcast %c16_i32_257 : i32 to vector<96x1xi32>
      %264 = arith.cmpi slt, %261, %263 : vector<96x1xi32>
      %cst_258 = arith.constant 0.000000e+00 : bf16
      %265 = vector.broadcast %cst_258 : bf16 to vector<96x256xbf16>
      %266 = vector.shape_cast %264 : vector<96x1xi1> to vector<96x1xi1>
      %267 = vector.broadcast %266 : vector<96x1xi1> to vector<96x256xi1>
      %268 = arith.select %267, %262, %265 : vector<96x256xi1>, vector<96x256xbf16>
      %c0_259 = arith.constant 0 : index
      %c0_260 = arith.constant 0 : index
      %269 = vector.load %arg15[%c0_259, %c0_260] : memref<96x256xbf16, #tpu.memory_space<vmem>>, vector<96x256xbf16>
      tpu.vector_store %arg15[%c0_259, %c0_260], %268 {strides = array<i32>} : memref<96x256xbf16, #tpu.memory_space<vmem>>, vector<96x256xbf16>,
    } else {
    }
    %c0_221 = arith.constant 0 : index
    %c0_222 = arith.constant 0 : index
    %225 = vector.load %arg12[%c0_221, %c0_222] : memref<1x256xf32, #tpu.memory_space<vmem>>, vector<1x256xf32>
    %c30 = arith.constant 30 : index
    %c0_223 = arith.constant 0 : index
    %226 = vector.load %arg15[%c30, %c0_223] : memref<96x256xbf16, #tpu.memory_space<vmem>>, vector<32x256xbf16>
    %c0_224 = arith.constant 0 : index
    %c0_225 = arith.constant 0 : index
    %c0_226 = arith.constant 0 : index
    %227 = vector.load %arg11[%c0_224, %c0_225, %c0_226] : memref<5x256x256xbf16, #tpu.memory_space<vmem>>, vector<1x256x256xbf16>
    %228 = vector.shape_cast %227 : vector<1x256x256xbf16> to vector<256x256xbf16>
    %cst_227 = arith.constant dense<0.000000e+00> : vector<32x256xf32>
    %229 = tpu.matmul %226, %228, %cst_227 {dimension_numbers = #tpu.dot_dimension_numbers<[1], [0], [0], [1], [0, 0, 1, 1], [], []>} : vector<32x256xbf16>, vector<256x256xbf16>, vector<32x256xf32> -> vector<32x256xf32>
    %c31 = arith.constant 31 : index
    %c0_228 = arith.constant 0 : index
    %230 = vector.load %arg15[%c31, %c0_228] : memref<96x256xbf16, #tpu.memory_space<vmem>>, vector<32x256xbf16>
    %c1_229 = arith.constant 1 : index
    %c0_230 = arith.constant 0 : index
    %c0_231 = arith.constant 0 : index
    %231 = vector.load %arg11[%c1_229, %c0_230, %c0_231] : memref<5x256x256xbf16, #tpu.memory_space<vmem>>, vector<1x256x256xbf16>
    %232 = vector.shape_cast %231 : vector<1x256x256xbf16> to vector<256x256xbf16>
    %cst_232 = arith.constant dense<0.000000e+00> : vector<32x256xf32>
    %233 = tpu.matmul %230, %232, %cst_232 {dimension_numbers = #tpu.dot_dimension_numbers<[1], [0], [0], [1], [0, 0, 1, 1], [], []>} : vector<32x256xbf16>, vector<256x256xbf16>, vector<32x256xf32> -> vector<32x256xf32>
    %234 = arith.addf %229, %233 : vector<32x256xf32>
    %c32_233 = arith.constant 32 : index
    %c0_234 = arith.constant 0 : index
    %235 = vector.load %arg15[%c32_233, %c0_234] : memref<96x256xbf16, #tpu.memory_space<vmem>>, vector<32x256xbf16>
    %c2_235 = arith.constant 2 : index
    %c0_236 = arith.constant 0 : index
    %c0_237 = arith.constant 0 : index
    %236 = vector.load %arg11[%c2_235, %c0_236, %c0_237] : memref<5x256x256xbf16, #tpu.memory_space<vmem>>, vector<1x256x256xbf16>
    %237 = vector.shape_cast %236 : vector<1x256x256xbf16> to vector<256x256xbf16>
    %cst_238 = arith.constant dense<0.000000e+00> : vector<32x256xf32>
    %238 = tpu.matmul %235, %237, %cst_238 {dimension_numbers = #tpu.dot_dimension_numbers<[1], [0], [0], [1], [0, 0, 1, 1], [], []>} : vector<32x256xbf16>, vector<256x256xbf16>, vector<32x256xf32> -> vector<32x256xf32>
    %239 = arith.addf %234, %238 : vector<32x256xf32>
    %c33 = arith.constant 33 : index
    %c0_239 = arith.constant 0 : index
    %240 = vector.load %arg15[%c33, %c0_239] : memref<96x256xbf16, #tpu.memory_space<vmem>>, vector<32x256xbf16>
    %c3_240 = arith.constant 3 : index
    %c0_241 = arith.constant 0 : index
    %c0_242 = arith.constant 0 : index
    %241 = vector.load %arg11[%c3_240, %c0_241, %c0_242] : memref<5x256x256xbf16, #tpu.memory_space<vmem>>, vector<1x256x256xbf16>
    %242 = vector.shape_cast %241 : vector<1x256x256xbf16> to vector<256x256xbf16>
    %cst_243 = arith.constant dense<0.000000e+00> : vector<32x256xf32>
    %243 = tpu.matmul %240, %242, %cst_243 {dimension_numbers = #tpu.dot_dimension_numbers<[1], [0], [0], [1], [0, 0, 1, 1], [], []>} : vector<32x256xbf16>, vector<256x256xbf16>, vector<32x256xf32> -> vector<32x256xf32>
    %244 = arith.addf %239, %243 : vector<32x256xf32>
    %c34 = arith.constant 34 : index
    %c0_244 = arith.constant 0 : index
    %245 = vector.load %arg15[%c34, %c0_244] : memref<96x256xbf16, #tpu.memory_space<vmem>>, vector<32x256xbf16>
    %c4_245 = arith.constant 4 : index
    %c0_246 = arith.constant 0 : index
    %c0_247 = arith.constant 0 : index
    %246 = vector.load %arg11[%c4_245, %c0_246, %c0_247] : memref<5x256x256xbf16, #tpu.memory_space<vmem>>, vector<1x256x256xbf16>
    %247 = vector.shape_cast %246 : vector<1x256x256xbf16> to vector<256x256xbf16>
    %cst_248 = arith.constant dense<0.000000e+00> : vector<32x256xf32>
    %248 = tpu.matmul %245, %247, %cst_248 {dimension_numbers = #tpu.dot_dimension_numbers<[1], [0], [0], [1], [0, 0, 1, 1], [], []>} : vector<32x256xbf16>, vector<256x256xbf16>, vector<32x256xf32> -> vector<32x256xf32>
    %249 = arith.addf %244, %248 : vector<32x256xf32>
    %250 = vector.broadcast %225 : vector<1x256xf32> to vector<32x256xf32>
    %251 = arith.addf %249, %250 : vector<32x256xf32>
    %cst_249 = arith.constant 0.000000e+00 : f32
    %252 = vector.broadcast %cst_249 : f32 to vector<32x256xf32>
    %253 = arith.maximumf %251, %252 : vector<32x256xf32>
    %c0_250 = arith.constant 0 : index
    %c0_251 = arith.constant 0 : index
    %c0_252 = arith.constant 0 : index
    %254 = vector.load %arg13[%c0_250, %c0_251, %c0_252] : memref<1x32x256xf32, #tpu.memory_space<vmem>>, vector<1x32x256xf32>
    %255 = vector.shape_cast %254 : vector<1x32x256xf32> to vector<32x256xf32>
    %256 = vector.shape_cast %253 : vector<32x256xf32> to vector<1x32x256xf32>
    tpu.vector_store %arg13[%c0_250, %c0_251, %c0_252], %256 {strides = array<i32>} : memref<1x32x256xf32, #tpu.memory_space<vmem>>, vector<1x32x256xf32>,
    return
  }
  func.func @transform_0(%arg0: i32, %arg1: i32) -> (i32, i32, i32) {
    %c0_i32 = arith.constant 0 : i32
    %c0_i32_0 = arith.constant 0 : i32
    return %arg0, %arg1, %c0_i32 : i32, i32, i32
  }
  func.func @transform_1(%arg0: i32, %arg1: i32) -> (i32, i32, i32) {
    %c1_i32 = arith.constant 1 : i32
    %0 = arith.muli %arg1, %c1_i32 : i32
    %c1_i32_0 = arith.constant 1 : i32
    %1 = arith.subi %0, %c1_i32_0 : i32
    %c0_i32 = arith.constant 0 : i32
    %2 = arith.maxsi %1, %c0_i32 : i32
    %c0_i32_1 = arith.constant 0 : i32
    %c0_i32_2 = arith.constant 0 : i32
    return %arg0, %2, %c0_i32_1 : i32, i32, i32
  }
  func.func @transform_2(%arg0: i32, %arg1: i32) -> (i32, i32, i32) {
    %c1_i32 = arith.constant 1 : i32
    %0 = arith.addi %arg1, %c1_i32 : i32
    %c1_i32_0 = arith.constant 1 : i32
    %1 = arith.muli %0, %c1_i32_0 : i32
    %c0_i32 = arith.constant 0 : i32
    %2 = arith.minsi %1, %c0_i32 : i32
    %c0_i32_1 = arith.constant 0 : i32
    %c0_i32_2 = arith.constant 0 : i32
    return %arg0, %2, %c0_i32_1 : i32, i32, i32
  }
  func.func @transform_3(%arg0: i32, %arg1: i32) -> (i32, i32, i32) {
    %c0_i32 = arith.constant 0 : i32
    %c0_i32_0 = arith.constant 0 : i32
    %c0_i32_1 = arith.constant 0 : i32
    %c0_i32_2 = arith.constant 0 : i32
    return %c0_i32, %c0_i32_0, %c0_i32_1 : i32, i32, i32
  }
  func.func @transform_4(%arg0: i32, %arg1: i32) -> (i32, i32) {
    %c0_i32 = arith.constant 0 : i32
    %c0_i32_0 = arith.constant 0 : i32
    %c0_i32_1 = arith.constant 0 : i32
    return %c0_i32, %c0_i32_0 : i32, i32
  }
  func.func @transform_5(%arg0: i32, %arg1: i32) -> (i32, i32, i32) {
    %c0_i32 = arith.constant 0 : i32
    %c0_i32_0 = arith.constant 0 : i32
    %c0_i32_1 = arith.constant 0 : i32
    %c0_i32_2 = arith.constant 0 : i32
    return %c0_i32, %c0_i32_0, %c0_i32_1 : i32, i32, i32
  }
  func.func @transform_6(%arg0: i32, %arg1: i32) -> (i32, i32) {
    %c0_i32 = arith.constant 0 : i32
    %c0_i32_0 = arith.constant 0 : i32
    %c0_i32_1 = arith.constant 0 : i32
    return %c0_i32, %c0_i32_0 : i32, i32
  }
  func.func @transform_7(%arg0: i32, %arg1: i32) -> (i32, i32, i32) {
    %c0_i32 = arith.constant 0 : i32
    %c0_i32_0 = arith.constant 0 : i32
    %c0_i32_1 = arith.constant 0 : i32
    %c0_i32_2 = arith.constant 0 : i32
    return %c0_i32, %c0_i32_0, %c0_i32_1 : i32, i32, i32
  }
  func.func @transform_8(%arg0: i32, %arg1: i32) -> (i32, i32) {
    %c0_i32 = arith.constant 0 : i32
    %c0_i32_0 = arith.constant 0 : i32
    %c0_i32_1 = arith.constant 0 : i32
    return %c0_i32, %c0_i32_0 : i32, i32
  }
  func.func @transform_9(%arg0: i32, %arg1: i32) -> (i32, i32, i32) {
    %c0_i32 = arith.constant 0 : i32
    %c0_i32_0 = arith.constant 0 : i32
    %c0_i32_1 = arith.constant 0 : i32
    %c0_i32_2 = arith.constant 0 : i32
    return %c0_i32, %c0_i32_0, %c0_i32_1 : i32, i32, i32
  }
  func.func @transform_10(%arg0: i32, %arg1: i32) -> (i32, i32) {
    %c0_i32 = arith.constant 0 : i32
    %c0_i32_0 = arith.constant 0 : i32
    %c0_i32_1 = arith.constant 0 : i32
    return %c0_i32, %c0_i32_0 : i32, i32
  }
  func.func @transform_11(%arg0: i32, %arg1: i32) -> (i32, i32, i32) {
    %c0_i32 = arith.constant 0 : i32
    %c0_i32_0 = arith.constant 0 : i32
    return %arg0, %arg1, %c0_i32 : i32, i32, i32
  }
}

</mosaic_0001>

<bundles_post_ra>
// kernel: decnn_conv_forward.1
= control target key start
LH: loop header
LB: loop body
LE: loop exit
PB: predicated region body
PF: predicated region fallthrough
CT: control target
= control target key end

     0   :  { %s16643_s0 = inlined_call_operand.vmem [shape: bf16[2,32,16], index: 0, kind: input, shape index: {}, may-alias: {0,1,2}]   ;;  %s16644_s1 = inlined_call_operand.vmem [shape: bf16[2,32,16], index: 1, kind: input, shape index: {}, may-alias: {0,1,2}]   ;;  %s16645_s2 = inlined_call_operand.vmem [shape: bf16[2,32,16], index: 2, kind: input, shape index: {}, may-alias: {0,1,2}]   ;;  %s16646_s3 = inlined_call_operand.vmem [shape: bf16[5,16,256], index: 3, kind: input, shape index: {}]   ;;  %s16647_s4 = inlined_call_operand.vmem [shape: f32[1,256], index: 4, kind: input, shape index: {}]   ;;  %s16648_s5 = inlined_call_operand.hbm [shape: bf16[5,256,256], index: 5, kind: input, shape index: {}]   ;;  %s16649_s6 = inlined_call_operand.vmem [shape: f32[1,256], index: 6, kind: input, shape index: {}]   ;;  %s16650_s7 = inlined_call_operand.hbm [shape: bf16[5,256,256], index: 7, kind: input, shape index: {}]   ;;  %s16651_s8 = inlined_call_operand.vmem [shape: f32[1,256], index: 8, kind: input, shape index: {}]   ;;  %s16652_s9 = inlined_call_operand.hbm [shape: bf16[5,256,256], index: 9, kind: input, shape index: {}]   ;;  %s16653_s10 = inlined_call_operand.vmem [shape: f32[1,256], index: 10, kind: input, shape index: {}]   ;;  %s16654_s11 = inlined_call_operand.vmem [shape: f32[2,32,256], index: 11, kind: output, shape index: {}]  }
   0x1   :  { %16666 = sst [smem:[#allocation27_spill]] %s16650_s7 }
   0x2   :  { %16 = vsyncpa [#allocation6], 0 }
   0x3   :  { %17 = vsyncpa [#allocation8], 0  ;;  %s14533_s17 = smov 0   ;;  %s14535_s18 = smov 0  }
   0x4   :  { %s14537_s19 = smov 0  }
   0x5 LB: > { %16667 = sst [smem:[#allocation12_spill]] %s14459_s18  ;;  %s10005_s20 = sadd.s32 4294967295, %s14463_s19   ;;  %s14463_s19 = sphi %s14537_s19, %s23_s19   ;;  %s14459_s18 = sphi %s14535_s18, %s16707_s18   ;;  %s14455_s17 = sphi %s14533_s17, %s16706_s17  }
   0x6   : > { %p10007_p0 = scmp.ge.s32.totalorder %s14463_s19, 1  ;;  %p332_p1 = scmp.lt.s32.totalorder %s14463_s19, 3 }
   0x7   : > { %p14551_p2 = scmp.eq.s32.totalorder %s10005_s20, 0  ;;  %s16669_s7 = sld [smem:[#allocation27_spill]] }
   0x8   : > { %p14558_p3 = pnand %p10007_p0, %p332_p1  ;;  %s14465_s26 = smov [#allocation7]  }
   0x9   : > { %s368_s27 = sshll.u32 %s14465_s26, 4  ;;  %s35_s29 = sadd.s32 1, %s14459_s18  ;;  %s369_s27 = int_to_ptr.vmem [resolvable:$true] %s368_s27 }
   0xa   : > { %p14294_p4 = pneg %p14558_p3  ;;  %p37_p6 = scmp.ge.s32.totalorder %s35_s29, 2 }
   0xb   : > { %s14466_s30 = smov 128   ;;  %s14467_s12 = smov 8  }
   0xc   : > { %p14566_p5 = pnand %p14551_p2, %p14294_p4  ;;  %s16709_s29 = smov (%p37_p6, %s35_s29), 0 }
   0xd   : > { %s366_s24 = sshll.u32 %s16669_s7, 4  ;;  %s349_s15 = sshll.u32 %s16648_s5, 4  ;;  %s367_s24 = int_to_ptr.hbm [resolvable:$true] %s366_s24  ;;  %s350_s15 = int_to_ptr.hbm [resolvable:$true] %s349_s15 }
   0xe   : > { %14300 = dma.hbm_to_vmem [thread:$0]  (!%p14566_p5), %s367_s24, 20480, %s369_s27, [#allocation8], %s14466_s30, %s14466_s30, %s14467_s12  }
   0xf   : > { %s14468_s16 = smov [#allocation5]   ;;  %s383_s26 = sshll.u32 %s16652_s9, 4  ;;  %s384_s26 = int_to_ptr.hbm [resolvable:$true] %s383_s26 }
  0x10   : > { %s351_s20 = sshll.u32 %s14468_s16, 4  ;;  %s14469_s7 = smov [#allocation9]   ;;  %s352_s20 = int_to_ptr.vmem [resolvable:$true] %s351_s20 }
  0x11   : > { %14297 = dma.hbm_to_vmem [thread:$0]  (!%p14566_p5), %s350_s15, 20480, %s352_s20, [#allocation6], %s14466_s30, %s14466_s30, %s14467_s12  }
  0x12   : > { %s385_s18 = sshll.u32 %s14469_s7, 4  ;;  %455 = sbr.rel (%p14558_p3) target bundleno = 1357 (0x54d), region = 64  ;;  %s386_s18 = int_to_ptr.vmem [resolvable:$true] %s385_s18 }
  0x13   : > { %14303 = dma.hbm_to_vmem [thread:$0]  (!%p14566_p5), %s384_s26, 20480, %s386_s18, [#allocation8], %s14466_s30, %s14466_s30, %s14467_s12  }
  0x17   : > { %14446 = dma.done.wait (%p14551_p2), [#allocation6], 20480  }
  0x18   : > { %14448 = vsyncadd (%p14551_p2), [#allocation6], 4294946816 }
  0x19   : > { %14450 = dma.done.wait (%p14551_p2), [#allocation8], 40960  }
  0x1a   : > { %14452 = vsyncadd (%p14551_p2), [#allocation8], 4294926336  ;;  %p540_p7 = scmp.lt.s32.totalorder %s14455_s17, 1  ;;  %vm597_vm0 = vcmask 125952   ;;  %v10040_v0 = vld [vmem:[%s16646_s3] sm:$0xf] }
  0x1b   : > { %v13415_v1 = vld [vmem:[%s16646_s3 + $0x4] sm:$0xf0]  ;;  %v13414_v2 = vld [vmem:[%s16646_s3 + $0x4] sm:$0xf]  ;;  %v10042_v4 = vld [vmem:[%s16646_s3 + $0x8] sm:$0xf0] }
  0x1c   : > { %s16711_s17 = smov (!%p540_p7, %s14455_s17), 1  ;;  %v10041_v3 = vor.u32 %v13415_v1, %v10040_v0  ;;  %v10045_v6 = vor.u32 %v13414_v2, %v10042_v4  ;;  %v10028_v10 = vld [vmem:[%s16646_s3 + $0x10] sm:$0xf]  ;;  %v13417_v11 = vld [vmem:[%s16646_s3 + $0x14] sm:$0xf0]  ;;  %v14470_v21 = vmov 0  }
  0x1d   : > { %s13410_s7 = sshll.u32 %s16711_s17, 4  ;;  %v13416_v12 = vld [vmem:[%s16646_s3 + $0x14] sm:$0xf]  ;;  %v10029_v13 = vor.u32 %v13417_v11, %v10028_v10  ;;  %v10030_v14 = vld [vmem:[%s16646_s3 + $0x18] sm:$0xf0]  ;;  %vm692_vm1 = vcmask 130048  }
  0x1e   : > { %s14603_s25 = scalar_lea.vmem %s16643_s0, %s13410_s7  ;;  %s560_s16 = scalar_lea.vmem %s16644_s1, %s13410_s7  ;;  %769 = vmatpush.bf16.msra.mxu2 %v10041_v3  ;;  %788 = vmatpush.bf16.msra.mxu3 %v10045_v6  ;;  %v10054_v15 = vld [vmem:[%s16646_s3 + $0x20] sm:$0xf]  ;;  %v10033_v16 = vor.u32 %v13416_v12, %v10030_v14  ;;  %v13419_v17 = vld [vmem:[%s16646_s3 + $0x24] sm:$0xf0]  ;;  %v13418_v18 = vld [vmem:[%s16646_s3 + $0x24] sm:$0xf] }
  0x1f   : > { %v593_v5 = vld [vmem:[%s14603_s25] sm:$0xf]  ;;  %v603_v7 = vld [vmem:[%s560_s16 + $0x4] sm:$0xf]  ;;  %s14625_s18 = scalar_lea.vmem %s16645_s2, %s13410_s7  ;;  %v604_v8 = vld [vmem:[%s560_s16 + $0x8] sm:$0xf]  ;;  %706 = vmatpush.bf16.msra.mxu0 %v10029_v13  ;;  %v10055_v19 = vor.u32 %v13419_v17, %v10054_v15 }
  0x20   : > { %598 = vst.msk [vmem:[#allocation2 + $0x10] sm:$0xf] %vm597_vm0, %v593_v5  ;;  %v605_v9 = vld [vmem:[%s560_s16 + $0xc] sm:$0xf]  ;;  %725 = vmatpush.bf16.msra.mxu1 %v10033_v16  ;;  %v594_v24 = vld [vmem:[%s14603_s25 + $0x4] sm:$0xf] }
  0x21   : > { %607 = vst.msk [vmem:[#allocation2 + $0x4] sm:$0xf] %vm597_vm0, %v603_v7  ;;  %v10056_v20 = vld [vmem:[%s16646_s3 + $0x28] sm:$0xf0]  ;;  %v10072_v26 = vld [vmem:[%s16646_s3 + $0x30] sm:$0xf] }
  0x22   : > { %608 = vst.msk [vmem:[#allocation2 + $0x8] sm:$0xf] %vm597_vm0, %v604_v8  ;;  %v10059_v22 = vor.u32 %v13418_v18, %v10056_v20  ;;  %v596_v23 = vld [vmem:[%s14603_s25 + $0xc] sm:$0xf]  ;;  %v13422_v27 = vld [vmem:[%s16646_s3 + $0x34] sm:$0xf0] }
  0x23   : > { %609 = vst.msk [vmem:[#allocation2 + $0xc] sm:$0xf] %vm597_vm0, %v605_v9  ;;  %828 = vmatpush.bf16.msrb.mxu0 %v10055_v19  ;;  %v10073_v28 = vor.u32 %v13422_v27, %v10072_v26  ;;  %v13421_v29 = vld [vmem:[%s16646_s3 + $0x34] sm:$0xf]  ;;  %v10074_v30 = vld [vmem:[%s16646_s3 + $0x38] sm:$0xf0] }
  0x24   : > { %623 = vst.msk [vmem:[#allocation2 + $0x4] sm:$0xf] %vm597_vm0, %v14470_v21  ;;  %847 = vmatpush.bf16.msrb.mxu1 %v10059_v22  ;;  %v10077_v32 = vor.u32 %v13421_v29, %v10074_v30  ;;  %vm740_vm2 = vcmask 1044480   ;;  %v595_v50 = vld [vmem:[%s14603_s25 + $0x8] sm:$0xf]  ;;  %vm978_vm5 = vcmask 1046528  }
  0x25   : > { %624 = vst.msk [vmem:[#allocation2 + $0x8] sm:$0xf] %vm597_vm0, %v14470_v21  ;;  %932 = vmatpush.bf16.msrb.mxu2 %v10073_v28  ;;  %vm655_vm3 = vsmask.f32 4352  ;;  %v10086_v59 = vld [vmem:[%s16646_s3 + $0x40] sm:$0xf] }
  0x26   : > { %625 = vst.msk [vmem:[#allocation2 + $0xc] sm:$0xf] %vm597_vm0, %v14470_v21  ;;  %951 = vmatpush.bf16.msrb.mxu3 %v10077_v32  ;;  %v13424_v60 = vld [vmem:[%s16646_s3 + $0x44] sm:$0xf0]  ;;  %v13423_v61 = vld [vmem:[%s16646_s3 + $0x44] sm:$0xf] }
  0x27   : > { %v14662_v25 = vld [vmem:[#allocation2 + $0x10] sm:$0xf]  ;;  %601 = vst.msk [vmem:[#allocation2 + $0x1c] sm:$0xf] %vm597_vm0, %v596_v23  ;;  %v10087_v1 = vor.u32 %v13424_v60, %v10086_v59  ;;  %v10088_v2 = vld [vmem:[%s16646_s3 + $0x48] sm:$0xf0] }
  0x28   : > { %599 = vst.msk [vmem:[#allocation2 + $0x14] sm:$0xf] %vm597_vm0, %v594_v24  ;;  %v650_v34 = vunpack.c.l.b16 %v14662_v25  ;;  %v10091_v3 = vor.u32 %v13423_v61, %v10088_v2  ;;  %v610_v7 = vld [vmem:[%s14625_s18] sm:$0xf]  ;;  %v10100_v13 = vld [vmem:[%s16646_s3 + $0x10] sm:$0xf] }
  0x29   : > { %600 = vst.msk [vmem:[#allocation2 + $0x18] sm:$0xf] %vm597_vm0, %v595_v50  ;;  %v13428_v14 = vld [vmem:[%s16646_s3 + $0x14] sm:$0xf0]  ;;  %v13427_v15 = vld [vmem:[%s16646_s3 + $0x14] sm:$0xf] }
  0x2a   : > { %614 = vst.msk [vmem:[#allocation2 + $0x20] sm:$0xf] %vm597_vm0, %v610_v7  ;;  %v10101_v19 = vor.u32 %v13428_v14, %v10100_v13  ;;  %v10102_v20 = vld [vmem:[%s16646_s3 + $0x18] sm:$0xf0]  ;;  %vm888_vm4 = vsmask.f32 7424 }
  0x2b   : > { %v14274_v31 = vld [vmem:[#allocation2 + $0x4] sm:$0x8]  ;;  %626 = vst.msk [vmem:[#allocation2 + $0x20] sm:$0xf] %vm597_vm0, %v14470_v21  ;;  %v10105_v22 = vor.u32 %v13427_v15, %v10102_v20  ;;  %v13430_v25 = vld [vmem:[%s16646_s3 + $0x24] sm:$0xf0] }
  0x2c   : > { %v14280_v33 = vld [vmem:[#allocation2 + $0x4] sm:$0xf0]   ;;  %v611_v27 = vld [vmem:[%s14625_s18 + $0x4] sm:$0xf]  ;;  %v10158_v20 = vld [vmem:[%s16646_s3 + $0x40] sm:$0xf] }
  0x2d   : > { %v14679_v35 = vld [vmem:[#allocation2 + $0x8] sm:$0xff]   ;;  %v14275_v36 = vor.u32 %v14280_v33, %v14274_v31  ;;  %615 = vst.msk [vmem:[#allocation2 + $0x24] sm:$0xf] %vm597_vm0, %v611_v27  ;;  %v13425_v7 = vld [vmem:[%s16646_s3 + $0x4] sm:$0xf]  ;;  %vm14471_vm6 = vmmov 1  }
  0x2e   : > { %v14249_v37 = vunpack.c.h.b16 %v14679_v35  ;;  %v892_v12 = vshll.u32 %v14679_v35, 16  ;;  %v890_v16 = vshrl.u32 %v14679_v35, 16  ;;  %627 = vst.msk [vmem:[#allocation2 + $0x24] sm:$0xf] %vm597_vm0, %v14470_v21  ;;  %vm14886_vm7 = vmpackc.low %vm14471_vm6, %vm14471_vm6  ;;  %vm14472_vm8 = vmmov 0   ;;  %s13413_s24 = sshll.u32 %s16711_s17, 6 }
  0x2f   : > { %v657_v38 = vshrl.u32 %v14275_v36, 16  ;;  %v660_v39 = vshll.u32 %v14275_v36, 16  ;;  %v741_v41 = vrot.slane %v14275_v36, 3  ;;  %v638_v42 = vld [vmem:[#allocation2 + $0x14] sm:$0xf]  ;;  %1621 = vst [vmem:[#allocation3 + $0x10] sm:$0xff] %v14470_v21  ;;  %vm15037_vm9 = vmpackc.low %vm14472_vm8, %vm14472_vm8  ;;  %s16601_s21 = scalar_lea.vmem %s16654_s11, %s13413_s24 }
  0x30   : > { %v653_v40 = vpack.c.b16 %v650_v34, %v14249_v37  ;;  %v14684_v48 = vunpack.c.l.b16 %v638_v42  ;;  %v635_v49 = vld [vmem:[#allocation2 + $0x14] sm:$0x7]  ;;  %v894_v17 = vrot.slane %v892_v12, 1  ;;  %v871_v26 = vld [vmem:[#allocation2 + $0x18] sm:$0x1]  ;;  %1622 = vst [vmem:[#allocation3 + $0x18] sm:$0xff] %v14470_v21 }
  0x31   : > { %v659_v43 = vrot.slane %v657_v38, 3  ;;  %v662_v44 = vrot.slane %v660_v39, 4  ;;  %v738_v56 = vunpack.c.l.b16 %v635_v49  ;;  %v14716_v11 = vld [vmem:[#allocation2 + $0x10] sm:$0xff]  ;;  %v884_v29 = vunpack.c.l.b16 %v871_v26  ;;  %v14750_v33 = vld [vmem:[#allocation2 + $0x18] sm:$0xff]   ;;  %v10160_v26 = vld [vmem:[%s16646_s3 + $0x48] sm:$0xf0] }
  0x32   : > { %v742_v45 = vrot.slane %v653_v40, 3  ;;  %v665_v46 = vshrl.u32 %v653_v40, 16  ;;  %v668_v47 = vshll.u32 %v653_v40, 16  ;;  %v654_v57 = vpack.c.b16 %v14684_v48, %v14684_v48  ;;  %v14752_v36 = vld [vmem:[#allocation2 + $0x20] sm:$0xf]  ;;  %1620 = vst [vmem:[#allocation3 + $0x8] sm:$0xff] %v14470_v21 }
  0x33   : > { %v663_v52 = vor.u32 %v662_v44, %v659_v43  ;;  %v739_v62 = vpack.c.b16 %v738_v56, %v738_v56  ;;  %v897_v18 = vshll.u32 %v14716_v11, 16  ;;  %v895_v23 = vor.u32 %v894_v17, %v890_v16  ;;  %v14278_v37 = vld [vmem:[#allocation2 + $0x14] sm:$0x8]  ;;  %v14281_v38 = vld [vmem:[#allocation2 + $0x14] sm:$0xf0]   ;;  %4929 = vst [vmem:[#allocation4 + $0x10] sm:$0xff] %v14470_v21 }
  0x34   : > { %v743_v51 = vsel %vm740_vm2, %v741_v41, %v742_v45  ;;  %v667_v53 = vrot.slane %v665_v46, 3  ;;  %v670_v54 = vrot.slane %v668_v47, 4  ;;  %v674_v63 = vshrl.u32 %v654_v57, 16  ;;  %v10128_v56 = vld [vmem:[%s16646_s3 + $0x28] sm:$0xf0]  ;;  %4930 = vst [vmem:[#allocation4 + $0x18] sm:$0xff] %v14470_v21 }
  0x35   : > { %10046 = vmatmul.msk.bf16.vlgmr.msra.gmra.mxu2 %vm692_vm1, %v743_v51  ;;  %10048 = vmatmul.msk.bf16.vlgmr.msra.gmra.mxu3 %vm692_vm1, %v743_v51  ;;  %v677_v0 = vshll.u32 %v654_v57, 16  ;;  %v744_v4 = vrot.slane %v739_v62, 3  ;;  %v899_v24 = vrot.slane %v897_v18, 1  ;;  %v14742_v30 = vpack.c.b16 %v884_v29, %v884_v29  ;;  %v14264_v57 = vld [vmem:[#allocation2 + $0x8] sm:$0xf0]  ;;  %4928 = vst [vmem:[#allocation4 + $0x8] sm:$0xff] %v14470_v21 }
  0x36   : > { %v671_v55 = vor.u32 %v670_v54, %v667_v53  ;;  %v676_v5 = vrot.slane %v674_v63, 3  ;;  %1147 = vmatpush.bf16.msra.mxu2 %v10101_v19  ;;  %1166 = vmatpush.bf16.msra.mxu3 %v10105_v22  ;;  %v901_v31 = vshrl.u32 %v14716_v11, 16  ;;  %v14257_v41 = vunpack.c.h.b16 %v14750_v33  ;;  %v1082_v59 = vld [vmem:[#allocation2 + $0x24] sm:$0xf]  ;;  %v13435_v22 = vld [vmem:[%s16646_s3 + $0x44] sm:$0xf0] }
  0x37   : > { %v679_v6 = vrot.slane %v677_v0, 4  ;;  %v745_v8 = vsel %vm740_vm2, %v742_v45, %v744_v4  ;;  %v900_v28 = vsel %vm888_vm4, %v895_v23, %v899_v24  ;;  %v905_v32 = vshll.u32 %v14742_v30, 16  ;;  %v13434_v23 = vld [vmem:[%s16646_s3 + $0x44] sm:$0xf] }
  0x38   : > { %v672_v58 = vsel %vm655_vm3, %v663_v52, %v671_v55  ;;  %v903_v39 = vor.u32 %v901_v31, %v899_v24  ;;  %v1093_v42 = vunpack.c.l.b16 %v14752_v36  ;;  %v14756_v43 = vor.u32 %v14281_v38, %v14278_v37  ;;  %v10126_v52 = vld [vmem:[%s16646_s3 + $0x20] sm:$0xf]  ;;  %v13433_v31 = vld [vmem:[%s16646_s3 + $0x34] sm:$0xf0]  ;;  %v10146_v38 = vld [vmem:[%s16646_s3 + $0x38] sm:$0xf0] }
  0x39   : > { %10034 = vmatmul.msk.bf16.vlgmr.msra.gmra.mxu0 %vm692_vm1, %v672_v58  ;;  %10036 = vmatmul.msk.bf16.vlgmr.msra.gmra.mxu1 %vm692_vm1, %v672_v58  ;;  %v680_v9 = vor.u32 %v679_v6, %v676_v5  ;;  %v907_v40 = vrot.slane %v905_v32, 1  ;;  %v804_v46 = vpack.c.b16 %v14684_v48, %v650_v34  ;;  %v13429_v34 = vld [vmem:[%s16646_s3 + $0x24] sm:$0xf]  ;;  %v14265_v58 = vld [vmem:[#allocation2 + $0x8] sm:$0xe]  ;;  %v1094_v0 = vunpack.c.l.b16 %v1082_v59 }
  0x3a   : > { %1007 = vmatpush.bf16.msra.mxu0 %v10087_v1  ;;  %1026 = vmatpush.bf16.msra.mxu1 %v10091_v3  ;;  %v14761_v44 = vpack.c.b16 %v1093_v42, %v14257_v41  ;;  %v1099_v45 = vshrl.u32 %v14756_v43, 16  ;;  %v1102_v47 = vshll.u32 %v14756_v43, 16  ;;  %v10131_v60 = vor.u32 %v13429_v34, %v10128_v56  ;;  %v10112_v5 = vld [vmem:[%s16646_s3] sm:$0xf]  ;;  %v13426_v6 = vld [vmem:[%s16646_s3 + $0x4] sm:$0xf0] }
  0x3b   : > { %v681_v10 = vsel %vm655_vm3, %v671_v55, %v680_v9  ;;  %v10127_v55 = vor.u32 %v13430_v25, %v10126_v52  ;;  %v14266_v63 = vor.u32 %v14265_v58, %v14264_v57  ;;  %v980_v3 = vrot.slane %v14716_v11, 1  ;;  %v10114_v9 = vld [vmem:[%s16646_s3 + $0x8] sm:$0xf0]  ;;  %v13432_v32 = vld [vmem:[%s16646_s3 + $0x34] sm:$0xf] }
  0x3c   : > { %v1107_v49 = vshrl.u32 %v14761_v44, 16  ;;  %v1110_v50 = vshll.u32 %v14761_v44, 16  ;;  %v1101_v51 = vrot.slane %v1099_v45, 3  ;;  %v1104_v48 = vrot.slane %v1102_v47, 4 }
  0x3d   : > { %v979_v2 = vrot.slane %v14266_v63, 1  ;;  %v1097_v4 = vpack.c.b16 %v1094_v0, %v1094_v0  ;;  %v982_v18 = vrot.slane %v14742_v30, 1  ;;  %v10159_v24 = vor.u32 %v13435_v22, %v10158_v20  ;;  %v10144_v30 = vld [vmem:[%s16646_s3 + $0x30] sm:$0xf] }
  0x3e   : > { %v1109_v53 = vrot.slane %v1107_v49, 3  ;;  %v1112_v54 = vrot.slane %v1110_v50, 4  ;;  %v1105_v61 = vor.u32 %v1104_v48, %v1101_v51  ;;  %v10163_v27 = vor.u32 %v13434_v23, %v10160_v26  ;;  %v14269_v49 = vld [vmem:[#allocation2 + $0x18] sm:$0xf0]  ;;  %v14270_v50 = vld [vmem:[#allocation2 + $0x18] sm:$0xe] }
  0x3f   : > { %v981_v11 = vsel %vm978_vm5, %v979_v2, %v980_v3  ;;  %v1116_v12 = vshrl.u32 %v1097_v4, 16  ;;  %v1119_v13 = vshll.u32 %v1097_v4, 16  ;;  %v983_v19 = vsel %vm978_vm5, %v980_v3, %v982_v18  ;;  %v13431_v51 = vld [vmem:[#allocation2 + $0x20] sm:$0xff] }
  0x40   : > { %v1113_v62 = vor.u32 %v1112_v54, %v1109_v53  ;;  %v1182_v29 = vrot.slane %v14761_v44, 3  ;;  %v10145_v37 = vor.u32 %v13433_v31, %v10144_v30  ;;  %v1243_v45 = vpack.c.b16 %v1094_v0, %v1093_v42  ;;  %v13482_v26 = vld [vmem:[#allocation5 + $0x174] sm:$0xf]  ;;  %v10292_v30 = vld [vmem:[#allocation5 + $0x1f8] sm:$0xf0] }
  0x41   : > { %v1118_v14 = vrot.slane %v1116_v12, 3  ;;  %v1121_v15 = vrot.slane %v1119_v13, 4  ;;  %v14271_v52 = vor.u32 %v14270_v50, %v14269_v49  ;;  %v1329_v25 = vshll.u32 %v14750_v33, 16  ;;  %v10284_v49 = vld [vmem:[#allocation5 + $0x1e8] sm:$0xf0] }
  0x42   : > { %v1114_v1 = vsel %vm655_vm3, %v1105_v61, %v1113_v62  ;;  %v1415_v34 = vrot.slane %v13431_v51, 1  ;;  %v1327_v42 = vshrl.u32 %v14750_v33, 16  ;;  %v1334_v53 = vshll.u32 %v13431_v51, 16  ;;  %v10218_v50 = vld [vmem:[#allocation5 + $0x160] sm:$0xf] }
  0x43   : > { %v1122_v16 = vor.u32 %v1121_v15, %v1118_v14  ;;  %v1414_v36 = vrot.slane %v14271_v52, 1  ;;  %v1331_v48 = vrot.slane %v1329_v25, 1  ;;  %v1338_v3 = vshrl.u32 %v13431_v51, 16  ;;  %v13481_v51 = vld [vmem:[#allocation5 + $0x164] sm:$0xf0] }
  0x44   : > { %v1336_v56 = vrot.slane %v1334_v53, 1  ;;  %v10219_v25 = vor.u32 %v13481_v51, %v10218_v50  ;;  %v10252_v51 = vld [vmem:[#allocation5 + $0x1a8] sm:$0xf0] }
  0x45   : > { %10047 = vmatmul.msk.bf16.gmra.mxu2 %vm692_vm1, %v745_v8  ;;  %10049 = vmatmul.msk.bf16.gmra.mxu3 %vm692_vm1, %v745_v8  ;;  %v10113_v8 = vor.u32 %v13426_v6, %v10112_v5  ;;  %v1123_v17 = vsel %vm655_vm3, %v1113_v62, %v1122_v16  ;;  %v1416_v54 = vsel %vm978_vm5, %v1414_v36, %v1415_v34  ;;  %v13497_v36 = vld [vmem:[#allocation5 + $0x1e4] sm:$0xf0] }
  0x49   : > { %10035 = vmatmul.msk.bf16.gmra.mxu0 %vm692_vm1, %v681_v10  ;;  %10037 = vmatmul.msk.bf16.gmra.mxu1 %vm692_vm1, %v681_v10  ;;  %v10117_v10 = vor.u32 %v13425_v7, %v10114_v9 }
  0x55   : > { %10078 = vmatmul.msk.bf16.vlgmr.msrb.gmra.mxu2 %vm692_vm1, %v900_v28  ;;  %10080 = vmatmul.msk.bf16.vlgmr.msrb.gmra.mxu3 %vm692_vm1, %v900_v28  ;;  %v1181_v28 = vrot.slane %v14756_v43, 3  ;;  %v1079_v43 = vld [vmem:[#allocation2 + $0x24] sm:$0x7] }
  0x56   : > { %1267 = vmatpush.bf16.msrb.mxu2 %v10127_v55  ;;  %1286 = vmatpush.bf16.msrb.mxu3 %v10131_v60  ;;  %v1332_v55 = vor.u32 %v1331_v48, %v1327_v42 }
  0x57   : > { %v1183_v41 = vsel %vm740_vm2, %v1181_v28, %v1182_v29 }
  0x58   : > { %v1337_v60 = vsel %vm888_vm4, %v1332_v55, %v1336_v56  ;;  %v10212_v55 = vld [vmem:[#allocation5 + $0x158] sm:$0xf0] }
  0x59   : > { %10060 = vmatmul.msk.bf16.vlgmr.msrb.gmra.mxu0 %vm692_vm1, %v14679_v35  ;;  %10062 = vmatmul.msk.bf16.vlgmr.msrb.gmra.mxu1 %vm692_vm1, %v14679_v35  ;;  %v908_v35 = vsel %vm888_vm4, %v903_v39, %v907_v40  ;;  %v10149_v39 = vor.u32 %v13432_v32, %v10146_v38  ;;  %v612_v40 = vld [vmem:[%s14625_s18 + $0x8] sm:$0xf]  ;;  %v10226_v32 = vld [vmem:[#allocation5 + $0x170] sm:$0xf] }
  0x5a   : > { %1209 = vmatpush.bf16.msrb.mxu0 %v10113_v8  ;;  %1228 = vmatpush.bf16.msrb.mxu1 %v10117_v10  ;;  %616 = vst.msk [vmem:[#allocation2 + $0x28] sm:$0xf] %vm597_vm0, %v612_v40  ;;  %v1340_v8 = vor.u32 %v1338_v3, %v1336_v56  ;;  %v13499_v40 = vld [vmem:[#allocation5 + $0x1f4] sm:$0xf0]  ;;  %v13494_v56 = vld [vmem:[#allocation5 + $0x1d4] sm:$0xf] }
  0x5b   : > { %628 = vst.msk [vmem:[#allocation2 + $0x28] sm:$0xf] %vm597_vm0, %v14470_v21  ;;  %v13492_v3 = vld [vmem:[#allocation5 + $0x1c4] sm:$0xf] }
  0x62   : > { %v1310_v57 = vld [vmem:[#allocation2 + $0x28] sm:$0x1] }
  0x63   : > { %v1322_v61 = vunpack.c.l.b16 %v1310_v57 }
  0x65   : > { %10079 = vmatmul.msk.bf16.gmra.mxu2 %vm692_vm1, %v908_v35  ;;  %10081 = vmatmul.msk.bf16.gmra.mxu3 %vm692_vm1, %v908_v35  ;;  %v1179_v35 = vunpack.c.l.b16 %v1079_v43  ;;  %v13480_v43 = vld [vmem:[#allocation5 + $0x164] sm:$0xf] }
  0x67   : > { %v1180_v44 = vpack.c.b16 %v1179_v35, %v1179_v35  ;;  %v10220_v35 = vld [vmem:[#allocation5 + $0x168] sm:$0xf0] }
  0x69   : > { %10061 = vmatmul.msk.bf16.gmra.mxu0 %vm692_vm1, %v804_v46  ;;  %10063 = vmatmul.msk.bf16.gmra.mxu1 %vm692_vm1, %v804_v46  ;;  %v1184_v46 = vrot.slane %v1180_v44, 3  ;;  %v13496_v44 = vld [vmem:[#allocation5 + $0x1e4] sm:$0xf] }
  0x6a   : > { %v10287_v52 = vor.u32 %v13496_v44, %v10284_v49  ;;  %v13472_v44 = vld [vmem:[#allocation5 + $0x124] sm:$0xf] }
  0x6b   : > { %v1185_v47 = vsel %vm740_vm2, %v1182_v29, %v1184_v46  ;;  %v13498_v29 = vld [vmem:[#allocation5 + $0x1f4] sm:$0xf] }
  0x6c   : > { %v10295_v31 = vor.u32 %v13498_v29, %v10292_v30  ;;  %v10196_v29 = vld [vmem:[#allocation5 + $0x138] sm:$0xf0]  ;;  %v13490_v30 = vld [vmem:[#allocation5 + $0x1b4] sm:$0xf] }
  0x75   : > { %10106 = vmatmul.msk.bf16.vlgmr.msra.gmra.mxu2 %vm692_vm1, %v1114_v1  ;;  %10108 = vmatmul.msk.bf16.vlgmr.msra.gmra.mxu3 %vm692_vm1, %v1114_v1 }
  0x76   : > { %1442 = vmatpush.bf16.msra.mxu2 %v10159_v24  ;;  %1461 = vmatpush.bf16.msra.mxu3 %v10163_v27  ;;  %v10228_v27 = vld [vmem:[#allocation5 + $0x178] sm:$0xf0] }
  0x77   : > { %v10231_v28 = vor.u32 %v13482_v26, %v10228_v27 }
  0x79   : > { %10092 = vmatmul.msk.bf16.vlgmr.msra.gmra.mxu0 %vm692_vm1, %v981_v11  ;;  %10094 = vmatmul.msk.bf16.vlgmr.msra.gmra.mxu1 %vm692_vm1, %v981_v11 }
  0x7a   : > { %1369 = vmatpush.bf16.msra.mxu0 %v10145_v37  ;;  %1388 = vmatpush.bf16.msra.mxu1 %v10149_v39  ;;  %v13483_v37 = vld [vmem:[#allocation5 + $0x174] sm:$0xf0]  ;;  %v10290_v39 = vld [vmem:[#allocation5 + $0x1f0] sm:$0xf] }
  0x7b   : > { %v10227_v38 = vor.u32 %v13483_v37, %v10226_v32  ;;  %v10260_v32 = vld [vmem:[#allocation5 + $0x1b8] sm:$0xf0]  ;;  %v10194_v37 = vld [vmem:[#allocation5 + $0x130] sm:$0xf] }
  0x85   : > { %10107 = vmatmul.msk.bf16.gmra.mxu2 %vm692_vm1, %v1123_v17  ;;  %10109 = vmatmul.msk.bf16.gmra.mxu3 %vm692_vm1, %v1123_v17 }
  0x89   : > { %10093 = vmatmul.msk.bf16.gmra.mxu0 %vm692_vm1, %v983_v19  ;;  %10095 = vmatmul.msk.bf16.gmra.mxu1 %vm692_vm1, %v983_v19 }
  0x95   : > { %10132 = vmatmul.msk.bf16.vlgmr.msrb.gmra.mxu2 %vm692_vm1, %v14750_v33  ;;  %10134 = vmatmul.msk.bf16.vlgmr.msrb.gmra.mxu3 %vm692_vm1, %v14750_v33  ;;  %v1325_v33 = vpack.c.b16 %v1322_v61, %v1322_v61 }
  0x96   : > { %1978 = vmatpush.bf16.msrb.mxu2 %v10231_v28  ;;  %1997 = vmatpush.bf16.msrb.mxu3 %v10295_v31  ;;  %v13474_v28 = vld [vmem:[#allocation5 + $0x134] sm:$0xf] }
  0x97   : > { %v1417_v2 = vrot.slane %v1325_v33, 1  ;;  %v1342_v4 = vshll.u32 %v1325_v33, 16  ;;  %v13495_v33 = vld [vmem:[#allocation5 + $0x1d4] sm:$0xf0]  ;;  %v10199_v31 = vor.u32 %v13474_v28, %v10196_v29 }
  0x99   : > { %10118 = vmatmul.msk.bf16.vlgmr.msrb.gmra.mxu0 %vm692_vm1, %v1183_v41  ;;  %10120 = vmatmul.msk.bf16.vlgmr.msrb.gmra.mxu1 %vm692_vm1, %v1183_v41  ;;  %v1418_v7 = vsel %vm978_vm5, %v1415_v34, %v1417_v2  ;;  %v1344_v9 = vrot.slane %v1342_v4, 1  ;;  %v10291_v41 = vor.u32 %v13499_v40, %v10290_v39  ;;  %v10282_v34 = vld [vmem:[#allocation5 + $0x1e0] sm:$0xf]  ;;  %v10204_v2 = vld [vmem:[#allocation5 + $0x148] sm:$0xf0]  ;;  %v10263_v39 = vor.u32 %v13490_v30, %v10260_v32 }
  0x9a   : > { %1940 = vmatpush.bf16.msrb.mxu0 %v10227_v38  ;;  %v10283_v53 = vor.u32 %v13497_v36, %v10282_v34  ;;  %1998 = vmatpush.bf16.msrb.mxu3 %v10287_v52  ;;  %v13475_v38 = vld [vmem:[#allocation5 + $0x134] sm:$0xf0]  ;;  %v10186_v52 = vld [vmem:[#allocation5 + $0x120] sm:$0xf] }
  0x9b   : > { %v1345_v12 = vsel %vm888_vm4, %v1340_v8, %v1344_v9  ;;  %1959 = vmatpush.bf16.msrb.mxu1 %v10291_v41  ;;  %v10202_v8 = vld [vmem:[#allocation5 + $0x140] sm:$0xf]  ;;  %v13477_v9 = vld [vmem:[#allocation5 + $0x144] sm:$0xf0]  ;;  %v10195_v40 = vor.u32 %v13475_v38, %v10194_v37  ;;  %v10258_v41 = vld [vmem:[#allocation5 + $0x1b0] sm:$0xf] }
  0x9c   : > { %v10234_v30 = vld [vmem:[#allocation5 + $0x180] sm:$0xf] }
  0x9e   : > { %1941 = vmatpush.bf16.msrb.mxu0 %v10219_v25  ;;  %v13473_v25 = vld [vmem:[#allocation5 + $0x124] sm:$0xf0] }
  0x9f   : > { %1960 = vmatpush.bf16.msrb.mxu1 %v10283_v53  ;;  %v10187_v36 = vor.u32 %v13473_v25, %v10186_v52  ;;  %v14905_v53 = vld [vmem:[#allocation3 + $0x8] sm:$0x88]  ;;  %v13451_v52 = vld [vmem:[#allocation5 + $0x74] sm:$0xf0]  ;;  %v10418_v25 = vld [vmem:[#allocation5 + $0xf0] sm:$0xf] }
  0xa0   : > { %8236 = vst [vmem:[#allocation3 + $0x8] sm:$0xff] %v14470_v21 }
  0xa5   : > { %10133 = vmatmul.msk.bf16.gmra.mxu2 %vm692_vm1, %v1243_v45  ;;  %10135 = vmatmul.msk.bf16.gmra.mxu3 %vm692_vm1, %v1243_v45 }
  0xa9   : > { %10119 = vmatmul.msk.bf16.gmra.mxu0 %vm692_vm1, %v1185_v47  ;;  %10121 = vmatmul.msk.bf16.gmra.mxu1 %vm692_vm1, %v1185_v47  ;;  %v10223_v47 = vor.u32 %v13480_v43, %v10220_v35  ;;  %v13491_v43 = vld [vmem:[#allocation5 + $0x1b4] sm:$0xf0] }
  0xaa   : > { %v10259_v35 = vor.u32 %v13491_v43, %v10258_v41  ;;  %v10356_v41 = vld [vmem:[#allocation5 + $0x78] sm:$0xf0] }
  0xab   : > { %1979 = vmatpush.bf16.msrb.mxu2 %v10223_v47 }
  0xb5   : > { %10164 = vmatmul.msk.bf16.vlgmr.msra.gmra.mxu2 %vm692_vm1, %v1416_v54  ;;  %10166 = vmatmul.msk.bf16.vlgmr.msra.gmra.mxu3 %vm692_vm1, %v1416_v54  ;;  %v13478_v54 = vld [vmem:[#allocation5 + $0x154] sm:$0xf] }
  0xb6   : > { %v708_v58 = vpop.f32.mrf.mxu0  ;;  %v727_v59 = vpop.f32.mrf.mxu1  ;;  %v10215_v57 = vor.u32 %v13478_v54, %v10212_v55 }
  0xb7   : > { %v10276_v58 = vld [vmem:[#allocation5 + $0x1d8] sm:$0xf0]  ;;  %v10210_v59 = vld [vmem:[#allocation5 + $0x150] sm:$0xf] }
  0xb8   : > { %v771_v62 = vpop.f32.mrf.mxu2  ;;  %v790_v63 = vpop.f32.mrf.mxu3  ;;  %v10279_v61 = vor.u32 %v13494_v56, %v10276_v58  ;;  %1980 = vmatpush.bf16.msrb.mxu2 %v10215_v57  ;;  %v13470_v57 = vld [vmem:[#allocation5 + $0x114] sm:$0xf]  ;;  %v10180_v58 = vld [vmem:[#allocation5 + $0x118] sm:$0xf0] }
  0xb9   : > { %10150 = vmatmul.msk.bf16.vlgmr.msra.gmra.mxu0 %vm692_vm1, %v1337_v60  ;;  %10152 = vmatmul.msk.bf16.vlgmr.msra.gmra.mxu1 %vm692_vm1, %v1337_v60  ;;  %v13479_v60 = vld [vmem:[#allocation5 + $0x154] sm:$0xf0]  ;;  %v10274_v63 = vld [vmem:[#allocation5 + $0x1d0] sm:$0xf] }
  0xba   : > { %v10211_v62 = vor.u32 %v13479_v60, %v10210_v59  ;;  %1999 = vmatpush.bf16.msrb.mxu3 %v10279_v61  ;;  %v13486_v59 = vld [vmem:[#allocation5 + $0x194] sm:$0xf]  ;;  %v10183_v60 = vor.u32 %v13470_v57, %v10180_v58  ;;  %v10244_v61 = vld [vmem:[#allocation5 + $0x198] sm:$0xf0] }
  0xbc   : > { %1942 = vmatpush.bf16.msrb.mxu0 %v10211_v62  ;;  %v10178_v62 = vld [vmem:[#allocation5 + $0x110] sm:$0xf] }
  0xbe   : > { %v710_v0 = vpop.f32.mrf.mxu0  ;;  %v729_v1 = vpop.f32.mrf.mxu1 }
  0xbf   : > { %v10275_v0 = vor.u32 %v13495_v33, %v10274_v63  ;;  %v13476_v1 = vld [vmem:[#allocation5 + $0x144] sm:$0xf]  ;;  %v13471_v63 = vld [vmem:[#allocation5 + $0x114] sm:$0xf0]  ;;  %v10247_v33 = vor.u32 %v13486_v59, %v10244_v61  ;;  %v10348_v61 = vld [vmem:[#allocation5 + $0x68] sm:$0xf0] }
  0xc0   : > { %v773_v5 = vpop.f32.mrf.mxu2  ;;  %v792_v6 = vpop.f32.mrf.mxu3 }
  0xc1   : > { %v10207_v6 = vor.u32 %v13476_v1, %v10204_v2  ;;  %1961 = vmatpush.bf16.msrb.mxu1 %v10275_v0  ;;  %v10179_v0 = vor.u32 %v13471_v63, %v10178_v62  ;;  %v10242_v1 = vld [vmem:[#allocation5 + $0x190] sm:$0xf]  ;;  %v13487_v2 = vld [vmem:[#allocation5 + $0x194] sm:$0xf0]  ;;  %v13464_v62 = vld [vmem:[#allocation5 + $0xe4] sm:$0xf] }
  0xc3   : > { %1981 = vmatpush.bf16.msrb.mxu2 %v10207_v6  ;;  %v13468_v6 = vld [vmem:[#allocation5 + $0x104] sm:$0xf] }
  0xc5   : > { %10165 = vmatmul.msk.bf16.gmra.mxu2 %vm692_vm1, %v1418_v7  ;;  %10167 = vmatmul.msk.bf16.gmra.mxu3 %vm692_vm1, %v1418_v7  ;;  %v10268_v7 = vld [vmem:[#allocation5 + $0x1c8] sm:$0xf0] }
  0xc6   : > { %v14867_v10 = vpop.f32.mrf.mxu0  ;;  %v14869_v11 = vpop.f32.mrf.mxu1 }
  0xc7   : > { %1982 = vmatpush.bf16.msrb.mxu2 %v10199_v31  ;;  %v13485_v31 = vld [vmem:[#allocation5 + $0x184] sm:$0xf0] }
  0xc8   : > { %v14872_v13 = vpop.f32.mrf.mxu2  ;;  %v14874_v14 = vpop.f32.mrf.mxu3  ;;  %v10235_v38 = vor.u32 %v13485_v31, %v10234_v30  ;;  %v10404_v30 = vld [vmem:[#allocation5 + $0xd8] sm:$0xf0]  ;;  %v13447_v31 = vld [vmem:[#allocation5 + $0x54] sm:$0xf0] }
  0xc9   : > { %10151 = vmatmul.msk.bf16.gmra.mxu0 %vm692_vm1, %v1345_v12  ;;  %10153 = vmatmul.msk.bf16.gmra.mxu1 %vm692_vm1, %v1345_v12  ;;  %v10271_v12 = vor.u32 %v13492_v3, %v10268_v7  ;;  %v10243_v3 = vor.u32 %v13487_v2, %v10242_v1  ;;  %v10172_v7 = vld [vmem:[#allocation5 + $0x108] sm:$0xf0]  ;;  %v777_v57 = vadd.f32 %v14872_v13, %v14867_v10  ;;  %v10346_v1 = vld [vmem:[#allocation5 + $0x60] sm:$0xf]  ;;  %v13449_v2 = vld [vmem:[#allocation5 + $0x64] sm:$0xf0] }
  0xca   : > { %v796_v63 = vadd.f32 %v14874_v14, %v14869_v11  ;;  %v1709_v14 = vunpack.c.h.b16 %v14905_v53 }
  0xcb   : > { %2000 = vmatpush.bf16.msrb.mxu3 %v10271_v12 }
  0xce   : > { %v14878_v15 = vpop.f32.mrf.mxu0  ;;  %v14880_v16 = vpop.f32.mrf.mxu1 }
  0xcf   : > { %2001 = vmatpush.bf16.msrb.mxu3 %v10263_v39  ;;  %v630_v39 = vld [vmem:[%s16647_s4] sm:$0x3] }
  0xd0   : > { %v14882_v17 = vpop.f32.mrf.mxu2  ;;  %v14884_v18 = vpop.f32.mrf.mxu3 }
  0xd6   : > { %v830_v19 = vpop.f32.mrf.mxu0  ;;  %v849_v20 = vpop.f32.mrf.mxu1 }
  0xd7   : > { %v10203_v19 = vor.u32 %v13477_v9, %v10202_v8  ;;  %v10266_v20 = vld [vmem:[#allocation5 + $0x1c0] sm:$0xf]  ;;  %v13484_v8 = vld [vmem:[#allocation5 + $0x184] sm:$0xf] }
  0xd8   : > { %v934_v23 = vpop.f32.mrf.mxu2  ;;  %v953_v24 = vpop.f32.mrf.mxu3 }
  0xd9   : > { %v13493_v23 = vld [vmem:[#allocation5 + $0x1c4] sm:$0xf0]  ;;  %1943 = vmatpush.bf16.msrb.mxu0 %v10203_v19  ;;  %v10175_v19 = vor.u32 %v13468_v6, %v10172_v7 }
  0xda   : > { %v10267_v27 = vor.u32 %v13493_v23, %v10266_v20  ;;  %v10236_v20 = vld [vmem:[#allocation5 + $0x188] sm:$0xf0]  ;;  %v10170_v23 = vld [vmem:[#allocation5 + $0x100] sm:$0xf] }
  0xdb   : > { %v10239_v28 = vor.u32 %v13484_v8, %v10236_v20  ;;  %v10347_v8 = vor.u32 %v13449_v2, %v10346_v1  ;;  %v13446_v20 = vld [vmem:[#allocation5 + $0x54] sm:$0xf] }
  0xdc   : > { %1962 = vmatpush.bf16.msrb.mxu1 %v10267_v27  ;;  %v13469_v27 = vld [vmem:[#allocation5 + $0x104] sm:$0xf0] }
  0xdd   : > { %1944 = vmatpush.bf16.msrb.mxu0 %v10195_v40  ;;  %v10171_v29 = vor.u32 %v13469_v27, %v10170_v23  ;;  %v13450_v40 = vld [vmem:[#allocation5 + $0x74] sm:$0xf]  ;;  %v10340_v23 = vld [vmem:[#allocation5 + $0x58] sm:$0xf0] }
  0xde   : > { %v832_v45 = vpop.f32.mrf.mxu0  ;;  %v851_v46 = vpop.f32.mrf.mxu1  ;;  %v10359_v43 = vor.u32 %v13450_v40, %v10356_v41  ;;  %v13462_v27 = vld [vmem:[#allocation5 + $0xd4] sm:$0xf] }
  0xdf   : > { %v10188_v45 = vld [vmem:[#allocation5 + $0x128] sm:$0xf0]  ;;  %v13488_v46 = vld [vmem:[#allocation5 + $0x1a4] sm:$0xf]  ;;  %v10407_v40 = vor.u32 %v13462_v27, %v10404_v30  ;;  %v13459_v30 = vld [vmem:[#allocation5 + $0xb4] sm:$0xf0] }
  0xe0   : > { %v936_v42 = vpop.f32.mrf.mxu2  ;;  %v955_v48 = vpop.f32.mrf.mxu3  ;;  %v10191_v50 = vor.u32 %v13472_v44, %v10188_v45  ;;  %1963 = vmatpush.bf16.msrb.mxu1 %v10259_v35  ;;  %v10255_v34 = vor.u32 %v13488_v46, %v10252_v51  ;;  %v13466_v35 = vld [vmem:[#allocation5 + $0xf4] sm:$0xf]  ;;  %v10420_v44 = vld [vmem:[#allocation5 + $0xf8] sm:$0xf0]  ;;  %v10354_v45 = vld [vmem:[#allocation5 + $0x70] sm:$0xf]  ;;  %v1708_v46 = vunpack.c.l.b16 %v14905_v53 }
  0xe1   : > { %v10250_v42 = vld [vmem:[#allocation5 + $0x1a0] sm:$0xf]  ;;  %v13489_v48 = vld [vmem:[#allocation5 + $0x1a4] sm:$0xf0]  ;;  %1945 = vmatpush.bf16.msrb.mxu0 %v10187_v36  ;;  %v10423_v51 = vor.u32 %v13466_v35, %v10420_v44  ;;  %v14923_v36 = vperm.slane %v630_v39, 0 }
  0xe2   : > { %1983 = vmatpush.bf16.msrb.mxu2 %v10191_v50  ;;  %v10251_v56 = vor.u32 %v13489_v48, %v10250_v42  ;;  %2002 = vmatpush.bf16.msrb.mxu3 %v10255_v34  ;;  %v14921_v50 = vunpack.c.l.b16 %v14470_v21  ;;  %v13467_v34 = vld [vmem:[#allocation5 + $0xf4] sm:$0xf0]  ;;  %v14925_v42 = vperm.slane %v630_v39, 1  ;;  %v10355_v48 = vor.u32 %v13451_v52, %v10354_v45  ;;  %v10338_v53 = vld [vmem:[#allocation5 + $0x50] sm:$0xf] }
  0xe3   : > { %v10339_v41 = vor.u32 %v13447_v31, %v10338_v53  ;;  %v13463_v35 = vld [vmem:[#allocation5 + $0xd4] sm:$0xf0]  ;;  %v13444_v52 = vld [vmem:[#allocation5 + $0x44] sm:$0xf] }
  0xe4   : > { %1964 = vmatpush.bf16.msrb.mxu1 %v10251_v56  ;;  %v10419_v56 = vor.u32 %v13467_v34, %v10418_v25  ;;  %v14937_v13 = vpack.c.b16 %v14921_v50, %v1708_v46  ;;  %v10332_v25 = vld [vmem:[#allocation5 + $0x48] sm:$0xf0]  ;;  %v13460_v34 = vld [vmem:[#allocation5 + $0xc4] sm:$0xf] }
  0xe5   : > { %1946 = vmatpush.bf16.msrb.mxu0 %v10179_v0  ;;  %v10412_v0 = vld [vmem:[#allocation5 + $0xe8] sm:$0xf0] }
  0xe6   : > { %v14893_v4 = vpop.f32.mrf.mxu0  ;;  %v14895_v5 = vpop.f32.mrf.mxu1  ;;  %1984 = vmatpush.bf16.msrb.mxu2 %v10183_v60  ;;  %2003 = vmatpush.bf16.msrb.mxu3 %v10247_v33  ;;  %v13448_v60 = vld [vmem:[#allocation5 + $0x64] sm:$0xf]  ;;  %v10415_v7 = vor.u32 %v13464_v62, %v10412_v0  ;;  %v1728_v39 = vshll.u32 %v14937_v13, 16 }
  0xe7   : > { %v10351_v33 = vor.u32 %v13448_v60, %v10348_v61  ;;  %v864_v11 = vadd.f32 %v14895_v5, %v796_v63  ;;  %v10343_v5 = vor.u32 %v13446_v20, %v10340_v23  ;;  %v10394_v63 = vld [vmem:[#allocation5 + $0xc0] sm:$0xf]  ;;  %v10322_v20 = vld [vmem:[#allocation5 + $0x30] sm:$0xf] }
  0xe8   : > { %v14897_v24 = vpop.f32.mrf.mxu2  ;;  %v14899_v26 = vpop.f32.mrf.mxu3  ;;  %1965 = vmatpush.bf16.msrb.mxu1 %v10243_v3  ;;  %v863_v3 = vadd.f32 %v14893_v4, %v777_v57  ;;  %v10330_v57 = vld [vmem:[#allocation5 + $0x40] sm:$0xf] }
  0xe9   : > { %1947 = vmatpush.bf16.msrb.mxu0 %v10171_v29  ;;  %v798_v29 = vadd.f32 %v14884_v18, %v14880_v16 }
  0xea   : > { %1985 = vmatpush.bf16.msrb.mxu2 %v10175_v19  ;;  %2004 = vmatpush.bf16.msrb.mxu3 %v10239_v28  ;;  %v14942_v19 = vunpack.c.h.b16 %v14470_v21  ;;  %v779_v28 = vadd.f32 %v14882_v17, %v14878_v15  ;;  %v967_v44 = vadd.f32 %v14897_v24, %v863_v3  ;;  %v968_v15 = vadd.f32 %v14899_v26, %v864_v11  ;;  %v10396_v26 = vld [vmem:[#allocation5 + $0xc8] sm:$0xf0] }
  0xeb   : > { %v10335_v24 = vor.u32 %v13444_v52, %v10332_v25  ;;  %v10399_v61 = vor.u32 %v13460_v34, %v10396_v26 }
  0xec   : > { %1966 = vmatpush.bf16.msrb.mxu1 %v10235_v38  ;;  %v1725_v38 = vshrl.u32 %v14937_v13, 16  ;;  %v14953_v16 = vpack.c.b16 %v14942_v19, %v1709_v14 }
  0xed   : > { %2195 = vmatpush.bf16.msra.mxu0 %v10355_v48 }
  0xee   : > { %v14901_v47 = vpop.f32.mrf.mxu0  ;;  %v14903_v49 = vpop.f32.mrf.mxu1  ;;  %2233 = vmatpush.bf16.msra.mxu2 %v10359_v43  ;;  %2252 = vmatpush.bf16.msra.mxu3 %v10423_v51  ;;  %v10402_v43 = vld [vmem:[#allocation5 + $0xd0] sm:$0xf]  ;;  %v1742_v2 = vshrl.u32 %v14953_v16, 16  ;;  %v1745_v31 = vshll.u32 %v14953_v16, 16 }
  0xef   : > { %v10403_v17 = vor.u32 %v13463_v35, %v10402_v43  ;;  %v865_v18 = vadd.f32 %v14901_v47, %v779_v28  ;;  %v866_v45 = vadd.f32 %v14903_v49, %v798_v29  ;;  %v14961_v47 = vrot.slane %v1725_v38, 3  ;;  %v13443_v29 = vld [vmem:[#allocation5 + $0x34] sm:$0xf0]  ;;  %v13440_v43 = vld [vmem:[#allocation5 + $0x24] sm:$0xf] }
  0xf0   : > { %v14907_v54 = vpop.f32.mrf.mxu2  ;;  %v14909_v55 = vpop.f32.mrf.mxu3  ;;  %2214 = vmatpush.bf16.msra.mxu1 %v10419_v56  ;;  %v14963_v49 = vrot.slane %v1728_v39, 4  ;;  %v10323_v38 = vor.u32 %v13443_v29, %v10322_v20  ;;  %v10316_v35 = vld [vmem:[#allocation5 + $0x28] sm:$0xf0]  ;;  %v14982_v34 = vrot.slane %v1742_v2, 3  ;;  %v10308_v2 = vld [vmem:[#allocation5 + $0x18] sm:$0xf0] }
  0xf1   : > { %2196 = vmatpush.bf16.msra.mxu0 %v10347_v8  ;;  %v10324_v8 = vld [vmem:[#allocation5 + $0x38] sm:$0xf0]  ;;  %v969_v23 = vadd.f32 %v14907_v54, %v865_v18  ;;  %v970_v27 = vadd.f32 %v14909_v55, %v866_v45  ;;  %v10380_v18 = vld [vmem:[#allocation5 + $0xa8] sm:$0xf0]  ;;  %v10314_v45 = vld [vmem:[#allocation5 + $0x20] sm:$0xf] }
  0xf2   : > { %2234 = vmatpush.bf16.msra.mxu2 %v10351_v33  ;;  %2253 = vmatpush.bf16.msra.mxu3 %v10415_v7  ;;  %v13461_v33 = vld [vmem:[#allocation5 + $0xc4] sm:$0xf0]  ;;  %v13442_v7 = vld [vmem:[#allocation5 + $0x34] sm:$0xf] }
  0xf3   : > { %v10395_v3 = vor.u32 %v13461_v33, %v10394_v63  ;;  %v10327_v14 = vor.u32 %v13442_v7, %v10324_v8 }
  0xf5   : > { %2197 = vmatpush.bf16.msra.mxu0 %v10339_v41 }
  0xf6   : > { %v1009_v9 = vpop.f32.mrf.mxu0  ;;  %v1028_v12 = vpop.f32.mrf.mxu1  ;;  %2235 = vmatpush.bf16.msra.mxu2 %v10343_v5  ;;  %2254 = vmatpush.bf16.msra.mxu3 %v10407_v40  ;;  %v10386_v5 = vld [vmem:[#allocation5 + $0xb0] sm:$0xf] }
  0xf7   : > { %v10410_v9 = vld [vmem:[#allocation5 + $0xe0] sm:$0xf]  ;;  %v13465_v12 = vld [vmem:[#allocation5 + $0xe4] sm:$0xf0]  ;;  %v10387_v39 = vor.u32 %v13459_v30, %v10386_v5 }
  0xf8   : > { %v14912_v32 = vpop.f32.mrf.mxu2  ;;  %v14914_v37 = vpop.f32.mrf.mxu3  ;;  %v10411_v4 = vor.u32 %v13465_v12, %v10410_v9  ;;  %v13458_v9 = vld [vmem:[#allocation5 + $0xb4] sm:$0xf] }
  0xfa   : > { %2215 = vmatpush.bf16.msra.mxu1 %v10411_v4  ;;  %2236 = vmatpush.bf16.msra.mxu2 %v10335_v24  ;;  %v10388_v4 = vld [vmem:[#allocation5 + $0xb8] sm:$0xf0]  ;;  %v10378_v24 = vld [vmem:[#allocation5 + $0xa0] sm:$0xf] }
  0xfb   : > { %2255 = vmatpush.bf16.msra.mxu3 %v10399_v61  ;;  %v10391_v28 = vor.u32 %v13458_v9, %v10388_v4  ;;  %v1731_v9 = vor.u32 %v14963_v49, %v14961_v47  ;;  %v10370_v49 = vld [vmem:[#allocation5 + $0x90] sm:$0xf] }
  0xfe   : > { %v1011_v58 = vpop.f32.mrf.mxu0  ;;  %v1030_v59 = vpop.f32.mrf.mxu1  ;;  %2216 = vmatpush.bf16.msra.mxu1 %v10403_v17  ;;  %2237 = vmatpush.bf16.msra.mxu2 %v10327_v14  ;;  %v10319_v17 = vor.u32 %v13440_v43, %v10316_v35  ;;  %v10306_v14 = vld [vmem:[#allocation5 + $0x10] sm:$0xf]  ;;  %v13436_v35 = vld [vmem:[#allocation5 + $0x4] sm:$0xf] }
  0xff   : > { %v13445_v58 = vld [vmem:[#allocation5 + $0x44] sm:$0xf0]  ;;  %2256 = vmatpush.bf16.msra.mxu3 %v10391_v28  ;;  %v13439_v28 = vld [vmem:[#allocation5 + $0x14] sm:$0xf0] }
 0x100   : > { %v14932_v6 = vpop.f32.mrf.mxu2  ;;  %v14934_v10 = vpop.f32.mrf.mxu3  ;;  %v10331_v62 = vor.u32 %v13445_v58, %v10330_v57  ;;  %v1747_v58 = vrot.slane %v1745_v31, 4  ;;  %v10307_v47 = vor.u32 %v13439_v28, %v10306_v14 }
 0x102   : > { %2198 = vmatpush.bf16.msra.mxu0 %v10331_v62  ;;  %2217 = vmatpush.bf16.msra.mxu1 %v10395_v3  ;;  %v13457_v62 = vld [vmem:[#allocation5 + $0xa4] sm:$0xf0]  ;;  %v13454_v3 = vld [vmem:[#allocation5 + $0x94] sm:$0xf]  ;;  %v1748_v5 = vor.u32 %v1747_v58, %v14982_v34 }
 0x103   : > { %2238 = vmatpush.bf16.msra.mxu2 %v10319_v17  ;;  %v13452_v17 = vld [vmem:[#allocation5 + $0x84] sm:$0xf] }
 0x106   : > { %v1014_v46 = vpop.f32.mrf.mxu0  ;;  %v1033_v51 = vpop.f32.mrf.mxu1  ;;  %2199 = vmatpush.bf16.msra.mxu0 %v10323_v38  ;;  %2218 = vmatpush.bf16.msra.mxu1 %v10387_v39 }
 0x107   : > { %v1042_v48 = vadd.f32 %v1014_v46, %v967_v44  ;;  %v1043_v56 = vadd.f32 %v1033_v51, %v968_v15  ;;  %v13456_v44 = vld [vmem:[#allocation5 + $0xa4] sm:$0xf] }
 0x108   : > { %v14957_v59 = vpop.f32.mrf.mxu2  ;;  %v14959_v60 = vpop.f32.mrf.mxu3 }
 0x109   : > { %v1055_v0 = vadd.f32 %v14923_v36, %v1042_v48  ;;  %v1056_v1 = vadd.f32 %v14925_v42, %v1043_v56  ;;  %v10383_v48 = vor.u32 %v13456_v44, %v10380_v18  ;;  %v13441_v56 = vld [vmem:[#allocation5 + $0x24] sm:$0xf0] }
 0x10a   : > { %v10315_v61 = vor.u32 %v13441_v56, %v10314_v45 }
 0x10b   : > { %v1063_v12 = vmax.f32 %v1055_v0, 0.0  ;;  %v1064_v11 = vmax.f32 %v1056_v1, 0.0  ;;  %2257 = vmatpush.bf16.msra.mxu3 %v10383_v48  ;;  %v10379_v0 = vor.u32 %v13457_v62, %v10378_v24  ;;  %v13438_v1 = vld [vmem:[#allocation5 + $0x14] sm:$0xf]  ;;  %v13437_v62 = vld [vmem:[#allocation5 + $0x4] sm:$0xf0] }
 0x10c   : > { %2200 = vmatpush.bf16.msra.mxu0 %v10315_v61 }
 0x10d   : > { %v1069_v53 = vpack.c.bf16 %v1064_v11, %v1063_v12  ;;  %v10311_v12 = vor.u32 %v13438_v1, %v10308_v2  ;;  %v10372_v11 = vld [vmem:[#allocation5 + $0x98] sm:$0xf0]  ;;  %2219 = vmatpush.bf16.msra.mxu1 %v10379_v0  ;;  %v10362_v0 = vld [vmem:[#allocation5 + $0x80] sm:$0xf]  ;;  %v13453_v1 = vld [vmem:[#allocation5 + $0x84] sm:$0xf0] }
 0x10e   : > { %v1016_v40 = vpop.f32.mrf.mxu0  ;;  %v1035_v41 = vpop.f32.mrf.mxu1  ;;  %v10375_v30 = vor.u32 %v13454_v3, %v10372_v11  ;;  %v10363_v11 = vor.u32 %v13453_v1, %v10362_v0  ;;  %v13512_v0 = vld [vmem:[#allocation5 + $0x264] sm:$0xf]  ;;  %v10476_v1 = vld [vmem:[#allocation5 + $0x268] sm:$0xf0] }
 0x10f   : > { %v14973_v54 = vsel %vm14886_vm7, %v1069_v53, 0  ;;  %v1044_v55 = vadd.f32 %v1016_v40, %v969_v23  ;;  %v1045_v15 = vadd.f32 %v1035_v41, %v970_v27  ;;  %2239 = vmatpush.bf16.msra.mxu2 %v10311_v12  ;;  %v13455_v53 = vld [vmem:[#allocation5 + $0x94] sm:$0xf0] }
 0x110   : > { %1623 = vst [vmem:[#allocation3 + $0x20] sm:$0xff] %v14973_v54  ;;  %v14976_v46 = vpop.f32.mrf.mxu2  ;;  %v14978_v51 = vpop.f32.mrf.mxu3  ;;  %v1714_v52 = vunpack.c.l.b16 %v14973_v54  ;;  %v1715_v25 = vunpack.c.h.b16 %v14973_v54  ;;  %2258 = vmatpush.bf16.msra.mxu3 %v10375_v30  ;;  %2201 = vmatpush.bf16.msra.mxu0 %v10307_v47 }
 0x111   : > { %v1057_v26 = vadd.f32 %v14923_v36, %v1044_v55  ;;  %v1058_v57 = vadd.f32 %v14925_v42, %v1045_v15  ;;  %v10371_v55 = vor.u32 %v13455_v53, %v10370_v49  ;;  %v10300_v15 = vld [vmem:[#allocation5 + $0x8] sm:$0xf0]  ;;  %v13514_v53 = vld [vmem:[#allocation5 + $0x274] sm:$0xf] }
 0x112   : > { %v14989_v63 = vpack.c.b16 %v1714_v52, %v14921_v50  ;;  %v14994_v33 = vpack.c.b16 %v1715_v25, %v14942_v19  ;;  %v10303_v58 = vor.u32 %v13436_v35, %v10300_v15  ;;  %v13530_v35 = vld [vmem:[#allocation5 + $0x2f4] sm:$0xf] }
 0x113   : > { %v1065_v7 = vmax.f32 %v1057_v26, 0.0  ;;  %v1066_v8 = vmax.f32 %v1058_v57, 0.0  ;;  %v10364_v26 = vld [vmem:[#allocation5 + $0x88] sm:$0xf0]  ;;  %v10298_v57 = vld [vmem:[#allocation5] sm:$0xf]  ;;  %2220 = vmatpush.bf16.msra.mxu1 %v10371_v55 }
 0x114   : > { %v1733_v4 = vshrl.u32 %v14989_v63, 16  ;;  %v1736_v20 = vshll.u32 %v14989_v63, 16  ;;  %v1750_v23 = vshrl.u32 %v14994_v33, 16  ;;  %v1753_v27 = vshll.u32 %v14994_v33, 16  ;;  %2240 = vmatpush.bf16.msra.mxu2 %v10303_v58  ;;  %v4866_v55 = vld [vmem:[#allocation4 + $0x58] sm:$0xff] }
 0x115   : > { %v1070_v29 = vpack.c.bf16 %v1066_v8, %v1065_v7  ;;  %v10367_v61 = vor.u32 %v13452_v17, %v10364_v26  ;;  %v10299_v12 = vor.u32 %v13437_v62, %v10298_v57  ;;  %v4926_v26 = vsel %vm15037_vm9, %v4866_v55, 0  ;;  %v10546_v58 = vld [vmem:[#allocation5 + $0x2f0] sm:$0xf]  ;;  %v10468_v55 = vld [vmem:[#allocation5 + $0x258] sm:$0xf0] }
 0x116   : > { %v15003_v31 = vpop.f32.mrf.mxu0  ;;  %v15005_v38 = vpop.f32.mrf.mxu1  ;;  %v1735_v39 = vrot.slane %v1733_v4, 3  ;;  %v1738_v40 = vrot.slane %v1736_v20, 4  ;;  %v1752_v41 = vrot.slane %v1750_v23, 3  ;;  %v1755_v43 = vrot.slane %v1753_v27, 4  ;;  %4938 = vst [vmem:[#allocation4 + $0x58] sm:$0xff] %v4926_v26 }
 0x117   : > { %v1612_v44 = vsel %vm14886_vm7, %v1070_v29, 0  ;;  %2259 = vmatpush.bf16.msra.mxu3 %v10367_v61  ;;  %2202 = vmatpush.bf16.msra.mxu0 %v10299_v12  ;;  %v13531_v61 = vld [vmem:[#allocation5 + $0x2f4] sm:$0xf0] }
 0x118   : > { %1624 = vst [vmem:[#allocation3 + $0x28] sm:$0xff] %v1612_v44  ;;  %v15009_v18 = vpop.f32.mrf.mxu2  ;;  %v15011_v45 = vpop.f32.mrf.mxu3  ;;  %v15013_v34 = vor.u32 %v1738_v40, %v1735_v39  ;;  %v15015_v48 = vor.u32 %v1755_v43, %v1752_v41  ;;  %v1716_v56 = vunpack.c.l.b16 %v1612_v44  ;;  %v1717_v24 = vunpack.c.h.b16 %v1612_v44  ;;  %2221 = vmatpush.bf16.msra.mxu1 %v10363_v11  ;;  %v10484_v39 = vld [vmem:[#allocation5 + $0x278] sm:$0xf0] }
 0x119   : > { %v10487_v43 = vor.u32 %v13514_v53, %v10484_v39  ;;  %v10548_v44 = vld [vmem:[#allocation5 + $0x2f8] sm:$0xf0]  ;;  %v10547_v62 = vor.u32 %v13531_v61, %v10546_v58  ;;  %v13529_v53 = vld [vmem:[#allocation5 + $0x2e4] sm:$0xf0]  ;;  %v13527_v58 = vld [vmem:[#allocation5 + $0x2d4] sm:$0xf0] }
 0x11a   : > { %v1740_v2 = vsel %vm655_vm3, %v1731_v9, %v15013_v34  ;;  %v1757_v3 = vsel %vm655_vm3, %v1748_v5, %v15015_v48  ;;  %v1722_v7 = vpack.c.b16 %v1716_v56, %v1716_v56  ;;  %v1723_v8 = vpack.c.b16 %v1717_v24, %v1717_v24  ;;  %v1558_v5 = vld [vmem:[#allocation3 + $0x58] sm:$0xff] }
 0x11b   : > { %1948 = vmatmul.bf16.vlgmr.msrb.gmra.mxu0 %v1740_v2  ;;  %1967 = vmatmul.bf16.vlgmr.msrb.gmra.mxu1 %v1757_v3  ;;  %v15023_v9 = vpack.c.b16 %v1716_v56, %v1714_v52  ;;  %v15027_v27 = vpack.c.b16 %v1717_v24, %v1715_v25  ;;  %v16674_v52 = vmov 0  ;;  %v1618_v40 = vsel %vm15037_vm9, %v1558_v5, 0  ;;  %v10482_v56 = vld [vmem:[#allocation5 + $0x270] sm:$0xf]  ;;  %v13515_v24 = vld [vmem:[#allocation5 + $0x274] sm:$0xf0] }
 0x11c   : > { %1986 = vmatmul.bf16.vlgmr.msrb.gmra.mxu2 %v1740_v2  ;;  %2005 = vmatmul.bf16.vlgmr.msrb.gmra.mxu3 %v1757_v3  ;;  %v1759_v14 = vshrl.u32 %v1722_v7, 16  ;;  %v1762_v4 = vshll.u32 %v1722_v7, 16  ;;  %v1768_v20 = vshrl.u32 %v1723_v8, 16  ;;  %v1771_v23 = vshll.u32 %v1723_v8, 16  ;;  %v13528_v3 = vld [vmem:[#allocation5 + $0x2e4] sm:$0xf] }
 0x11d   : > { %v16675_v52 = vsel %vm15037_vm9, 4294967295, %v16674_v52  ;;  %v8234_v15 = vsel %vm15037_vm9, %v1618_v40, 0  ;;  %v10551_v17 = vor.u32 %v13530_v35, %v10548_v44  ;;  %2510 = vmatpush.bf16.msrb.mxu2 %v10487_v43  ;;  %v10483_v57 = vor.u32 %v13515_v24, %v10482_v56  ;;  %v10540_v7 = vld [vmem:[#allocation5 + $0x2e8] sm:$0xf0]  ;;  %v10474_v8 = vld [vmem:[#allocation5 + $0x260] sm:$0xf]  ;;  %2491 = vmatpush.bf16.msrb.mxu1 %v10547_v62 }
 0x11e   : > { %v15029_v28 = vpop.f32.mrf.mxu0  ;;  %v15031_v29 = vpop.f32.mrf.mxu1  ;;  %v1761_v30 = vrot.slane %v1759_v14, 3  ;;  %16676 = vst [vmem:[#allocation13_spill] sm:$0xff] %v16675_v52  ;;  %v1764_v54 = vrot.slane %v1762_v4, 4  ;;  %v1770_v25 = vrot.slane %v1768_v20, 3  ;;  %v1773_v41 = vrot.slane %v1771_v23, 4 }
 0x11f   : > { %8246 = vst [vmem:[#allocation3 + $0x58] sm:$0xff] %v8234_v15  ;;  %2529 = vmatpush.bf16.msrb.mxu3 %v10551_v17  ;;  %2472 = vmatpush.bf16.msrb.mxu0 %v10483_v57  ;;  %v10479_v2 = vor.u32 %v13512_v0, %v10476_v1  ;;  %v10543_v20 = vor.u32 %v13528_v3, %v10540_v7  ;;  %v13513_v23 = vld [vmem:[#allocation5 + $0x264] sm:$0xf0]  ;;  %v10538_v5 = vld [vmem:[#allocation5 + $0x2e0] sm:$0xf] }
 0x120   : > { %v15033_v47 = vpop.f32.mrf.mxu2  ;;  %v15035_v49 = vpop.f32.mrf.mxu3  ;;  %v1765_v14 = vor.u32 %v1764_v54, %v1761_v30  ;;  %v1774_v4 = vor.u32 %v1773_v41, %v1770_v25  ;;  %v10475_v39 = vor.u32 %v13513_v23, %v10474_v8  ;;  %v10539_v40 = vor.u32 %v13529_v53, %v10538_v5  ;;  %v13510_v44 = vld [vmem:[#allocation5 + $0x254] sm:$0xf]  ;;  %v10532_v30 = vld [vmem:[#allocation5 + $0x2d8] sm:$0xf0]  ;;  %v10466_v54 = vld [vmem:[#allocation5 + $0x250] sm:$0xf] }
 0x121   : > { %2511 = vmatpush.bf16.msrb.mxu2 %v10479_v2  ;;  %v13526_v15 = vld [vmem:[#allocation5 + $0x2d4] sm:$0xf]  ;;  %v10471_v17 = vor.u32 %v13510_v44, %v10468_v55  ;;  %v13511_v25 = vld [vmem:[#allocation5 + $0x254] sm:$0xf0]  ;;  %v10530_v57 = vld [vmem:[#allocation5 + $0x2d0] sm:$0xf] }
 0x122   : > { %v1766_v41 = vsel %vm655_vm3, %v15013_v34, %v1765_v14  ;;  %v1775_v56 = vsel %vm655_vm3, %v15015_v48, %v1774_v4  ;;  %2492 = vmatpush.bf16.msrb.mxu1 %v10539_v40  ;;  %v10535_v24 = vor.u32 %v13526_v15, %v10532_v30  ;;  %v10467_v26 = vor.u32 %v13511_v25, %v10466_v54  ;;  %v13508_v62 = vld [vmem:[#allocation5 + $0x244] sm:$0xf]  ;;  %v10460_v0 = vld [vmem:[#allocation5 + $0x248] sm:$0xf0]  ;;  %v10458_v3 = vld [vmem:[#allocation5 + $0x240] sm:$0xf] }
 0x123   : > { %2530 = vmatpush.bf16.msrb.mxu3 %v10543_v20  ;;  %2473 = vmatpush.bf16.msrb.mxu0 %v10475_v39  ;;  %v10531_v61 = vor.u32 %v13527_v58, %v10530_v57  ;;  %v13524_v1 = vld [vmem:[#allocation5 + $0x2c4] sm:$0xf]  ;;  %v10463_v2 = vor.u32 %v13508_v62, %v10460_v0  ;;  %v10524_v34 = vld [vmem:[#allocation5 + $0x2c8] sm:$0xf0]  ;;  %v13509_v7 = vld [vmem:[#allocation5 + $0x244] sm:$0xf0]  ;;  %v1212_v15 = vadd.f32 %v15003_v31, %v14912_v32 }
 0x124   : > { %v10527_v14 = vor.u32 %v13524_v1, %v10524_v34  ;;  %v10459_v4 = vor.u32 %v13509_v7, %v10458_v3  ;;  %v10522_v20 = vld [vmem:[#allocation5 + $0x2c0] sm:$0xf]  ;;  %v13525_v23 = vld [vmem:[#allocation5 + $0x2c4] sm:$0xf0]  ;;  %v13506_v40 = vld [vmem:[#allocation5 + $0x234] sm:$0xf] }
 0x125   : > { %2512 = vmatpush.bf16.msrb.mxu2 %v10471_v17  ;;  %v10523_v5 = vor.u32 %v13525_v23, %v10522_v20  ;;  %v10452_v44 = vld [vmem:[#allocation5 + $0x238] sm:$0xf0]  ;;  %v13522_v55 = vld [vmem:[#allocation5 + $0x2b4] sm:$0xf]  ;;  %v1231_v17 = vadd.f32 %v15005_v38, %v14914_v37  ;;  %v10450_v25 = vld [vmem:[#allocation5 + $0x230] sm:$0xf]  ;;  %v1298_v0 = vadd.f32 %v15009_v18, %v1212_v15  ;;  %v1214_v15 = vadd.f32 %v15029_v28, %v14932_v6 }
 0x126   : > { %v15047_v12 = vpop.f32.mrf.mxu0  ;;  %v15049_v11 = vpop.f32.mrf.mxu1  ;;  %2493 = vmatpush.bf16.msrb.mxu1 %v10531_v61  ;;  %v10455_v30 = vor.u32 %v13506_v40, %v10452_v44  ;;  %v10516_v54 = vld [vmem:[#allocation5 + $0x2b8] sm:$0xf0]  ;;  %v13523_v57 = vld [vmem:[#allocation5 + $0x2b4] sm:$0xf0]  ;;  %v2021_v58 = vrot.slane %v14937_v13, 3  ;;  %v2022_v61 = vrot.slane %v14989_v63, 3 }
 0x127   : > { %2531 = vmatpush.bf16.msrb.mxu3 %v10535_v24  ;;  %2474 = vmatpush.bf16.msrb.mxu0 %v10467_v26  ;;  %v10514_v26 = vld [vmem:[#allocation5 + $0x2b0] sm:$0xf]  ;;  %v15073_v32 = vld [vmem:[#allocation3 + $0x28] sm:$0x77]  ;;  %v13504_v37 = vld [vmem:[#allocation5 + $0x224] sm:$0xf]  ;;  %v1299_v1 = vadd.f32 %v15011_v45, %v1231_v17  ;;  %v1233_v17 = vadd.f32 %v15031_v29, %v14934_v10 }
 0x128   : > { %v15051_v43 = vpop.f32.mrf.mxu2  ;;  %v15053_v35 = vpop.f32.mrf.mxu3  ;;  %v10515_v31 = vor.u32 %v13523_v57, %v10514_v26  ;;  %v10444_v38 = vld [vmem:[#allocation5 + $0x228] sm:$0xf0]  ;;  %v13520_v62 = vld [vmem:[#allocation5 + $0x2a4] sm:$0xf]  ;;  %v10442_v3 = vld [vmem:[#allocation5 + $0x220] sm:$0xf]  ;;  %v2018_v29 = vunpack.c.h.b16 %v15073_v32 }
 0x129   : > { %2513 = vmatpush.bf16.msrb.mxu2 %v10463_v2  ;;  %v10447_v2 = vor.u32 %v13504_v37, %v10444_v38  ;;  %v10508_v34 = vld [vmem:[#allocation5 + $0x2a8] sm:$0xf0]  ;;  %v13505_v7 = vld [vmem:[#allocation5 + $0x224] sm:$0xf0]  ;;  %v2025_v20 = vrot.slane %v14994_v33, 3 }
 0x12a   : > { %2494 = vmatpush.bf16.msrb.mxu1 %v10523_v5  ;;  %v10511_v23 = vor.u32 %v13520_v62, %v10508_v34  ;;  %v10443_v5 = vor.u32 %v13505_v7, %v10442_v3  ;;  %v10506_v40 = vld [vmem:[#allocation5 + $0x2a0] sm:$0xf]  ;;  %v13521_v18 = vld [vmem:[#allocation5 + $0x2a4] sm:$0xf0]  ;;  %v10500_v6 = vld [vmem:[#allocation5 + $0x298] sm:$0xf0] }
 0x12b   : > { %1953 = vmatmul.bf16.gmra.mxu0 %v1766_v41  ;;  %1972 = vmatmul.bf16.gmra.mxu1 %v1775_v56  ;;  %v10434_v28 = vld [vmem:[#allocation5 + $0x210] sm:$0xf]  ;;  %v13503_v37 = vld [vmem:[#allocation5 + $0x214] sm:$0xf0]  ;;  %v10428_v7 = vld [vmem:[#allocation5 + $0x208] sm:$0xf0] }
 0x12c   : > { %1991 = vmatmul.bf16.gmra.mxu2 %v1766_v41  ;;  %2010 = vmatmul.bf16.gmra.mxu3 %v1775_v56  ;;  %v13507_v41 = vld [vmem:[#allocation5 + $0x234] sm:$0xf0]  ;;  %v10519_v56 = vor.u32 %v13522_v55, %v10516_v54  ;;  %v10507_v55 = vor.u32 %v13521_v18, %v10506_v40  ;;  %v10435_v38 = vor.u32 %v13503_v37, %v10434_v28  ;;  %v10498_v62 = vld [vmem:[#allocation5 + $0x290] sm:$0xf]  ;;  %v13501_v40 = vld [vmem:[#allocation5 + $0x204] sm:$0xf0] }
 0x12d   : > { %2532 = vmatpush.bf16.msrb.mxu3 %v10527_v14  ;;  %2475 = vmatpush.bf16.msrb.mxu0 %v10459_v4  ;;  %v10451_v24 = vor.u32 %v13507_v41, %v10450_v25  ;;  %v2024_v4 = vrot.slane %v14953_v16, 3  ;;  %v2023_v16 = vsel %vm740_vm2, %v2021_v58, %v2022_v61  ;;  %v2017_v25 = vunpack.c.l.b16 %v15073_v32  ;;  %v13502_v41 = vld [vmem:[#allocation5 + $0x214] sm:$0xf]  ;;  %v10490_v18 = vld [vmem:[#allocation5 + $0x280] sm:$0xf] }
 0x12e   : > { %v15059_v48 = vpop.f32.mrf.mxu0  ;;  %v15061_v8 = vpop.f32.mrf.mxu1  ;;  %2514 = vmatpush.bf16.msrb.mxu2 %v10455_v30  ;;  %2495 = vmatpush.bf16.msrb.mxu1 %v10515_v31  ;;  %v1301_v32 = vadd.f32 %v15035_v49, %v1233_v17  ;;  %v10620_v17 = vld [vmem:[#allocation5 + $0x378] sm:$0xf0]  ;;  %v10618_v28 = vld [vmem:[#allocation5 + $0x370] sm:$0xf]  ;;  %v13549_v37 = vld [vmem:[#allocation5 + $0x374] sm:$0xf0] }
 0x12f   : > { %v2026_v10 = vsel %vm740_vm2, %v2024_v4, %v2025_v20  ;;  %v1300_v4 = vadd.f32 %v15033_v47, %v1214_v15  ;;  %v15097_v47 = vpack.c.b16 %v2018_v29, %v2018_v29  ;;  %v1236_v29 = vadd.f32 %v15049_v11, %v14959_v60  ;;  %v13547_v11 = vld [vmem:[#allocation5 + $0x364] sm:$0xf0] }
 0x130   : > { %v15063_v53 = vpop.f32.mrf.mxu2  ;;  %v15065_v39 = vpop.f32.mrf.mxu3 }
 0x131   : > { %2533 = vmatpush.bf16.msrb.mxu3 %v10519_v56  ;;  %2476 = vmatpush.bf16.msrb.mxu0 %v10451_v24  ;;  %v10436_v56 = vld [vmem:[#allocation5 + $0x218] sm:$0xf0]  ;;  %v13518_v24 = vld [vmem:[#allocation5 + $0x294] sm:$0xf] }
 0x132   : > { %2515 = vmatpush.bf16.msrb.mxu2 %v10447_v2  ;;  %v10439_v31 = vor.u32 %v13502_v41, %v10436_v56  ;;  %2496 = vmatpush.bf16.msrb.mxu1 %v10507_v55  ;;  %v10503_v58 = vor.u32 %v13518_v24, %v10500_v6  ;;  %v13548_v41 = vld [vmem:[#allocation5 + $0x374] sm:$0xf] }
 0x135   : > { %2534 = vmatpush.bf16.msrb.mxu3 %v10511_v23  ;;  %2477 = vmatpush.bf16.msrb.mxu0 %v10443_v5  ;;  %v15095_v23 = vpack.c.b16 %v2017_v25, %v2017_v25  ;;  %v10426_v5 = vld [vmem:[#allocation5 + $0x200] sm:$0xf]  ;;  %v10684_v25 = vld [vmem:[#allocation5 + $0x3f8] sm:$0xf0] }
 0x136   : > { %v1371_v14 = vpop.f32.mrf.mxu0  ;;  %v1390_v13 = vpop.f32.mrf.mxu1  ;;  %2516 = vmatpush.bf16.msrb.mxu2 %v10439_v31  ;;  %v10427_v49 = vor.u32 %v13501_v40, %v10426_v5  ;;  %v10623_v31 = vor.u32 %v13548_v41, %v10620_v17  ;;  %v13544_v17 = vld [vmem:[#allocation5 + $0x354] sm:$0xf] }
 0x137   : > { %v1400_v44 = vadd.f32 %v1371_v14, %v1298_v0  ;;  %v1401_v45 = vadd.f32 %v1390_v13, %v1299_v1  ;;  %v13519_v0 = vld [vmem:[#allocation5 + $0x294] sm:$0xf0]  ;;  %v13500_v1 = vld [vmem:[#allocation5 + $0x204] sm:$0xf]  ;;  %v10492_v13 = vld [vmem:[#allocation5 + $0x288] sm:$0xf0] }
 0x138   : > { %v1444_v30 = vpop.f32.mrf.mxu2  ;;  %v1463_v54 = vpop.f32.mrf.mxu3  ;;  %v10499_v3 = vor.u32 %v13519_v0, %v10498_v62  ;;  %v13516_v14 = vld [vmem:[#allocation5 + $0x284] sm:$0xf]  ;;  %v10431_v55 = vor.u32 %v13500_v1, %v10428_v7  ;;  %v10619_v1 = vor.u32 %v13549_v37, %v10618_v28  ;;  %v13545_v37 = vld [vmem:[#allocation5 + $0x354] sm:$0xf0] }
 0x139   : > { %v1473_v26 = vadd.f32 %v1444_v30, %v1400_v44  ;;  %v1474_v57 = vadd.f32 %v1463_v54, %v1401_v45  ;;  %2535 = vmatpush.bf16.msrb.mxu3 %v10503_v58  ;;  %v10495_v30 = vor.u32 %v13516_v14, %v10492_v13  ;;  %v13517_v54 = vld [vmem:[#allocation5 + $0x284] sm:$0xf0]  ;;  %2478 = vmatpush.bf16.msrb.mxu0 %v10435_v38 }
 0x13a   : > { %2497 = vmatpush.bf16.msrb.mxu1 %v10499_v3  ;;  %v10491_v15 = vor.u32 %v13517_v54, %v10490_v18  ;;  %v1217_v58 = vadd.f32 %v15047_v12, %v14957_v59  ;;  %v10612_v3 = vld [vmem:[#allocation5 + $0x368] sm:$0xf0]  ;;  %2517 = vmatpush.bf16.msrb.mxu2 %v10431_v55  ;;  %v10610_v12 = vld [vmem:[#allocation5 + $0x360] sm:$0xf]  ;;  %v2027_v55 = vrot.slane %v15095_v23, 3 }
 0x13b   : > { %v1481_v2 = vadd.f32 %v1473_v26, %v14923_v36  ;;  %v1482_v34 = vadd.f32 %v1474_v57, %v14925_v42  ;;  %2203 = vmatmul.bf16.vlgmr.msra.gmra.mxu0 %v2023_v16  ;;  %2222 = vmatmul.bf16.vlgmr.msra.gmra.mxu1 %v2026_v10  ;;  %v10676_v59 = vld [vmem:[#allocation5 + $0x3e8] sm:$0xf0]  ;;  %v10611_v54 = vor.u32 %v13547_v11, %v10610_v12  ;;  %v10658_v12 = vld [vmem:[#allocation5 + $0x3c0] sm:$0xf]  ;;  %v13559_v11 = vld [vmem:[#allocation5 + $0x3c4] sm:$0xf0] }
 0x13c   : > { %2241 = vmatmul.bf16.vlgmr.msra.gmra.mxu2 %v2023_v16  ;;  %2260 = vmatmul.bf16.vlgmr.msra.gmra.mxu3 %v2026_v10  ;;  %v13564_v16 = vld [vmem:[#allocation5 + $0x3f4] sm:$0xf]  ;;  %v10682_v10 = vld [vmem:[#allocation5 + $0x3f0] sm:$0xf] }
 0x13d   : > { %v1489_v44 = vmax.f32 %v1481_v2, 0.0  ;;  %v1490_v45 = vmax.f32 %v1482_v34, 0.0  ;;  %v10687_v0 = vor.u32 %v13564_v16, %v10684_v25  ;;  %v13565_v2 = vld [vmem:[#allocation5 + $0x3f4] sm:$0xf0]  ;;  %v13546_v34 = vld [vmem:[#allocation5 + $0x364] sm:$0xf]  ;;  %2536 = vmatpush.bf16.msrb.mxu3 %v10495_v30  ;;  %2479 = vmatpush.bf16.msrb.mxu0 %v10427_v49 }
 0x13e   : > { %v1373_v56 = vpop.f32.mrf.mxu0  ;;  %v1392_v24 = vpop.f32.mrf.mxu1  ;;  %2498 = vmatpush.bf16.msrb.mxu1 %v10491_v15  ;;  %v10615_v60 = vor.u32 %v13546_v34, %v10612_v3  ;;  %2857 = vmatpush.bf16.msra.mxu2 %v10623_v31  ;;  %v2029_v30 = vrot.slane %v15097_v47, 3  ;;  %v10604_v16 = vld [vmem:[#allocation5 + $0x358] sm:$0xf0]  ;;  %v10602_v31 = vld [vmem:[#allocation5 + $0x350] sm:$0xf] }
 0x13f   : > { %v1497_v26 = vpack.c.bf16 %v1490_v45, %v1489_v44  ;;  %v1402_v57 = vadd.f32 %v1373_v56, %v1300_v4  ;;  %v1403_v6 = vadd.f32 %v1392_v24, %v1301_v32  ;;  %v10683_v4 = vor.u32 %v13565_v2, %v10682_v10  ;;  %v13562_v32 = vld [vmem:[#allocation5 + $0x3e4] sm:$0xf]  ;;  %v10674_v44 = vld [vmem:[#allocation5 + $0x3e0] sm:$0xf]  ;;  %v13563_v45 = vld [vmem:[#allocation5 + $0x3e4] sm:$0xf0] }
 0x140   : > { %v1446_v38 = vpop.f32.mrf.mxu2  ;;  %v1465_v62 = vpop.f32.mrf.mxu3  ;;  %v10679_v18 = vor.u32 %v13562_v32, %v10676_v59  ;;  %v10675_v41 = vor.u32 %v13563_v45, %v10674_v44  ;;  %v1302_v56 = vadd.f32 %v15051_v43, %v1217_v58  ;;  %v1303_v24 = vadd.f32 %v15053_v35, %v1236_v29  ;;  %v10666_v10 = vld [vmem:[#allocation5 + $0x3d0] sm:$0xf]  ;;  %v10588_v44 = vld [vmem:[#allocation5 + $0x338] sm:$0xf0] }
 0x141   : > { %v1613_v7 = vsel %vm15037_vm9, %v1497_v26, 0  ;;  %v1475_v14 = vadd.f32 %v1446_v38, %v1402_v57  ;;  %v1476_v13 = vadd.f32 %v1465_v62, %v1403_v6  ;;  %2876 = vmatpush.bf16.msra.mxu3 %v10687_v0  ;;  %2819 = vmatpush.bf16.msra.mxu0 %v10619_v1  ;;  %v13560_v57 = vld [vmem:[#allocation5 + $0x3d4] sm:$0xf]  ;;  %v10668_v6 = vld [vmem:[#allocation5 + $0x3d8] sm:$0xf0]  ;;  %v1219_v43 = vadd.f32 %v15059_v48, %v14976_v46 }
 0x142   : > { %1625 = vst [vmem:[#allocation3 + $0x30] sm:$0xff] %v1613_v7  ;;  %2838 = vmatpush.bf16.msra.mxu1 %v10683_v4  ;;  %2858 = vmatpush.bf16.msra.mxu2 %v10615_v60  ;;  %v13561_v38 = vld [vmem:[#allocation5 + $0x3d4] sm:$0xf0]  ;;  %v1238_v35 = vadd.f32 %v15061_v8, %v14978_v51  ;;  %v10607_v62 = vor.u32 %v13544_v17, %v10604_v16  ;;  %v13542_v0 = vld [vmem:[#allocation5 + $0x344] sm:$0xf] }
 0x143   : > { %v1483_v5 = vadd.f32 %v1475_v14, %v14923_v36  ;;  %v1484_v40 = vadd.f32 %v1476_v13, %v14925_v42  ;;  %v10671_v3 = vor.u32 %v13560_v57, %v10668_v6  ;;  %v10596_v7 = vld [vmem:[#allocation5 + $0x348] sm:$0xf0]  ;;  %v13558_v14 = vld [vmem:[#allocation5 + $0x3c4] sm:$0xf]  ;;  %v2028_v46 = vsel %vm740_vm2, %v2022_v61, %v2027_v55  ;;  %v10594_v4 = vld [vmem:[#allocation5 + $0x340] sm:$0xf] }
 0x144   : > { %v2030_v51 = vsel %vm740_vm2, %v2025_v20, %v2029_v30  ;;  %v10603_v48 = vor.u32 %v13545_v37, %v10602_v31  ;;  %v10667_v8 = vor.u32 %v13561_v38, %v10666_v10  ;;  %v10660_v13 = vld [vmem:[#allocation5 + $0x3c8] sm:$0xf0]  ;;  %v13543_v60 = vld [vmem:[#allocation5 + $0x344] sm:$0xf0]  ;;  %v1304_v63 = vadd.f32 %v15063_v53, %v1219_v43  ;;  %v10652_v53 = vld [vmem:[#allocation5 + $0x3b8] sm:$0xf0] }
 0x145   : > { %v1491_v49 = vmax.f32 %v1483_v5, 0.0  ;;  %v1492_v15 = vmax.f32 %v1484_v40, 0.0  ;;  %2877 = vmatpush.bf16.msra.mxu3 %v10679_v18  ;;  %2820 = vmatpush.bf16.msra.mxu0 %v10611_v54  ;;  %v1305_v61 = vadd.f32 %v15065_v39, %v1238_v35  ;;  %v10599_v5 = vor.u32 %v13542_v0, %v10596_v7  ;;  %v13540_v18 = vld [vmem:[#allocation5 + $0x334] sm:$0xf]  ;;  %v10650_v17 = vld [vmem:[#allocation5 + $0x3b0] sm:$0xf] }
 0x146   : > { %v1376_v25 = vpop.f32.mrf.mxu0  ;;  %v1395_v26 = vpop.f32.mrf.mxu1  ;;  %2839 = vmatpush.bf16.msra.mxu1 %v10675_v41  ;;  %2859 = vmatpush.bf16.msra.mxu2 %v10607_v62  ;;  %v10663_v40 = vor.u32 %v13558_v14, %v10660_v13  ;;  %v10595_v30 = vor.u32 %v13543_v60, %v10594_v4  ;;  %v10659_v54 = vor.u32 %v13559_v11, %v10658_v12  ;;  %v13556_v41 = vld [vmem:[#allocation5 + $0x3b4] sm:$0xf]  ;;  %v13557_v16 = vld [vmem:[#allocation5 + $0x3b4] sm:$0xf0]  ;;  %v13538_v6 = vld [vmem:[#allocation5 + $0x324] sm:$0xf] }
 0x147   : > { %v1498_v23 = vpack.c.bf16 %v1492_v15, %v1491_v49  ;;  %v1404_v28 = vadd.f32 %v1376_v25, %v1302_v56  ;;  %v1405_v47 = vadd.f32 %v1395_v26, %v1303_v24  ;;  %v10586_v56 = vld [vmem:[#allocation5 + $0x330] sm:$0xf]  ;;  %v13541_v15 = vld [vmem:[#allocation5 + $0x334] sm:$0xf0]  ;;  %v10591_v57 = vor.u32 %v13540_v18, %v10588_v44  ;;  %v10580_v37 = vld [vmem:[#allocation5 + $0x328] sm:$0xf0] }
 0x148   : > { %v1449_v58 = vpop.f32.mrf.mxu2  ;;  %v1468_v29 = vpop.f32.mrf.mxu3  ;;  %v13554_v10 = vld [vmem:[#allocation5 + $0x3a4] sm:$0xf]  ;;  %v10587_v38 = vor.u32 %v13541_v15, %v10586_v56  ;;  %v10651_v43 = vor.u32 %v13557_v16, %v10650_v17  ;;  %v10644_v35 = vld [vmem:[#allocation5 + $0x3a8] sm:$0xf0]  ;;  %v13539_v0 = vld [vmem:[#allocation5 + $0x324] sm:$0xf0]  ;;  %v10583_v14 = vor.u32 %v13538_v6, %v10580_v37  ;;  %v15137_v60 = vpack.c.b16 %v14921_v50, %v14921_v50 }
 0x149   : > { %v1614_v1 = vsel %vm15037_vm9, %v1498_v23, 0  ;;  %v1477_v2 = vadd.f32 %v1449_v58, %v1404_v28  ;;  %v1478_v34 = vadd.f32 %v1468_v29, %v1405_v47  ;;  %2878 = vmatpush.bf16.msra.mxu3 %v10671_v3  ;;  %2821 = vmatpush.bf16.msra.mxu0 %v10603_v48  ;;  %v10655_v47 = vor.u32 %v13556_v41, %v10652_v53  ;;  %v10578_v58 = vld [vmem:[#allocation5 + $0x320] sm:$0xf]  ;;  %v10572_v48 = vld [vmem:[#allocation5 + $0x318] sm:$0xf0]  ;;  %v15147_v56 = vld [vmem:[#allocation3 + $0x10] sm:$0xff] }
 0x14a   : > { %1626 = vst [vmem:[#allocation3 + $0x38] sm:$0xff] %v1614_v1  ;;  %2840 = vmatpush.bf16.msra.mxu1 %v10667_v8  ;;  %2860 = vmatpush.bf16.msra.mxu2 %v10599_v5  ;;  %v10642_v1 = vld [vmem:[#allocation5 + $0x3a0] sm:$0xf]  ;;  %v15133_v8 = vld [vmem:[#allocation3 + $0x30] sm:$0xff]  ;;  %v10636_v4 = vld [vmem:[#allocation5 + $0x398] sm:$0xf0]  ;;  %v15141_v12 = vpack.c.b16 %v14942_v19, %v14942_v19 }
 0x14b   : > { %v1485_v32 = vadd.f32 %v1477_v2, %v14923_v36  ;;  %v1486_v59 = vadd.f32 %v1478_v34, %v14925_v42  ;;  %2208 = vmatmul.bf16.gmra.mxu0 %v2028_v46  ;;  %2227 = vmatmul.bf16.gmra.mxu1 %v2030_v51  ;;  %v13555_v2 = vld [vmem:[#allocation5 + $0x3a4] sm:$0xf0]  ;;  %v13537_v11 = vld [vmem:[#allocation5 + $0x314] sm:$0xf0]  ;;  %v10564_v44 = vld [vmem:[#allocation5 + $0x308] sm:$0xf0]  ;;  %v3307_v16 = vunpack.c.h.b16 %v15133_v8 }
 0x14c   : > { %2246 = vmatmul.bf16.gmra.mxu2 %v2028_v46  ;;  %2265 = vmatmul.bf16.gmra.mxu3 %v2030_v51  ;;  %v10647_v46 = vor.u32 %v13554_v10, %v10644_v35  ;;  %v13536_v51 = vld [vmem:[#allocation5 + $0x314] sm:$0xf]  ;;  %v10643_v13 = vor.u32 %v13555_v2, %v10642_v1  ;;  %v10628_v41 = vld [vmem:[#allocation5 + $0x388] sm:$0xf0]  ;;  %v10562_v53 = vld [vmem:[#allocation5 + $0x300] sm:$0xf] }
 0x14d   : > { %v1493_v33 = vmax.f32 %v1485_v32, 0.0  ;;  %v1494_v20 = vmax.f32 %v1486_v59, 0.0  ;;  %2879 = vmatpush.bf16.msra.mxu3 %v10663_v40  ;;  %2822 = vmatpush.bf16.msra.mxu0 %v10595_v30  ;;  %v10570_v32 = vld [vmem:[#allocation5 + $0x310] sm:$0xf]  ;;  %v10575_v40 = vor.u32 %v13536_v51, %v10572_v48  ;;  %v10626_v15 = vld [vmem:[#allocation5 + $0x380] sm:$0xf] }
 0x14e   : > { %v1378_v45 = vpop.f32.mrf.mxu0  ;;  %v1397_v55 = vpop.f32.mrf.mxu1  ;;  %2841 = vmatpush.bf16.msra.mxu1 %v10659_v54  ;;  %2861 = vmatpush.bf16.msra.mxu2 %v10591_v57  ;;  %v10571_v30 = vor.u32 %v13537_v11, %v10570_v32  ;;  %v13551_v17 = vld [vmem:[#allocation5 + $0x384] sm:$0xf0]  ;;  %v13596_v57 = vld [vmem:[#allocation5 + $0x4f4] sm:$0xf]  ;;  %v13581_v37 = vld [vmem:[#allocation5 + $0x474] sm:$0xf0] }
 0x14f   : > { %v1499_v39 = vpack.c.bf16 %v1494_v20, %v1493_v33  ;;  %v1406_v24 = vadd.f32 %v1378_v45, %v1304_v63  ;;  %v1407_v49 = vadd.f32 %v1397_v55, %v1305_v61  ;;  %v10634_v63 = vld [vmem:[#allocation5 + $0x390] sm:$0xf]  ;;  %v13553_v61 = vld [vmem:[#allocation5 + $0x394] sm:$0xf0]  ;;  %v13534_v33 = vld [vmem:[#allocation5 + $0x304] sm:$0xf] }
 0x150   : > { %v1451_v25 = vpop.f32.mrf.mxu2  ;;  %v1470_v26 = vpop.f32.mrf.mxu3  ;;  %v13550_v45 = vld [vmem:[#allocation5 + $0x384] sm:$0xf]  ;;  %v10635_v54 = vor.u32 %v13553_v61, %v10634_v63  ;;  %v10810_v35 = vld [vmem:[#allocation5 + $0x4f0] sm:$0xf]  ;;  %v10804_v51 = vld [vmem:[#allocation5 + $0x4e8] sm:$0xf0] }
 0x151   : > { %v1615_v31 = vsel %vm15037_vm9, %v1499_v39, 0  ;;  %v1479_v23 = vadd.f32 %v1451_v25, %v1406_v24  ;;  %v1480_v28 = vadd.f32 %v1470_v26, %v1407_v49  ;;  %v15131_v34 = vld [vmem:[#allocation3 + $0x38] sm:$0xff]  ;;  %2880 = vmatpush.bf16.msra.mxu3 %v10655_v47  ;;  %2823 = vmatpush.bf16.msra.mxu0 %v10587_v38  ;;  %v3306_v24 = vunpack.c.l.b16 %v15133_v8  ;;  %v13535_v49 = vld [vmem:[#allocation5 + $0x304] sm:$0xf0]  ;;  %v13580_v25 = vld [vmem:[#allocation5 + $0x474] sm:$0xf] }
 0x152   : > { %1627 = vst [vmem:[#allocation3 + $0x40] sm:$0xff] %v1615_v31  ;;  %2842 = vmatpush.bf16.msra.mxu1 %v10651_v43  ;;  %v3308_v20 = vunpack.c.l.b16 %v15131_v34  ;;  %2862 = vmatpush.bf16.msra.mxu2 %v10583_v14  ;;  %v3309_v55 = vunpack.c.h.b16 %v15131_v34  ;;  %v15149_v39 = vld [vmem:[#allocation3 + $0x18] sm:$0xff]  ;;  %v10567_v31 = vor.u32 %v13534_v33, %v10564_v44  ;;  %v10746_v47 = vld [vmem:[#allocation5 + $0x470] sm:$0xf]  ;;  %v10563_v38 = vor.u32 %v13535_v49, %v10562_v53  ;;  %v13578_v2 = vld [vmem:[#allocation5 + $0x464] sm:$0xf] }
 0x153   : > { %v1487_v29 = vadd.f32 %v1479_v23, %v14923_v36  ;;  %v1488_v62 = vadd.f32 %v1480_v28, %v14925_v42  ;;  %v10579_v36 = vor.u32 %v13539_v0, %v10578_v58  ;;  %v13552_v42 = vld [vmem:[#allocation5 + $0x394] sm:$0xf]  ;;  %v10748_v26 = vld [vmem:[#allocation5 + $0x478] sm:$0xf0]  ;;  %v10631_v23 = vor.u32 %v13550_v45, %v10628_v41  ;;  %v13597_v58 = vld [vmem:[#allocation5 + $0x4f4] sm:$0xf0] }
 0x154   : > { %v10639_v18 = vor.u32 %v13552_v42, %v10636_v4  ;;  %v15161_v6 = vpack.c.b16 %v3308_v20, %v3306_v24  ;;  %v10812_v28 = vld [vmem:[#allocation5 + $0x4f8] sm:$0xf0]  ;;  %v15167_v10 = vpack.c.b16 %v3309_v55, %v3307_v16  ;;  %v10627_v43 = vor.u32 %v13551_v17, %v10626_v15  ;;  %v10738_v48 = vld [vmem:[#allocation5 + $0x460] sm:$0xf]  ;;  %v13595_v42 = vld [vmem:[#allocation5 + $0x4e4] sm:$0xf0] }
 0x155   : > { %v1495_v3 = vmax.f32 %v1487_v29, 0.0  ;;  %v1496_v7 = vmax.f32 %v1488_v62, 0.0  ;;  %2881 = vmatpush.bf16.msra.mxu3 %v10647_v46  ;;  %2824 = vmatpush.bf16.msra.mxu0 %v10579_v36  ;;  %v2599_v29 = vunpack.c.l.b16 %v15147_v56  ;;  %v2601_v62 = vunpack.c.l.b16 %v15149_v39  ;;  %v13594_v46 = vld [vmem:[#allocation5 + $0x4e4] sm:$0xf]  ;;  %v13579_v36 = vld [vmem:[#allocation5 + $0x464] sm:$0xf0] }
 0x156   : > { %2843 = vmatpush.bf16.msra.mxu1 %v10643_v13  ;;  %2863 = vmatpush.bf16.msra.mxu2 %v10575_v40  ;;  %v10751_v0 = vor.u32 %v13580_v25, %v10748_v26  ;;  %v10815_v1 = vor.u32 %v13596_v57, %v10812_v28  ;;  %v10811_v14 = vor.u32 %v13597_v58, %v10810_v35  ;;  %v10802_v13 = vld [vmem:[#allocation5 + $0x4e0] sm:$0xf]  ;;  %v2600_v4 = vunpack.c.h.b16 %v15147_v56  ;;  %v13576_v40 = vld [vmem:[#allocation5 + $0x454] sm:$0xf]  ;;  %v10796_v45 = vld [vmem:[#allocation5 + $0x4d8] sm:$0xf0] }
 0x157   : > { %v1500_v59 = vpack.c.bf16 %v1496_v7, %v1495_v3  ;;  %v10740_v3 = vld [vmem:[#allocation5 + $0x468] sm:$0xf0]  ;;  %v10747_v7 = vor.u32 %v13581_v37, %v10746_v47  ;;  %v15174_v32 = vpack.c.b16 %v2601_v62, %v2599_v29  ;;  %v10807_v63 = vor.u32 %v13594_v46, %v10804_v51  ;;  %v13592_v44 = vld [vmem:[#allocation5 + $0x4d4] sm:$0xf]  ;;  %v13577_v41 = vld [vmem:[#allocation5 + $0x454] sm:$0xf0] }
 0x158   : > { %v10743_v11 = vor.u32 %v13578_v2, %v10740_v3  ;;  %v10739_v61 = vor.u32 %v13579_v36, %v10738_v48  ;;  %v10803_v33 = vor.u32 %v13595_v42, %v10802_v13  ;;  %v10794_v53 = vld [vmem:[#allocation5 + $0x4d0] sm:$0xf]  ;;  %v13593_v56 = vld [vmem:[#allocation5 + $0x4d4] sm:$0xf0]  ;;  %v13533_v49 = vld [vmem:[#allocation3 + $0x24] sm:$0xf0]  ;;  %v10799_v28 = vor.u32 %v13592_v44, %v10796_v45 }
 0x159   : > { %v1616_v5 = vsel %vm15037_vm9, %v1500_v59, 0  ;;  %2882 = vmatpush.bf16.msra.mxu3 %v10639_v18  ;;  %2825 = vmatpush.bf16.msra.mxu0 %v10571_v30  ;;  %v2602_v59 = vunpack.c.h.b16 %v15149_v39  ;;  %v10732_v18 = vld [vmem:[#allocation5 + $0x458] sm:$0xf0]  ;;  %v10730_v30 = vld [vmem:[#allocation5 + $0x450] sm:$0xf]  ;;  %v2618_v15 = vshll.u32 %v15174_v32, 16  ;;  %v10795_v35 = vor.u32 %v13593_v56, %v10794_v53 }
 0x15a   : > { %1628 = vst [vmem:[#allocation3 + $0x48] sm:$0xff] %v1616_v5  ;;  %2844 = vmatpush.bf16.msra.mxu1 %v10635_v54  ;;  %2864 = vmatpush.bf16.msra.mxu2 %v10567_v31  ;;  %v2616_v5 = vshrl.u32 %v15174_v32, 16  ;;  %v10556_v17 = vld [vmem:[#allocation3 + $0x28] sm:$0xf0]  ;;  %v10554_v26 = vld [vmem:[#allocation3 + $0x20] sm:$0xf] }
 0x15b   : > { %2480 = vmatmul.bf16.vlgmr.msrb.gmra.mxu0 %v15137_v60  ;;  %2499 = vmatmul.bf16.vlgmr.msrb.gmra.mxu1 %v15141_v12  ;;  %v15180_v54 = vpack.c.b16 %v2602_v59, %v2600_v4  ;;  %v13532_v57 = vld [vmem:[#allocation3 + $0x24] sm:$0xf]  ;;  %v10724_v37 = vld [vmem:[#allocation5 + $0x448] sm:$0xf0]  ;;  %v10786_v2 = vld [vmem:[#allocation5 + $0x4c0] sm:$0xf] }
 0x15c   : > { %2518 = vmatmul.bf16.vlgmr.msrb.gmra.mxu2 %v15137_v60  ;;  %2537 = vmatmul.bf16.vlgmr.msrb.gmra.mxu3 %v15141_v12  ;;  %v13574_v47 = vld [vmem:[#allocation5 + $0x444] sm:$0xf]  ;;  %v10788_v29 = vld [vmem:[#allocation5 + $0x4c8] sm:$0xf0]  ;;  %v13591_v3 = vld [vmem:[#allocation5 + $0x4c4] sm:$0xf0]  ;;  %v15194_v46 = vor.u32 %v13532_v57, %v10556_v17 }
 0x15d   : > { %2883 = vmatpush.bf16.msra.mxu3 %v10631_v23  ;;  %2826 = vmatpush.bf16.msra.mxu0 %v10563_v38  ;;  %v2628_v31 = vshrl.u32 %v15180_v54, 16  ;;  %v10735_v23 = vor.u32 %v13576_v40, %v10732_v18  ;;  %v15184_v38 = vld [vmem:[#allocation3 + $0x40] sm:$0xff]  ;;  %v2630_v51 = vshll.u32 %v15180_v54, 16  ;;  %v2620_v36 = vrot.slane %v2618_v15, 1  ;;  %v13572_v4 = vld [vmem:[#allocation5 + $0x434] sm:$0xf] }
 0x15e   : > { %2845 = vmatpush.bf16.msra.mxu1 %v10627_v43  ;;  %3154 = vmatpush.bf16.msrb.mxu2 %v10751_v0  ;;  %v10731_v43 = vor.u32 %v13577_v41, %v10730_v30  ;;  %v13590_v58 = vld [vmem:[#allocation5 + $0x4c4] sm:$0xf]  ;;  %v10722_v0 = vld [vmem:[#allocation5 + $0x440] sm:$0xf]  ;;  %v10727_v13 = vor.u32 %v13574_v47, %v10724_v37  ;;  %v10714_v40 = vld [vmem:[#allocation5 + $0x430] sm:$0xf]  ;;  %v3311_v18 = vunpack.c.h.b16 %v15184_v38 }
 0x15f   : > { %v10791_v42 = vor.u32 %v13590_v58, %v10788_v29  ;;  %v13573_v44 = vld [vmem:[#allocation5 + $0x434] sm:$0xf0]  ;;  %v10778_v45 = vld [vmem:[#allocation5 + $0x4b0] sm:$0xf]  ;;  %v2632_v56 = vrot.slane %v2630_v51, 1  ;;  %8238 = vst [vmem:[#allocation3 + $0x18] sm:$0xff] %v14470_v21 }
 0x160   : > { %v13589_v30 = vld [vmem:[#allocation5 + $0x4b4] sm:$0xf0]  ;;  %v2560_v17 = vld [vmem:[#allocation3 + $0x30] sm:$0x11]  ;;  %v13570_v57 = vld [vmem:[#allocation5 + $0x424] sm:$0xf]  ;;  %v15282_v8 = vpack.c.b16 %v3311_v18, %v3309_v55 }
 0x161   : > { %3173 = vmatpush.bf16.msrb.mxu3 %v10815_v1  ;;  %3116 = vmatpush.bf16.msrb.mxu0 %v10747_v7  ;;  %v3266_v25 = vld [vmem:[#allocation3 + $0x48] sm:$0xff]  ;;  %v10779_v47 = vor.u32 %v13589_v30, %v10778_v45  ;;  %v13586_v37 = vld [vmem:[#allocation5 + $0x4a4] sm:$0xf]  ;;  %v10770_v29 = vld [vmem:[#allocation5 + $0x4a0] sm:$0xf] }
 0x162   : > { %3135 = vmatpush.bf16.msrb.mxu1 %v10811_v14  ;;  %3155 = vmatpush.bf16.msrb.mxu2 %v10743_v11  ;;  %v13575_v1 = vld [vmem:[#allocation5 + $0x444] sm:$0xf0]  ;;  %v15188_v7 = vunpack.c.l.b16 %v3266_v25  ;;  %v15192_v14 = vor.u32 %v13533_v49, %v10554_v26  ;;  %v15197_v48 = vunpack.c.h.b16 %v3266_v25  ;;  %v10716_v11 = vld [vmem:[#allocation5 + $0x438] sm:$0xf0]  ;;  %v2635_v49 = vshll.u32 %v15194_v46, 16 }
 0x163   : > { %v10719_v25 = vor.u32 %v13572_v4, %v10716_v11  ;;  %v13571_v58 = vld [vmem:[#allocation5 + $0x424] sm:$0xf0]  ;;  %v13568_v4 = vld [vmem:[#allocation5 + $0x414] sm:$0xf]  ;;  %v10700_v11 = vld [vmem:[#allocation5 + $0x418] sm:$0xf0] }
 0x164   : > { %v2623_v53 = vshll.u32 %v15192_v14, 16  ;;  %v15211_v15 = vpack.c.b16 %v15197_v48, %v3311_v18  ;;  %v15219_v51 = vrot.slane %v2635_v49, 1  ;;  %v13584_v32 = vld [vmem:[#allocation5 + $0x494] sm:$0xf]  ;;  %v10762_v54 = vld [vmem:[#allocation5 + $0x490] sm:$0xf]  ;;  %v10703_v30 = vor.u32 %v13568_v4, %v10700_v11 }
 0x165   : > { %3174 = vmatpush.bf16.msrb.mxu3 %v10807_v63  ;;  %3117 = vmatpush.bf16.msrb.mxu0 %v10739_v61  ;;  %v3310_v63 = vunpack.c.l.b16 %v15184_v38  ;;  %v13588_v61 = vld [vmem:[#allocation5 + $0x4b4] sm:$0xf]  ;;  %v10692_v49 = vld [vmem:[#allocation5 + $0x408] sm:$0xf0]  ;;  %v13645_v4 = vld [vmem:[#allocation5 + $0x174] sm:$0xf0] }
 0x166   : > { %3136 = vmatpush.bf16.msrb.mxu1 %v10803_v33  ;;  %3156 = vmatpush.bf16.msrb.mxu2 %v10735_v23  ;;  %v10780_v33 = vld [vmem:[#allocation5 + $0x4b8] sm:$0xf0]  ;;  %v10708_v23 = vld [vmem:[#allocation5 + $0x428] sm:$0xf0]  ;;  %v2943_v39 = vrot.slane %v15192_v14, 1 }
 0x167   : > { %v15204_v41 = vpack.c.b16 %v15188_v7, %v3310_v63  ;;  %v10783_v26 = vor.u32 %v13588_v61, %v10780_v33  ;;  %v2608_v33 = vunpack.c.h.b16 %v2560_v17  ;;  %v10980_v18 = vld [vmem:[#allocation5 + $0x48] sm:$0xf0] }
 0x169   : > { %3175 = vmatpush.bf16.msrb.mxu3 %v10799_v28  ;;  %3118 = vmatpush.bf16.msrb.mxu0 %v10731_v43  ;;  %v10715_v28 = vor.u32 %v13573_v44, %v10714_v40  ;;  %v10772_v43 = vld [vmem:[#allocation5 + $0x4a8] sm:$0xf0]  ;;  %v13569_v40 = vld [vmem:[#allocation5 + $0x414] sm:$0xf0] }
 0x16a   : > { %3137 = vmatpush.bf16.msrb.mxu1 %v10795_v35  ;;  %3157 = vmatpush.bf16.msrb.mxu2 %v10727_v13  ;;  %v10706_v35 = vld [vmem:[#allocation5 + $0x420] sm:$0xf]  ;;  %v10711_v13 = vor.u32 %v13570_v57, %v10708_v23  ;;  %v13582_v57 = vld [vmem:[#allocation5 + $0x484] sm:$0xf]  ;;  %v10756_v23 = vld [vmem:[#allocation5 + $0x488] sm:$0xf0] }
 0x16b   : > { %2485 = vmatmul.bf16.gmra.mxu0 %v15023_v9  ;;  %2504 = vmatmul.bf16.gmra.mxu1 %v15027_v27 }
 0x16c   : > { %2523 = vmatmul.bf16.gmra.mxu2 %v15023_v9  ;;  %2542 = vmatmul.bf16.gmra.mxu3 %v15027_v27  ;;  %v10723_v9 = vor.u32 %v13575_v1, %v10722_v0  ;;  %v10787_v27 = vor.u32 %v13591_v3, %v10786_v2  ;;  %v13587_v0 = vld [vmem:[#allocation5 + $0x4a4] sm:$0xf0]  ;;  %v2621_v1 = vor.u32 %v2620_v36, %v2616_v5  ;;  %v15215_v2 = vrot.slane %v2623_v53, 1  ;;  %v10764_v5 = vld [vmem:[#allocation5 + $0x498] sm:$0xf0] }
 0x16d   : > { %3176 = vmatpush.bf16.msrb.mxu3 %v10791_v42  ;;  %v2633_v3 = vor.u32 %v2632_v56, %v2628_v31  ;;  %v10775_v42 = vor.u32 %v13586_v37, %v10772_v43  ;;  %v10771_v61 = vor.u32 %v13587_v0, %v10770_v29  ;;  %v10698_v36 = vld [vmem:[#allocation5 + $0x410] sm:$0xf]  ;;  %v13585_v31 = vld [vmem:[#allocation5 + $0x494] sm:$0xf0]  ;;  %v10767_v53 = vor.u32 %v13584_v32, %v10764_v5  ;;  %v13566_v56 = vld [vmem:[#allocation5 + $0x404] sm:$0xf] }
 0x16e   : > { %3119 = vmatpush.bf16.msrb.mxu0 %v10723_v9  ;;  %3138 = vmatpush.bf16.msrb.mxu1 %v10787_v27  ;;  %v2607_v9 = vunpack.c.l.b16 %v2560_v17  ;;  %v10707_v27 = vor.u32 %v13571_v58, %v10706_v35  ;;  %v2626_v44 = vsel %vm888_vm4, %v2621_v1, %v15215_v2  ;;  %v10699_v17 = vor.u32 %v13569_v40, %v10698_v36  ;;  %v13567_v37 = vld [vmem:[#allocation5 + $0x404] sm:$0xf0]  ;;  %v10754_v43 = vld [vmem:[#allocation5 + $0x480] sm:$0xf]  ;;  %v13644_v58 = vld [vmem:[#allocation5 + $0x174] sm:$0xf] }
 0x16f   : > { %3158 = vmatpush.bf16.msrb.mxu2 %v10719_v25  ;;  %v2638_v45 = vsel %vm888_vm4, %v2633_v3, %v15219_v51  ;;  %v13583_v35 = vld [vmem:[#allocation5 + $0x484] sm:$0xf0]  ;;  %v10876_v29 = vld [vmem:[#allocation5 + $0x178] sm:$0xf0]  ;;  %v13660_v0 = vld [vmem:[#allocation5 + $0x1f4] sm:$0xf]  ;;  %v10695_v1 = vor.u32 %v13566_v56, %v10692_v49  ;;  %v10759_v3 = vor.u32 %v13582_v57, %v10756_v23 }
 0x170   : > { %v15225_v25 = vpack.c.b16 %v2607_v9, %v2607_v9  ;;  %v13661_v32 = vld [vmem:[#allocation5 + $0x1f4] sm:$0xf0]  ;;  %v10879_v36 = vor.u32 %v13644_v58, %v10876_v29  ;;  %v13642_v40 = vld [vmem:[#allocation5 + $0x164] sm:$0xf]  ;;  %v10866_v56 = vld [vmem:[#allocation5 + $0x160] sm:$0xf] }
 0x171   : > { %3177 = vmatpush.bf16.msrb.mxu3 %v10783_v26  ;;  %v10763_v26 = vor.u32 %v13585_v31, %v10762_v54  ;;  %v10868_v54 = vld [vmem:[#allocation5 + $0x168] sm:$0xf0]  ;;  %v1557_v31 = vld [vmem:[#allocation3 + $0x50] sm:$0xff]  ;;  %v13643_v49 = vld [vmem:[#allocation5 + $0x164] sm:$0xf0]  ;;  %v2639_v57 = vshrl.u32 %v15192_v14, 16 }
 0x172   : > { %3120 = vmatpush.bf16.msrb.mxu0 %v10715_v28  ;;  %3139 = vmatpush.bf16.msrb.mxu1 %v10779_v47  ;;  %v10690_v28 = vld [vmem:[#allocation5 + $0x400] sm:$0xf]  ;;  %v15227_v47 = vpack.c.b16 %v2608_v33, %v2608_v33  ;;  %v2643_v11 = vshll.u32 %v15225_v25, 16  ;;  %v2647_v23 = vshrl.u32 %v15194_v46, 16  ;;  %v1617_v29 = vsel %vm15037_vm9, %v1557_v31, 0 }
 0x173   : > { %3159 = vmatpush.bf16.msrb.mxu2 %v10711_v13  ;;  %v10940_v13 = vld [vmem:[#allocation5 + $0x1f8] sm:$0xf0]  ;;  %v10691_v9 = vor.u32 %v13567_v37, %v10690_v28  ;;  %v10871_v28 = vor.u32 %v13642_v40, %v10868_v54  ;;  %1629 = vst [vmem:[#allocation3 + $0x50] sm:$0xff] %v1617_v29  ;;  %v13638_v40 = vld [vmem:[#allocation5 + $0x144] sm:$0xf] }
 0x174   : > { %v2651_v5 = vshll.u32 %v15227_v47, 16  ;;  %v10943_v33 = vor.u32 %v13660_v0, %v10940_v13  ;;  %v13656_v13 = vld [vmem:[#allocation5 + $0x1d4] sm:$0xf]  ;;  %v10852_v54 = vld [vmem:[#allocation5 + $0x148] sm:$0xf0] }
 0x175   : > { %3178 = vmatpush.bf16.msrb.mxu3 %v10775_v42  ;;  %v10874_v42 = vld [vmem:[#allocation5 + $0x170] sm:$0xf]  ;;  %v13652_v29 = vld [vmem:[#allocation5 + $0x1b4] sm:$0xf] }
 0x176   : > { %3121 = vmatpush.bf16.msrb.mxu0 %v10707_v27  ;;  %3140 = vmatpush.bf16.msrb.mxu1 %v10771_v61  ;;  %v10755_v27 = vor.u32 %v13583_v35, %v10754_v43  ;;  %v10938_v61 = vld [vmem:[#allocation5 + $0x1f0] sm:$0xf]  ;;  %v2645_v43 = vrot.slane %v2643_v11, 1  ;;  %v10867_v35 = vor.u32 %v13643_v49, %v10866_v56  ;;  %v2653_v0 = vrot.slane %v2651_v5, 1  ;;  %v10916_v56 = vld [vmem:[#allocation5 + $0x1c8] sm:$0xf0] }
 0x177   : > { %3160 = vmatpush.bf16.msrb.mxu2 %v10703_v30  ;;  %v13658_v30 = vld [vmem:[#allocation5 + $0x1e4] sm:$0xf]  ;;  %v2641_v11 = vor.u32 %v2639_v57, %v15215_v2  ;;  %v10850_v49 = vld [vmem:[#allocation5 + $0x140] sm:$0xf]  ;;  %v13639_v2 = vld [vmem:[#allocation5 + $0x144] sm:$0xf0] }
 0x179   : > { %3179 = vmatpush.bf16.msrb.mxu3 %v10767_v53  ;;  %v10932_v53 = vld [vmem:[#allocation5 + $0x1e8] sm:$0xf0]  ;;  %v2646_v31 = vsel %vm888_vm4, %v2641_v11, %v2645_v43  ;;  %v10844_v43 = vld [vmem:[#allocation5 + $0x138] sm:$0xf0]  ;;  %v13634_v11 = vld [vmem:[#allocation5 + $0x124] sm:$0xf] }
 0x17a   : > { %3122 = vmatpush.bf16.msrb.mxu0 %v10699_v17  ;;  %3141 = vmatpush.bf16.msrb.mxu1 %v10763_v26  ;;  %v10930_v17 = vld [vmem:[#allocation5 + $0x1e0] sm:$0xf]  ;;  %v13659_v26 = vld [vmem:[#allocation5 + $0x1e4] sm:$0xf0]  ;;  %v10935_v37 = vor.u32 %v13658_v30, %v10932_v53  ;;  %v13654_v53 = vld [vmem:[#allocation5 + $0x1c4] sm:$0xf] }
 0x17b   : > { %2827 = vmatmul.bf16.vlgmr.msra.gmra.mxu0 %v2626_v44  ;;  %2846 = vmatmul.bf16.vlgmr.msra.gmra.mxu1 %v2638_v45  ;;  %v10931_v58 = vor.u32 %v13659_v26, %v10930_v17  ;;  %v13655_v17 = vld [vmem:[#allocation5 + $0x1c4] sm:$0xf0] }
 0x17c   : > { %2865 = vmatmul.bf16.vlgmr.msra.gmra.mxu2 %v2626_v44  ;;  %2884 = vmatmul.bf16.vlgmr.msra.gmra.mxu3 %v2638_v45  ;;  %v10875_v44 = vor.u32 %v13645_v4, %v10874_v42  ;;  %v10939_v45 = vor.u32 %v13661_v32, %v10938_v61  ;;  %v10924_v42 = vld [vmem:[#allocation5 + $0x1d8] sm:$0xf0]  ;;  %v10858_v4 = vld [vmem:[#allocation5 + $0x150] sm:$0xf]  ;;  %v13657_v61 = vld [vmem:[#allocation5 + $0x1d4] sm:$0xf0]  ;;  %v2649_v32 = vor.u32 %v2647_v23, %v15219_v51 }
 0x17d   : > { %3161 = vmatpush.bf16.msrb.mxu2 %v10695_v1  ;;  %3180 = vmatpush.bf16.msrb.mxu3 %v10759_v3  ;;  %v13640_v1 = vld [vmem:[#allocation5 + $0x154] sm:$0xf]  ;;  %v10860_v3 = vld [vmem:[#allocation5 + $0x158] sm:$0xf0]  ;;  %v10927_v5 = vor.u32 %v13656_v13, %v10924_v42  ;;  %v10914_v51 = vld [vmem:[#allocation5 + $0x1c0] sm:$0xf]  ;;  %v10855_v23 = vor.u32 %v13638_v40, %v10852_v54 }
 0x17e   : > { %3123 = vmatpush.bf16.msrb.mxu0 %v10691_v9  ;;  %3142 = vmatpush.bf16.msrb.mxu1 %v10755_v27  ;;  %v13641_v9 = vld [vmem:[#allocation5 + $0x154] sm:$0xf0]  ;;  %v10922_v27 = vld [vmem:[#allocation5 + $0x1d0] sm:$0xf]  ;;  %v10900_v40 = vld [vmem:[#allocation5 + $0x1a8] sm:$0xf0] }
 0x17f   : > { %v10923_v30 = vor.u32 %v13657_v61, %v10922_v27  ;;  %v10906_v13 = vld [vmem:[#allocation5 + $0x1b0] sm:$0xf]  ;;  %v13653_v42 = vld [vmem:[#allocation5 + $0x1b4] sm:$0xf0]  ;;  %v10834_v54 = vld [vmem:[#allocation5 + $0x120] sm:$0xf] }
 0x181   : > { %3574 = vmatpush.bf16.msra.mxu2 %v10879_v36  ;;  %3593 = vmatpush.bf16.msra.mxu3 %v10943_v33  ;;  %v2903_v36 = vld [vmem:[#allocation3 + $0x10] sm:$0xee]  ;;  %v10863_v33 = vor.u32 %v13640_v1, %v10860_v3  ;;  %v13637_v3 = vld [vmem:[#allocation5 + $0x134] sm:$0xf0] }
 0x182   : > { %3536 = vmatpush.bf16.msra.mxu0 %v10875_v44  ;;  %3555 = vmatpush.bf16.msra.mxu1 %v10939_v45  ;;  %v2654_v44 = vsel %vm888_vm4, %v2649_v32, %v2653_v0  ;;  %v10859_v45 = vor.u32 %v13641_v9, %v10858_v4  ;;  %v2938_v26 = vunpack.c.l.b16 %v2903_v36  ;;  %v2939_v57 = vunpack.c.h.b16 %v2903_v36  ;;  %v10908_v0 = vld [vmem:[#allocation5 + $0x1b8] sm:$0xf0]  ;;  %v10842_v1 = vld [vmem:[#allocation5 + $0x130] sm:$0xf]  ;;  %v10836_v32 = vld [vmem:[#allocation5 + $0x128] sm:$0xf0] }
 0x183   : > { %v10911_v61 = vor.u32 %v13652_v29, %v10908_v0  ;;  %v10843_v36 = vor.u32 %v13637_v3, %v10842_v1  ;;  %v13630_v3 = vld [vmem:[#allocation5 + $0x104] sm:$0xf]  ;;  %8237 = vst [vmem:[#allocation3 + $0x10] sm:$0xff] %v14470_v21 }
 0x184   : > { %v2940_v4 = vpack.c.b16 %v2601_v62, %v2938_v26  ;;  %v2941_v9 = vpack.c.b16 %v2602_v59, %v2939_v57  ;;  %v13648_v26 = vld [vmem:[#allocation5 + $0x194] sm:$0xf]  ;;  %v10892_v57 = vld [vmem:[#allocation5 + $0x198] sm:$0xf0] }
 0x185   : > { %3575 = vmatpush.bf16.msra.mxu2 %v10871_v28  ;;  %3594 = vmatpush.bf16.msra.mxu3 %v10935_v37  ;;  %v10919_v28 = vor.u32 %v13654_v53, %v10916_v56  ;;  %v13636_v37 = vld [vmem:[#allocation5 + $0x134] sm:$0xf]  ;;  %v10839_v53 = vor.u32 %v13634_v11, %v10836_v32  ;;  %v10895_v1 = vor.u32 %v13648_v26, %v10892_v57  ;;  %v10884_v11 = vld [vmem:[#allocation5 + $0x188] sm:$0xf0]  ;;  %v10818_v32 = vld [vmem:[#allocation5 + $0x100] sm:$0xf] }
 0x186   : > { %3537 = vmatpush.bf16.msra.mxu0 %v10867_v35  ;;  %3556 = vmatpush.bf16.msra.mxu1 %v10931_v58  ;;  %v10851_v35 = vor.u32 %v13639_v2, %v10850_v49  ;;  %v10915_v58 = vor.u32 %v13655_v17, %v10914_v51  ;;  %v10847_v27 = vor.u32 %v13636_v37, %v10844_v43  ;;  %v2942_v62 = vrot.slane %v2940_v4, 1  ;;  %v13632_v49 = vld [vmem:[#allocation5 + $0x114] sm:$0xf]  ;;  %v10828_v2 = vld [vmem:[#allocation5 + $0x118] sm:$0xf0] }
 0x187   : > { %v2945_v59 = vrot.slane %v2941_v9, 1  ;;  %v10890_v37 = vld [vmem:[#allocation5 + $0x190] sm:$0xf]  ;;  %v13649_v43 = vld [vmem:[#allocation5 + $0x194] sm:$0xf0]  ;;  %v10831_v0 = vor.u32 %v13632_v49, %v10828_v2 }
 0x188   : > { %v2944_v29 = vsel %vm978_vm5, %v2942_v62, %v2943_v39 }
 0x189   : > { %3576 = vmatpush.bf16.msra.mxu2 %v10863_v33  ;;  %3595 = vmatpush.bf16.msra.mxu3 %v10927_v5  ;;  %v10907_v33 = vor.u32 %v13653_v42, %v10906_v13  ;;  %v13650_v5 = vld [vmem:[#allocation5 + $0x1a4] sm:$0xf]  ;;  %v10820_v13 = vld [vmem:[#allocation5 + $0x108] sm:$0xf0] }
 0x18a   : > { %3538 = vmatpush.bf16.msra.mxu0 %v10859_v45  ;;  %3557 = vmatpush.bf16.msra.mxu1 %v10923_v30  ;;  %v13651_v45 = vld [vmem:[#allocation5 + $0x1a4] sm:$0xf0]  ;;  %v2946_v30 = vrot.slane %v15194_v46, 1  ;;  %v10903_v56 = vor.u32 %v13650_v5, %v10900_v40  ;;  %v13612_v40 = vld [vmem:[#allocation5 + $0x74] sm:$0xf]  ;;  %v3346_v46 = vshrl.u32 %v15282_v8, 16 }
 0x18b   : > { %2832 = vmatmul.bf16.gmra.mxu0 %v2646_v31  ;;  %2851 = vmatmul.bf16.gmra.mxu1 %v2654_v44  ;;  %v15248_v42 = vld [vmem:[#allocation3 + $0x28] sm:$0x88] }
 0x18c   : > { %2870 = vmatmul.bf16.gmra.mxu2 %v2646_v31  ;;  %2889 = vmatmul.bf16.gmra.mxu3 %v2654_v44  ;;  %v13635_v31 = vld [vmem:[#allocation5 + $0x124] sm:$0xf0]  ;;  %v10898_v44 = vld [vmem:[#allocation5 + $0x1a0] sm:$0xf]  ;;  %v2947_v4 = vsel %vm978_vm5, %v2945_v59, %v2946_v30  ;;  %v3304_v62 = vunpack.c.l.b16 %v15248_v42  ;;  %v11068_v59 = vld [vmem:[#allocation5 + $0xf8] sm:$0xf0] }
 0x18d   : > { %3577 = vmatpush.bf16.msra.mxu2 %v10855_v23  ;;  %3596 = vmatpush.bf16.msra.mxu3 %v10919_v28  ;;  %v10835_v51 = vor.u32 %v13635_v31, %v10834_v54  ;;  %v10899_v17 = vor.u32 %v13651_v45, %v10898_v44  ;;  %v10826_v23 = vld [vmem:[#allocation5 + $0x110] sm:$0xf]  ;;  %v13633_v28 = vld [vmem:[#allocation5 + $0x114] sm:$0xf0]  ;;  %v13647_v5 = vld [vmem:[#allocation5 + $0x184] sm:$0xf0]  ;;  %v10823_v44 = vor.u32 %v13630_v3, %v10820_v13 }
 0x18e   : > { %3539 = vmatpush.bf16.msra.mxu0 %v10851_v35  ;;  %3558 = vmatpush.bf16.msra.mxu1 %v10915_v58  ;;  %v10827_v9 = vor.u32 %v13633_v28, %v10826_v23  ;;  %v11004_v54 = vld [vmem:[#allocation5 + $0x78] sm:$0xf0]  ;;  %v13628_v31 = vld [vmem:[#allocation5 + $0xf4] sm:$0xf]  ;;  %v15256_v23 = vpack.c.b16 %v3306_v24, %v3304_v62  ;;  %v13626_v3 = vld [vmem:[#allocation5 + $0xe4] sm:$0xf] }
 0x18f   : > { %v11007_v28 = vor.u32 %v13612_v40, %v11004_v54  ;;  %v11060_v13 = vld [vmem:[#allocation5 + $0xe8] sm:$0xf0]  ;;  %v2948_v54 = vrot.slane %v15225_v25, 1  ;;  %v10988_v62 = vld [vmem:[#allocation5 + $0x58] sm:$0xf0] }
 0x190   : > { %v3321_v24 = vshrl.u32 %v15256_v23, 16  ;;  %v13625_v25 = vld [vmem:[#allocation5 + $0xd4] sm:$0xf0] }
 0x191   : > { %3578 = vmatpush.bf16.msra.mxu2 %v10847_v27  ;;  %3597 = vmatpush.bf16.msra.mxu3 %v10911_v61  ;;  %v10891_v27 = vor.u32 %v13649_v43, %v10890_v37  ;;  %v13646_v61 = vld [vmem:[#allocation5 + $0x184] sm:$0xf]  ;;  %v11071_v37 = vor.u32 %v13628_v31, %v11068_v59  ;;  %v2950_v31 = vrot.slane %v15227_v47, 1  ;;  %v13624_v59 = vld [vmem:[#allocation5 + $0xd4] sm:$0xf] }
 0x192   : > { %3540 = vmatpush.bf16.msra.mxu0 %v10843_v36  ;;  %3559 = vmatpush.bf16.msra.mxu1 %v10907_v33  ;;  %v13631_v36 = vld [vmem:[#allocation5 + $0x104] sm:$0xf0]  ;;  %v10882_v33 = vld [vmem:[#allocation5 + $0x180] sm:$0xf]  ;;  %v10887_v45 = vor.u32 %v13646_v61, %v10884_v11  ;;  %v13610_v43 = vld [vmem:[#allocation5 + $0x64] sm:$0xf] }
 0x193   : > { %v10819_v49 = vor.u32 %v13631_v36, %v10818_v32  ;;  %v10883_v2 = vor.u32 %v13647_v5, %v10882_v33  ;;  %v13627_v61 = vld [vmem:[#allocation5 + $0xe4] sm:$0xf0]  ;;  %v11063_v32 = vor.u32 %v13626_v3, %v11060_v13  ;;  %v15263_v36 = vpack.c.b16 %v3310_v63, %v3308_v20  ;;  %v11042_v13 = vld [vmem:[#allocation5 + $0xc0] sm:$0xf] }
 0x194   : > { %v3324_v33 = vshll.u32 %v15256_v23, 16  ;;  %v2951_v34 = vsel %vm978_vm5, %v2946_v30, %v2950_v31  ;;  %v13607_v3 = vld [vmem:[#allocation5 + $0x44] sm:$0xf0]  ;;  %v10970_v31 = vld [vmem:[#allocation5 + $0x30] sm:$0xf] }
 0x195   : > { %3579 = vmatpush.bf16.msra.mxu2 %v10839_v53  ;;  %3598 = vmatpush.bf16.msra.mxu3 %v10903_v56  ;;  %v11002_v53 = vld [vmem:[#allocation5 + $0x70] sm:$0xf]  ;;  %v13613_v56 = vld [vmem:[#allocation5 + $0x74] sm:$0xf0]  ;;  %v13623_v30 = vld [vmem:[#allocation5 + $0xc4] sm:$0xf0] }
 0x196   : > { %3541 = vmatpush.bf16.msra.mxu0 %v10835_v51  ;;  %3560 = vmatpush.bf16.msra.mxu1 %v10899_v17  ;;  %v11066_v51 = vld [vmem:[#allocation5 + $0xf0] sm:$0xf]  ;;  %v13629_v17 = vld [vmem:[#allocation5 + $0xf4] sm:$0xf0] }
 0x198   : > { %v1949_v35 = vpop.f32.mrf.mxu0  ;;  %v1968_v58 = vpop.f32.mrf.mxu1 }
 0x199   : > { %3580 = vmatpush.bf16.msra.mxu2 %v10831_v0  ;;  %3599 = vmatpush.bf16.msra.mxu3 %v10895_v1  ;;  %v10996_v35 = vld [vmem:[#allocation5 + $0x68] sm:$0xf0]  ;;  %v11003_v0 = vor.u32 %v13613_v56, %v11002_v53  ;;  %v11067_v1 = vor.u32 %v13629_v17, %v11066_v51  ;;  %v11052_v53 = vld [vmem:[#allocation5 + $0xd8] sm:$0xf0]  ;;  %v10986_v56 = vld [vmem:[#allocation5 + $0x50] sm:$0xf] }
 0x19a   : > { %3542 = vmatpush.bf16.msra.mxu0 %v10827_v9  ;;  %3561 = vmatpush.bf16.msra.mxu1 %v10891_v27  ;;  %v13611_v9 = vld [vmem:[#allocation5 + $0x64] sm:$0xf0]  ;;  %v11058_v27 = vld [vmem:[#allocation5 + $0xe0] sm:$0xf]  ;;  %v10999_v11 = vor.u32 %v13610_v43, %v10996_v35  ;;  %v11050_v51 = vld [vmem:[#allocation5 + $0xd0] sm:$0xf]  ;;  %v11055_v43 = vor.u32 %v13624_v59, %v11052_v53 }
 0x19b   : > { %3124 = vmatmul.bf16.vlgmr.msrb.gmra.mxu0 %v2944_v29  ;;  %3143 = vmatmul.bf16.vlgmr.msrb.gmra.mxu1 %v2947_v4  ;;  %v11059_v40 = vor.u32 %v13627_v61, %v11058_v27  ;;  %v13606_v35 = vld [vmem:[#allocation5 + $0x44] sm:$0xf]  ;;  %v11051_v55 = vor.u32 %v13625_v25, %v11050_v51  ;;  %v3349_v27 = vshll.u32 %v15282_v8, 16  ;;  %v11034_v59 = vld [vmem:[#allocation5 + $0xb0] sm:$0xf]  ;;  %v3348_v25 = vrot.slane %v3346_v46, 3 }
 0x19c   : > { %3162 = vmatmul.bf16.vlgmr.msrb.gmra.mxu2 %v2944_v29  ;;  %3181 = vmatmul.bf16.vlgmr.msrb.gmra.mxu3 %v2947_v4  ;;  %v10994_v4 = vld [vmem:[#allocation5 + $0x60] sm:$0xf]  ;;  %v10983_v61 = vor.u32 %v13606_v35, %v10980_v18  ;;  %v13621_v53 = vld [vmem:[#allocation5 + $0xb4] sm:$0xf0]  ;;  %v13602_v35 = vld [vmem:[#allocation5 + $0x24] sm:$0xf] }
 0x19d   : > { %3581 = vmatpush.bf16.msra.mxu2 %v10823_v44  ;;  %3600 = vmatpush.bf16.msra.mxu3 %v10887_v45  ;;  %v10995_v5 = vor.u32 %v13611_v9, %v10994_v4  ;;  %v3305_v44 = vunpack.c.h.b16 %v15248_v42  ;;  %v13608_v45 = vld [vmem:[#allocation5 + $0x54] sm:$0xf]  ;;  %v15275_v42 = vrot.slane %v3324_v33, 4  ;;  %v13603_v18 = vld [vmem:[#allocation5 + $0x24] sm:$0xf0] }
 0x19e   : > { %3543 = vmatpush.bf16.msra.mxu0 %v10819_v49  ;;  %3562 = vmatpush.bf16.msra.mxu1 %v10883_v2  ;;  %v13609_v2 = vld [vmem:[#allocation5 + $0x54] sm:$0xf0] }
 0x19f   : > { %v1987_v26 = vpop.f32.mrf.mxu2  ;;  %v2006_v57 = vpop.f32.mrf.mxu3  ;;  %v15271_v63 = vpack.c.b16 %v3307_v16, %v3305_v44  ;;  %v10987_v38 = vor.u32 %v13609_v2, %v10986_v56 }
 0x1a0   : > { %v1951_v58 = vpop.f32.mrf.mxu0  ;;  %v1970_v29 = vpop.f32.mrf.mxu1  ;;  %v15273_v26 = vrot.slane %v3321_v24, 3  ;;  %v3329_v57 = vshrl.u32 %v15263_v36, 16 }
 0x1a1   : > { %3829 = vmatpush.bf16.msrb.mxu2 %v11007_v28  ;;  %3848 = vmatpush.bf16.msrb.mxu3 %v11071_v37  ;;  %v3332_v28 = vshll.u32 %v15263_v36, 16  ;;  %v10991_v37 = vor.u32 %v13608_v45, %v10988_v62  ;;  %v2949_v58 = vsel %vm978_vm5, %v2943_v39, %v2948_v54  ;;  %v13622_v29 = vld [vmem:[#allocation5 + $0xc4] sm:$0xf]  ;;  %v3338_v14 = vshrl.u32 %v15271_v63, 16  ;;  %v11036_v54 = vld [vmem:[#allocation5 + $0xb8] sm:$0xf0] }
 0x1a2   : > { %3791 = vmatpush.bf16.msrb.mxu0 %v11003_v0  ;;  %3810 = vmatpush.bf16.msrb.mxu1 %v11067_v1  ;;  %v11044_v0 = vld [vmem:[#allocation5 + $0xc8] sm:$0xf0]  ;;  %v10978_v1 = vld [vmem:[#allocation5 + $0x40] sm:$0xf]  ;;  %v3331_v4 = vrot.slane %v3329_v57, 3  ;;  %v3341_v39 = vshll.u32 %v15271_v63, 16 }
 0x1a3   : > { %v3334_v9 = vrot.slane %v3332_v28, 4  ;;  %v11047_v24 = vor.u32 %v13622_v29, %v11044_v0  ;;  %v10979_v33 = vor.u32 %v13607_v3, %v10978_v1  ;;  %v13605_v62 = vld [vmem:[#allocation5 + $0x34] sm:$0xf0]  ;;  %v3340_v2 = vrot.slane %v3338_v14, 3  ;;  %v11026_v3 = vld [vmem:[#allocation5 + $0xa0] sm:$0xf] }
 0x1a4   : > { %v3343_v51 = vrot.slane %v3341_v39, 4  ;;  %v3327_v29 = vor.u32 %v15275_v42, %v15273_v26  ;;  %v15307_v1 = vpack.c.b16 %v15188_v7, %v15188_v7  ;;  %v15311_v14 = vpack.c.b16 %v15197_v48, %v15197_v48  ;;  %v13616_v7 = vld [vmem:[#allocation5 + $0x94] sm:$0xf]  ;;  %v13601_v48 = vld [vmem:[#allocation5 + $0x14] sm:$0xf0] }
 0x1a5   : > { %3830 = vmatpush.bf16.msrb.mxu2 %v10999_v11  ;;  %3849 = vmatpush.bf16.msrb.mxu3 %v11063_v32  ;;  %v13604_v11 = vld [vmem:[#allocation5 + $0x34] sm:$0xf]  ;;  %v10972_v32 = vld [vmem:[#allocation5 + $0x38] sm:$0xf0]  ;;  %v15303_v0 = vor.u32 %v3334_v9, %v3331_v4  ;;  %v10954_v9 = vld [vmem:[#allocation5 + $0x10] sm:$0xf] }
 0x1a6   : > { %3792 = vmatpush.bf16.msrb.mxu0 %v10995_v5  ;;  %3811 = vmatpush.bf16.msrb.mxu1 %v11059_v40  ;;  %v11043_v5 = vor.u32 %v13623_v30, %v11042_v13  ;;  %v13620_v40 = vld [vmem:[#allocation5 + $0xb4] sm:$0xf]  ;;  %v10975_v57 = vor.u32 %v13604_v11, %v10972_v32  ;;  %v13619_v13 = vld [vmem:[#allocation5 + $0xa4] sm:$0xf0]  ;;  %v11020_v4 = vld [vmem:[#allocation5 + $0x98] sm:$0xf0]  ;;  %v3344_v32 = vor.u32 %v3343_v51, %v3340_v2 }
 0x1a7   : > { %v1989_v49 = vpop.f32.mrf.mxu2  ;;  %v2008_v20 = vpop.f32.mrf.mxu3  ;;  %v11039_v28 = vor.u32 %v13620_v40, %v11036_v54  ;;  %v13600_v30 = vld [vmem:[#allocation5 + $0x14] sm:$0xf]  ;;  %v11027_v42 = vor.u32 %v13619_v13, %v11026_v3  ;;  %v10955_v51 = vor.u32 %v13601_v48, %v10954_v9  ;;  %v11196_v3 = vld [vmem:[#allocation5 + $0x2f8] sm:$0xf0]  ;;  %v13674_v9 = vld [vmem:[#allocation5 + $0x264] sm:$0xf] }
 0x1a8   : > { %v1954_v17 = vpop.f32.mrf.mxu0  ;;  %v1973_v47 = vpop.f32.mrf.mxu1 }
 0x1a9   : > { %v15284_v16 = vadd.f32 %v1973_v47, %v1954_v17  ;;  %3831 = vmatpush.bf16.msrb.mxu2 %v10991_v37  ;;  %3850 = vmatpush.bf16.msrb.mxu3 %v11055_v43  ;;  %v3351_v47 = vrot.slane %v3349_v27, 4  ;;  %v10971_v37 = vor.u32 %v13605_v62, %v10970_v31  ;;  %v11035_v43 = vor.u32 %v13621_v53, %v11034_v59  ;;  %v10956_v27 = vld [vmem:[#allocation5 + $0x18] sm:$0xf0] }
 0x1aa   : > { %3793 = vmatpush.bf16.msrb.mxu0 %v10987_v38  ;;  %3812 = vmatpush.bf16.msrb.mxu1 %v11051_v55  ;;  %v11028_v38 = vld [vmem:[#allocation5 + $0xa8] sm:$0xf0]  ;;  %v10962_v55 = vld [vmem:[#allocation5 + $0x20] sm:$0xf]  ;;  %v3358_v62 = vshll.u32 %v15307_v1, 16  ;;  %v3364_v59 = vshrl.u32 %v15311_v14, 16 }
 0x1ab   : > { %3129 = vmatmul.bf16.gmra.mxu0 %v2949_v58  ;;  %3148 = vmatmul.bf16.gmra.mxu1 %v2951_v34  ;;  %v10963_v26 = vor.u32 %v13603_v18, %v10962_v55  ;;  %v3367_v53 = vshll.u32 %v15311_v14, 16 }
 0x1ac   : > { %3167 = vmatmul.bf16.gmra.mxu2 %v2949_v58  ;;  %3186 = vmatmul.bf16.gmra.mxu3 %v2951_v34  ;;  %v10964_v58 = vld [vmem:[#allocation5 + $0x28] sm:$0xf0]  ;;  %v13618_v34 = vld [vmem:[#allocation5 + $0xa4] sm:$0xf] }
 0x1ad   : > { %3832 = vmatpush.bf16.msrb.mxu2 %v10983_v61  ;;  %3851 = vmatpush.bf16.msrb.mxu3 %v11047_v24  ;;  %v10967_v39 = vor.u32 %v13602_v35, %v10964_v58  ;;  %v11031_v46 = vor.u32 %v13618_v34, %v11028_v38  ;;  %v15313_v61 = vor.u32 %v3351_v47, %v3348_v25  ;;  %v13598_v47 = vld [vmem:[#allocation5 + $0x4] sm:$0xf]  ;;  %v13599_v35 = vld [vmem:[#allocation5 + $0x4] sm:$0xf0]  ;;  %v11010_v58 = vld [vmem:[#allocation5 + $0x80] sm:$0xf] }
 0x1ae   : > { %3794 = vmatpush.bf16.msrb.mxu0 %v10979_v33  ;;  %3813 = vmatpush.bf16.msrb.mxu1 %v11043_v5  ;;  %v11018_v33 = vld [vmem:[#allocation5 + $0x90] sm:$0xf]  ;;  %v13617_v5 = vld [vmem:[#allocation5 + $0x94] sm:$0xf0]  ;;  %v13615_v34 = vld [vmem:[#allocation5 + $0x84] sm:$0xf0] }
 0x1af   : > { %v1992_v44 = vpop.f32.mrf.mxu2  ;;  %v2011_v45 = vpop.f32.mrf.mxu3  ;;  %v3353_v2 = vsel %vm655_vm3, %v3344_v32, %v15313_v61  ;;  %v11019_v25 = vor.u32 %v13617_v5, %v11018_v33  ;;  %v13676_v38 = vld [vmem:[#allocation5 + $0x274] sm:$0xf]  ;;  %v11011_v14 = vor.u32 %v13615_v34, %v11010_v58  ;;  %v13690_v5 = vld [vmem:[#allocation5 + $0x2e4] sm:$0xf]  ;;  %v11116_v58 = vld [vmem:[#allocation5 + $0x258] sm:$0xf0] }
 0x1b0   : > { %v15297_v56 = vadd.f32 %v2011_v45, %v1992_v44  ;;  %v1956_v49 = vpop.f32.mrf.mxu0  ;;  %v1975_v20 = vpop.f32.mrf.mxu1  ;;  %v3336_v44 = vsel %vm655_vm3, %v3327_v29, %v15303_v0  ;;  %v3355_v45 = vshrl.u32 %v15307_v1, 16  ;;  %v11132_v29 = vld [vmem:[#allocation5 + $0x278] sm:$0xf0]  ;;  %v13692_v1 = vld [vmem:[#allocation5 + $0x2f4] sm:$0xf] }
 0x1b1   : > { %v15299_v17 = vadd.f32 %v1975_v20, %v1956_v49  ;;  %3833 = vmatpush.bf16.msrb.mxu2 %v10975_v57  ;;  %3852 = vmatpush.bf16.msrb.mxu3 %v11039_v28  ;;  %v10959_v49 = vor.u32 %v13600_v30, %v10956_v27  ;;  %v11023_v20 = vor.u32 %v13616_v7, %v11020_v4  ;;  %v10948_v57 = vld [vmem:[#allocation5 + $0x8] sm:$0xf0]  ;;  %v13614_v28 = vld [vmem:[#allocation5 + $0x84] sm:$0xf]  ;;  %v11194_v30 = vld [vmem:[#allocation5 + $0x2f0] sm:$0xf] }
 0x1b2   : > { %3795 = vmatpush.bf16.msrb.mxu0 %v10971_v37  ;;  %3814 = vmatpush.bf16.msrb.mxu1 %v11035_v43  ;;  %v11012_v37 = vld [vmem:[#allocation5 + $0x88] sm:$0xf0]  ;;  %v10946_v43 = vld [vmem:[#allocation5] sm:$0xf]  ;;  %v10951_v55 = vor.u32 %v13598_v47, %v10948_v57  ;;  %v11199_v7 = vor.u32 %v13692_v1, %v11196_v3  ;;  %v13693_v4 = vld [vmem:[#allocation5 + $0x2f4] sm:$0xf0] }
 0x1b3   : > { %v11015_v18 = vor.u32 %v13614_v28, %v11012_v37  ;;  %v10947_v13 = vor.u32 %v13599_v35, %v10946_v43  ;;  %v11195_v33 = vor.u32 %v13693_v4, %v11194_v30  ;;  %v3369_v47 = vrot.slane %v3367_v53, 4  ;;  %v13672_v35 = vld [vmem:[#allocation5 + $0x254] sm:$0xf]  ;;  %v13673_v53 = vld [vmem:[#allocation5 + $0x254] sm:$0xf0] }
 0x1b4   : > { %v13689_v1 = vld [vmem:[#allocation5 + $0x2d4] sm:$0xf0]  ;;  %v13670_v30 = vld [vmem:[#allocation5 + $0x244] sm:$0xf]  ;;  %v11108_v4 = vld [vmem:[#allocation5 + $0x248] sm:$0xf0] }
 0x1b5   : > { %3834 = vmatpush.bf16.msrb.mxu2 %v10967_v39  ;;  %3853 = vmatpush.bf16.msrb.mxu3 %v11031_v46  ;;  %v11130_v39 = vld [vmem:[#allocation5 + $0x270] sm:$0xf]  ;;  %v13677_v46 = vld [vmem:[#allocation5 + $0x274] sm:$0xf0] }
 0x1b6   : > { %3796 = vmatpush.bf16.msrb.mxu0 %v10963_v26  ;;  %3815 = vmatpush.bf16.msrb.mxu1 %v11027_v42  ;;  %v11135_v42 = vor.u32 %v13676_v38, %v11132_v29  ;;  %v11131_v48 = vor.u32 %v13677_v46, %v11130_v39  ;;  %v11178_v29 = vld [vmem:[#allocation5 + $0x2d0] sm:$0xf]  ;;  %v11119_v39 = vor.u32 %v13672_v35, %v11116_v58 }
 0x1b7   : > { %v1994_v24 = vpop.f32.mrf.mxu2  ;;  %v2013_v11 = vpop.f32.mrf.mxu3 }
 0x1b8   : > { %v15315_v40 = vadd.f32 %v2013_v11, %v1994_v24  ;;  %v2204_v54 = vpop.f32.mrf.mxu0  ;;  %v2223_v31 = vpop.f32.mrf.mxu1  ;;  %v11124_v24 = vld [vmem:[#allocation5 + $0x268] sm:$0xf0] }
 0x1b9   : > { %3835 = vmatpush.bf16.msrb.mxu2 %v10959_v49  ;;  %3854 = vmatpush.bf16.msrb.mxu3 %v11023_v20  ;;  %v11188_v54 = vld [vmem:[#allocation5 + $0x2e8] sm:$0xf0]  ;;  %v11122_v31 = vld [vmem:[#allocation5 + $0x260] sm:$0xf]  ;;  %v13691_v20 = vld [vmem:[#allocation5 + $0x2e4] sm:$0xf0]  ;;  %v11127_v57 = vor.u32 %v13674_v9, %v11124_v24 }
 0x1ba   : > { %3797 = vmatpush.bf16.msrb.mxu0 %v10955_v51  ;;  %3816 = vmatpush.bf16.msrb.mxu1 %v11019_v25  ;;  %v11186_v49 = vld [vmem:[#allocation5 + $0x2e0] sm:$0xf]  ;;  %v3360_v51 = vrot.slane %v3358_v62, 4  ;;  %v3366_v25 = vrot.slane %v3364_v59, 3  ;;  %v11191_v28 = vor.u32 %v13690_v5, %v11188_v54  ;;  %v13686_v9 = vld [vmem:[#allocation5 + $0x2c4] sm:$0xf] }
 0x1bb   : > { %3544 = vmatmul.bf16.vlgmr.msra.gmra.mxu0 %v3336_v44  ;;  %3563 = vmatmul.bf16.vlgmr.msra.gmra.mxu1 %v3353_v2  ;;  %v11187_v43 = vor.u32 %v13691_v20, %v11186_v49  ;;  %v11172_v24 = vld [vmem:[#allocation5 + $0x2c8] sm:$0xf0]  ;;  %v11100_v54 = vld [vmem:[#allocation5 + $0x238] sm:$0xf0]  ;;  %v13684_v49 = vld [vmem:[#allocation5 + $0x2b4] sm:$0xf] }
 0x1bc   : > { %3582 = vmatmul.bf16.vlgmr.msra.gmra.mxu2 %v3336_v44  ;;  %3601 = vmatmul.bf16.vlgmr.msra.gmra.mxu3 %v3353_v2  ;;  %v13675_v44 = vld [vmem:[#allocation5 + $0x264] sm:$0xf0]  ;;  %v3357_v2 = vrot.slane %v3355_v45, 3  ;;  %v3370_v38 = vor.u32 %v3369_v47, %v3366_v25  ;;  %v11114_v45 = vld [vmem:[#allocation5 + $0x250] sm:$0xf]  ;;  %v11175_v5 = vor.u32 %v13686_v9, %v11172_v24 }
 0x1bd   : > { %3836 = vmatpush.bf16.msrb.mxu2 %v10951_v55  ;;  %3855 = vmatpush.bf16.msrb.mxu3 %v11015_v18  ;;  %v11123_v37 = vor.u32 %v13675_v44, %v11122_v31  ;;  %v13688_v55 = vld [vmem:[#allocation5 + $0x2d4] sm:$0xf]  ;;  %v11180_v18 = vld [vmem:[#allocation5 + $0x2d8] sm:$0xf0]  ;;  %v13669_v47 = vld [vmem:[#allocation5 + $0x234] sm:$0xf0] }
 0x1be   : > { %3798 = vmatpush.bf16.msrb.mxu0 %v10947_v13  ;;  %3817 = vmatpush.bf16.msrb.mxu1 %v11011_v14  ;;  %v3361_v34 = vor.u32 %v3360_v51, %v3357_v2  ;;  %v11183_v46 = vor.u32 %v13688_v55, %v11180_v18  ;;  %v11164_v20 = vld [vmem:[#allocation5 + $0x2b8] sm:$0xf0]  ;;  %v11098_v2 = vld [vmem:[#allocation5 + $0x230] sm:$0xf]  ;;  %v13680_v24 = vld [vmem:[#allocation5 + $0x294] sm:$0xf] }
 0x1bf   : > { %v2242_v27 = vpop.f32.mrf.mxu2  ;;  %v2261_v26 = vpop.f32.mrf.mxu3  ;;  %v11099_v18 = vor.u32 %v13669_v47, %v11098_v2  ;;  %v13662_v47 = vld [vmem:[#allocation5 + $0x204] sm:$0xf] }
 0x1c0   : > { %v2206_v11 = vpop.f32.mrf.mxu0  ;;  %v2225_v32 = vpop.f32.mrf.mxu1  ;;  %v3362_v27 = vsel %vm655_vm3, %v15303_v0, %v3361_v34  ;;  %v3371_v26 = vsel %vm655_vm3, %v15313_v61, %v3370_v38  ;;  %v11111_v0 = vor.u32 %v13670_v30, %v11108_v4  ;;  %v13668_v61 = vld [vmem:[#allocation5 + $0x234] sm:$0xf]  ;;  %v11167_v38 = vor.u32 %v13684_v49, %v11164_v20  ;;  %v3233_v49 = vld [vmem:[#allocation3 + $0x48] sm:$0x77] }
 0x1c1   : > { %4105 = vmatpush.bf16.msra.mxu2 %v11135_v42  ;;  %4124 = vmatpush.bf16.msra.mxu3 %v11199_v7  ;;  %v11115_v42 = vor.u32 %v13673_v53, %v11114_v45  ;;  %v11179_v7 = vor.u32 %v13689_v1, %v11178_v29  ;;  %v11106_v32 = vld [vmem:[#allocation5 + $0x240] sm:$0xf]  ;;  %v11103_v34 = vor.u32 %v13668_v61, %v11100_v54  ;;  %v13682_v53 = vld [vmem:[#allocation5 + $0x2a4] sm:$0xf]  ;;  %v3621_v30 = vrot.slane %v15282_v8, 3 }
 0x1c2   : > { %4067 = vmatpush.bf16.msra.mxu0 %v11131_v48  ;;  %4086 = vmatpush.bf16.msra.mxu1 %v11195_v33  ;;  %v11170_v48 = vld [vmem:[#allocation5 + $0x2c0] sm:$0xf]  ;;  %v13687_v33 = vld [vmem:[#allocation5 + $0x2c4] sm:$0xf0] }
 0x1c3   : > { %v11171_v44 = vor.u32 %v13687_v33, %v11170_v48  ;;  %v11090_v1 = vld [vmem:[#allocation5 + $0x220] sm:$0xf]  ;;  %v13665_v33 = vld [vmem:[#allocation5 + $0x214] sm:$0xf0] }
 0x1c5   : > { %4106 = vmatpush.bf16.msra.mxu2 %v11127_v57  ;;  %4125 = vmatpush.bf16.msra.mxu3 %v11191_v28  ;;  %v11162_v57 = vld [vmem:[#allocation5 + $0x2b0] sm:$0xf]  ;;  %v13685_v28 = vld [vmem:[#allocation5 + $0x2b4] sm:$0xf0] }
 0x1c6   : > { %4068 = vmatpush.bf16.msra.mxu0 %v11123_v37  ;;  %4087 = vmatpush.bf16.msra.mxu1 %v11187_v43  ;;  %v11163_v45 = vor.u32 %v13685_v28, %v11162_v57  ;;  %v11076_v57 = vld [vmem:[#allocation5 + $0x208] sm:$0xf0]  ;;  %v13678_v28 = vld [vmem:[#allocation5 + $0x284] sm:$0xf] }
 0x1c7   : > { %v2244_v62 = vpop.f32.mrf.mxu2  ;;  %v2263_v59 = vpop.f32.mrf.mxu3 }
 0x1c8   : > { %v2209_v3 = vpop.f32.mrf.mxu0  ;;  %v2228_v13 = vpop.f32.mrf.mxu1  ;;  %v13666_v62 = vld [vmem:[#allocation5 + $0x224] sm:$0xf]  ;;  %v11092_v59 = vld [vmem:[#allocation5 + $0x228] sm:$0xf0] }
 0x1c9   : > { %v2210_v14 = vadd.f32 %v2209_v3, %v15284_v16  ;;  %v13671_v16 = vld [vmem:[#allocation5 + $0x244] sm:$0xf0]  ;;  %4107 = vmatpush.bf16.msra.mxu2 %v11119_v39  ;;  %4126 = vmatpush.bf16.msra.mxu3 %v11183_v46  ;;  %v3620_v46 = vrot.slane %v15271_v63, 3  ;;  %v13681_v63 = vld [vmem:[#allocation5 + $0x294] sm:$0xf0] }
 0x1ca   : > { %4069 = vmatpush.bf16.msra.mxu0 %v11115_v42  ;;  %4088 = vmatpush.bf16.msra.mxu1 %v11179_v7  ;;  %v11107_v31 = vor.u32 %v13671_v16, %v11106_v32  ;;  %v13667_v3 = vld [vmem:[#allocation5 + $0x224] sm:$0xf0]  ;;  %v13664_v42 = vld [vmem:[#allocation5 + $0x214] sm:$0xf]  ;;  %v11084_v7 = vld [vmem:[#allocation5 + $0x218] sm:$0xf0] }
 0x1cb   : > { %v15330_v11 = vadd.f32 %v2228_v13, %v2210_v14  ;;  %3549 = vmatmul.bf16.gmra.mxu0 %v3362_v27  ;;  %3568 = vmatmul.bf16.gmra.mxu1 %v3371_v26  ;;  %v3618_v13 = vrot.slane %v15263_v36, 3  ;;  %v11154_v14 = vld [vmem:[#allocation5 + $0x2a0] sm:$0xf]  ;;  %v13683_v39 = vld [vmem:[#allocation5 + $0x2a4] sm:$0xf0]  ;;  %v11091_v4 = vor.u32 %v13667_v3, %v11090_v1  ;;  %v11087_v20 = vor.u32 %v13664_v42, %v11084_v7 }
 0x1cc   : > { %3587 = vmatmul.bf16.gmra.mxu2 %v3362_v27  ;;  %3606 = vmatmul.bf16.gmra.mxu3 %v3371_v26  ;;  %v11095_v27 = vor.u32 %v13666_v62, %v11092_v59  ;;  %v11155_v9 = vor.u32 %v13683_v39, %v11154_v14  ;;  %v11082_v32 = vld [vmem:[#allocation5 + $0x210] sm:$0xf]  ;;  %v11079_v62 = vor.u32 %v13662_v47, %v11076_v57  ;;  %v11332_v1 = vld [vmem:[#allocation5 + $0x3f8] sm:$0xf0]  ;;  %v13711_v39 = vld [vmem:[#allocation5 + $0x374] sm:$0xf0] }
 0x1cd   : > { %4108 = vmatpush.bf16.msra.mxu2 %v11111_v0  ;;  %4127 = vmatpush.bf16.msra.mxu3 %v11175_v5  ;;  %v11146_v0 = vld [vmem:[#allocation5 + $0x290] sm:$0xf]  ;;  %v13706_v57 = vld [vmem:[#allocation5 + $0x354] sm:$0xf]  ;;  %v13721_v36 = vld [vmem:[#allocation5 + $0x3c4] sm:$0xf0] }
 0x1ce   : > { %4070 = vmatpush.bf16.msra.mxu0 %v11107_v31  ;;  %4089 = vmatpush.bf16.msra.mxu1 %v11171_v44  ;;  %v3622_v44 = vsel %vm740_vm2, %v3620_v46, %v3621_v30  ;;  %v11266_v14 = vld [vmem:[#allocation5 + $0x370] sm:$0xf] }
 0x1cf   : > { %v2247_v51 = vpop.f32.mrf.mxu2  ;;  %v2266_v25 = vpop.f32.mrf.mxu3  ;;  %v11330_v46 = vld [vmem:[#allocation5 + $0x3f0] sm:$0xf] }
 0x1d0   : > { %v2248_v37 = vadd.f32 %v2247_v51, %v15297_v56  ;;  %v2211_v43 = vpop.f32.mrf.mxu0  ;;  %v2230_v35 = vpop.f32.mrf.mxu1  ;;  %v11156_v56 = vld [vmem:[#allocation5 + $0x2a8] sm:$0xf0] }
 0x1d1   : > { %v2212_v58 = vadd.f32 %v2211_v43, %v15299_v17  ;;  %v3617_v17 = vrot.slane %v15256_v23, 3  ;;  %4109 = vmatpush.bf16.msra.mxu2 %v11103_v34  ;;  %4128 = vmatpush.bf16.msra.mxu3 %v11167_v38  ;;  %v11159_v26 = vor.u32 %v13682_v53, %v11156_v56  ;;  %v11148_v23 = vld [vmem:[#allocation5 + $0x298] sm:$0xf0]  ;;  %v11074_v43 = vld [vmem:[#allocation5 + $0x200] sm:$0xf] }
 0x1d2   : > { %v15334_v55 = vadd.f32 %v2266_v25, %v2248_v37  ;;  %4071 = vmatpush.bf16.msra.mxu0 %v11099_v18  ;;  %4090 = vmatpush.bf16.msra.mxu1 %v11163_v45  ;;  %v11151_v2 = vor.u32 %v13680_v24, %v11148_v23  ;;  %v11147_v25 = vor.u32 %v13681_v63, %v11146_v0  ;;  %v11140_v37 = vld [vmem:[#allocation5 + $0x288] sm:$0xf0]  ;;  %v13679_v34 = vld [vmem:[#allocation5 + $0x284] sm:$0xf0]  ;;  %v13710_v38 = vld [vmem:[#allocation5 + $0x374] sm:$0xf]  ;;  %v3613_v18 = vunpack.c.l.b16 %v3233_v49 }
 0x1d3   : > { %v15336_v29 = vadd.f32 %v2230_v35, %v2212_v58  ;;  %v3619_v31 = vsel %vm740_vm2, %v3617_v17, %v3618_v13  ;;  %v13663_v35 = vld [vmem:[#allocation5 + $0x204] sm:$0xf0]  ;;  %v11138_v58 = vld [vmem:[#allocation5 + $0x280] sm:$0xf]  ;;  %v3614_v45 = vunpack.c.h.b16 %v3233_v49  ;;  %v11143_v59 = vor.u32 %v13678_v28, %v11140_v37  ;;  %v11268_v53 = vld [vmem:[#allocation5 + $0x378] sm:$0xf0] }
 0x1d4   : > { %v13726_v56 = vld [vmem:[#allocation5 + $0x3f4] sm:$0xf]  ;;  %v11075_v3 = vor.u32 %v13663_v35, %v11074_v43  ;;  %v11139_v17 = vor.u32 %v13679_v34, %v11138_v58  ;;  %v11271_v42 = vor.u32 %v13710_v38, %v11268_v53  ;;  %v11260_v24 = vld [vmem:[#allocation5 + $0x368] sm:$0xf0]  ;;  %v11258_v63 = vld [vmem:[#allocation5 + $0x360] sm:$0xf] }
 0x1d5   : > { %4110 = vmatpush.bf16.msra.mxu2 %v11095_v27  ;;  %4129 = vmatpush.bf16.msra.mxu3 %v11159_v26  ;;  %v11335_v7 = vor.u32 %v13726_v56, %v11332_v1  ;;  %v11324_v0 = vld [vmem:[#allocation5 + $0x3e8] sm:$0xf0]  ;;  %v11252_v28 = vld [vmem:[#allocation5 + $0x358] sm:$0xf0]  ;;  %v13722_v37 = vld [vmem:[#allocation5 + $0x3d4] sm:$0xf] }
 0x1d6   : > { %4072 = vmatpush.bf16.msra.mxu0 %v11091_v4  ;;  %4091 = vmatpush.bf16.msra.mxu1 %v11155_v9  ;;  %v13727_v4 = vld [vmem:[#allocation5 + $0x3f4] sm:$0xf0]  ;;  %v13708_v9 = vld [vmem:[#allocation5 + $0x364] sm:$0xf]  ;;  %v11316_v43 = vld [vmem:[#allocation5 + $0x3d8] sm:$0xf0]  ;;  %v11255_v56 = vor.u32 %v13706_v57, %v11252_v28 }
 0x1d7   : > { %v2249_v16 = vpop.f32.mrf.mxu2  ;;  %v2268_v48 = vpop.f32.mrf.mxu3  ;;  %v11263_v49 = vor.u32 %v13708_v9, %v11260_v24  ;;  %v11250_v35 = vld [vmem:[#allocation5 + $0x350] sm:$0xf]  ;;  %v13707_v38 = vld [vmem:[#allocation5 + $0x354] sm:$0xf0]  ;;  %v11319_v1 = vor.u32 %v13722_v37, %v11316_v43  ;;  %v13705_v9 = vld [vmem:[#allocation5 + $0x344] sm:$0xf0] }
 0x1d8   : > { %v2250_v5 = vadd.f32 %v2249_v16, %v15315_v40  ;;  %v2481_v61 = vpop.f32.mrf.mxu0  ;;  %v2500_v54 = vpop.f32.mrf.mxu1  ;;  %v11083_v40 = vor.u32 %v13665_v33, %v11082_v32  ;;  %v11267_v16 = vor.u32 %v13711_v39, %v11266_v14  ;;  %v13724_v33 = vld [vmem:[#allocation5 + $0x3e4] sm:$0xf]  ;;  %v11251_v39 = vor.u32 %v13707_v38, %v11250_v35  ;;  %v11306_v24 = vld [vmem:[#allocation5 + $0x3c0] sm:$0xf]  ;;  %v11228_v57 = vld [vmem:[#allocation5 + $0x328] sm:$0xf0] }
 0x1d9   : > { %4111 = vmatpush.bf16.msra.mxu2 %v11087_v20  ;;  %4130 = vmatpush.bf16.msra.mxu3 %v11151_v2  ;;  %v3616_v61 = vpack.c.b16 %v3614_v45, %v3614_v45  ;;  %v13709_v54 = vld [vmem:[#allocation5 + $0x364] sm:$0xf0]  ;;  %v11327_v20 = vor.u32 %v13724_v33, %v11324_v0  ;;  %v13723_v45 = vld [vmem:[#allocation5 + $0x3d4] sm:$0xf0]  ;;  %v11234_v33 = vld [vmem:[#allocation5 + $0x330] sm:$0xf] }
 0x1da   : > { %v15349_v51 = vadd.f32 %v2268_v48, %v2250_v5  ;;  %4073 = vmatpush.bf16.msra.mxu0 %v11083_v40  ;;  %4092 = vmatpush.bf16.msra.mxu1 %v11147_v25  ;;  %v11331_v48 = vor.u32 %v13727_v4, %v11330_v46  ;;  %v3615_v5 = vpack.c.b16 %v3613_v18, %v3613_v18  ;;  %v11314_v18 = vld [vmem:[#allocation5 + $0x3d0] sm:$0xf]  ;;  %v11242_v4 = vld [vmem:[#allocation5 + $0x340] sm:$0xf]  ;;  %v13716_v28 = vld [vmem:[#allocation5 + $0x3a4] sm:$0xf] }
 0x1db   : > { %3799 = vmatmul.bf16.vlgmr.msrb.gmra.mxu0 %v3619_v31  ;;  %3818 = vmatmul.bf16.vlgmr.msrb.gmra.mxu1 %v3622_v44  ;;  %v11259_v2 = vor.u32 %v13709_v54, %v11258_v63  ;;  %v3625_v47 = vrot.slane %v3616_v61, 3  ;;  %v11315_v46 = vor.u32 %v13723_v45, %v11314_v18  ;;  %v11298_v61 = vld [vmem:[#allocation5 + $0x3b0] sm:$0xf]  ;;  %v13719_v54 = vld [vmem:[#allocation5 + $0x3b4] sm:$0xf0] }
 0x1dc   : > { %3837 = vmatmul.bf16.vlgmr.msrb.gmra.mxu2 %v3619_v31  ;;  %3856 = vmatmul.bf16.vlgmr.msrb.gmra.mxu3 %v3622_v44  ;;  %v11322_v31 = vld [vmem:[#allocation5 + $0x3e0] sm:$0xf]  ;;  %v13725_v44 = vld [vmem:[#allocation5 + $0x3e4] sm:$0xf0]  ;;  %v3623_v25 = vrot.slane %v3615_v5, 3 }
 0x1dd   : > { %4112 = vmatpush.bf16.msra.mxu2 %v11079_v62  ;;  %4131 = vmatpush.bf16.msra.mxu3 %v11143_v59  ;;  %v11323_v40 = vor.u32 %v13725_v44, %v11322_v31  ;;  %v3626_v14 = vsel %vm740_vm2, %v3621_v30, %v3625_v47  ;;  %v13702_v30 = vld [vmem:[#allocation5 + $0x334] sm:$0xf]  ;;  %v13703_v5 = vld [vmem:[#allocation5 + $0x334] sm:$0xf0]  ;;  %v13700_v47 = vld [vmem:[#allocation5 + $0x324] sm:$0xf] }
 0x1de   : > { %4074 = vmatpush.bf16.msra.mxu0 %v11075_v3  ;;  %4093 = vmatpush.bf16.msra.mxu1 %v11139_v17  ;;  %v13704_v3 = vld [vmem:[#allocation5 + $0x344] sm:$0xf]  ;;  %v3624_v17 = vsel %vm740_vm2, %v3618_v13, %v3623_v25  ;;  %v11299_v25 = vor.u32 %v13719_v54, %v11298_v61  ;;  %v11292_v43 = vld [vmem:[#allocation5 + $0x3a8] sm:$0xf0]  ;;  %v11226_v35 = vld [vmem:[#allocation5 + $0x320] sm:$0xf]  ;;  %v11231_v18 = vor.u32 %v13700_v47, %v11228_v57 }
 0x1df   : > { %v2519_v27 = vpop.f32.mrf.mxu2  ;;  %v2538_v26 = vpop.f32.mrf.mxu3  ;;  %v13717_v38 = vld [vmem:[#allocation5 + $0x3a4] sm:$0xf0]  ;;  %v11295_v45 = vor.u32 %v13716_v28, %v11292_v43  ;;  %v13742_v61 = vld [vmem:[#allocation5 + $0x474] sm:$0xf]  ;;  %v11396_v54 = vld [vmem:[#allocation5 + $0x478] sm:$0xf0] }
 0x1e0   : > { %v2483_v23 = vpop.f32.mrf.mxu0  ;;  %v2502_v32 = vpop.f32.mrf.mxu1  ;;  %v11244_v27 = vld [vmem:[#allocation5 + $0x348] sm:$0xf0]  ;;  %v13720_v26 = vld [vmem:[#allocation5 + $0x3c4] sm:$0xf]  ;;  %v13743_v47 = vld [vmem:[#allocation5 + $0x474] sm:$0xf0] }
 0x1e1   : > { %4451 = vmatpush.bf16.msrb.mxu2 %v11271_v42  ;;  %4470 = vmatpush.bf16.msrb.mxu3 %v11335_v7  ;;  %v11308_v42 = vld [vmem:[#allocation5 + $0x3c8] sm:$0xf0]  ;;  %v11247_v8 = vor.u32 %v13704_v3, %v11244_v27  ;;  %v11236_v23 = vld [vmem:[#allocation5 + $0x338] sm:$0xf0]  ;;  %v11243_v32 = vor.u32 %v13705_v9, %v11242_v4  ;;  %v13715_v27 = vld [vmem:[#allocation5 + $0x394] sm:$0xf0] }
 0x1e2   : > { %4413 = vmatpush.bf16.msrb.mxu0 %v11267_v16  ;;  %4432 = vmatpush.bf16.msrb.mxu1 %v11331_v48  ;;  %v11311_v13 = vor.u32 %v13720_v26, %v11308_v42  ;;  %v11307_v16 = vor.u32 %v13721_v36, %v11306_v24  ;;  %v11300_v48 = vld [vmem:[#allocation5 + $0x3b8] sm:$0xf0]  ;;  %v11458_v57 = vld [vmem:[#allocation5 + $0x4f0] sm:$0xf]  ;;  %v13759_v28 = vld [vmem:[#allocation5 + $0x4f4] sm:$0xf0] }
 0x1e3   : > { %v11284_v3 = vld [vmem:[#allocation5 + $0x398] sm:$0xf0] }
 0x1e5   : > { %4452 = vmatpush.bf16.msrb.mxu2 %v11263_v49  ;;  %4471 = vmatpush.bf16.msrb.mxu3 %v11327_v20  ;;  %v11239_v20 = vor.u32 %v13702_v30, %v11236_v23  ;;  %v13712_v30 = vld [vmem:[#allocation5 + $0x384] sm:$0xf]  ;;  %v11276_v23 = vld [vmem:[#allocation5 + $0x388] sm:$0xf0] }
 0x1e6   : > { %4414 = vmatpush.bf16.msrb.mxu0 %v11259_v2  ;;  %4433 = vmatpush.bf16.msrb.mxu1 %v11323_v40  ;;  %v11235_v40 = vor.u32 %v13703_v5, %v11234_v33  ;;  %v11279_v33 = vor.u32 %v13712_v30, %v11276_v23  ;;  %v13713_v5 = vld [vmem:[#allocation5 + $0x384] sm:$0xf0] }
 0x1e7   : > { %v2521_v58 = vpop.f32.mrf.mxu2  ;;  %v2540_v34 = vpop.f32.mrf.mxu3 }
 0x1e8   : > { %v2486_v62 = vpop.f32.mrf.mxu0  ;;  %v2505_v59 = vpop.f32.mrf.mxu1  ;;  %v13701_v58 = vld [vmem:[#allocation5 + $0x324] sm:$0xf0]  ;;  %v11290_v34 = vld [vmem:[#allocation5 + $0x3a0] sm:$0xf] }
 0x1e9   : > { %v2506_v53 = vadd.f32 %v2505_v59, %v2486_v62  ;;  %4453 = vmatpush.bf16.msrb.mxu2 %v11255_v56  ;;  %4472 = vmatpush.bf16.msrb.mxu3 %v11319_v1  ;;  %v13698_v62 = vld [vmem:[#allocation5 + $0x314] sm:$0xf]  ;;  %v11220_v59 = vld [vmem:[#allocation5 + $0x318] sm:$0xf0]  ;;  %v11291_v56 = vor.u32 %v13717_v38, %v11290_v34  ;;  %v11459_v34 = vor.u32 %v13759_v28, %v11458_v57  ;;  %v13740_v38 = vld [vmem:[#allocation5 + $0x464] sm:$0xf] }
 0x1ea   : > { %4415 = vmatpush.bf16.msrb.mxu0 %v11251_v39  ;;  %4434 = vmatpush.bf16.msrb.mxu1 %v11315_v46  ;;  %v13714_v1 = vld [vmem:[#allocation5 + $0x394] sm:$0xf]  ;;  %v13699_v39 = vld [vmem:[#allocation5 + $0x314] sm:$0xf0]  ;;  %v11282_v46 = vld [vmem:[#allocation5 + $0x390] sm:$0xf]  ;;  %v11223_v4 = vor.u32 %v13698_v62, %v11220_v59 }
 0x1eb   : > { %v15358_v7 = vadd.f32 %v2506_v53, %v15330_v11  ;;  %3804 = vmatmul.bf16.gmra.mxu0 %v3624_v17  ;;  %3823 = vmatmul.bf16.gmra.mxu1 %v3626_v14  ;;  %v13718_v11 = vld [vmem:[#allocation5 + $0x3b4] sm:$0xf]  ;;  %v11227_v53 = vor.u32 %v13701_v58, %v11226_v35  ;;  %v11287_v9 = vor.u32 %v13714_v1, %v11284_v3  ;;  %v11452_v62 = vld [vmem:[#allocation5 + $0x4e8] sm:$0xf0]  ;;  %v11386_v59 = vld [vmem:[#allocation5 + $0x460] sm:$0xf] }
 0x1ec   : > { %3842 = vmatmul.bf16.gmra.mxu2 %v3624_v17  ;;  %3861 = vmatmul.bf16.gmra.mxu3 %v3626_v14  ;;  %v11303_v2 = vor.u32 %v13718_v11, %v11300_v48  ;;  %v11218_v17 = vld [vmem:[#allocation5 + $0x310] sm:$0xf]  ;;  %v11283_v36 = vor.u32 %v13715_v27, %v11282_v46  ;;  %v11274_v11 = vld [vmem:[#allocation5 + $0x380] sm:$0xf]  ;;  %v15376_v1 = vld [vmem:[#allocation3 + $0x38] sm:$0xff] }
 0x1ed   : > { %4454 = vmatpush.bf16.msrb.mxu2 %v11247_v8  ;;  %4473 = vmatpush.bf16.msrb.mxu3 %v11311_v13  ;;  %v11219_v24 = vor.u32 %v13699_v39, %v11218_v17  ;;  %v13696_v8 = vld [vmem:[#allocation5 + $0x304] sm:$0xf]  ;;  %v11212_v13 = vld [vmem:[#allocation5 + $0x308] sm:$0xf0]  ;;  %v13757_v39 = vld [vmem:[#allocation5 + $0x4e4] sm:$0xf0] }
 0x1ee   : > { %4416 = vmatpush.bf16.msrb.mxu0 %v11243_v32  ;;  %4435 = vmatpush.bf16.msrb.mxu1 %v11307_v16  ;;  %v11210_v32 = vld [vmem:[#allocation5 + $0x300] sm:$0xf]  ;;  %v13697_v16 = vld [vmem:[#allocation5 + $0x304] sm:$0xf0]  ;;  %v11215_v48 = vor.u32 %v13696_v8, %v11212_v13  ;;  %v4151_v46 = vld [vmem:[#allocation3 + $0x30] sm:$0xff] }
 0x1ef   : > { %v15360_v0 = vpop.f32.mrf.mxu2  ;;  %v15362_v63 = vpop.f32.mrf.mxu3  ;;  %v11444_v8 = vld [vmem:[#allocation5 + $0x4d8] sm:$0xf0]  ;;  %v11378_v13 = vld [vmem:[#allocation5 + $0x450] sm:$0xf]  ;;  %v13752_v57 = vld [vmem:[#allocation5 + $0x4c4] sm:$0xf] }
 0x1f0   : > { %v2488_v31 = vpop.f32.mrf.mxu0  ;;  %v2507_v44 = vpop.f32.mrf.mxu1  ;;  %v11436_v28 = vld [vmem:[#allocation5 + $0x4c8] sm:$0xf0] }
 0x1f1   : > { %v2508_v49 = vadd.f32 %v2507_v44, %v2488_v31  ;;  %4455 = vmatpush.bf16.msrb.mxu2 %v11239_v20  ;;  %4474 = vmatpush.bf16.msrb.mxu3 %v11303_v2  ;;  %v11211_v31 = vor.u32 %v13697_v16, %v11210_v32  ;;  %v11275_v44 = vor.u32 %v13713_v5, %v11274_v11  ;;  %v11460_v20 = vld [vmem:[#allocation5 + $0x4f8] sm:$0xf0]  ;;  %v11394_v2 = vld [vmem:[#allocation5 + $0x470] sm:$0xf]  ;;  %v13739_v32 = vld [vmem:[#allocation5 + $0x454] sm:$0xf0]  ;;  %v4193_v5 = vunpack.c.l.b16 %v4151_v46 }
 0x1f2   : > { %4417 = vmatpush.bf16.msrb.mxu0 %v11235_v40  ;;  %4436 = vmatpush.bf16.msrb.mxu1 %v11299_v25  ;;  %v11399_v25 = vor.u32 %v13742_v61, %v11396_v54  ;;  %v11395_v58 = vor.u32 %v13743_v47, %v11394_v2  ;;  %v11442_v16 = vld [vmem:[#allocation5 + $0x4d0] sm:$0xf]  ;;  %v13755_v11 = vld [vmem:[#allocation5 + $0x4d4] sm:$0xf0]  ;;  %v4196_v61 = vunpack.c.h.b16 %v15376_v1  ;;  %v11202_v54 = vld [vmem:[#allocation3 + $0x40] sm:$0xf] }
 0x1f3   : > { %v15365_v37 = vadd.f32 %v2508_v49, %v15336_v29  ;;  %v13758_v49 = vld [vmem:[#allocation5 + $0x4f4] sm:$0xf]  ;;  %v13736_v2 = vld [vmem:[#allocation5 + $0x444] sm:$0xf]  ;;  %v11372_v47 = vld [vmem:[#allocation5 + $0x448] sm:$0xf0] }
 0x1f5   : > { %4456 = vmatpush.bf16.msrb.mxu2 %v11231_v18  ;;  %4475 = vmatpush.bf16.msrb.mxu3 %v11295_v45  ;;  %v11388_v18 = vld [vmem:[#allocation5 + $0x468] sm:$0xf0]  ;;  %v13756_v45 = vld [vmem:[#allocation5 + $0x4e4] sm:$0xf] }
 0x1f6   : > { %4418 = vmatpush.bf16.msrb.mxu0 %v11227_v53  ;;  %4437 = vmatpush.bf16.msrb.mxu1 %v11291_v56  ;;  %v13741_v53 = vld [vmem:[#allocation5 + $0x464] sm:$0xf0]  ;;  %v11450_v56 = vld [vmem:[#allocation5 + $0x4e0] sm:$0xf]  ;;  %v11391_v3 = vor.u32 %v13740_v38, %v11388_v18  ;;  %v11455_v17 = vor.u32 %v13756_v45, %v11452_v62  ;;  %v11439_v38 = vor.u32 %v13752_v57, %v11436_v28  ;;  %v4155_v62 = vld [vmem:[#allocation3 + $0x50] sm:$0x11] }
 0x1f7   : > { %v15367_v29 = vpop.f32.mrf.mxu2  ;;  %v15369_v14 = vpop.f32.mrf.mxu3  ;;  %v11387_v27 = vor.u32 %v13741_v53, %v11386_v59  ;;  %v11370_v59 = vld [vmem:[#allocation5 + $0x440] sm:$0xf]  ;;  %v13737_v53 = vld [vmem:[#allocation5 + $0x444] sm:$0xf0] }
 0x1f8   : > { %v2828_v26 = vpop.f32.mrf.mxu0  ;;  %v2847_v42 = vpop.f32.mrf.mxu1 }
 0x1f9   : > { %4457 = vmatpush.bf16.msrb.mxu2 %v11223_v4  ;;  %4476 = vmatpush.bf16.msrb.mxu3 %v11287_v9  ;;  %v11451_v26 = vor.u32 %v13757_v39, %v11450_v56  ;;  %v13695_v42 = vld [vmem:[#allocation3 + $0x44] sm:$0xf0]  ;;  %v13738_v4 = vld [vmem:[#allocation5 + $0x454] sm:$0xf]  ;;  %v11380_v9 = vld [vmem:[#allocation5 + $0x458] sm:$0xf0] }
 0x1fa   : > { %4419 = vmatpush.bf16.msrb.mxu0 %v11219_v24  ;;  %4438 = vmatpush.bf16.msrb.mxu1 %v11283_v36  ;;  %v13754_v24 = vld [vmem:[#allocation5 + $0x4d4] sm:$0xf]  ;;  %v4195_v36 = vunpack.c.l.b16 %v15376_v1  ;;  %v11434_v56 = vld [vmem:[#allocation5 + $0x4c0] sm:$0xf] }
 0x1fb   : > { %4075 = vmatmul.bf16.vlgmr.msra.gmra.mxu0 %v15161_v6  ;;  %4094 = vmatmul.bf16.vlgmr.msra.gmra.mxu1 %v15167_v10 }
 0x1fc   : > { %4113 = vmatmul.bf16.vlgmr.msra.gmra.mxu2 %v15161_v6  ;;  %4132 = vmatmul.bf16.vlgmr.msra.gmra.mxu3 %v15167_v10  ;;  %v11463_v10 = vor.u32 %v13758_v49, %v11460_v20  ;;  %v11383_v49 = vor.u32 %v13738_v4, %v11380_v9  ;;  %v11447_v20 = vor.u32 %v13754_v24, %v11444_v8  ;;  %v13734_v4 = vld [vmem:[#allocation5 + $0x434] sm:$0xf]  ;;  %v11364_v8 = vld [vmem:[#allocation5 + $0x438] sm:$0xf0] }
 0x1fd   : > { %4458 = vmatpush.bf16.msrb.mxu2 %v11215_v48  ;;  %4477 = vmatpush.bf16.msrb.mxu3 %v11279_v33 }
 0x1fe   : > { %4420 = vmatpush.bf16.msrb.mxu0 %v11211_v31  ;;  %4439 = vmatpush.bf16.msrb.mxu1 %v11275_v44  ;;  %v11204_v31 = vld [vmem:[#allocation3 + $0x48] sm:$0xf0]  ;;  %v4194_v44 = vunpack.c.h.b16 %v4151_v46  ;;  %v11371_v46 = vor.u32 %v13737_v53, %v11370_v59 }
 0x1ff   : > { %v2866_v40 = vpop.f32.mrf.mxu2  ;;  %v2885_v6 = vpop.f32.mrf.mxu3 }
 0x200   : > { %v2830_v43 = vpop.f32.mrf.mxu0  ;;  %v2849_v35 = vpop.f32.mrf.mxu1  ;;  %v15388_v40 = vpack.c.b16 %v4195_v36, %v4193_v5  ;;  %v15390_v6 = vor.u32 %v13695_v42, %v11202_v54 }
 0x201   : > { %4747 = vmatpush.bf16.msra.mxu2 %v11399_v25  ;;  %4766 = vmatpush.bf16.msra.mxu3 %v11463_v10  ;;  %v11379_v25 = vor.u32 %v13739_v32, %v11378_v13  ;;  %v11443_v10 = vor.u32 %v13755_v11, %v11442_v16  ;;  %v13694_v43 = vld [vmem:[#allocation3 + $0x44] sm:$0xf]  ;;  %v4204_v35 = vpack.c.b16 %v4196_v61, %v4194_v44  ;;  %v13750_v13 = vld [vmem:[#allocation5 + $0x4b4] sm:$0xf]  ;;  %v11362_v32 = vld [vmem:[#allocation5 + $0x430] sm:$0xf] }
 0x202   : > { %4709 = vmatpush.bf16.msra.mxu0 %v11395_v58  ;;  %4728 = vmatpush.bf16.msra.mxu1 %v11459_v34  ;;  %v15398_v58 = vor.u32 %v13694_v43, %v11204_v31  ;;  %v11375_v34 = vor.u32 %v13736_v2, %v11372_v47  ;;  %v4212_v18 = vshll.u32 %v15388_v40, 16  ;;  %v4217_v45 = vshll.u32 %v15390_v6, 16  ;;  %v13735_v16 = vld [vmem:[#allocation5 + $0x434] sm:$0xf0]  ;;  %v11426_v31 = vld [vmem:[#allocation5 + $0x4b0] sm:$0xf] }
 0x203   : > { %v4224_v39 = vshll.u32 %v4204_v35, 16  ;;  %v11363_v54 = vor.u32 %v13735_v16, %v11362_v32  ;;  %v13751_v44 = vld [vmem:[#allocation5 + $0x4b4] sm:$0xf0]  ;;  %v4202_v2 = vunpack.c.h.b16 %v4155_v62  ;;  %v4222_v57 = vshrl.u32 %v4204_v35, 16 }
 0x204   : > { %v4229_v9 = vshll.u32 %v15398_v58, 16  ;;  %v4214_v11 = vrot.slane %v4212_v18, 1  ;;  %v15414_v47 = vrot.slane %v4217_v45, 1  ;;  %v4233_v1 = vshrl.u32 %v15390_v6, 16 }
 0x205   : > { %4748 = vmatpush.bf16.msra.mxu2 %v11391_v3  ;;  %4767 = vmatpush.bf16.msra.mxu3 %v11455_v17 }
 0x206   : > { %4710 = vmatpush.bf16.msra.mxu0 %v11387_v27  ;;  %4729 = vmatpush.bf16.msra.mxu1 %v11451_v26  ;;  %v13753_v27 = vld [vmem:[#allocation5 + $0x4c4] sm:$0xf0]  ;;  %v14342_v26 = vld [vmem:[#allocation3 + $0x50] sm:$0xff]  ;;  %v15416_v28 = vrot.slane %v4229_v9, 1 }
 0x207   : > { %v2868_v30 = vpop.f32.mrf.mxu2  ;;  %v2887_v23 = vpop.f32.mrf.mxu3  ;;  %v8233_v42 = vsel %vm15037_vm9, %v14342_v26, 0  ;;  %v11435_v24 = vor.u32 %v13753_v27, %v11434_v56  ;;  %v15424_v56 = vpack.c.b16 %v4202_v2, %v4202_v2  ;;  %v13732_v27 = vld [vmem:[#allocation5 + $0x424] sm:$0xf]  ;;  %v11356_v26 = vld [vmem:[#allocation5 + $0x428] sm:$0xf0] }
 0x208   : > { %v15380_v48 = vpop.f32.mrf.mxu0  ;;  %v15382_v33 = vpop.f32.mrf.mxu1  ;;  %8245 = vst [vmem:[#allocation3 + $0x50] sm:$0xff] %v8233_v42  ;;  %v11367_v30 = vor.u32 %v13734_v4, %v11364_v8  ;;  %v11428_v23 = vld [vmem:[#allocation5 + $0x4b8] sm:$0xf0]  ;;  %v13748_v42 = vld [vmem:[#allocation5 + $0x4a4] sm:$0xf] }
 0x209   : > { %4749 = vmatpush.bf16.msra.mxu2 %v11383_v49  ;;  %4768 = vmatpush.bf16.msra.mxu3 %v11447_v20  ;;  %v11431_v5 = vor.u32 %v13750_v13, %v11428_v23  ;;  %v4226_v49 = vrot.slane %v4224_v39, 1  ;;  %v4201_v20 = vunpack.c.l.b16 %v4155_v62  ;;  %v11420_v8 = vld [vmem:[#allocation5 + $0x4a8] sm:$0xf0]  ;;  %v11354_v13 = vld [vmem:[#allocation5 + $0x420] sm:$0xf] }
 0x20a   : > { %4711 = vmatpush.bf16.msra.mxu0 %v11379_v25  ;;  %4730 = vmatpush.bf16.msra.mxu1 %v11443_v10  ;;  %v11427_v25 = vor.u32 %v13751_v44, %v11426_v31  ;;  %v4210_v10 = vshrl.u32 %v15388_v40, 16  ;;  %v4497_v40 = vld [vmem:[#allocation3 + $0x30] sm:$0xee]  ;;  %v11423_v32 = vor.u32 %v13748_v42, %v11420_v8 }
 0x20b   : > { %4080 = vmatmul.bf16.gmra.mxu0 %v15204_v41  ;;  %4099 = vmatmul.bf16.gmra.mxu1 %v15211_v15  ;;  %v4227_v62 = vor.u32 %v4226_v49, %v4222_v57  ;;  %v15422_v53 = vpack.c.b16 %v4201_v20, %v4201_v20  ;;  %v4531_v4 = vunpack.c.l.b16 %v4497_v40  ;;  %v4532_v9 = vunpack.c.h.b16 %v4497_v40  ;;  %v15435_v23 = vld [vmem:[%s16649_s6] sm:$0x3]  ;;  %v11348_v20 = vld [vmem:[#allocation5 + $0x418] sm:$0xf0]  ;;  %v13746_v2 = vld [vmem:[#allocation5 + $0x494] sm:$0xf] }
 0x20c   : > { %4118 = vmatmul.bf16.gmra.mxu2 %v15204_v41  ;;  %4137 = vmatmul.bf16.gmra.mxu3 %v15211_v15  ;;  %v4215_v59 = vor.u32 %v4214_v11, %v4210_v10  ;;  %v11418_v11 = vld [vmem:[#allocation5 + $0x4a0] sm:$0xf]  ;;  %v11410_v40 = vld [vmem:[#allocation5 + $0x490] sm:$0xf] }
 0x20d   : > { %4750 = vmatpush.bf16.msra.mxu2 %v11375_v34  ;;  %4769 = vmatpush.bf16.msra.mxu3 %v11439_v38  ;;  %v4232_v45 = vsel %vm888_vm4, %v4227_v62, %v15416_v28  ;;  %v4237_v39 = vshll.u32 %v15422_v53, 16  ;;  %v15439_v31 = vpack.c.b16 %v4195_v36, %v4531_v4  ;;  %v15443_v44 = vpack.c.b16 %v4196_v61, %v4532_v9  ;;  %v13731_v62 = vld [vmem:[#allocation5 + $0x414] sm:$0xf0] }
 0x20e   : > { %4712 = vmatpush.bf16.msra.mxu0 %v11371_v46  ;;  %4731 = vmatpush.bf16.msra.mxu1 %v11435_v24  ;;  %v4220_v35 = vsel %vm888_vm4, %v4215_v59, %v15414_v47  ;;  %v4245_v46 = vshll.u32 %v15424_v56, 16  ;;  %v11359_v24 = vor.u32 %v13732_v27, %v11356_v26  ;;  %v11346_v59 = vld [vmem:[#allocation5 + $0x410] sm:$0xf]  ;;  %v4241_v61 = vshrl.u32 %v15398_v58, 16  ;;  %v13747_v27 = vld [vmem:[#allocation5 + $0x494] sm:$0xf0] }
 0x20f   : > { %v15402_v41 = vpop.f32.mrf.mxu2  ;;  %v15404_v15 = vpop.f32.mrf.mxu3  ;;  %v11411_v26 = vor.u32 %v13747_v27, %v11410_v40  ;;  %v4535_v42 = vrot.slane %v15439_v31, 1  ;;  %v4536_v4 = vrot.slane %v15390_v6, 1  ;;  %v4538_v9 = vrot.slane %v15443_v44, 1  ;;  %v11586_v40 = vld [vmem:[#allocation7 + $0x1f0] sm:$0xf] }
 0x210   : > { %v15406_v3 = vpop.f32.mrf.mxu0  ;;  %v15408_v17 = vpop.f32.mrf.mxu1  ;;  %v4239_v8 = vrot.slane %v4237_v39, 1  ;;  %v13745_v39 = vld [vmem:[#allocation5 + $0x484] sm:$0xf0]  ;;  %v13806_v27 = vld [vmem:[#allocation7 + $0x174] sm:$0xf] }
 0x211   : > { %4751 = vmatpush.bf16.msra.mxu2 %v11367_v30  ;;  %4770 = vmatpush.bf16.msra.mxu3 %v11431_v5  ;;  %v13733_v30 = vld [vmem:[#allocation5 + $0x424] sm:$0xf0] }
 0x212   : > { %4713 = vmatpush.bf16.msra.mxu0 %v11363_v54  ;;  %4732 = vmatpush.bf16.msra.mxu1 %v11427_v25  ;;  %v11355_v16 = vor.u32 %v13733_v30, %v11354_v13  ;;  %v13749_v5 = vld [vmem:[#allocation5 + $0x4a4] sm:$0xf0]  ;;  %v13730_v54 = vld [vmem:[#allocation5 + $0x414] sm:$0xf]  ;;  %v11412_v25 = vld [vmem:[#allocation5 + $0x498] sm:$0xf0] }
 0x213   : > { %v11419_v49 = vor.u32 %v13749_v5, %v11418_v11  ;;  %v4247_v13 = vrot.slane %v4245_v46, 1  ;;  %v4539_v30 = vrot.slane %v15398_v58, 1  ;;  %v13744_v11 = vld [vmem:[#allocation5 + $0x484] sm:$0xf]  ;;  %v4235_v5 = vor.u32 %v4233_v1, %v15414_v47  ;;  %v11522_v46 = vld [vmem:[#allocation7 + $0x170] sm:$0xf] }
 0x214   : > { %v13823_v47 = vld [vmem:[#allocation7 + $0x1f4] sm:$0xf0] }
 0x215   : > { %4752 = vmatpush.bf16.msra.mxu2 %v11359_v24  ;;  %4771 = vmatpush.bf16.msra.mxu3 %v11423_v32  ;;  %v15451_v24 = vperm.slane %v15435_v23, 0  ;;  %v13728_v32 = vld [vmem:[#allocation5 + $0x404] sm:$0xf] }
 0x216   : > { %4714 = vmatpush.bf16.msra.mxu0 %v11355_v16  ;;  %4733 = vmatpush.bf16.msra.mxu1 %v11419_v49  ;;  %v11340_v16 = vld [vmem:[#allocation5 + $0x408] sm:$0xf0] }
 0x217   : > { %v15418_v43 = vpop.f32.mrf.mxu2  ;;  %v15420_v34 = vpop.f32.mrf.mxu3  ;;  %v11404_v49 = vld [vmem:[#allocation5 + $0x488] sm:$0xf0] }
 0x218   : > { %v3125_v38 = vpop.f32.mrf.mxu0  ;;  %v3144_v18 = vpop.f32.mrf.mxu1 }
 0x219   : > { %v11351_v38 = vor.u32 %v13730_v54, %v11348_v20  ;;  %v11415_v18 = vor.u32 %v13746_v2, %v11412_v25  ;;  %v11343_v54 = vor.u32 %v13728_v32, %v11340_v16  ;;  %v11338_v20 = vld [vmem:[#allocation5 + $0x400] sm:$0xf]  ;;  %v13729_v2 = vld [vmem:[#allocation5 + $0x404] sm:$0xf0]  ;;  %v11407_v25 = vor.u32 %v13744_v11, %v11404_v49  ;;  %v13822_v32 = vld [vmem:[#allocation7 + $0x1f4] sm:$0xf] }
 0x21a   : > { %4734 = vmatpush.bf16.msra.mxu1 %v11411_v26  ;;  %v11524_v26 = vld [vmem:[#allocation7 + $0x178] sm:$0xf0] }
 0x21b   : > { %4421 = vmatmul.bf16.vlgmr.msrb.gmra.mxu0 %v4220_v35  ;;  %4440 = vmatmul.bf16.vlgmr.msrb.gmra.mxu1 %v4232_v45 }
 0x21c   : > { %4459 = vmatmul.bf16.vlgmr.msrb.gmra.mxu2 %v4220_v35  ;;  %4478 = vmatmul.bf16.vlgmr.msrb.gmra.mxu3 %v4232_v45  ;;  %v11347_v45 = vor.u32 %v13731_v62, %v11346_v59  ;;  %v13807_v62 = vld [vmem:[#allocation7 + $0x174] sm:$0xf0] }
 0x21d   : > { %4753 = vmatpush.bf16.msra.mxu2 %v11351_v38  ;;  %4772 = vmatpush.bf16.msra.mxu3 %v11415_v18  ;;  %v2853_v38 = vadd.f32 %v15382_v33, %v15380_v48  ;;  %v4243_v18 = vor.u32 %v4241_v61, %v15416_v28  ;;  %v11523_v1 = vor.u32 %v13807_v62, %v11522_v46  ;;  %v11588_v28 = vld [vmem:[#allocation7 + $0x1f8] sm:$0xf0]  ;;  %v11514_v61 = vld [vmem:[#allocation7 + $0x160] sm:$0xf]  ;;  %v13820_v62 = vld [vmem:[#allocation7 + $0x1e4] sm:$0xf] }
 0x21e   : > { %4715 = vmatpush.bf16.msra.mxu0 %v11347_v45  ;;  %v11587_v45 = vor.u32 %v13823_v47, %v11586_v40  ;;  %v4240_v48 = vsel %vm888_vm4, %v4235_v5, %v4239_v8  ;;  %v11527_v33 = vor.u32 %v13806_v27, %v11524_v26  ;;  %v11580_v40 = vld [vmem:[#allocation7 + $0x1e8] sm:$0xf0] }
 0x21f   : > { %v3163_v10 = vpop.f32.mrf.mxu2  ;;  %v3182_v57 = vpop.f32.mrf.mxu3  ;;  %v2899_v46 = vadd.f32 %v2853_v38, %v15358_v7  ;;  %v4248_v8 = vsel %vm888_vm4, %v4243_v18, %v4247_v13  ;;  %v13802_v13 = vld [vmem:[#allocation7 + $0x154] sm:$0xf]  ;;  %v11508_v38 = vld [vmem:[#allocation7 + $0x158] sm:$0xf0]  ;;  %v15468_v18 = vperm.slane %v15435_v23, 1  ;;  %v11583_v27 = vor.u32 %v13820_v62, %v11580_v40 }
 0x220   : > { %v3127_v36 = vpop.f32.mrf.mxu0  ;;  %v3146_v35 = vpop.f32.mrf.mxu1  ;;  %v11339_v10 = vor.u32 %v13729_v2, %v11338_v20  ;;  %v11402_v57 = vld [vmem:[#allocation5 + $0x480] sm:$0xf]  ;;  %v11591_v20 = vor.u32 %v13822_v32, %v11588_v28  ;;  %v13818_v32 = vld [vmem:[#allocation7 + $0x1d4] sm:$0xf]  ;;  %v2546_v23 = vadd.f32 %v15369_v14, %v15367_v29  ;;  %v11564_v29 = vld [vmem:[#allocation7 + $0x1c8] sm:$0xf0] }
 0x221   : > { %4754 = vmatpush.bf16.msra.mxu2 %v11343_v54  ;;  %v11403_v59 = vor.u32 %v13745_v39, %v11402_v57  ;;  %4773 = vmatpush.bf16.msra.mxu3 %v11407_v25  ;;  %v13805_v54 = vld [vmem:[#allocation7 + $0x164] sm:$0xf0]  ;;  %v11578_v25 = vld [vmem:[#allocation7 + $0x1e0] sm:$0xf]  ;;  %v13804_v57 = vld [vmem:[#allocation7 + $0x164] sm:$0xf]  ;;  %v2544_v39 = vadd.f32 %v15362_v63, %v15360_v0  ;;  %v2855_v0 = vadd.f32 %v15408_v17, %v15406_v3 }
 0x222   : > { %4716 = vmatpush.bf16.msra.mxu0 %v11339_v10  ;;  %v11515_v2 = vor.u32 %v13805_v54, %v11514_v61  ;;  %v13821_v10 = vld [vmem:[#allocation7 + $0x1e4] sm:$0xf0]  ;;  %v13819_v63 = vld [vmem:[#allocation7 + $0x1d4] sm:$0xf0]  ;;  %v11511_v17 = vor.u32 %v13802_v13, %v11508_v38  ;;  %v11490_v14 = vld [vmem:[#allocation7 + $0x130] sm:$0xf] }
 0x223   : > { %4735 = vmatpush.bf16.msra.mxu1 %v11403_v59  ;;  %v11579_v5 = vor.u32 %v13821_v10, %v11578_v25  ;;  %v11516_v59 = vld [vmem:[#allocation7 + $0x168] sm:$0xf0]  ;;  %v13817_v54 = vld [vmem:[#allocation7 + $0x1c4] sm:$0xf0]  ;;  %v2901_v25 = vadd.f32 %v2855_v0, %v15365_v37  ;;  %v11554_v37 = vld [vmem:[#allocation7 + $0x1b0] sm:$0xf] }
 0x224   : > { %v11519_v47 = vor.u32 %v13804_v57, %v11516_v59  ;;  %v13816_v59 = vld [vmem:[#allocation7 + $0x1c4] sm:$0xf]  ;;  %v11492_v0 = vld [vmem:[#allocation7 + $0x138] sm:$0xf0] }
 0x225   : > { %5286 = vmatpush.bf16.msrb.mxu2 %v11527_v33  ;;  %5305 = vmatpush.bf16.msrb.mxu3 %v11591_v20  ;;  %v11562_v33 = vld [vmem:[#allocation7 + $0x1c0] sm:$0xf]  ;;  %v11500_v20 = vld [vmem:[#allocation7 + $0x148] sm:$0xf0]  ;;  %v15481_v38 = vld [vmem:[#allocation7 + $0x1b8] sm:$0xf0] }
 0x226   : > { %5248 = vmatpush.bf16.msrb.mxu0 %v11523_v1  ;;  %v11570_v1 = vld [vmem:[#allocation7 + $0x1d0] sm:$0xf]  ;;  %v11563_v40 = vor.u32 %v13817_v54, %v11562_v33 }
 0x227   : > { %v3165_v36 = vpop.f32.mrf.mxu2  ;;  %v3184_v35 = vpop.f32.mrf.mxu3  ;;  %5267 = vmatpush.bf16.msrb.mxu1 %v11587_v45  ;;  %v2891_v45 = vadd.f32 %v15404_v15, %v15402_v41  ;;  %v4541_v41 = vrot.slane %v15422_v53, 1  ;;  %v2553_v15 = vadd.f32 %v2544_v39, %v15334_v55  ;;  %v11571_v3 = vor.u32 %v13819_v63, %v11570_v1 }
 0x228   : > { %v3130_v16 = vpop.f32.mrf.mxu0  ;;  %v3149_v11 = vpop.f32.mrf.mxu1  ;;  %v11506_v36 = vld [vmem:[#allocation7 + $0x150] sm:$0xf]  ;;  %v13803_v35 = vld [vmem:[#allocation7 + $0x154] sm:$0xf0]  ;;  %v2893_v1 = vadd.f32 %v15420_v34, %v15418_v43  ;;  %v15488_v43 = vld [vmem:[#allocation7 + $0x1a0] sm:$0xf] }
 0x229   : > { %v3150_v49 = vadd.f32 %v3149_v11, %v3130_v16  ;;  %v11507_v26 = vor.u32 %v13803_v35, %v11506_v36  ;;  %v11572_v16 = vld [vmem:[#allocation7 + $0x1d8] sm:$0xf0]  ;;  %5287 = vmatpush.bf16.msrb.mxu2 %v11519_v47  ;;  %v11498_v11 = vld [vmem:[#allocation7 + $0x140] sm:$0xf]  ;;  %5306 = vmatpush.bf16.msrb.mxu3 %v11583_v27  ;;  %v13799_v36 = vld [vmem:[#allocation7 + $0x134] sm:$0xf0] }
 0x22a   : > { %5249 = vmatpush.bf16.msrb.mxu0 %v11515_v2  ;;  %v2900_v2 = vadd.f32 %v2891_v45, %v2553_v15  ;;  %v13815_v35 = vld [vmem:[#allocation7 + $0x1b4] sm:$0xf0]  ;;  %v13798_v45 = vld [vmem:[#allocation7 + $0x134] sm:$0xf]  ;;  %v15483_v27 = vld [vmem:[#allocation7 + $0x120] sm:$0xf]  ;;  %v11491_v15 = vor.u32 %v13799_v36, %v11490_v14 }
 0x22b   : > { %4426 = vmatmul.bf16.gmra.mxu0 %v4240_v48  ;;  %4445 = vmatmul.bf16.gmra.mxu1 %v4248_v8  ;;  %v3196_v7 = vadd.f32 %v3150_v49, %v2899_v46  ;;  %v13800_v49 = vld [vmem:[#allocation7 + $0x144] sm:$0xf]  ;;  %v15490_v34 = vld [vmem:[#allocation7 + $0x1a4] sm:$0xf0]  ;;  %v11495_v33 = vor.u32 %v13798_v45, %v11492_v0  ;;  %v15526_v14 = vld [vmem:[#allocation7 + $0x114] sm:$0xf] }
 0x22c   : > { %4464 = vmatmul.bf16.gmra.mxu2 %v4240_v48  ;;  %4483 = vmatmul.bf16.gmra.mxu3 %v4248_v8  ;;  %v13801_v48 = vld [vmem:[#allocation7 + $0x144] sm:$0xf0]  ;;  %v11575_v8 = vor.u32 %v13818_v32, %v11572_v16  ;;  %v11503_v47 = vor.u32 %v13800_v49, %v11500_v20  ;;  %v2555_v32 = vadd.f32 %v2546_v23, %v15349_v51  ;;  %v15543_v45 = vld [vmem:[#allocation7 + $0x100] sm:$0xf] }
 0x22d   : > { %5268 = vmatpush.bf16.msrb.mxu1 %v11579_v5  ;;  %v3209_v55 = vadd.f32 %v15451_v24, %v3196_v7  ;;  %v11499_v5 = vor.u32 %v13801_v48, %v11498_v11  ;;  %5288 = vmatpush.bf16.msrb.mxu2 %v11511_v17  ;;  %v15478_v7 = vld [vmem:[#allocation7 + $0x1b4] sm:$0xf]  ;;  %v11567_v16 = vor.u32 %v13816_v59, %v11564_v29  ;;  %v15524_v29 = vld [vmem:[#allocation7 + $0x194] sm:$0xf0]  ;;  %v15545_v0 = vld [vmem:[#allocation7 + $0x104] sm:$0xf0] }
 0x22e   : > { %5250 = vmatpush.bf16.msrb.mxu0 %v11507_v26  ;;  %v15485_v26 = vld [vmem:[#allocation7 + $0x124] sm:$0xf0]  ;;  %5307 = vmatpush.bf16.msrb.mxu3 %v11575_v8  ;;  %v11555_v48 = vor.u32 %v13815_v35, %v11554_v37  ;;  %v2902_v51 = vadd.f32 %v2893_v1, %v2555_v32  ;;  %v4537_v49 = vsel %vm978_vm5, %v4535_v42, %v4536_v4  ;;  %v15517_v8 = vld [vmem:[#allocation7 + $0x190] sm:$0xf]  ;;  %v15538_v35 = vld [vmem:[#allocation7 + $0x194] sm:$0xf] }
 0x22f   : > { %v3168_v28 = vpop.f32.mrf.mxu2  ;;  %v3187_v61 = vpop.f32.mrf.mxu3  ;;  %v3217_v17 = vmax.f32 %v3209_v55, 0.0  ;;  %v4540_v20 = vsel %vm978_vm5, %v4538_v9, %v4539_v30  ;;  %v15510_v55 = vld [vmem:[#allocation7 + $0x110] sm:$0xf]  ;;  %v11483_v44 = vor.u32 %v15485_v26, %v15483_v27  ;;  %v15540_v1 = vld [vmem:[#allocation7 + $0x198] sm:$0xf0] }
 0x230   : > { %v3188_v10 = vadd.f32 %v3187_v61, %v3168_v28  ;;  %v3132_v57 = vpop.f32.mrf.mxu0  ;;  %v3151_v39 = vpop.f32.mrf.mxu1  ;;  %v11484_v28 = vld [vmem:[#allocation7 + $0x128] sm:$0xf0]  ;;  %v15494_v61 = vld [vmem:[#allocation7 + $0x1a4] sm:$0xf]  ;;  %v15554_v26 = vld [vmem:[#allocation7 + $0x180] sm:$0xf] }
 0x231   : > { %v3152_v46 = vadd.f32 %v3151_v39, %v3132_v57  ;;  %5269 = vmatpush.bf16.msrb.mxu1 %v11571_v3  ;;  %v15492_v3 = vld [vmem:[#allocation7 + $0x124] sm:$0xf]  ;;  %5289 = vmatpush.bf16.msrb.mxu2 %v11503_v47  ;;  %v15556_v32 = vld [vmem:[#allocation7 + $0x184] sm:$0xf0] }
 0x232   : > { %v3197_v62 = vadd.f32 %v3188_v10, %v2900_v2  ;;  %5251 = vmatpush.bf16.msrb.mxu0 %v11499_v5  ;;  %v11559_v2 = vor.u32 %v15478_v7, %v15481_v38  ;;  %v15512_v10 = vld [vmem:[#allocation7 + $0x114] sm:$0xf0]  ;;  %5308 = vmatpush.bf16.msrb.mxu3 %v11567_v16  ;;  %v11547_v5 = vor.u32 %v15490_v34, %v15488_v43  ;;  %v15558_v16 = vld [vmem:[#allocation7 + $0x104] sm:$0xf]  ;;  %v15562_v34 = vld [vmem:[#allocation7 + $0x108] sm:$0xf0] }
 0x233   : > { %v3198_v13 = vadd.f32 %v3152_v46, %v2901_v25  ;;  %v15508_v25 = vld [vmem:[#allocation7 + $0x1a8] sm:$0xf0]  ;;  %v11487_v59 = vor.u32 %v15492_v3, %v11484_v28  ;;  %v11475_v37 = vor.u32 %v15512_v10, %v15510_v55  ;;  %v11539_v38 = vor.u32 %v15524_v29, %v15517_v8  ;;  %v11650_v10 = vld [vmem:[#allocation7 + $0x70] sm:$0xf] }
 0x234   : > { %v3210_v63 = vadd.f32 %v15468_v18, %v3197_v62  ;;  %v15528_v62 = vld [vmem:[#allocation7 + $0x118] sm:$0xf0]  ;;  %v11551_v36 = vor.u32 %v15494_v61, %v15508_v25  ;;  %v11543_v43 = vor.u32 %v15538_v35, %v15540_v1  ;;  %v11471_v28 = vor.u32 %v15558_v16, %v15562_v34  ;;  %v4940_v61 = vld [vmem:[#allocation4 + $0x8] sm:$0x88]  ;;  %v13774_v35 = vld [vmem:[#allocation7 + $0x74] sm:$0xf] }
 0x235   : > { %5270 = vmatpush.bf16.msrb.mxu1 %v11563_v40  ;;  %v3211_v31 = vadd.f32 %v15451_v24, %v3198_v13  ;;  %5290 = vmatpush.bf16.msrb.mxu2 %v11495_v33  ;;  %v11479_v27 = vor.u32 %v15526_v14, %v15528_v62  ;;  %v11531_v33 = vor.u32 %v15556_v32, %v15554_v26  ;;  %v5017_v55 = vunpack.c.h.b16 %v4940_v61  ;;  %v11652_v1 = vld [vmem:[#allocation7 + $0x78] sm:$0xf0] }
 0x236   : > { %v3218_v11 = vmax.f32 %v3210_v63, 0.0  ;;  %5252 = vmatpush.bf16.msrb.mxu0 %v11491_v15  ;;  %5309 = vmatpush.bf16.msrb.mxu3 %v11559_v2 }
 0x237   : > { %v3170_v23 = vpop.f32.mrf.mxu2  ;;  %v3189_v54 = vpop.f32.mrf.mxu3  ;;  %v3219_v15 = vmax.f32 %v3211_v31, 0.0 }
 0x238   : > { %v3223_v57 = vpack.c.bf16 %v3218_v11, %v3217_v17  ;;  %v3190_v39 = vadd.f32 %v3189_v54, %v3170_v23  ;;  %v3545_v42 = vpop.f32.mrf.mxu0  ;;  %v3564_v46 = vpop.f32.mrf.mxu1  ;;  %v15580_v54 = vld [vmem:[#allocation7 + $0x184] sm:$0xf] }
 0x239   : > { %v15519_v9 = vadd.f32 %v3564_v46, %v3545_v42  ;;  %5271 = vmatpush.bf16.msrb.mxu1 %v11555_v48  ;;  %5291 = vmatpush.bf16.msrb.mxu2 %v11487_v59  ;;  %v11467_v48 = vor.u32 %v15545_v0, %v15543_v45  ;;  %v13791_v59 = vld [vmem:[#allocation7 + $0xf4] sm:$0xf0]  ;;  %v15600_v0 = vpack.c.b16 %v14942_v19, %v5017_v55 }
 0x23a   : > { %v15532_v40 = vsel %vm14886_vm7, %v3223_v57, 0  ;;  %v3199_v47 = vadd.f32 %v3190_v39, %v2902_v51  ;;  %5253 = vmatpush.bf16.msrb.mxu0 %v11483_v44  ;;  %v13775_v57 = vld [vmem:[#allocation7 + $0x74] sm:$0xf0]  ;;  %5310 = vmatpush.bf16.msrb.mxu3 %v11551_v36  ;;  %v13790_v36 = vld [vmem:[#allocation7 + $0xf4] sm:$0xf] }
 0x23b   : > { %4931 = vst [vmem:[#allocation4 + $0x20] sm:$0xff] %v15532_v40  ;;  %4717 = vmatmul.bf16.vlgmr.msra.gmra.mxu0 %v4537_v49  ;;  %4736 = vmatmul.bf16.vlgmr.msra.gmra.mxu1 %v4540_v20  ;;  %v5022_v7 = vunpack.c.l.b16 %v15532_v40  ;;  %v5023_v63 = vunpack.c.h.b16 %v15532_v40  ;;  %v11651_v16 = vor.u32 %v13775_v57, %v11650_v10  ;;  %v13789_v10 = vld [vmem:[#allocation7 + $0xe4] sm:$0xf0]  ;;  %v13772_v57 = vld [vmem:[#allocation7 + $0x64] sm:$0xf] }
 0x23c   : > { %v3212_v13 = vadd.f32 %v15468_v18, %v3199_v47  ;;  %4755 = vmatmul.bf16.vlgmr.msra.gmra.mxu2 %v4537_v49  ;;  %4774 = vmatmul.bf16.vlgmr.msra.gmra.mxu3 %v4540_v20  ;;  %v15582_v49 = vld [vmem:[#allocation7 + $0x188] sm:$0xf0]  ;;  %v5016_v20 = vunpack.c.l.b16 %v4940_v61 }
 0x23d   : > { %v15567_v3 = vpack.c.b16 %v5022_v7, %v14921_v50  ;;  %v15572_v17 = vpack.c.b16 %v5023_v63, %v14942_v19  ;;  %5272 = vmatpush.bf16.msrb.mxu1 %v11547_v5  ;;  %v11714_v5 = vld [vmem:[#allocation7 + $0xf0] sm:$0xf]  ;;  %5292 = vmatpush.bf16.msrb.mxu2 %v11479_v27  ;;  %v5050_v27 = vshrl.u32 %v15600_v0, 16  ;;  %v5053_v19 = vshll.u32 %v15600_v0, 16 }
 0x23e   : > { %v3220_v11 = vmax.f32 %v3212_v13, 0.0  ;;  %5254 = vmatpush.bf16.msrb.mxu0 %v11475_v37  ;;  %v15593_v14 = vpack.c.b16 %v14921_v50, %v5016_v20  ;;  %v4543_v50 = vrot.slane %v15424_v56, 1  ;;  %v11715_v34 = vor.u32 %v13791_v59, %v11714_v5  ;;  %5311 = vmatpush.bf16.msrb.mxu3 %v11543_v43  ;;  %v13773_v20 = vld [vmem:[#allocation7 + $0x64] sm:$0xf0] }
 0x23f   : > { %v3583_v51 = vpop.f32.mrf.mxu2  ;;  %v3602_v23 = vpop.f32.mrf.mxu3  ;;  %v5041_v2 = vshrl.u32 %v15567_v3, 16  ;;  %v5044_v25 = vshll.u32 %v15567_v3, 16  ;;  %v5058_v44 = vshrl.u32 %v15572_v17, 16  ;;  %v5061_v8 = vshll.u32 %v15572_v17, 16 }
 0x240   : > { %v3224_v31 = vpack.c.bf16 %v3220_v11, %v3219_v15  ;;  %v15586_v39 = vadd.f32 %v3602_v23, %v3583_v51  ;;  %v3547_v42 = vpop.f32.mrf.mxu0  ;;  %v3566_v46 = vpop.f32.mrf.mxu1  ;;  %v5033_v37 = vshrl.u32 %v15593_v14, 16  ;;  %v5036_v32 = vshll.u32 %v15593_v14, 16  ;;  %v11716_v15 = vld [vmem:[#allocation7 + $0xf8] sm:$0xf0]  ;;  %v11642_v11 = vld [vmem:[#allocation7 + $0x60] sm:$0xf] }
 0x241   : > { %v15590_v29 = vadd.f32 %v3566_v46, %v3547_v42  ;;  %v5043_v62 = vrot.slane %v5041_v2, 3  ;;  %v5046_v47 = vrot.slane %v5044_v25, 4  ;;  %5273 = vmatpush.bf16.msrb.mxu1 %v11539_v38  ;;  %v5060_v13 = vrot.slane %v5058_v44, 3  ;;  %v11706_v2 = vld [vmem:[#allocation7 + $0xe0] sm:$0xf]  ;;  %5293 = vmatpush.bf16.msrb.mxu2 %v11471_v28 }
 0x242   : > { %v15597_v45 = vsel %vm14886_vm7, %v3224_v31, 0  ;;  %v5063_v26 = vrot.slane %v5061_v8, 4  ;;  %v11535_v38 = vor.u32 %v15580_v54, %v15582_v49  ;;  %5255 = vmatpush.bf16.msrb.mxu0 %v11467_v48  ;;  %v5035_v61 = vrot.slane %v5033_v37, 3  ;;  %v11644_v48 = vld [vmem:[#allocation7 + $0x68] sm:$0xf0] }
 0x243   : > { %4932 = vst [vmem:[#allocation4 + $0x28] sm:$0xff] %v15597_v45  ;;  %v5038_v51 = vrot.slane %v5036_v32, 4  ;;  %v15610_v56 = vor.u32 %v5046_v47, %v5043_v62  ;;  %v11655_v23 = vor.u32 %v13774_v35, %v11652_v1  ;;  %v5052_v25 = vrot.slane %v5050_v27, 3  ;;  %v13788_v46 = vld [vmem:[#allocation7 + $0xe4] sm:$0xf] }
 0x244   : > { %v5055_v55 = vrot.slane %v5053_v19, 4  ;;  %v15612_v54 = vor.u32 %v5063_v26, %v5060_v13  ;;  %v11719_v49 = vor.u32 %v13790_v36, %v11716_v15  ;;  %v11708_v44 = vld [vmem:[#allocation7 + $0xe8] sm:$0xf0]  ;;  %v4542_v28 = vsel %vm978_vm5, %v4536_v4, %v4541_v41  ;;  %5312 = vmatpush.bf16.msrb.mxu3 %v11535_v38  ;;  %v11634_v13 = vld [vmem:[#allocation7 + $0x50] sm:$0xf] }
 0x245   : > { %5274 = vmatpush.bf16.msrb.mxu1 %v11531_v33  ;;  %v5039_v43 = vor.u32 %v5038_v51, %v5035_v61  ;;  %5541 = vmatpush.bf16.msra.mxu2 %v11655_v23  ;;  %v11643_v35 = vor.u32 %v13773_v20, %v11642_v11  ;;  %v11707_v1 = vor.u32 %v13789_v10, %v11706_v2  ;;  %v13771_v26 = vld [vmem:[#allocation7 + $0x54] sm:$0xf0]  ;;  %v11698_v36 = vld [vmem:[#allocation7 + $0xd0] sm:$0xf]  ;;  %v13770_v32 = vld [vmem:[#allocation7 + $0x54] sm:$0xf]  ;;  %v15635_v19 = vunpack.c.l.b16 %v15597_v45 }
 0x246   : > { %5503 = vmatpush.bf16.msra.mxu0 %v11651_v16  ;;  %v5056_v59 = vor.u32 %v5055_v55, %v5052_v25  ;;  %v4544_v6 = vsel %vm978_vm5, %v4539_v30, %v4543_v50  ;;  %v11647_v4 = vor.u32 %v13772_v57, %v11644_v48  ;;  %v11711_v41 = vor.u32 %v13788_v46, %v11708_v44  ;;  %v13787_v37 = vld [vmem:[#allocation7 + $0xd4] sm:$0xf0]  ;;  %v11636_v16 = vld [vmem:[#allocation7 + $0x58] sm:$0xf0]  ;;  %v13786_v15 = vld [vmem:[#allocation7 + $0xd4] sm:$0xf] }
 0x247   : > { %v3585_v31 = vpop.f32.mrf.mxu2  ;;  %v3604_v42 = vpop.f32.mrf.mxu3  ;;  %v15625_v47 = vsel %vm655_vm3, %v5039_v43, %v15610_v56  ;;  %v11700_v38 = vld [vmem:[#allocation7 + $0xd8] sm:$0xf0]  ;;  %v11626_v27 = vld [vmem:[#allocation7 + $0x40] sm:$0xf]  ;;  %v15638_v58 = vunpack.c.h.b16 %v15597_v45  ;;  %v13769_v30 = vld [vmem:[#allocation7 + $0x44] sm:$0xf0]  ;;  %v11635_v11 = vor.u32 %v13771_v26, %v11634_v13  ;;  %v11699_v61 = vor.u32 %v13787_v37, %v11698_v36 }
 0x248   : > { %v15614_v8 = vadd.f32 %v3604_v42, %v3585_v31  ;;  %v3550_v5 = vpop.f32.mrf.mxu0  ;;  %v3569_v33 = vpop.f32.mrf.mxu1  ;;  %v15632_v53 = vsel %vm655_vm3, %v5056_v59, %v15612_v54  ;;  %5560 = vmatpush.bf16.msra.mxu3 %v11719_v49  ;;  %v11690_v50 = vld [vmem:[#allocation7 + $0xc0] sm:$0xf]  ;;  %v13768_v51 = vld [vmem:[#allocation7 + $0x44] sm:$0xf]  ;;  %v11628_v23 = vld [vmem:[#allocation7 + $0x48] sm:$0xf0]  ;;  %v5030_v20 = vpack.c.b16 %v15635_v19, %v15635_v19  ;;  %v11639_v2 = vor.u32 %v13770_v32, %v11636_v16 }
 0x249   : > { %5522 = vmatpush.bf16.msra.mxu1 %v11715_v34  ;;  %v15621_v62 = vadd.f32 %v3569_v33, %v3550_v5  ;;  %v13785_v34 = vld [vmem:[#allocation7 + $0xc4] sm:$0xf0]  ;;  %5542 = vmatpush.bf16.msra.mxu2 %v11647_v4  ;;  %v11703_v25 = vor.u32 %v13786_v15, %v11700_v38  ;;  %v13784_v45 = vld [vmem:[#allocation7 + $0xc4] sm:$0xf]  ;;  %v11692_v55 = vld [vmem:[#allocation7 + $0xc8] sm:$0xf0]  ;;  %v5031_v49 = vpack.c.b16 %v15638_v58, %v15638_v58 }
 0x24a   : > { %5504 = vmatpush.bf16.msra.mxu0 %v11643_v35  ;;  %v11627_v31 = vor.u32 %v13769_v30, %v11626_v27  ;;  %v11691_v42 = vor.u32 %v13785_v34, %v11690_v50  ;;  %v5067_v43 = vshrl.u32 %v5030_v20, 16  ;;  %v5070_v48 = vshll.u32 %v5030_v20, 16  ;;  %v11618_v46 = vld [vmem:[#allocation7 + $0x30] sm:$0xf]  ;;  %v13766_v37 = vld [vmem:[#allocation7 + $0x34] sm:$0xf] }
 0x24b   : > { %4722 = vmatmul.bf16.gmra.mxu0 %v4542_v28  ;;  %4741 = vmatmul.bf16.gmra.mxu1 %v4544_v6  ;;  %v5076_v59 = vshrl.u32 %v5031_v49, 16  ;;  %v5079_v35 = vshll.u32 %v5031_v49, 16  ;;  %v11682_v13 = vld [vmem:[#allocation7 + $0xb0] sm:$0xf]  ;;  %v11695_v36 = vor.u32 %v13784_v45, %v11692_v55  ;;  %v11620_v15 = vld [vmem:[#allocation7 + $0x38] sm:$0xf0] }
 0x24c   : > { %4760 = vmatmul.bf16.gmra.mxu2 %v4542_v28  ;;  %4779 = vmatmul.bf16.gmra.mxu3 %v4544_v6  ;;  %v11631_v28 = vor.u32 %v13768_v51, %v11628_v23  ;;  %v5069_v6 = vrot.slane %v5067_v43, 3  ;;  %v5072_v4 = vrot.slane %v5070_v48, 4  ;;  %v5329_v38 = vrot.slane %v15593_v14, 3  ;;  %v13782_v50 = vld [vmem:[#allocation7 + $0xb4] sm:$0xf] }
 0x24d   : > { %5523 = vmatpush.bf16.msra.mxu1 %v11707_v1  ;;  %5561 = vmatpush.bf16.msra.mxu3 %v11711_v41  ;;  %v13767_v1 = vld [vmem:[#allocation7 + $0x34] sm:$0xf0]  ;;  %v5078_v32 = vrot.slane %v5076_v59, 3  ;;  %v5081_v16 = vrot.slane %v5079_v35, 4  ;;  %v5330_v27 = vrot.slane %v15567_v3, 3  ;;  %v11623_v14 = vor.u32 %v13766_v37, %v11620_v15 }
 0x24e   : > { %5505 = vmatpush.bf16.msra.mxu0 %v11635_v11  ;;  %v13783_v41 = vld [vmem:[#allocation7 + $0xb4] sm:$0xf0]  ;;  %5543 = vmatpush.bf16.msra.mxu2 %v11639_v2  ;;  %v5073_v30 = vor.u32 %v5072_v4, %v5069_v6  ;;  %v11684_v34 = vld [vmem:[#allocation7 + $0xb8] sm:$0xf0]  ;;  %v11619_v11 = vor.u32 %v13767_v1, %v11618_v46  ;;  %v11610_v2 = vld [vmem:[#allocation7 + $0x20] sm:$0xf] }
 0x24f   : > { %v3588_v10 = vpop.f32.mrf.mxu2  ;;  %v3607_v57 = vpop.f32.mrf.mxu3  ;;  %v5082_v51 = vor.u32 %v5081_v16, %v5078_v32  ;;  %v11683_v20 = vor.u32 %v13783_v41, %v11682_v13  ;;  %v11687_v55 = vor.u32 %v13782_v50, %v11684_v34  ;;  %v11674_v49 = vld [vmem:[#allocation7 + $0xa0] sm:$0xf]  ;;  %v11612_v43 = vld [vmem:[#allocation7 + $0x28] sm:$0xf0]  ;;  %v13780_v48 = vld [vmem:[#allocation7 + $0xa4] sm:$0xf] }
 0x250   : > { %v15644_v44 = vadd.f32 %v3607_v57, %v3588_v10  ;;  %v3552_v5 = vpop.f32.mrf.mxu0  ;;  %v3571_v33 = vpop.f32.mrf.mxu1  ;;  %v15657_v23 = vsel %vm655_vm3, %v15610_v56, %v5073_v30  ;;  %v13781_v10 = vld [vmem:[#allocation7 + $0xa4] sm:$0xf0]  ;;  %v13764_v57 = vld [vmem:[#allocation7 + $0x24] sm:$0xf]  ;;  %v11676_v46 = vld [vmem:[#allocation7 + $0xa8] sm:$0xf0] }
 0x251   : > { %v15646_v26 = vadd.f32 %v3571_v33, %v3552_v5  ;;  %5524 = vmatpush.bf16.msra.mxu1 %v11699_v61  ;;  %5562 = vmatpush.bf16.msra.mxu3 %v11703_v25  ;;  %v15653_v61 = vsel %vm740_vm2, %v5329_v38, %v5330_v27  ;;  %v13765_v25 = vld [vmem:[#allocation7 + $0x24] sm:$0xf0]  ;;  %v15661_v45 = vsel %vm655_vm3, %v15612_v54, %v5082_v51  ;;  %v5332_v59 = vrot.slane %v15600_v0, 3  ;;  %v11602_v13 = vld [vmem:[#allocation7 + $0x10] sm:$0xf] }
 0x252   : > { %5506 = vmatpush.bf16.msra.mxu0 %v11627_v31  ;;  %5544 = vmatpush.bf16.msra.mxu2 %v11631_v28  ;;  %v15666_v31 = vpack.c.b16 %v15635_v19, %v5022_v7  ;;  %v15671_v5 = vpack.c.b16 %v15638_v58, %v5023_v63  ;;  %v5333_v35 = vrot.slane %v15572_v17, 3  ;;  %v11611_v19 = vor.u32 %v13765_v25, %v11610_v2  ;;  %v11666_v58 = vld [vmem:[#allocation7 + $0x90] sm:$0xf]  ;;  %v13779_v6 = vld [vmem:[#allocation7 + $0x94] sm:$0xf0] }
 0x253   : > { %v11675_v1 = vor.u32 %v13781_v10, %v11674_v49  ;;  %v11615_v40 = vor.u32 %v13764_v57, %v11612_v43  ;;  %v11679_v63 = vor.u32 %v13780_v48, %v11676_v46  ;;  %v13762_v4 = vld [vmem:[#allocation7 + $0x14] sm:$0xf]  ;;  %v11668_v32 = vld [vmem:[#allocation7 + $0x98] sm:$0xf0]  ;;  %v11594_v16 = vld [vmem:[#allocation7] sm:$0xf]  ;;  %v11667_v38 = vor.u32 %v13779_v6, %v11666_v58 }
 0x254   : > { %v15681_v0 = vsel %vm740_vm2, %v5332_v59, %v5333_v35  ;;  %v13778_v37 = vld [vmem:[#allocation7 + $0x94] sm:$0xf]  ;;  %v13761_v30 = vld [vmem:[#allocation7 + $0x4] sm:$0xf0]  ;;  %v11658_v50 = vld [vmem:[#allocation7 + $0x80] sm:$0xf] }
 0x255   : > { %5525 = vmatpush.bf16.msra.mxu1 %v11691_v42  ;;  %5563 = vmatpush.bf16.msra.mxu3 %v11695_v36  ;;  %v13763_v36 = vld [vmem:[#allocation7 + $0x14] sm:$0xf0]  ;;  %v13777_v34 = vld [vmem:[#allocation7 + $0x84] sm:$0xf0]  ;;  %v13776_v2 = vld [vmem:[#allocation7 + $0x84] sm:$0xf] }
 0x256   : > { %5507 = vmatpush.bf16.msra.mxu0 %v11619_v11  ;;  %5545 = vmatpush.bf16.msra.mxu2 %v11623_v14  ;;  %v11603_v15 = vor.u32 %v13763_v36, %v11602_v13  ;;  %v11671_v11 = vor.u32 %v13778_v37, %v11668_v32  ;;  %v11596_v14 = vld [vmem:[#allocation7 + $0x8] sm:$0xf0]  ;;  %v11778_v49 = vld [vmem:[#allocation7 + $0x270] sm:$0xf]  ;;  %v13855_v43 = vld [vmem:[#allocation7 + $0x2f4] sm:$0xf0] }
 0x257   : > { %v3590_v56 = vpop.f32.mrf.mxu2  ;;  %v3609_v42 = vpop.f32.mrf.mxu3  ;;  %v13838_v48 = vld [vmem:[#allocation7 + $0x274] sm:$0xf]  ;;  %v11780_v59 = vld [vmem:[#allocation7 + $0x278] sm:$0xf0]  ;;  %v13853_v37 = vld [vmem:[#allocation7 + $0x2e4] sm:$0xf0] }
 0x258   : > { %v15673_v54 = vadd.f32 %v3609_v42, %v3590_v56  ;;  %v3800_v33 = vpop.f32.mrf.mxu0  ;;  %v3819_v28 = vpop.f32.mrf.mxu1  ;;  %v11842_v42 = vld [vmem:[#allocation7 + $0x2f0] sm:$0xf]  ;;  %v11783_v58 = vor.u32 %v13838_v48, %v11780_v59  ;;  %v13836_v32 = vld [vmem:[#allocation7 + $0x264] sm:$0xf] }
 0x259   : > { %v3801_v7 = vadd.f32 %v3800_v33, %v15519_v9  ;;  %5526 = vmatpush.bf16.msra.mxu1 %v11683_v20  ;;  %5564 = vmatpush.bf16.msra.mxu3 %v11687_v55  ;;  %v11604_v9 = vld [vmem:[#allocation7 + $0x18] sm:$0xf0]  ;;  %v13760_v20 = vld [vmem:[#allocation7 + $0x4] sm:$0xf]  ;;  %v11595_v33 = vor.u32 %v13761_v30, %v11594_v16 }
 0x25a   : > { %5508 = vmatpush.bf16.msra.mxu0 %v11611_v19  ;;  %5546 = vmatpush.bf16.msra.mxu2 %v11615_v40  ;;  %v11607_v51 = vor.u32 %v13762_v4, %v11604_v9  ;;  %v11844_v19 = vld [vmem:[#allocation7 + $0x2f8] sm:$0xf0]  ;;  %v11599_v13 = vor.u32 %v13760_v20, %v11596_v14  ;;  %v13837_v4 = vld [vmem:[#allocation7 + $0x264] sm:$0xf0]  ;;  %v11834_v9 = vld [vmem:[#allocation7 + $0x2e0] sm:$0xf] }
 0x25b   : > { %v15683_v41 = vadd.f32 %v3819_v28, %v3801_v7  ;;  %5256 = vmatmul.bf16.vlgmr.msrb.gmra.mxu0 %v15625_v47  ;;  %5275 = vmatmul.bf16.vlgmr.msrb.gmra.mxu1 %v15632_v53  ;;  %v11659_v28 = vor.u32 %v13777_v34, %v11658_v50  ;;  %v13854_v7 = vld [vmem:[#allocation7 + $0x2f4] sm:$0xf]  ;;  %v13852_v30 = vld [vmem:[#allocation7 + $0x2e4] sm:$0xf]  ;;  %v11836_v50 = vld [vmem:[#allocation7 + $0x2e8] sm:$0xf0] }
 0x25c   : > { %5294 = vmatmul.bf16.vlgmr.msrb.gmra.mxu2 %v15625_v47  ;;  %5313 = vmatmul.bf16.vlgmr.msrb.gmra.mxu3 %v15632_v53  ;;  %v11660_v47 = vld [vmem:[#allocation7 + $0x88] sm:$0xf0]  ;;  %v13839_v53 = vld [vmem:[#allocation7 + $0x274] sm:$0xf0]  ;;  %v11847_v6 = vor.u32 %v13854_v7, %v11844_v19  ;;  %v11818_v19 = vld [vmem:[#allocation7 + $0x2c0] sm:$0xf] }
 0x25d   : > { %5527 = vmatpush.bf16.msra.mxu1 %v11675_v1  ;;  %5565 = vmatpush.bf16.msra.mxu3 %v11679_v63  ;;  %v11779_v40 = vor.u32 %v13839_v53, %v11778_v49  ;;  %v11843_v63 = vor.u32 %v13855_v43, %v11842_v42  ;;  %v11839_v53 = vor.u32 %v13852_v30, %v11836_v50  ;;  %v13850_v43 = vld [vmem:[#allocation7 + $0x2d4] sm:$0xf] }
 0x25e   : > { %5509 = vmatpush.bf16.msra.mxu0 %v11603_v15  ;;  %5547 = vmatpush.bf16.msra.mxu2 %v11607_v51 }
 0x25f   : > { %v3838_v25 = vpop.f32.mrf.mxu2  ;;  %v3857_v55 = vpop.f32.mrf.mxu3 }
 0x260   : > { %v3839_v10 = vadd.f32 %v3838_v25, %v15586_v39  ;;  %v3802_v57 = vpop.f32.mrf.mxu0  ;;  %v3821_v56 = vpop.f32.mrf.mxu1  ;;  %v11663_v39 = vor.u32 %v13776_v2, %v11660_v47  ;;  %v11835_v2 = vor.u32 %v13853_v37, %v11834_v9  ;;  %v11762_v25 = vld [vmem:[#allocation7 + $0x250] sm:$0xf] }
 0x261   : > { %v3803_v46 = vadd.f32 %v3802_v57, %v15590_v29  ;;  %5528 = vmatpush.bf16.msra.mxu1 %v11667_v38  ;;  %5566 = vmatpush.bf16.msra.mxu3 %v11671_v11  ;;  %v11770_v29 = vld [vmem:[#allocation7 + $0x260] sm:$0xf]  ;;  %v11772_v38 = vld [vmem:[#allocation7 + $0x268] sm:$0xf0]  ;;  %v13851_v57 = vld [vmem:[#allocation7 + $0x2d4] sm:$0xf0] }
 0x262   : > { %v15691_v1 = vadd.f32 %v3857_v55, %v3839_v10  ;;  %5510 = vmatpush.bf16.msra.mxu0 %v11595_v33  ;;  %5548 = vmatpush.bf16.msra.mxu2 %v11599_v13  ;;  %v11771_v14 = vor.u32 %v13837_v4, %v11770_v29  ;;  %v13835_v55 = vld [vmem:[#allocation7 + $0x254] sm:$0xf0]  ;;  %v11775_v49 = vor.u32 %v13836_v32, %v11772_v38  ;;  %v11826_v10 = vld [vmem:[#allocation7 + $0x2d0] sm:$0xf]  ;;  %v11754_v33 = vld [vmem:[#allocation7 + $0x240] sm:$0xf] }
 0x263   : > { %v15693_v36 = vadd.f32 %v3821_v56, %v3803_v46  ;;  %v13834_v56 = vld [vmem:[#allocation7 + $0x254] sm:$0xf]  ;;  %v11763_v48 = vor.u32 %v13835_v55, %v11762_v25  ;;  %v11827_v46 = vor.u32 %v13851_v57, %v11826_v10  ;;  %v13849_v13 = vld [vmem:[#allocation7 + $0x2c4] sm:$0xf0]  ;;  %v11738_v55 = vld [vmem:[#allocation7 + $0x220] sm:$0xf] }
 0x264   : > { %v11819_v32 = vor.u32 %v13849_v13, %v11818_v19  ;;  %v11802_v57 = vld [vmem:[#allocation7 + $0x2a0] sm:$0xf]  ;;  %v4944_v13 = vld [vmem:[#allocation4 + $0x28] sm:$0x77] }
 0x265   : > { %5529 = vmatpush.bf16.msra.mxu1 %v11659_v28  ;;  %5567 = vmatpush.bf16.msra.mxu3 %v11663_v39  ;;  %v13833_v28 = vld [vmem:[#allocation7 + $0x244] sm:$0xf0]  ;;  %v13832_v39 = vld [vmem:[#allocation7 + $0x244] sm:$0xf] }
 0x266   : > { %5780 = vmatpush.bf16.msrb.mxu0 %v11779_v40  ;;  %5818 = vmatpush.bf16.msrb.mxu2 %v11783_v58  ;;  %v11756_v58 = vld [vmem:[#allocation7 + $0x248] sm:$0xf0]  ;;  %v11755_v37 = vor.u32 %v13833_v28, %v11754_v33 }
 0x267   : > { %v3840_v16 = vpop.f32.mrf.mxu2  ;;  %v3859_v15 = vpop.f32.mrf.mxu3  ;;  %v11759_v30 = vor.u32 %v13832_v39, %v11756_v58  ;;  %v11804_v33 = vld [vmem:[#allocation7 + $0x2a8] sm:$0xf0]  ;;  %v13827_v58 = vld [vmem:[#allocation7 + $0x214] sm:$0xf0] }
 0x268   : > { %v3841_v34 = vadd.f32 %v3840_v16, %v15614_v8  ;;  %v3805_v51 = vpop.f32.mrf.mxu0  ;;  %v3824_v11 = vpop.f32.mrf.mxu1  ;;  %v11764_v8 = vld [vmem:[#allocation7 + $0x258] sm:$0xf0]  ;;  %v11746_v16 = vld [vmem:[#allocation7 + $0x230] sm:$0xf] }
 0x269   : > { %5799 = vmatpush.bf16.msrb.mxu1 %v11843_v63  ;;  %5837 = vmatpush.bf16.msrb.mxu3 %v11847_v6  ;;  %v3806_v20 = vadd.f32 %v3805_v51, %v15621_v62  ;;  %v11828_v62 = vld [vmem:[#allocation7 + $0x2d8] sm:$0xf0]  ;;  %v11767_v59 = vor.u32 %v13834_v56, %v11764_v8  ;;  %v13848_v6 = vld [vmem:[#allocation7 + $0x2c4] sm:$0xf]  ;;  %v13847_v51 = vld [vmem:[#allocation7 + $0x2b4] sm:$0xf0] }
 0x26a   : > { %v15697_v47 = vadd.f32 %v3859_v15, %v3841_v34  ;;  %5781 = vmatpush.bf16.msrb.mxu0 %v11771_v14  ;;  %5819 = vmatpush.bf16.msrb.mxu2 %v11775_v49  ;;  %v11831_v7 = vor.u32 %v13850_v43, %v11828_v62  ;;  %v13831_v15 = vld [vmem:[#allocation7 + $0x234] sm:$0xf0]  ;;  %v11810_v34 = vld [vmem:[#allocation7 + $0x2b0] sm:$0xf]  ;;  %v13846_v14 = vld [vmem:[#allocation7 + $0x2b4] sm:$0xf] }
 0x26b   : > { %v15699_v42 = vadd.f32 %v3824_v11, %v3806_v20  ;;  %5261 = vmatmul.bf16.gmra.mxu0 %v15657_v23  ;;  %5280 = vmatmul.bf16.gmra.mxu1 %v15661_v45  ;;  %v13830_v11 = vld [vmem:[#allocation7 + $0x234] sm:$0xf]  ;;  %v11748_v20 = vld [vmem:[#allocation7 + $0x238] sm:$0xf0]  ;;  %v11811_v25 = vor.u32 %v13847_v51, %v11810_v34  ;;  %v13829_v49 = vld [vmem:[#allocation7 + $0x224] sm:$0xf0] }
 0x26c   : > { %5299 = vmatmul.bf16.gmra.mxu2 %v15657_v23  ;;  %5318 = vmatmul.bf16.gmra.mxu3 %v15661_v45  ;;  %v11820_v23 = vld [vmem:[#allocation7 + $0x2c8] sm:$0xf0]  ;;  %v13845_v56 = vld [vmem:[#allocation7 + $0x2a4] sm:$0xf0]  ;;  %v13828_v8 = vld [vmem:[#allocation7 + $0x224] sm:$0xf]  ;;  %v11739_v39 = vor.u32 %v13829_v49, %v11738_v55 }
 0x26d   : > { %5800 = vmatpush.bf16.msrb.mxu1 %v11835_v2  ;;  %5838 = vmatpush.bf16.msrb.mxu3 %v11839_v53  ;;  %v11823_v50 = vor.u32 %v13848_v6, %v11820_v23  ;;  %v11747_v2 = vor.u32 %v13831_v15, %v11746_v16  ;;  %v11751_v53 = vor.u32 %v13830_v11, %v11748_v20  ;;  %v11796_v16 = vld [vmem:[#allocation7 + $0x298] sm:$0xf0]  ;;  %v5325_v15 = vunpack.c.l.b16 %v4944_v13  ;;  %v11786_v11 = vld [vmem:[#allocation7 + $0x280] sm:$0xf]  ;;  %v13841_v20 = vld [vmem:[#allocation7 + $0x284] sm:$0xf0] }
 0x26e   : > { %5782 = vmatpush.bf16.msrb.mxu0 %v11763_v48  ;;  %5820 = vmatpush.bf16.msrb.mxu2 %v11767_v59  ;;  %v11740_v48 = vld [vmem:[#allocation7 + $0x228] sm:$0xf0]  ;;  %v13840_v55 = vld [vmem:[#allocation7 + $0x284] sm:$0xf] }
 0x26f   : > { %v3843_v40 = vpop.f32.mrf.mxu2  ;;  %v3862_v63 = vpop.f32.mrf.mxu3  ;;  %v11743_v23 = vor.u32 %v13828_v8, %v11740_v48  ;;  %v11788_v49 = vld [vmem:[#allocation7 + $0x288] sm:$0xf0]  ;;  %v5327_v8 = vpack.c.b16 %v5325_v15, %v5325_v15  ;;  %v13889_v48 = vld [vmem:[#allocation7 + $0x3f4] sm:$0xf0]  ;;  %v13887_v15 = vld [vmem:[#allocation7 + $0x3e4] sm:$0xf0] }
 0x270   : > { %v3844_v45 = vadd.f32 %v3843_v40, %v15644_v44  ;;  %v3807_v29 = vpop.f32.mrf.mxu0  ;;  %v3826_v4 = vpop.f32.mrf.mxu1  ;;  %v11803_v40 = vor.u32 %v13845_v56, %v11802_v57 }
 0x271   : > { %v3808_v9 = vadd.f32 %v3807_v29, %v15646_v26  ;;  %5801 = vmatpush.bf16.msrb.mxu1 %v11827_v46  ;;  %5839 = vmatpush.bf16.msrb.mxu3 %v11831_v7  ;;  %v11812_v26 = vld [vmem:[#allocation7 + $0x2b8] sm:$0xf0]  ;;  %v13844_v46 = vld [vmem:[#allocation7 + $0x2a4] sm:$0xf]  ;;  %v11794_v29 = vld [vmem:[#allocation7 + $0x290] sm:$0xf] }
 0x272   : > { %v15707_v38 = vadd.f32 %v3862_v63, %v3844_v45  ;;  %5783 = vmatpush.bf16.msrb.mxu0 %v11755_v37  ;;  %5821 = vmatpush.bf16.msrb.mxu2 %v11759_v30  ;;  %v11815_v10 = vor.u32 %v13846_v14, %v11812_v26  ;;  %v11730_v63 = vld [vmem:[#allocation7 + $0x210] sm:$0xf]  ;;  %v11807_v45 = vor.u32 %v13844_v46, %v11804_v33  ;;  %v11732_v37 = vld [vmem:[#allocation7 + $0x218] sm:$0xf0]  ;;  %v5326_v30 = vunpack.c.h.b16 %v4944_v13  ;;  %v13872_v46 = vld [vmem:[#allocation7 + $0x374] sm:$0xf] }
 0x273   : > { %v15709_v44 = vadd.f32 %v3826_v4, %v3808_v9  ;;  %v13843_v4 = vld [vmem:[#allocation7 + $0x294] sm:$0xf0]  ;;  %v13826_v9 = vld [vmem:[#allocation7 + $0x214] sm:$0xf]  ;;  %v11731_v34 = vor.u32 %v13827_v58, %v11730_v63  ;;  %v11980_v13 = vld [vmem:[#allocation7 + $0x3f8] sm:$0xf0] }
 0x274   : > { %v11795_v51 = vor.u32 %v13843_v4, %v11794_v29  ;;  %v11735_v14 = vor.u32 %v13826_v9, %v11732_v37  ;;  %v5335_v4 = vrot.slane %v5327_v8, 3  ;;  %v11906_v37 = vld [vmem:[#allocation7 + $0x360] sm:$0xf]  ;;  %v13885_v8 = vld [vmem:[#allocation7 + $0x3d4] sm:$0xf0] }
 0x275   : > { %5802 = vmatpush.bf16.msrb.mxu1 %v11819_v32  ;;  %5840 = vmatpush.bf16.msrb.mxu3 %v11823_v50  ;;  %v13842_v32 = vld [vmem:[#allocation7 + $0x294] sm:$0xf]  ;;  %v11722_v50 = vld [vmem:[#allocation7 + $0x200] sm:$0xf] }
 0x276   : > { %5784 = vmatpush.bf16.msrb.mxu0 %v11747_v2  ;;  %5822 = vmatpush.bf16.msrb.mxu2 %v11751_v53  ;;  %v11799_v26 = vor.u32 %v13842_v32, %v11796_v16  ;;  %v13824_v2 = vld [vmem:[#allocation7 + $0x204] sm:$0xf]  ;;  %v11914_v53 = vld [vmem:[#allocation7 + $0x370] sm:$0xf]  ;;  %v13871_v32 = vld [vmem:[#allocation7 + $0x364] sm:$0xf0] }
 0x277   : > { %v3845_v43 = vpop.f32.mrf.mxu2  ;;  %v3864_v62 = vpop.f32.mrf.mxu3  ;;  %v11970_v16 = vld [vmem:[#allocation7 + $0x3e0] sm:$0xf] }
 0x278   : > { %v3846_v28 = vadd.f32 %v3845_v43, %v15673_v54  ;;  %v4076_v59 = vpop.f32.mrf.mxu0  ;;  %v4095_v7 = vpop.f32.mrf.mxu1  ;;  %v5328_v43 = vpack.c.b16 %v5326_v30, %v5326_v30  ;;  %v13870_v30 = vld [vmem:[#allocation7 + $0x364] sm:$0xf] }
 0x279   : > { %v4096_v19 = vadd.f32 %v4095_v7, %v4076_v59  ;;  %5803 = vmatpush.bf16.msrb.mxu1 %v11811_v25  ;;  %5841 = vmatpush.bf16.msrb.mxu3 %v11815_v10  ;;  %v11724_v25 = vld [vmem:[#allocation7 + $0x208] sm:$0xf0]  ;;  %v13873_v10 = vld [vmem:[#allocation7 + $0x374] sm:$0xf0]  ;;  %v11787_v59 = vor.u32 %v13841_v20, %v11786_v11  ;;  %v11916_v7 = vld [vmem:[#allocation7 + $0x378] sm:$0xf0] }
 0x27a   : > { %v15712_v6 = vadd.f32 %v3864_v62, %v3846_v28  ;;  %5785 = vmatpush.bf16.msrb.mxu0 %v11739_v39  ;;  %5823 = vmatpush.bf16.msrb.mxu2 %v11743_v23  ;;  %v11978_v62 = vld [vmem:[#allocation7 + $0x3f0] sm:$0xf]  ;;  %v11727_v39 = vor.u32 %v13824_v2, %v11724_v25  ;;  %v11915_v58 = vor.u32 %v13873_v10, %v11914_v53  ;;  %v5337_v9 = vrot.slane %v5328_v43, 3  ;;  %v13868_v43 = vld [vmem:[#allocation7 + $0x354] sm:$0xf] }
 0x27b   : > { %v15715_v54 = vadd.f32 %v4096_v19, %v15683_v41  ;;  %5511 = vmatmul.bf16.vlgmr.msra.gmra.mxu0 %v15653_v61  ;;  %5530 = vmatmul.bf16.vlgmr.msra.gmra.mxu1 %v15681_v0  ;;  %v13825_v41 = vld [vmem:[#allocation7 + $0x204] sm:$0xf0]  ;;  %v13888_v19 = vld [vmem:[#allocation7 + $0x3f4] sm:$0xf]  ;;  %v11979_v23 = vor.u32 %v13889_v48, %v11978_v62  ;;  %v11971_v2 = vor.u32 %v13887_v15, %v11970_v16  ;;  %v11898_v25 = vld [vmem:[#allocation7 + $0x350] sm:$0xf] }
 0x27c   : > { %5549 = vmatmul.bf16.vlgmr.msra.gmra.mxu2 %v15653_v61  ;;  %5568 = vmatmul.bf16.vlgmr.msra.gmra.mxu3 %v15681_v0  ;;  %v11723_v28 = vor.u32 %v13825_v41, %v11722_v50  ;;  %v11983_v29 = vor.u32 %v13888_v19, %v11980_v13  ;;  %v11972_v41 = vld [vmem:[#allocation7 + $0x3e8] sm:$0xf0]  ;;  %v5338_v53 = vsel %vm740_vm2, %v5333_v35, %v5337_v9  ;;  %v11900_v48 = vld [vmem:[#allocation7 + $0x358] sm:$0xf0]  ;;  %v13867_v35 = vld [vmem:[#allocation7 + $0x344] sm:$0xf0] }
 0x27d   : > { %5804 = vmatpush.bf16.msrb.mxu1 %v11803_v40  ;;  %5842 = vmatpush.bf16.msrb.mxu3 %v11807_v45  ;;  %v11791_v40 = vor.u32 %v13840_v55, %v11788_v49  ;;  %v11919_v45 = vor.u32 %v13872_v46, %v11916_v7  ;;  %v13869_v55 = vld [vmem:[#allocation7 + $0x354] sm:$0xf0]  ;;  %v5336_v49 = vsel %vm740_vm2, %v5330_v27, %v5335_v4  ;;  %v13884_v46 = vld [vmem:[#allocation7 + $0x3d4] sm:$0xf]  ;;  %v11890_v27 = vld [vmem:[#allocation7 + $0x340] sm:$0xf] }
 0x27e   : > { %5786 = vmatpush.bf16.msrb.mxu0 %v11731_v34  ;;  %5824 = vmatpush.bf16.msrb.mxu2 %v11735_v14  ;;  %v11899_v3 = vor.u32 %v13869_v55, %v11898_v25  ;;  %v11954_v7 = vld [vmem:[#allocation7 + $0x3c0] sm:$0xf]  ;;  %v13866_v19 = vld [vmem:[#allocation7 + $0x344] sm:$0xf]  ;;  %v11891_v4 = vor.u32 %v13867_v35, %v11890_v27  ;;  %v13863_v25 = vld [vmem:[#allocation7 + $0x324] sm:$0xf0] }
 0x27f   : > { %v15721_v61 = vpop.f32.mrf.mxu2  ;;  %v15723_v0 = vpop.f32.mrf.mxu3  ;;  %v11866_v35 = vld [vmem:[#allocation7 + $0x310] sm:$0xf] }
 0x280   : > { %v4078_v57 = vpop.f32.mrf.mxu0  ;;  %v4097_v56 = vpop.f32.mrf.mxu1 }
 0x281   : > { %v4098_v33 = vadd.f32 %v4097_v56, %v4078_v57  ;;  %5805 = vmatpush.bf16.msrb.mxu1 %v11795_v51  ;;  %5843 = vmatpush.bf16.msrb.mxu3 %v11799_v26  ;;  %v13886_v51 = vld [vmem:[#allocation7 + $0x3e4] sm:$0xf]  ;;  %v11907_v26 = vor.u32 %v13871_v32, %v11906_v37  ;;  %v11962_v56 = vld [vmem:[#allocation7 + $0x3d0] sm:$0xf]  ;;  %v13865_v32 = vld [vmem:[#allocation7 + $0x334] sm:$0xf0] }
 0x282   : > { %5787 = vmatpush.bf16.msrb.mxu0 %v11723_v28  ;;  %5825 = vmatpush.bf16.msrb.mxu2 %v11727_v39  ;;  %v11975_v57 = vor.u32 %v13886_v51, %v11972_v41  ;;  %v11963_v17 = vor.u32 %v13885_v8, %v11962_v56  ;;  %v11903_v28 = vor.u32 %v13868_v43, %v11900_v48  ;;  %v11882_v37 = vld [vmem:[#allocation7 + $0x330] sm:$0xf]  ;;  %v13864_v51 = vld [vmem:[#allocation7 + $0x334] sm:$0xf]  ;;  %v11884_v41 = vld [vmem:[#allocation7 + $0x338] sm:$0xf0] }
 0x283   : > { %v15726_v63 = vadd.f32 %v4098_v33, %v15693_v36  ;;  %v11908_v36 = vld [vmem:[#allocation7 + $0x368] sm:$0xf0]  ;;  %v11964_v33 = vld [vmem:[#allocation7 + $0x3d8] sm:$0xf0]  ;;  %v11887_v55 = vor.u32 %v13864_v51, %v11884_v41  ;;  %v13878_v48 = vld [vmem:[#allocation7 + $0x3a4] sm:$0xf] }
 0x284   : > { %v11911_v10 = vor.u32 %v13870_v30, %v11908_v36  ;;  %v11946_v30 = vld [vmem:[#allocation7 + $0x3b0] sm:$0xf]  ;;  %v13881_v36 = vld [vmem:[#allocation7 + $0x3b4] sm:$0xf0]  ;;  %v11876_v43 = vld [vmem:[#allocation7 + $0x328] sm:$0xf0] }
 0x285   : > { %5806 = vmatpush.bf16.msrb.mxu1 %v11787_v59  ;;  %5844 = vmatpush.bf16.msrb.mxu3 %v11791_v40  ;;  %v11967_v59 = vor.u32 %v13884_v46, %v11964_v33  ;;  %v11892_v40 = vld [vmem:[#allocation7 + $0x348] sm:$0xf0]  ;;  %v13859_v51 = vld [vmem:[#allocation7 + $0x304] sm:$0xf0]  ;;  %v11922_v41 = vld [vmem:[#allocation7 + $0x380] sm:$0xf] }
 0x286   : > { %6127 = vmatpush.bf16.msra.mxu0 %v11915_v58  ;;  %6165 = vmatpush.bf16.msra.mxu2 %v11919_v45  ;;  %v13882_v58 = vld [vmem:[#allocation7 + $0x3c4] sm:$0xf]  ;;  %v11895_v16 = vor.u32 %v13866_v19, %v11892_v40  ;;  %v11940_v46 = vld [vmem:[#allocation7 + $0x3a8] sm:$0xf0]  ;;  %v13877_v19 = vld [vmem:[#allocation7 + $0x394] sm:$0xf0] }
 0x287   : > { %v15728_v50 = vpop.f32.mrf.mxu2  ;;  %v15730_v34 = vpop.f32.mrf.mxu3  ;;  %v13860_v40 = vld [vmem:[#allocation7 + $0x314] sm:$0xf] }
 0x288   : > { %v4081_v11 = vpop.f32.mrf.mxu0  ;;  %v4100_v20 = vpop.f32.mrf.mxu1 }
 0x289   : > { %6146 = vmatpush.bf16.msra.mxu1 %v11979_v23  ;;  %6184 = vmatpush.bf16.msra.mxu3 %v11983_v29  ;;  %v4101_v14 = vadd.f32 %v4100_v20, %v4081_v11  ;;  %v11956_v23 = vld [vmem:[#allocation7 + $0x3c8] sm:$0xf0]  ;;  %v13880_v11 = vld [vmem:[#allocation7 + $0x3b4] sm:$0xf]  ;;  %v11948_v20 = vld [vmem:[#allocation7 + $0x3b8] sm:$0xf0] }
 0x28a   : > { %6128 = vmatpush.bf16.msra.mxu0 %v11907_v26  ;;  %6166 = vmatpush.bf16.msra.mxu2 %v11911_v10  ;;  %v11959_v15 = vor.u32 %v13882_v58, %v11956_v23  ;;  %v11947_v26 = vor.u32 %v13881_v36, %v11946_v30  ;;  %v13879_v10 = vld [vmem:[#allocation7 + $0x3a4] sm:$0xf0]  ;;  %v11868_v58 = vld [vmem:[#allocation7 + $0x318] sm:$0xf0]  ;;  %v13876_v23 = vld [vmem:[#allocation7 + $0x394] sm:$0xf] }
 0x28b   : > { %v15739_v62 = vadd.f32 %v4101_v14, %v15699_v42  ;;  %5516 = vmatmul.bf16.gmra.mxu0 %v5336_v49  ;;  %5535 = vmatmul.bf16.gmra.mxu1 %v5338_v53  ;;  %v13883_v42 = vld [vmem:[#allocation7 + $0x3c4] sm:$0xf0]  ;;  %v11883_v14 = vor.u32 %v13865_v32, %v11882_v37  ;;  %v11871_v32 = vor.u32 %v13860_v40, %v11868_v58  ;;  %v11858_v36 = vld [vmem:[#allocation7 + $0x300] sm:$0xf]  ;;  %v11852_v40 = vld [vmem:[#allocation4 + $0x28] sm:$0xf0] }
 0x28c   : > { %5554 = vmatmul.bf16.gmra.mxu2 %v5336_v49  ;;  %5573 = vmatmul.bf16.gmra.mxu3 %v5338_v53  ;;  %v11955_v9 = vor.u32 %v13883_v42, %v11954_v7  ;;  %v11951_v49 = vor.u32 %v13880_v11, %v11948_v20  ;;  %v11938_v53 = vld [vmem:[#allocation7 + $0x3a0] sm:$0xf]  ;;  %v11943_v7 = vor.u32 %v13878_v48, %v11940_v46  ;;  %v11930_v42 = vld [vmem:[#allocation7 + $0x390] sm:$0xf]  ;;  %v13858_v20 = vld [vmem:[#allocation7 + $0x304] sm:$0xf] }
 0x28d   : > { %6147 = vmatpush.bf16.msra.mxu1 %v11971_v2  ;;  %6185 = vmatpush.bf16.msra.mxu3 %v11975_v57  ;;  %v11874_v2 = vld [vmem:[#allocation7 + $0x320] sm:$0xf]  ;;  %v13862_v57 = vld [vmem:[#allocation7 + $0x324] sm:$0xf]  ;;  %v11939_v27 = vor.u32 %v13879_v10, %v11938_v53  ;;  %v11931_v37 = vor.u32 %v13877_v19, %v11930_v42  ;;  %v5864_v10 = vld [vmem:[#allocation4 + $0x10] sm:$0xff] }
 0x28e   : > { %6129 = vmatpush.bf16.msra.mxu0 %v11899_v3  ;;  %6167 = vmatpush.bf16.msra.mxu2 %v11903_v28  ;;  %v13861_v28 = vld [vmem:[#allocation7 + $0x314] sm:$0xf0]  ;;  %v5908_v46 = vunpack.c.h.b16 %v5864_v10  ;;  %v13857_v19 = vld [vmem:[#allocation4 + $0x24] sm:$0xf0]  ;;  %v11850_v58 = vld [vmem:[#allocation4 + $0x20] sm:$0xf] }
 0x28f   : > { %v15741_v13 = vpop.f32.mrf.mxu2  ;;  %v15743_v39 = vpop.f32.mrf.mxu3 }
 0x290   : > { %v15745_v45 = vpop.f32.mrf.mxu0  ;;  %v15747_v29 = vpop.f32.mrf.mxu1 }
 0x291   : > { %6148 = vmatpush.bf16.msra.mxu1 %v11963_v17  ;;  %6186 = vmatpush.bf16.msra.mxu3 %v11967_v59  ;;  %v11875_v17 = vor.u32 %v13863_v25, %v11874_v2  ;;  %v11879_v59 = vor.u32 %v13862_v57, %v11876_v43  ;;  %v13874_v25 = vld [vmem:[#allocation7 + $0x384] sm:$0xf]  ;;  %v15769_v57 = vld [vmem:[#allocation4 + $0x18] sm:$0xff]  ;;  %v5907_v43 = vunpack.c.l.b16 %v5864_v10 }
 0x292   : > { %6130 = vmatpush.bf16.msra.mxu0 %v11891_v4  ;;  %6168 = vmatpush.bf16.msra.mxu2 %v11895_v16  ;;  %v11932_v4 = vld [vmem:[#allocation7 + $0x398] sm:$0xf0]  ;;  %v5909_v48 = vunpack.c.l.b16 %v15769_v57 }
 0x293   : > { %v11935_v16 = vor.u32 %v13876_v23, %v11932_v4  ;;  %v13856_v4 = vld [vmem:[#allocation4 + $0x24] sm:$0xf] }
 0x295   : > { %6149 = vmatpush.bf16.msra.mxu1 %v11955_v9  ;;  %6187 = vmatpush.bf16.msra.mxu3 %v11959_v15  ;;  %v11867_v9 = vor.u32 %v13861_v28, %v11866_v35 }
 0x296   : > { %6131 = vmatpush.bf16.msra.mxu0 %v11883_v14  ;;  %6169 = vmatpush.bf16.msra.mxu2 %v11887_v55  ;;  %v11860_v14 = vld [vmem:[#allocation7 + $0x308] sm:$0xf0] }
 0x297   : > { %v15749_v56 = vpop.f32.mrf.mxu2  ;;  %v15751_v8 = vpop.f32.mrf.mxu3  ;;  %v11924_v55 = vld [vmem:[#allocation7 + $0x388] sm:$0xf0] }
 0x298   : > { %v15753_v33 = vpop.f32.mrf.mxu0  ;;  %v15755_v3 = vpop.f32.mrf.mxu1  ;;  %v11927_v53 = vor.u32 %v13874_v25, %v11924_v55 }
 0x299   : > { %6150 = vmatpush.bf16.msra.mxu1 %v11947_v26  ;;  %6188 = vmatpush.bf16.msra.mxu3 %v11951_v49  ;;  %v11859_v26 = vor.u32 %v13859_v51, %v11858_v36  ;;  %v11863_v49 = vor.u32 %v13858_v20, %v11860_v14 }
 0x29a   : > { %6132 = vmatpush.bf16.msra.mxu0 %v11875_v17  ;;  %6170 = vmatpush.bf16.msra.mxu2 %v11879_v59  ;;  %v5910_v17 = vunpack.c.h.b16 %v15769_v57 }
 0x29b   : > { %5788 = vmatmul.bf16.vlgmr.msrb.gmra.mxu0 %v15137_v60  ;;  %5807 = vmatmul.bf16.vlgmr.msrb.gmra.mxu1 %v15141_v12 }
 0x29c   : > { %5826 = vmatmul.bf16.vlgmr.msrb.gmra.mxu2 %v15137_v60  ;;  %5845 = vmatmul.bf16.vlgmr.msrb.gmra.mxu3 %v15141_v12  ;;  %v13875_v12 = vld [vmem:[#allocation7 + $0x384] sm:$0xf0]  ;;  %v5918_v42 = vpack.c.b16 %v5910_v17, %v5908_v46 }
 0x29d   : > { %6151 = vmatpush.bf16.msra.mxu1 %v11939_v27  ;;  %6189 = vmatpush.bf16.msra.mxu3 %v11943_v7  ;;  %v11923_v2 = vor.u32 %v13875_v12, %v11922_v41  ;;  %v5917_v7 = vpack.c.b16 %v5909_v48, %v5907_v43  ;;  %v4442_v43 = vadd.f32 %v15755_v3, %v15753_v33  ;;  %v12042_v3 = vld [vmem:[#allocation7 + $0x470] sm:$0xf] }
 0x29e   : > { %6133 = vmatpush.bf16.msra.mxu0 %v11867_v9  ;;  %6171 = vmatpush.bf16.msra.mxu2 %v11871_v32  ;;  %v15789_v9 = vor.u32 %v13857_v19, %v11850_v58  ;;  %v5938_v32 = vshll.u32 %v5918_v42, 16  ;;  %v5936_v20 = vshrl.u32 %v5918_v42, 16  ;;  %v4134_v42 = vadd.f32 %v15723_v0, %v15721_v61  ;;  %v12108_v0 = vld [vmem:[#allocation7 + $0x4f8] sm:$0xf0] }
 0x29f   : > { %v15761_v15 = vpop.f32.mrf.mxu2  ;;  %v15763_v30 = vpop.f32.mrf.mxu3  ;;  %v5926_v23 = vshll.u32 %v5917_v7, 16  ;;  %v5924_v12 = vshrl.u32 %v5917_v7, 16 }
 0x2a0   : > { %v15765_v11 = vpop.f32.mrf.mxu0  ;;  %v15767_v60 = vpop.f32.mrf.mxu1  ;;  %v5940_v14 = vrot.slane %v5938_v32, 1  ;;  %v13920_v32 = vld [vmem:[#allocation7 + $0x4f4] sm:$0xf]  ;;  %v4480_v33 = vadd.f32 %v15763_v30, %v15761_v15 }
 0x2a1   : > { %6152 = vmatpush.bf16.msra.mxu1 %v11931_v37  ;;  %6190 = vmatpush.bf16.msra.mxu3 %v11935_v16  ;;  %v15791_v37 = vor.u32 %v13856_v4, %v11852_v40  ;;  %v12044_v4 = vld [vmem:[#allocation7 + $0x478] sm:$0xf0] }
 0x2a2   : > { %6134 = vmatpush.bf16.msra.mxu0 %v11859_v26  ;;  %6172 = vmatpush.bf16.msra.mxu2 %v11863_v49  ;;  %v5941_v55 = vor.u32 %v5940_v14, %v5936_v20  ;;  %v12106_v14 = vld [vmem:[#allocation7 + $0x4f0] sm:$0xf] }
 0x2a3   : > { %v5943_v26 = vshll.u32 %v15791_v37, 16 }
 0x2a5   : > { %6153 = vmatpush.bf16.msra.mxu1 %v11923_v2  ;;  %6191 = vmatpush.bf16.msra.mxu3 %v11927_v53  ;;  %v15805_v49 = vrot.slane %v5943_v26, 1  ;;  %v13921_v26 = vld [vmem:[#allocation7 + $0x4f4] sm:$0xf0] }
 0x2a7   : > { %v15773_v27 = vpop.f32.mrf.mxu2  ;;  %v15775_v35 = vpop.f32.mrf.mxu3  ;;  %v5946_v58 = vsel %vm888_vm4, %v5941_v55, %v15805_v49 }
 0x2a8   : > { %v15777_v28 = vpop.f32.mrf.mxu0  ;;  %v15779_v59 = vpop.f32.mrf.mxu1 }
 0x2ab   : > { %5793 = vmatmul.bf16.gmra.mxu0 %v15666_v31  ;;  %5812 = vmatmul.bf16.gmra.mxu1 %v15671_v5 }
 0x2ac   : > { %5831 = vmatmul.bf16.gmra.mxu2 %v15666_v31  ;;  %5850 = vmatmul.bf16.gmra.mxu3 %v15671_v5  ;;  %v5928_v31 = vrot.slane %v5926_v23, 1  ;;  %v5931_v5 = vshll.u32 %v15789_v9, 16  ;;  %v13904_v23 = vld [vmem:[#allocation7 + $0x474] sm:$0xf] }
 0x2ad   : > { %v12047_v61 = vor.u32 %v13904_v23, %v12044_v4  ;;  %v4136_v4 = vadd.f32 %v15730_v34, %v15728_v50  ;;  %v12098_v34 = vld [vmem:[#allocation7 + $0x4e0] sm:$0xf] }
 0x2ae   : > { %v5929_v2 = vor.u32 %v5928_v31, %v5924_v12  ;;  %v15803_v25 = vrot.slane %v5931_v5, 1  ;;  %v4489_v12 = vadd.f32 %v4442_v43, %v15715_v54  ;;  %v13905_v31 = vld [vmem:[#allocation7 + $0x474] sm:$0xf0]  ;;  %v12111_v5 = vor.u32 %v13920_v32, %v12108_v0  ;;  %v13902_v32 = vld [vmem:[#allocation7 + $0x464] sm:$0xf] }
 0x2af   : > { %v15793_v16 = vpop.f32.mrf.mxu2  ;;  %v15795_v36 = vpop.f32.mrf.mxu3  ;;  %v12043_v20 = vor.u32 %v13905_v31, %v12042_v3  ;;  %6462 = vmatpush.bf16.msrb.mxu2 %v12047_v61  ;;  %v4444_v54 = vadd.f32 %v15767_v60, %v15765_v11  ;;  %v12036_v11 = vld [vmem:[#allocation7 + $0x468] sm:$0xf0]  ;;  %v13918_v60 = vld [vmem:[#allocation7 + $0x4e4] sm:$0xf]  ;;  %v12034_v3 = vld [vmem:[#allocation7 + $0x460] sm:$0xf] }
 0x2b0   : > { %v15797_v51 = vpop.f32.mrf.mxu0  ;;  %v15799_v41 = vpop.f32.mrf.mxu1  ;;  %v5934_v40 = vsel %vm888_vm4, %v5929_v2, %v15803_v25  ;;  %v4144_v2 = vadd.f32 %v4134_v42, %v15691_v1  ;;  %6481 = vmatpush.bf16.msrb.mxu3 %v12111_v5  ;;  %v12039_v61 = vor.u32 %v13902_v32, %v12036_v11  ;;  %v12100_v0 = vld [vmem:[#allocation7 + $0x4e8] sm:$0xf0]  ;;  %v13903_v31 = vld [vmem:[#allocation7 + $0x464] sm:$0xf0]  ;;  %v12090_v32 = vld [vmem:[#allocation7 + $0x4d0] sm:$0xf] }
 0x2b1   : > { %6424 = vmatpush.bf16.msrb.mxu0 %v12043_v20  ;;  %v12103_v20 = vor.u32 %v13918_v60, %v12100_v0  ;;  %v12035_v50 = vor.u32 %v13903_v31, %v12034_v3  ;;  %v13917_v11 = vld [vmem:[#allocation7 + $0x4d4] sm:$0xf0]  ;;  %v12020_v0 = vld [vmem:[#allocation7 + $0x448] sm:$0xf0]  ;;  %v13914_v3 = vld [vmem:[#allocation7 + $0x4c4] sm:$0xf] }
 0x2b2   : > { %v4490_v30 = vadd.f32 %v4480_v33, %v4144_v2 }
 0x2b3   : > { %6463 = vmatpush.bf16.msrb.mxu2 %v12039_v61  ;;  %v13898_v61 = vld [vmem:[#allocation7 + $0x444] sm:$0xf] }
 0x2b4   : > { %6482 = vmatpush.bf16.msrb.mxu3 %v12103_v20 }
 0x2b5   : > { %6425 = vmatpush.bf16.msrb.mxu0 %v12035_v50  ;;  %v12023_v50 = vor.u32 %v13898_v61, %v12020_v0  ;;  %v12004_v0 = vld [vmem:[#allocation7 + $0x428] sm:$0xf0] }
 0x2b7   : > { %v15807_v53 = vpop.f32.mrf.mxu2  ;;  %v15809_v10 = vpop.f32.mrf.mxu3 }
 0x2b8   : > { %v4718_v46 = vpop.f32.mrf.mxu0  ;;  %v4737_v7 = vpop.f32.mrf.mxu1 }
 0x2b9   : > { %v4738_v19 = vadd.f32 %v4737_v7, %v4718_v46  ;;  %v12107_v46 = vor.u32 %v13921_v26, %v12106_v14  ;;  %v13919_v14 = vld [vmem:[#allocation7 + $0x4e4] sm:$0xf0]  ;;  %v13900_v26 = vld [vmem:[#allocation7 + $0x454] sm:$0xf] }
 0x2bb   : > { %6135 = vmatmul.bf16.vlgmr.msra.gmra.mxu0 %v5934_v40  ;;  %6154 = vmatmul.bf16.vlgmr.msra.gmra.mxu1 %v5946_v58  ;;  %v4785_v55 = vadd.f32 %v4738_v19, %v4489_v12  ;;  %v4491_v19 = vadd.f32 %v4444_v54, %v15726_v63  ;;  %v4482_v12 = vadd.f32 %v15775_v35, %v15773_v27  ;;  %v12028_v54 = vld [vmem:[#allocation7 + $0x458] sm:$0xf0]  ;;  %v13916_v27 = vld [vmem:[#allocation7 + $0x4d4] sm:$0xf] }
 0x2bc   : > { %6173 = vmatmul.bf16.vlgmr.msra.gmra.mxu2 %v5934_v40  ;;  %6192 = vmatmul.bf16.vlgmr.msra.gmra.mxu3 %v5946_v58  ;;  %v4146_v63 = vadd.f32 %v4136_v4, %v15697_v47  ;;  %v4447_v35 = vadd.f32 %v15779_v59, %v15777_v28  ;;  %v4139_v28 = vadd.f32 %v15743_v39, %v15741_v13 }
 0x2bd   : > { %6443 = vmatpush.bf16.msrb.mxu1 %v12107_v46  ;;  %v4793_v1 = vadd.f32 %v4785_v55, %v15451_v24  ;;  %v12099_v46 = vor.u32 %v13919_v14, %v12098_v34  ;;  %v12084_v34 = vld [vmem:[#allocation7 + $0x4c8] sm:$0xf0]  ;;  %v12018_v14 = vld [vmem:[#allocation7 + $0x440] sm:$0xf]  ;;  %v4103_v13 = vadd.f32 %v15747_v29, %v15745_v45  ;;  %v13896_v45 = vld [vmem:[#allocation7 + $0x434] sm:$0xf] }
 0x2be   : > { %v12087_v39 = vor.u32 %v13914_v3, %v12084_v34  ;;  %v12012_v29 = vld [vmem:[#allocation7 + $0x438] sm:$0xf0]  ;;  %v13910_v3 = vld [vmem:[#allocation7 + $0x4a4] sm:$0xf]  ;;  %v12002_v34 = vld [vmem:[#allocation7 + $0x420] sm:$0xf] }
 0x2bf   : > { %v4756_v43 = vpop.f32.mrf.mxu2  ;;  %v4775_v15 = vpop.f32.mrf.mxu3  ;;  %v4801_v2 = vmax.f32 %v4793_v1, 0.0 }
 0x2c0   : > { %v4776_v7 = vadd.f32 %v4775_v15, %v4756_v43  ;;  %v4720_v40 = vpop.f32.mrf.mxu0  ;;  %v4739_v58 = vpop.f32.mrf.mxu1 }
 0x2c1   : > { %v4740_v23 = vadd.f32 %v4739_v58, %v4720_v40  ;;  %v12026_v40 = vld [vmem:[#allocation7 + $0x450] sm:$0xf]  ;;  %v4492_v58 = vadd.f32 %v4482_v12, %v4146_v63  ;;  %6444 = vmatpush.bf16.msrb.mxu1 %v12099_v46  ;;  %v5947_v63 = vshrl.u32 %v15789_v9, 16 }
 0x2c2   : > { %v4786_v42 = vadd.f32 %v4776_v7, %v4490_v30  ;;  %v12031_v30 = vor.u32 %v13900_v26, %v12028_v54  ;;  %v12092_v7 = vld [vmem:[#allocation7 + $0x4d8] sm:$0xf0]  ;;  %v12082_v26 = vld [vmem:[#allocation7 + $0x4c0] sm:$0xf] }
 0x2c3   : > { %v4787_v5 = vadd.f32 %v4740_v23, %v4491_v19  ;;  %v12095_v1 = vor.u32 %v13916_v27, %v12092_v7  ;;  %v13901_v19 = vld [vmem:[#allocation7 + $0x454] sm:$0xf0]  ;;  %v13915_v27 = vld [vmem:[#allocation7 + $0x4c4] sm:$0xf0]  ;;  %v13912_v7 = vld [vmem:[#allocation7 + $0x4b4] sm:$0xf] }
 0x2c4   : > { %v4794_v33 = vadd.f32 %v4786_v42, %v15468_v18  ;;  %v12027_v60 = vor.u32 %v13901_v19, %v12026_v40  ;;  %6464 = vmatpush.bf16.msrb.mxu2 %v12031_v30  ;;  %v12083_v30 = vor.u32 %v13915_v27, %v12082_v26  ;;  %v12076_v40 = vld [vmem:[#allocation7 + $0x4b8] sm:$0xf0]  ;;  %v13913_v19 = vld [vmem:[#allocation7 + $0x4b4] sm:$0xf0] }
 0x2c5   : > { %v4795_v59 = vadd.f32 %v4787_v5, %v15451_v24  ;;  %6483 = vmatpush.bf16.msrb.mxu3 %v12095_v1  ;;  %v13899_v5 = vld [vmem:[#allocation7 + $0x444] sm:$0xf0] }
 0x2c6   : > { %v4802_v55 = vmax.f32 %v4794_v33, 0.0  ;;  %v12091_v33 = vor.u32 %v13917_v11, %v12090_v32  ;;  %6426 = vmatpush.bf16.msrb.mxu0 %v12027_v60  ;;  %v12019_v54 = vor.u32 %v13899_v5, %v12018_v14  ;;  %v13894_v32 = vld [vmem:[#allocation7 + $0x424] sm:$0xf]  ;;  %v13895_v14 = vld [vmem:[#allocation7 + $0x424] sm:$0xf0] }
 0x2c7   : > { %v4758_v43 = vpop.f32.mrf.mxu2  ;;  %v4777_v15 = vpop.f32.mrf.mxu3  ;;  %v12003_v27 = vor.u32 %v13895_v14, %v12002_v34 }
 0x2c8   : > { %v4809_v23 = vpack.c.bf16 %v4802_v55, %v4801_v2  ;;  %v4778_v42 = vadd.f32 %v4777_v15, %v4758_v43  ;;  %v4723_v47 = vpop.f32.mrf.mxu0  ;;  %v4742_v4 = vpop.f32.mrf.mxu1  ;;  %v4493_v2 = vadd.f32 %v4447_v35, %v15739_v62  ;;  %v4485_v55 = vadd.f32 %v15795_v36, %v15793_v16  ;;  %6445 = vmatpush.bf16.msrb.mxu1 %v12091_v33  ;;  %v13897_v36 = vld [vmem:[#allocation7 + $0x434] sm:$0xf0] }
 0x2c9   : > { %v4743_v20 = vadd.f32 %v4742_v4, %v4723_v47  ;;  %v4148_v43 = vadd.f32 %v4139_v28, %v15707_v38  ;;  %v4449_v15 = vadd.f32 %v15799_v41, %v15797_v51  ;;  %v4803_v62 = vmax.f32 %v4795_v59, 0.0  ;;  %6465 = vmatpush.bf16.msrb.mxu2 %v12023_v50  ;;  %6484 = vmatpush.bf16.msrb.mxu3 %v12087_v39 }
 0x2ca   : > { %v15840_v12 = vsel %vm15037_vm9, %v4809_v23, 0  ;;  %v4788_v31 = vadd.f32 %v4778_v42, %v4492_v58  ;;  %v12010_v58 = vld [vmem:[#allocation7 + $0x430] sm:$0xf]  ;;  %v12015_v16 = vor.u32 %v13896_v45, %v12012_v29  ;;  %v4149_v47 = vadd.f32 %v4103_v13, %v15709_v44  ;;  %6427 = vmatpush.bf16.msrb.mxu0 %v12019_v54  ;;  %v12068_v44 = vld [vmem:[#allocation7 + $0x4a8] sm:$0xf0] }
 0x2cb   : > { %4933 = vst [vmem:[#allocation4 + $0x30] sm:$0xff] %v15840_v12  ;;  %v4789_v23 = vadd.f32 %v4743_v20, %v4493_v2  ;;  %v12074_v42 = vld [vmem:[#allocation7 + $0x4b0] sm:$0xf]  ;;  %v5955_v38 = vshrl.u32 %v15791_v37, 16  ;;  %v12079_v51 = vor.u32 %v13912_v7, %v12076_v40  ;;  %v12011_v41 = vor.u32 %v13897_v36, %v12010_v58  ;;  %v12066_v13 = vld [vmem:[#allocation7 + $0x4a0] sm:$0xf] }
 0x2cc   : > { %v4796_v46 = vadd.f32 %v4788_v31, %v15468_v18  ;;  %v4494_v11 = vadd.f32 %v4485_v55, %v4148_v43  ;;  %6446 = vmatpush.bf16.msrb.mxu1 %v12083_v30  ;;  %v12075_v61 = vor.u32 %v13913_v19, %v12074_v42  ;;  %v4141_v31 = vadd.f32 %v15751_v8, %v15749_v56  ;;  %v13892_v45 = vld [vmem:[#allocation7 + $0x414] sm:$0xf]  ;;  %v11996_v29 = vld [vmem:[#allocation7 + $0x418] sm:$0xf0]  ;;  %v11994_v58 = vld [vmem:[#allocation7 + $0x410] sm:$0xf] }
 0x2cd   : > { %v4495_v20 = vadd.f32 %v4449_v15, %v4149_v47  ;;  %v4797_v5 = vadd.f32 %v4789_v23, %v15451_v24  ;;  %6466 = vmatpush.bf16.msrb.mxu2 %v12015_v16  ;;  %v12007_v55 = vor.u32 %v13894_v32, %v12004_v0  ;;  %6485 = vmatpush.bf16.msrb.mxu3 %v12079_v51  ;;  %v13908_v7 = vld [vmem:[#allocation7 + $0x494] sm:$0xf]  ;;  %v12060_v40 = vld [vmem:[#allocation7 + $0x498] sm:$0xf0]  ;;  %v13893_v36 = vld [vmem:[#allocation7 + $0x414] sm:$0xf0] }
 0x2ce   : > { %v4804_v35 = vmax.f32 %v4796_v46, 0.0  ;;  %v13911_v46 = vld [vmem:[#allocation7 + $0x4a4] sm:$0xf0]  ;;  %6428 = vmatpush.bf16.msrb.mxu0 %v12011_v41  ;;  %v12071_v8 = vor.u32 %v13910_v3, %v12068_v44  ;;  %v4487_v43 = vadd.f32 %v15809_v10, %v15807_v53  ;;  %v5949_v23 = vor.u32 %v5947_v63, %v15803_v25  ;;  %v15873_v42 = vld [vmem:[#allocation7 + $0x490] sm:$0xf] }
 0x2cf   : > { %v4761_v4 = vpop.f32.mrf.mxu2  ;;  %v4780_v1 = vpop.f32.mrf.mxu3  ;;  %v12067_v30 = vor.u32 %v13911_v46, %v12066_v13  ;;  %v4150_v53 = vadd.f32 %v4141_v31, %v15712_v6  ;;  %v4805_v10 = vmax.f32 %v4797_v5, 0.0  ;;  %v13890_v51 = vld [vmem:[#allocation7 + $0x404] sm:$0xf]  ;;  %v12063_v25 = vor.u32 %v13908_v7, %v12060_v40  ;;  %v12052_v44 = vld [vmem:[#allocation7 + $0x488] sm:$0xf0] }
 0x2d0   : > { %v4810_v28 = vpack.c.bf16 %v4804_v35, %v4803_v62  ;;  %v4781_v59 = vadd.f32 %v4780_v1, %v4761_v4  ;;  %v4725_v60 = vpop.f32.mrf.mxu0  ;;  %v4744_v33 = vpop.f32.mrf.mxu1  ;;  %6447 = vmatpush.bf16.msrb.mxu1 %v12075_v61  ;;  %v11999_v4 = vor.u32 %v13892_v45, %v11996_v29  ;;  %v13909_v1 = vld [vmem:[#allocation7 + $0x494] sm:$0xf0]  ;;  %v11995_v63 = vor.u32 %v13893_v36, %v11994_v58  ;;  %v11986_v31 = vld [vmem:[#allocation7 + $0x400] sm:$0xf]  ;;  %v13984_v45 = vld [vmem:[#allocation7 + $0x1f4] sm:$0xf] }
 0x2d1   : > { %v4745_v50 = vadd.f32 %v4744_v33, %v4725_v60  ;;  %6467 = vmatpush.bf16.msrb.mxu2 %v12007_v55  ;;  %6486 = vmatpush.bf16.msrb.mxu3 %v12071_v8  ;;  %v4496_v60 = vadd.f32 %v4487_v43, %v4150_v53  ;;  %v5957_v3 = vor.u32 %v5955_v38, %v15805_v49  ;;  %v12236_v29 = vld [vmem:[#allocation7 + $0x1f8] sm:$0xf0]  ;;  %v12170_v7 = vld [vmem:[#allocation7 + $0x170] sm:$0xf]  ;;  %v13969_v40 = vld [vmem:[#allocation7 + $0x174] sm:$0xf0] }
 0x2d2   : > { %v15859_v39 = vsel %vm15037_vm9, %v4810_v28, 0  ;;  %v4790_v26 = vadd.f32 %v4781_v59, %v4494_v11  ;;  %v5868_v2 = vld [vmem:[#allocation4 + $0x30] sm:$0x11]  ;;  %6429 = vmatpush.bf16.msrb.mxu0 %v12003_v27  ;;  %v11988_v28 = vld [vmem:[#allocation7 + $0x408] sm:$0xf0]  ;;  %v12059_v5 = vor.u32 %v13909_v1, %v15873_v42 }
 0x2d3   : > { %4934 = vst [vmem:[#allocation4 + $0x38] sm:$0xff] %v15859_v39  ;;  %v5915_v54 = vunpack.c.l.b16 %v5868_v2  ;;  %v5916_v56 = vunpack.c.h.b16 %v5868_v2  ;;  %v4791_v62 = vadd.f32 %v4745_v50, %v4495_v20  ;;  %v13906_v59 = vld [vmem:[#allocation7 + $0x484] sm:$0xf]  ;;  %v13891_v20 = vld [vmem:[#allocation7 + $0x404] sm:$0xf0]  ;;  %v11991_v38 = vor.u32 %v13890_v51, %v11988_v28 }
 0x2d4   : > { %v4798_v15 = vadd.f32 %v4790_v26, %v15468_v18  ;;  %6448 = vmatpush.bf16.msrb.mxu1 %v12067_v30  ;;  %v15881_v50 = vld [vmem:[#allocation4 + $0x10] sm:$0xee]  ;;  %v15885_v26 = vld [vmem:[#allocation7 + $0x480] sm:$0xf]  ;;  %v15887_v2 = vld [vmem:[#allocation7 + $0x484] sm:$0xf0]  ;;  %v12055_v46 = vor.u32 %v13906_v59, %v12052_v44  ;;  %v11987_v27 = vor.u32 %v13891_v20, %v11986_v31  ;;  %v12239_v30 = vor.u32 %v13984_v45, %v12236_v29 }
 0x2d5   : > { %v15866_v35 = vpack.c.b16 %v5915_v54, %v5915_v54  ;;  %v15871_v16 = vpack.c.b16 %v5916_v56, %v5916_v56  ;;  %v4799_v34 = vadd.f32 %v4791_v62, %v15451_v24  ;;  %6468 = vmatpush.bf16.msrb.mxu2 %v11999_v4  ;;  %v13968_v54 = vld [vmem:[#allocation7 + $0x174] sm:$0xf]  ;;  %v12172_v56 = vld [vmem:[#allocation7 + $0x178] sm:$0xf0]  ;;  %6487 = vmatpush.bf16.msrb.mxu3 %v12063_v25  ;;  %v12234_v58 = vld [vmem:[#allocation7 + $0x1f0] sm:$0xf]  ;;  %v6246_v62 = vunpack.c.l.b16 %v15881_v50 }
 0x2d6   : > { %v4806_v47 = vmax.f32 %v4798_v15, 0.0  ;;  %6430 = vmatpush.bf16.msrb.mxu0 %v11995_v63  ;;  %v12175_v15 = vor.u32 %v13968_v54, %v12172_v56  ;;  %v13985_v36 = vld [vmem:[#allocation7 + $0x1f4] sm:$0xf0]  ;;  %v13966_v42 = vld [vmem:[#allocation7 + $0x164] sm:$0xf]  ;;  %v6247_v4 = vunpack.c.h.b16 %v15881_v50  ;;  %v6251_v54 = vrot.slane %v15789_v9, 1 }
 0x2d7   : > { %v4763_v41 = vpop.f32.mrf.mxu2  ;;  %v4782_v19 = vpop.f32.mrf.mxu3  ;;  %v5951_v32 = vshll.u32 %v15866_v35, 16  ;;  %v5959_v11 = vshll.u32 %v15871_v16, 16  ;;  %v12164_v53 = vld [vmem:[#allocation7 + $0x168] sm:$0xf0]  ;;  %v13982_v1 = vld [vmem:[#allocation7 + $0x1e4] sm:$0xf]  ;;  %v6614_v45 = vunpack.c.l.b16 %v15840_v12 }
 0x2d8   : > { %v4811_v6 = vpack.c.bf16 %v4806_v47, %v4805_v10  ;;  %v4783_v33 = vadd.f32 %v4782_v19, %v4763_v41  ;;  %v5257_v61 = vpop.f32.mrf.mxu0  ;;  %v5276_v0 = vpop.f32.mrf.mxu1  ;;  %v4807_v10 = vmax.f32 %v4799_v34, 0.0  ;;  %6449 = vmatpush.bf16.msrb.mxu1 %v12059_v5  ;;  %v12228_v51 = vld [vmem:[#allocation7 + $0x1e8] sm:$0xf0]  ;;  %v13967_v25 = vld [vmem:[#allocation7 + $0x164] sm:$0xf0] }
 0x2d9   : > { %v5953_v14 = vrot.slane %v5951_v32, 1  ;;  %v5961_v13 = vrot.slane %v5959_v11, 1  ;;  %6469 = vmatpush.bf16.msrb.mxu2 %v11991_v38  ;;  %6488 = vmatpush.bf16.msrb.mxu3 %v12055_v46  ;;  %v12235_v32 = vor.u32 %v13985_v36, %v12234_v58  ;;  %v12162_v11 = vld [vmem:[#allocation7 + $0x160] sm:$0xf]  ;;  %v13983_v61 = vld [vmem:[#allocation7 + $0x1e4] sm:$0xf0]  ;;  %v6615_v58 = vunpack.c.h.b16 %v15840_v12 }
 0x2da   : > { %v15891_v55 = vsel %vm15037_vm9, %v4811_v6, 0  ;;  %v4792_v49 = vadd.f32 %v4783_v33, %v4496_v60  ;;  %6431 = vmatpush.bf16.msrb.mxu0 %v11987_v27  ;;  %v12167_v60 = vor.u32 %v13966_v42, %v12164_v53  ;;  %v12231_v6 = vor.u32 %v13982_v1, %v12228_v51  ;;  %v12226_v33 = vld [vmem:[#allocation7 + $0x1e0] sm:$0xf]  ;;  %v13964_v0 = vld [vmem:[#allocation7 + $0x154] sm:$0xf] }
 0x2db   : > { %4935 = vst [vmem:[#allocation4 + $0x40] sm:$0xff] %v15891_v55  ;;  %v5954_v24 = vsel %vm888_vm4, %v5949_v23, %v5953_v14  ;;  %v5962_v8 = vsel %vm888_vm4, %v5957_v3, %v5961_v13  ;;  %v12171_v23 = vor.u32 %v13969_v40, %v12170_v7  ;;  %v6248_v3 = vpack.c.b16 %v5909_v48, %v6246_v62  ;;  %v12156_v31 = vld [vmem:[#allocation7 + $0x158] sm:$0xf0]  ;;  %v13980_v20 = vld [vmem:[#allocation7 + $0x1d4] sm:$0xf] }
 0x2dc   : > { %v4800_v43 = vadd.f32 %v4792_v49, %v15468_v18  ;;  %6140 = vmatmul.bf16.gmra.mxu0 %v5954_v24  ;;  %6159 = vmatmul.bf16.gmra.mxu1 %v5962_v8  ;;  %v12051_v18 = vor.u32 %v15887_v2, %v15885_v26  ;;  %v12163_v44 = vor.u32 %v13967_v25, %v12162_v11  ;;  %v12220_v50 = vld [vmem:[#allocation7 + $0x1d8] sm:$0xf0]  ;;  %v12154_v13 = vld [vmem:[#allocation7 + $0x150] sm:$0xf]  ;;  %v13965_v5 = vld [vmem:[#allocation7 + $0x154] sm:$0xf0]  ;;  %v6617_v51 = vunpack.c.h.b16 %v15859_v39 }
 0x2dd   : > { %6178 = vmatmul.bf16.gmra.mxu2 %v5954_v24  ;;  %6197 = vmatmul.bf16.gmra.mxu3 %v5962_v8  ;;  %v6249_v14 = vpack.c.b16 %v5910_v17, %v6247_v4  ;;  %v12227_v26 = vor.u32 %v13983_v61, %v12226_v33  ;;  %v12159_v48 = vor.u32 %v13964_v0, %v12156_v31  ;;  %v12218_v49 = vld [vmem:[#allocation7 + $0x1d0] sm:$0xf]  ;;  %v13981_v38 = vld [vmem:[#allocation7 + $0x1d4] sm:$0xf0]  ;;  %v6250_v46 = vrot.slane %v6248_v3, 1 }
 0x2de   : > { %v4808_v47 = vmax.f32 %v4800_v43, 0.0  ;;  %6882 = vmatpush.bf16.msra.mxu2 %v12175_v15  ;;  %6901 = vmatpush.bf16.msra.mxu3 %v12239_v30  ;;  %v12223_v2 = vor.u32 %v13980_v20, %v12220_v50  ;;  %v12155_v56 = vor.u32 %v13965_v5, %v12154_v13  ;;  %v6537_v24 = vld [vmem:[#allocation4 + $0x28] sm:$0x88]  ;;  %v6254_v17 = vrot.slane %v15791_v37, 1  ;;  %v13962_v8 = vld [vmem:[#allocation7 + $0x144] sm:$0xf] }
 0x2df   : > { %v5295_v41 = vpop.f32.mrf.mxu2  ;;  %v5314_v19 = vpop.f32.mrf.mxu3  ;;  %6844 = vmatpush.bf16.msra.mxu0 %v12171_v23  ;;  %6450 = vmatpush.bf16.msrb.mxu1 %v12051_v18  ;;  %v6253_v57 = vrot.slane %v6249_v14, 1  ;;  %v12148_v27 = vld [vmem:[#allocation7 + $0x148] sm:$0xf0]  ;;  %v12219_v15 = vor.u32 %v13981_v38, %v12218_v49  ;;  %v13978_v30 = vld [vmem:[#allocation7 + $0x1c4] sm:$0xf]  ;;  %v6613_v1 = vunpack.c.h.b16 %v6537_v24  ;;  %v6252_v12 = vsel %vm978_vm5, %v6250_v46, %v6251_v54 }
 0x2e0   : > { %v4812_v63 = vpack.c.bf16 %v4808_v47, %v4807_v10  ;;  %v5259_v28 = vpop.f32.mrf.mxu0  ;;  %v5278_v59 = vpop.f32.mrf.mxu1  ;;  %v12212_v7 = vld [vmem:[#allocation7 + $0x1c8] sm:$0xf0]  ;;  %v12146_v40 = vld [vmem:[#allocation7 + $0x140] sm:$0xf]  ;;  %v13963_v36 = vld [vmem:[#allocation7 + $0x144] sm:$0xf0]  ;;  %v6612_v10 = vunpack.c.l.b16 %v6537_v24  ;;  %v6616_v47 = vunpack.c.l.b16 %v15859_v39  ;;  %v12151_v41 = vor.u32 %v13962_v8, %v12148_v27 }
 0x2e1   : > { %v12210_v42 = vld [vmem:[#allocation7 + $0x1c0] sm:$0xf]  ;;  %v13979_v53 = vld [vmem:[#allocation7 + $0x1c4] sm:$0xf0]  ;;  %v13960_v4 = vld [vmem:[#allocation7 + $0x134] sm:$0xf]  ;;  %v12215_v19 = vor.u32 %v13978_v30, %v12212_v7  ;;  %v6255_v28 = vsel %vm978_vm5, %v6253_v57, %v6254_v17  ;;  %v12147_v59 = vor.u32 %v13963_v36, %v12146_v40  ;;  %v15926_v39 = vpack.c.b16 %v6615_v58, %v6613_v1 }
 0x2e2   : > { %v15905_v34 = vsel %vm15037_vm9, %v4812_v63, 0  ;;  %6883 = vmatpush.bf16.msra.mxu2 %v12167_v60  ;;  %6902 = vmatpush.bf16.msra.mxu3 %v12231_v6  ;;  %v13976_v11 = vld [vmem:[#allocation7 + $0x1b4] sm:$0xf]  ;;  %v12204_v25 = vld [vmem:[#allocation7 + $0x1b8] sm:$0xf0]  ;;  %v15921_v63 = vpack.c.b16 %v6614_v45, %v6612_v10  ;;  %v12211_v60 = vor.u32 %v13979_v53, %v12210_v42  ;;  %v6618_v3 = vunpack.c.l.b16 %v15891_v55 }
 0x2e3   : > { %4936 = vst [vmem:[#allocation4 + $0x48] sm:$0xff] %v15905_v34  ;;  %6863 = vmatpush.bf16.msra.mxu1 %v12235_v32  ;;  %6845 = vmatpush.bf16.msra.mxu0 %v12163_v44  ;;  %v12140_v32 = vld [vmem:[#allocation7 + $0x138] sm:$0xf0]  ;;  %v12138_v6 = vld [vmem:[#allocation7 + $0x130] sm:$0xf]  ;;  %v6619_v44 = vunpack.c.h.b16 %v15891_v55  ;;  %v15930_v31 = vpack.c.b16 %v6616_v47, %v6614_v45  ;;  %v6256_v20 = vrot.slane %v15866_v35, 1  ;;  %v12207_v14 = vor.u32 %v13976_v11, %v12204_v25 }
 0x2e4   : > { %v13961_v33 = vld [vmem:[#allocation7 + $0x134] sm:$0xf0]  ;;  %v12202_v61 = vld [vmem:[#allocation7 + $0x1b0] sm:$0xf]  ;;  %v12143_v50 = vor.u32 %v13960_v4, %v12140_v32  ;;  %v13958_v13 = vld [vmem:[#allocation7 + $0x124] sm:$0xf]  ;;  %v15937_v49 = vpack.c.b16 %v6618_v3, %v6616_v47 }
 0x2e5   : > { %v13977_v0 = vld [vmem:[#allocation7 + $0x1b4] sm:$0xf0]  ;;  %v12132_v5 = vld [vmem:[#allocation7 + $0x128] sm:$0xf0]  ;;  %v6629_v38 = vshrl.u32 %v15921_v63, 16  ;;  %v6632_v46 = vshll.u32 %v15921_v63, 16  ;;  %v12139_v27 = vor.u32 %v13961_v33, %v12138_v6 }
 0x2e6   : > { %6884 = vmatpush.bf16.msra.mxu2 %v12159_v48  ;;  %6903 = vmatpush.bf16.msra.mxu3 %v12223_v2  ;;  %v13974_v48 = vld [vmem:[#allocation7 + $0x1a4] sm:$0xf]  ;;  %v12196_v2 = vld [vmem:[#allocation7 + $0x1a8] sm:$0xf0]  ;;  %v6258_v8 = vrot.slane %v15871_v16, 1  ;;  %v12203_v45 = vor.u32 %v13977_v0, %v12202_v61  ;;  %v6640_v36 = vshll.u32 %v15937_v49, 16  ;;  %v12135_v4 = vor.u32 %v13958_v13, %v12132_v5 }
 0x2e7   : > { %v5297_v29 = vpop.f32.mrf.mxu2  ;;  %v5316_v43 = vpop.f32.mrf.mxu3  ;;  %6864 = vmatpush.bf16.msra.mxu1 %v12227_v26  ;;  %6846 = vmatpush.bf16.msra.mxu0 %v12155_v56  ;;  %v15933_v26 = vpack.c.b16 %v6617_v51, %v6615_v58  ;;  %v15943_v56 = vpack.c.b16 %v6619_v44, %v6617_v51  ;;  %v12194_v58 = vld [vmem:[#allocation7 + $0x1a0] sm:$0xf]  ;;  %v13956_v42 = vld [vmem:[#allocation7 + $0x114] sm:$0xf]  ;;  %v12124_v53 = vld [vmem:[#allocation7 + $0x118] sm:$0xf0]  ;;  %v12199_v1 = vor.u32 %v13974_v48, %v12196_v2 }
 0x2e8   : > { %v5262_v62 = vpop.f32.mrf.mxu0  ;;  %v5281_v23 = vpop.f32.mrf.mxu1  ;;  %v12130_v29 = vld [vmem:[#allocation7 + $0x120] sm:$0xf]  ;;  %v13959_v43 = vld [vmem:[#allocation7 + $0x124] sm:$0xf0]  ;;  %v6649_v10 = vshll.u32 %v15926_v39, 16  ;;  %v6642_v61 = vrot.slane %v6640_v36, 4 }
 0x2e9   : > { %v15915_v18 = vadd.f32 %v5281_v23, %v5262_v62  ;;  %v13975_v62 = vld [vmem:[#allocation7 + $0x1a4] sm:$0xf0]  ;;  %v6637_v23 = vshrl.u32 %v15937_v49, 16  ;;  %v6654_v47 = vshrl.u32 %v15943_v56, 16  ;;  %v13972_v51 = vld [vmem:[#allocation7 + $0x194] sm:$0xf] }
 0x2ea   : > { %6885 = vmatpush.bf16.msra.mxu2 %v12151_v41  ;;  %6904 = vmatpush.bf16.msra.mxu3 %v12215_v19  ;;  %v6634_v41 = vrot.slane %v6632_v46, 4  ;;  %v12131_v19 = vor.u32 %v13959_v43, %v12130_v29  ;;  %v12195_v32 = vor.u32 %v13975_v62, %v12194_v58  ;;  %v12188_v11 = vld [vmem:[#allocation7 + $0x198] sm:$0xf0]  ;;  %v12122_v25 = vld [vmem:[#allocation7 + $0x110] sm:$0xf]  ;;  %v6651_v13 = vrot.slane %v6649_v10, 4 }
 0x2eb   : > { %6865 = vmatpush.bf16.msra.mxu1 %v12219_v15  ;;  %6847 = vmatpush.bf16.msra.mxu0 %v12147_v59  ;;  %v6646_v15 = vshrl.u32 %v15926_v39, 16  ;;  %v12127_v59 = vor.u32 %v13956_v42, %v12124_v53  ;;  %v13973_v6 = vld [vmem:[#allocation7 + $0x194] sm:$0xf0]  ;;  %v6639_v33 = vrot.slane %v6637_v23, 3  ;;  %v15957_v0 = vld [vmem:[#allocation7 + $0x104] sm:$0xf]  ;;  %v12191_v2 = vor.u32 %v13972_v51, %v12188_v11 }
 0x2ec   : > { %6432 = vmatmul.bf16.vlgmr.msrb.gmra.mxu0 %v6252_v12  ;;  %6451 = vmatmul.bf16.vlgmr.msrb.gmra.mxu1 %v6255_v28  ;;  %v6656_v5 = vrot.slane %v6654_v47, 3  ;;  %v6657_v48 = vshll.u32 %v15943_v56, 16  ;;  %v12180_v46 = vld [vmem:[#allocation7 + $0x188] sm:$0xf0]  ;;  %v13955_v58 = vld [vmem:[#allocation7 + $0x104] sm:$0xf0]  ;;  %v6257_v51 = vsel %vm978_vm5, %v6251_v54, %v6256_v20 }
 0x2ed   : > { %6470 = vmatmul.bf16.vlgmr.msrb.gmra.mxu2 %v6252_v12  ;;  %6489 = vmatmul.bf16.vlgmr.msrb.gmra.mxu3 %v6255_v28  ;;  %v6631_v12 = vrot.slane %v6629_v38, 3  ;;  %v13957_v28 = vld [vmem:[#allocation7 + $0x114] sm:$0xf0]  ;;  %v13970_v38 = vld [vmem:[#allocation7 + $0x184] sm:$0xf] }
 0x2ee   : > { %6886 = vmatpush.bf16.msra.mxu2 %v12143_v50  ;;  %6905 = vmatpush.bf16.msra.mxu3 %v12207_v14  ;;  %v15959_v50 = vld [vmem:[#allocation7 + $0x108] sm:$0xf0]  ;;  %v6648_v14 = vrot.slane %v6646_v15, 3  ;;  %v12123_v43 = vor.u32 %v13957_v28, %v12122_v25  ;;  %v12178_v62 = vld [vmem:[#allocation7 + $0x180] sm:$0xf]  ;;  %v6659_v23 = vrot.slane %v6657_v48, 4  ;;  %v6621_v25 = vunpack.c.h.b16 %v15905_v34 }
 0x2ef   : > { %v5300_v24 = vpop.f32.mrf.mxu2  ;;  %v5319_v57 = vpop.f32.mrf.mxu3  ;;  %6866 = vmatpush.bf16.msra.mxu1 %v12211_v60  ;;  %6848 = vmatpush.bf16.msra.mxu0 %v12139_v27  ;;  %v12186_v60 = vld [vmem:[#allocation7 + $0x190] sm:$0xf]  ;;  %v15962_v27 = vor.u32 %v6642_v61, %v6639_v33  ;;  %v13971_v53 = vld [vmem:[#allocation7 + $0x184] sm:$0xf0]  ;;  %v13936_v47 = vld [vmem:[#allocation7 + $0x74] sm:$0xf]  ;;  %v6259_v28 = vsel %vm978_vm5, %v6254_v17, %v6258_v8  ;;  %v12119_v9 = vor.u32 %v15957_v0, %v15959_v50 }
 0x2f0   : > { %v15947_v30 = vadd.f32 %v5319_v57, %v5300_v24  ;;  %v15949_v7 = vpop.f32.mrf.mxu0  ;;  %v15951_v40 = vpop.f32.mrf.mxu1  ;;  %v12114_v24 = vld [vmem:[#allocation7 + $0x100] sm:$0xf]  ;;  %v6635_v57 = vor.u32 %v6634_v41, %v6631_v12  ;;  %v12187_v15 = vor.u32 %v13973_v6, %v12186_v60  ;;  %v6652_v12 = vor.u32 %v6651_v13, %v6648_v14  ;;  %v12298_v11 = vld [vmem:[#allocation7 + $0x70] sm:$0xf]  ;;  %v13937_v54 = vld [vmem:[#allocation7 + $0x74] sm:$0xf0] }
 0x2f1   : > { %v15978_v41 = vor.u32 %v6659_v23, %v6656_v5  ;;  %v12183_v35 = vor.u32 %v13970_v38, %v12180_v46  ;;  %v12362_v20 = vld [vmem:[#allocation7 + $0xf0] sm:$0xf]  ;;  %v13953_v60 = vld [vmem:[#allocation7 + $0xf4] sm:$0xf0]  ;;  %v12115_v6 = vor.u32 %v13955_v58, %v12114_v24  ;;  %v12179_v33 = vor.u32 %v13971_v53, %v12178_v62  ;;  %v13934_v17 = vld [vmem:[#allocation7 + $0x64] sm:$0xf] }
 0x2f2   : > { %6887 = vmatpush.bf16.msra.mxu2 %v12135_v4  ;;  %6906 = vmatpush.bf16.msra.mxu3 %v12199_v1  ;;  %v15970_v10 = vsel %vm655_vm3, %v6635_v57, %v15962_v27  ;;  %v12300_v4 = vld [vmem:[#allocation7 + $0x78] sm:$0xf0]  ;;  %v6620_v1 = vunpack.c.l.b16 %v15905_v34  ;;  %v12292_v8 = vld [vmem:[#allocation7 + $0x68] sm:$0xf0]  ;;  %v12299_v61 = vor.u32 %v13937_v54, %v12298_v11  ;;  %v12363_v0 = vor.u32 %v13953_v60, %v12362_v20  ;;  %v13950_v50 = vld [vmem:[#allocation7 + $0xe4] sm:$0xf] }
 0x2f3   : > { %6867 = vmatpush.bf16.msra.mxu1 %v12203_v45  ;;  %6849 = vmatpush.bf16.msra.mxu0 %v12131_v19  ;;  %v13952_v19 = vld [vmem:[#allocation7 + $0xf4] sm:$0xf]  ;;  %v15990_v16 = vsel %vm655_vm3, %v6652_v12, %v15978_v41  ;;  %v12303_v37 = vor.u32 %v13936_v47, %v12300_v4  ;;  %v12356_v14 = vld [vmem:[#allocation7 + $0xe8] sm:$0xf0]  ;;  %v12290_v13 = vld [vmem:[#allocation7 + $0x60] sm:$0xf]  ;;  %v15998_v5 = vpack.c.b16 %v6621_v25, %v6619_v44 }
 0x2f4   : > { %v13935_v48 = vld [vmem:[#allocation7 + $0x64] sm:$0xf0]  ;;  %v6626_v46 = vpack.c.b16 %v6620_v1, %v6620_v1  ;;  %v6627_v57 = vpack.c.b16 %v6621_v25, %v6621_v25  ;;  %v12295_v58 = vor.u32 %v13934_v17, %v12292_v8  ;;  %v12359_v62 = vor.u32 %v13950_v50, %v12356_v14  ;;  %v13932_v55 = vld [vmem:[#allocation7 + $0x54] sm:$0xf]  ;;  %v12284_v44 = vld [vmem:[#allocation7 + $0x58] sm:$0xf0] }
 0x2f5   : > { %v13951_v38 = vld [vmem:[#allocation7 + $0xe4] sm:$0xf0]  ;;  %v13948_v23 = vld [vmem:[#allocation7 + $0xd4] sm:$0xf]  ;;  %v12348_v53 = vld [vmem:[#allocation7 + $0xd8] sm:$0xf0]  ;;  %v12287_v25 = vor.u32 %v13932_v55, %v12284_v44 }
 0x2f6   : > { %6888 = vmatpush.bf16.msra.mxu2 %v12127_v59  ;;  %6907 = vmatpush.bf16.msra.mxu3 %v12191_v2  ;;  %v15994_v59 = vpack.c.b16 %v6620_v1, %v6618_v3  ;;  %v12354_v2 = vld [vmem:[#allocation7 + $0xe0] sm:$0xf]  ;;  %v12282_v47 = vld [vmem:[#allocation7 + $0x50] sm:$0xf]  ;;  %v13933_v4 = vld [vmem:[#allocation7 + $0x54] sm:$0xf0] }
 0x2f7   : > { %v15964_v45 = vpop.f32.mrf.mxu2  ;;  %v15966_v29 = vpop.f32.mrf.mxu3  ;;  %6868 = vmatpush.bf16.msra.mxu1 %v12195_v32  ;;  %v12364_v32 = vld [vmem:[#allocation7 + $0xf8] sm:$0xf0]  ;;  %6850 = vmatpush.bf16.msra.mxu0 %v12123_v43  ;;  %v12346_v1 = vld [vmem:[#allocation7 + $0xd0] sm:$0xf]  ;;  %v6663_v12 = vshrl.u32 %v6626_v46, 16  ;;  %v6675_v11 = vshll.u32 %v6627_v57, 16  ;;  %v12283_v54 = vor.u32 %v13933_v4, %v12282_v47 }
 0x2f8   : > { %v5512_v36 = vpop.f32.mrf.mxu0  ;;  %v5531_v42 = vpop.f32.mrf.mxu1  ;;  %v12367_v34 = vor.u32 %v13952_v19, %v12364_v32  ;;  %v6666_v19 = vshll.u32 %v6626_v46, 16  ;;  %v6672_v32 = vshrl.u32 %v6627_v57, 16  ;;  %v13930_v60 = vld [vmem:[#allocation7 + $0x44] sm:$0xf]  ;;  %v6925_v8 = vrot.slane %v15921_v63, 3 }
 0x2f9   : > { %v12291_v36 = vor.u32 %v13935_v48, %v12290_v13  ;;  %v12355_v42 = vor.u32 %v13951_v38, %v12354_v2  ;;  %v12340_v14 = vld [vmem:[#allocation7 + $0xc8] sm:$0xf0]  ;;  %v12274_v13 = vld [vmem:[#allocation7 + $0x40] sm:$0xf]  ;;  %v13931_v48 = vld [vmem:[#allocation7 + $0x44] sm:$0xf0] }
 0x2fa   : > { %6889 = vmatpush.bf16.msra.mxu2 %v12119_v9  ;;  %6908 = vmatpush.bf16.msra.mxu3 %v12183_v35  ;;  %v6665_v9 = vrot.slane %v6663_v12, 3  ;;  %v6668_v35 = vrot.slane %v6666_v19, 4  ;;  %v13928_v44 = vld [vmem:[#allocation7 + $0x34] sm:$0xf]  ;;  %v12332_v47 = vld [vmem:[#allocation7 + $0xb8] sm:$0xf0] }
 0x2fb   : > { %6869 = vmatpush.bf16.msra.mxu1 %v12187_v15  ;;  %6851 = vmatpush.bf16.msra.mxu0 %v12115_v6  ;;  %v6674_v6 = vrot.slane %v6672_v32, 3  ;;  %v12266_v4 = vld [vmem:[#allocation7 + $0x30] sm:$0xf]  ;;  %v13926_v32 = vld [vmem:[#allocation7 + $0x24] sm:$0xf] }
 0x2fc   : > { %6437 = vmatmul.bf16.gmra.mxu0 %v6257_v51  ;;  %6456 = vmatmul.bf16.gmra.mxu1 %v6259_v28  ;;  %v6669_v17 = vor.u32 %v6668_v35, %v6665_v9 }
 0x2fd   : > { %6475 = vmatmul.bf16.gmra.mxu2 %v6257_v51  ;;  %6494 = vmatmul.bf16.gmra.mxu3 %v6259_v28  ;;  %v13949_v51 = vld [vmem:[#allocation7 + $0xd4] sm:$0xf0]  ;;  %v12351_v28 = vor.u32 %v13948_v23, %v12348_v53  ;;  %v12268_v23 = vld [vmem:[#allocation7 + $0x38] sm:$0xf0] }
 0x2fe   : > { %7137 = vmatpush.bf16.msrb.mxu2 %v12303_v37  ;;  %7156 = vmatpush.bf16.msrb.mxu3 %v12367_v34  ;;  %v12347_v20 = vor.u32 %v13949_v51, %v12346_v1  ;;  %v12276_v37 = vld [vmem:[#allocation7 + $0x48] sm:$0xf0]  ;;  %v13946_v34 = vld [vmem:[#allocation7 + $0xc4] sm:$0xf]  ;;  %v16004_v57 = vsel %vm655_vm3, %v15962_v27, %v6669_v17  ;;  %v12330_v1 = vld [vmem:[#allocation7 + $0xb0] sm:$0xf]  ;;  %v12271_v12 = vor.u32 %v13928_v44, %v12268_v23 }
 0x2ff   : > { %v5550_v24 = vpop.f32.mrf.mxu2  ;;  %v5569_v3 = vpop.f32.mrf.mxu3  ;;  %6870 = vmatpush.bf16.msra.mxu1 %v12179_v33  ;;  %7099 = vmatpush.bf16.msrb.mxu0 %v12299_v61  ;;  %v6677_v33 = vrot.slane %v6675_v11, 4  ;;  %v6926_v61 = vrot.slane %v15937_v49, 3  ;;  %v12279_v55 = vor.u32 %v13930_v60, %v12276_v37  ;;  %v12343_v27 = vor.u32 %v13946_v34, %v12340_v14  ;;  %v13945_v51 = vld [vmem:[#allocation7 + $0xb4] sm:$0xf0]  ;;  %v12260_v11 = vld [vmem:[#allocation7 + $0x28] sm:$0xf0] }
 0x300   : > { %v5514_v43 = vpop.f32.mrf.mxu0  ;;  %v5533_v15 = vpop.f32.mrf.mxu1  ;;  %v12338_v24 = vld [vmem:[#allocation7 + $0xc0] sm:$0xf]  ;;  %v13947_v3 = vld [vmem:[#allocation7 + $0xc4] sm:$0xf0]  ;;  %v12331_v35 = vor.u32 %v13945_v51, %v12330_v1  ;;  %v12252_v14 = vld [vmem:[#allocation7 + $0x18] sm:$0xf0] }
 0x301   : > { %v6678_v2 = vor.u32 %v6677_v33, %v6674_v6  ;;  %v16009_v63 = vsel %vm740_vm2, %v6925_v8, %v6926_v61  ;;  %v6928_v43 = vrot.slane %v15926_v39, 3  ;;  %v6929_v15 = vrot.slane %v15943_v56, 3  ;;  %v12258_v60 = vld [vmem:[#allocation7 + $0x20] sm:$0xf]  ;;  %v13927_v33 = vld [vmem:[#allocation7 + $0x24] sm:$0xf0] }
 0x302   : > { %7138 = vmatpush.bf16.msrb.mxu2 %v12295_v58  ;;  %7157 = vmatpush.bf16.msrb.mxu3 %v12359_v62  ;;  %v12339_v53 = vor.u32 %v13947_v3, %v12338_v24  ;;  %v12322_v37 = vld [vmem:[#allocation7 + $0xa0] sm:$0xf]  ;;  %v13943_v34 = vld [vmem:[#allocation7 + $0xa4] sm:$0xf0]  ;;  %v12263_v8 = vor.u32 %v13926_v32, %v12260_v11  ;;  %v13925_v24 = vld [vmem:[#allocation7 + $0x14] sm:$0xf0] }
 0x303   : > { %7118 = vmatpush.bf16.msrb.mxu1 %v12363_v0  ;;  %7100 = vmatpush.bf16.msrb.mxu0 %v12291_v36  ;;  %v16016_v62 = vsel %vm655_vm3, %v15978_v41, %v6678_v2  ;;  %v16021_v36 = vsel %vm740_vm2, %v6928_v43, %v6929_v15  ;;  %v13929_v41 = vld [vmem:[#allocation7 + $0x34] sm:$0xf0]  ;;  %v12316_v2 = vld [vmem:[#allocation7 + $0x98] sm:$0xf0]  ;;  %v12314_v3 = vld [vmem:[#allocation7 + $0x90] sm:$0xf] }
 0x304   : > { %v12267_v9 = vor.u32 %v13929_v41, %v12266_v4  ;;  %v13941_v43 = vld [vmem:[#allocation7 + $0x94] sm:$0xf0]  ;;  %v12306_v51 = vld [vmem:[#allocation7 + $0x80] sm:$0xf]  ;;  %v14033_v56 = vld [vmem:[#allocation7 + $0x364] sm:$0xf0] }
 0x305   : > { %v12315_v1 = vor.u32 %v13941_v43, %v12314_v3  ;;  %v12482_v3 = vld [vmem:[#allocation7 + $0x2e0] sm:$0xf]  ;;  %v14015_v43 = vld [vmem:[#allocation7 + $0x2e4] sm:$0xf0] }
 0x306   : > { %7139 = vmatpush.bf16.msrb.mxu2 %v12287_v25  ;;  %7158 = vmatpush.bf16.msrb.mxu3 %v12351_v28 }
 0x307   : > { %7119 = vmatpush.bf16.msrb.mxu1 %v12355_v42  ;;  %v5552_v0 = vpop.f32.mrf.mxu2  ;;  %v5571_v50 = vpop.f32.mrf.mxu3  ;;  %7101 = vmatpush.bf16.msrb.mxu0 %v12283_v54  ;;  %v12275_v42 = vor.u32 %v13931_v48, %v12274_v13  ;;  %v13942_v54 = vld [vmem:[#allocation7 + $0xa4] sm:$0xf]  ;;  %v12259_v13 = vor.u32 %v13927_v33, %v12258_v60  ;;  %v12323_v48 = vor.u32 %v13943_v34, %v12322_v37  ;;  %v12490_v33 = vld [vmem:[#allocation7 + $0x2f0] sm:$0xf]  ;;  %v14017_v37 = vld [vmem:[#allocation7 + $0x2f4] sm:$0xf0] }
 0x308   : > { %v5517_v38 = vpop.f32.mrf.mxu0  ;;  %v5536_v46 = vpop.f32.mrf.mxu1  ;;  %v13924_v50 = vld [vmem:[#allocation7 + $0x14] sm:$0xf] }
 0x309   : > { %v5518_v58 = vadd.f32 %v5517_v38, %v15915_v18  ;;  %v13944_v18 = vld [vmem:[#allocation7 + $0xb4] sm:$0xf]  ;;  %v12250_v38 = vld [vmem:[#allocation7 + $0x10] sm:$0xf]  ;;  %v12255_v44 = vor.u32 %v13924_v50, %v12252_v14  ;;  %v13998_v14 = vld [vmem:[#allocation7 + $0x264] sm:$0xf] }
 0x30a   : > { %7140 = vmatpush.bf16.msrb.mxu2 %v12279_v55  ;;  %7159 = vmatpush.bf16.msrb.mxu3 %v12343_v27  ;;  %v12335_v19 = vor.u32 %v13944_v18, %v12332_v47  ;;  %v12244_v55 = vld [vmem:[#allocation7 + $0x8] sm:$0xf0]  ;;  %v13938_v27 = vld [vmem:[#allocation7 + $0x84] sm:$0xf]  ;;  %v13923_v18 = vld [vmem:[#allocation7 + $0x4] sm:$0xf0]  ;;  %v12251_v41 = vor.u32 %v13925_v24, %v12250_v38 }
 0x30b   : > { %7120 = vmatpush.bf16.msrb.mxu1 %v12347_v20  ;;  %v16023_v39 = vadd.f32 %v5536_v46, %v5518_v58  ;;  %7102 = vmatpush.bf16.msrb.mxu0 %v12275_v42  ;;  %v12324_v20 = vld [vmem:[#allocation7 + $0xa8] sm:$0xf0]  ;;  %v4865_v46 = vld [vmem:[#allocation4 + $0x50] sm:$0xff]  ;;  %v13922_v58 = vld [vmem:[#allocation7 + $0x4] sm:$0xf] }
 0x30c   : > { %6852 = vmatmul.bf16.vlgmr.msra.gmra.mxu0 %v15970_v10  ;;  %6871 = vmatmul.bf16.vlgmr.msra.gmra.mxu1 %v15990_v16  ;;  %v12327_v0 = vor.u32 %v13942_v54, %v12324_v20  ;;  %v12308_v42 = vld [vmem:[#allocation7 + $0x88] sm:$0xf0]  ;;  %v12426_v54 = vld [vmem:[#allocation7 + $0x270] sm:$0xf]  ;;  %v12247_v20 = vor.u32 %v13922_v58, %v12244_v55  ;;  %v13999_v24 = vld [vmem:[#allocation7 + $0x264] sm:$0xf0] }
 0x30d   : > { %6890 = vmatmul.bf16.vlgmr.msra.gmra.mxu2 %v15970_v10  ;;  %6909 = vmatmul.bf16.vlgmr.msra.gmra.mxu3 %v15990_v16  ;;  %v12311_v60 = vor.u32 %v13938_v27, %v12308_v42  ;;  %v12484_v38 = vld [vmem:[#allocation7 + $0x2e8] sm:$0xf0]  ;;  %v12412_v42 = vld [vmem:[#allocation7 + $0x258] sm:$0xf0] }
 0x30e   : > { %7141 = vmatpush.bf16.msrb.mxu2 %v12271_v12  ;;  %7160 = vmatpush.bf16.msrb.mxu3 %v12335_v19  ;;  %v13939_v12 = vld [vmem:[#allocation7 + $0x84] sm:$0xf0]  ;;  %v14000_v19 = vld [vmem:[#allocation7 + $0x274] sm:$0xf] }
 0x30f   : > { %v5555_v25 = vpop.f32.mrf.mxu2  ;;  %v5574_v28 = vpop.f32.mrf.mxu3  ;;  %7121 = vmatpush.bf16.msrb.mxu1 %v12339_v53  ;;  %7103 = vmatpush.bf16.msrb.mxu0 %v12267_v9  ;;  %v12242_v53 = vld [vmem:[#allocation7] sm:$0xf]  ;;  %v4925_v9 = vsel %vm15037_vm9, %v4865_v46, 0 }
 0x310   : > { %v5556_v6 = vadd.f32 %v5555_v25, %v15947_v30  ;;  %v16030_v10 = vpop.f32.mrf.mxu0  ;;  %v16032_v16 = vpop.f32.mrf.mxu1  ;;  %v13940_v30 = vld [vmem:[#allocation7 + $0x94] sm:$0xf]  ;;  %v12428_v25 = vld [vmem:[#allocation7 + $0x278] sm:$0xf0]  ;;  %4937 = vst [vmem:[#allocation4 + $0x50] sm:$0xff] %v4925_v9  ;;  %v12243_v34 = vor.u32 %v13923_v18, %v12242_v53  ;;  %v12483_v18 = vor.u32 %v14015_v43, %v12482_v3 }
 0x311   : > { %v12319_v23 = vor.u32 %v13940_v30, %v12316_v2  ;;  %v12491_v30 = vor.u32 %v14017_v37, %v12490_v33  ;;  %v14014_v2 = vld [vmem:[#allocation7 + $0x2e4] sm:$0xf]  ;;  %v12418_v46 = vld [vmem:[#allocation7 + $0x260] sm:$0xf]  ;;  %v12468_v33 = vld [vmem:[#allocation7 + $0x2c8] sm:$0xf0] }
 0x312   : > { %v16034_v17 = vadd.f32 %v5574_v28, %v5556_v6  ;;  %7142 = vmatpush.bf16.msrb.mxu2 %v12263_v8  ;;  %7161 = vmatpush.bf16.msrb.mxu3 %v12327_v0  ;;  %v14016_v28 = vld [vmem:[#allocation7 + $0x2f4] sm:$0xf]  ;;  %v14001_v6 = vld [vmem:[#allocation7 + $0x274] sm:$0xf0]  ;;  %v12307_v8 = vor.u32 %v13939_v12, %v12306_v51  ;;  %v12431_v0 = vor.u32 %v14000_v19, %v12428_v25  ;;  %v12410_v51 = vld [vmem:[#allocation7 + $0x250] sm:$0xf] }
 0x313   : > { %7122 = vmatpush.bf16.msrb.mxu1 %v12331_v35  ;;  %7104 = vmatpush.bf16.msrb.mxu0 %v12259_v13  ;;  %v12492_v35 = vld [vmem:[#allocation7 + $0x2f8] sm:$0xf0]  ;;  %v12420_v13 = vld [vmem:[#allocation7 + $0x268] sm:$0xf0]  ;;  %v12419_v53 = vor.u32 %v13999_v24, %v12418_v46  ;;  %v13997_v12 = vld [vmem:[#allocation7 + $0x254] sm:$0xf0] }
 0x314   : > { %v12495_v50 = vor.u32 %v14016_v28, %v12492_v35  ;;  %v12474_v19 = vld [vmem:[#allocation7 + $0x2d0] sm:$0xf]  ;;  %v12411_v28 = vor.u32 %v13997_v12, %v12410_v51  ;;  %v13994_v35 = vld [vmem:[#allocation7 + $0x244] sm:$0xf]  ;;  %v12402_v37 = vld [vmem:[#allocation7 + $0x240] sm:$0xf] }
 0x315   : > { %v12396_v46 = vld [vmem:[#allocation7 + $0x238] sm:$0xf0] }
 0x316   : > { %7143 = vmatpush.bf16.msrb.mxu2 %v12255_v44  ;;  %7162 = vmatpush.bf16.msrb.mxu3 %v12319_v23  ;;  %v13996_v23 = vld [vmem:[#allocation7 + $0x254] sm:$0xf] }
 0x317   : > { %v16036_v47 = vpop.f32.mrf.mxu2  ;;  %v16038_v4 = vpop.f32.mrf.mxu3  ;;  %7123 = vmatpush.bf16.msrb.mxu1 %v12323_v48  ;;  %7105 = vmatpush.bf16.msrb.mxu0 %v12251_v41  ;;  %v12427_v48 = vor.u32 %v14001_v6, %v12426_v54  ;;  %v14012_v41 = vld [vmem:[#allocation7 + $0x2d4] sm:$0xf]  ;;  %v12404_v54 = vld [vmem:[#allocation7 + $0x248] sm:$0xf0]  ;;  %v14010_v6 = vld [vmem:[#allocation7 + $0x2c4] sm:$0xf] }
 0x318   : > { %v5789_v32 = vpop.f32.mrf.mxu0  ;;  %v5808_v11 = vpop.f32.mrf.mxu1 }
 0x319   : > { %v14013_v32 = vld [vmem:[#allocation7 + $0x2d4] sm:$0xf0]  ;;  %v12415_v11 = vor.u32 %v13996_v23, %v12412_v42 }
 0x31a   : > { %7144 = vmatpush.bf16.msrb.mxu2 %v12247_v20  ;;  %7163 = vmatpush.bf16.msrb.mxu3 %v12311_v60  ;;  %v12475_v9 = vor.u32 %v14013_v32, %v12474_v19  ;;  %v14006_v32 = vld [vmem:[#allocation7 + $0x2a4] sm:$0xf] }
 0x31b   : > { %7124 = vmatpush.bf16.msrb.mxu1 %v12315_v1  ;;  %7106 = vmatpush.bf16.msrb.mxu0 %v12243_v34  ;;  %v12476_v1 = vld [vmem:[#allocation7 + $0x2d8] sm:$0xf0] }
 0x31c   : > { %6857 = vmatmul.bf16.gmra.mxu0 %v16004_v57  ;;  %6876 = vmatmul.bf16.gmra.mxu1 %v16016_v62  ;;  %v12479_v25 = vor.u32 %v14012_v41, %v12476_v1  ;;  %v12388_v41 = vld [vmem:[#allocation7 + $0x228] sm:$0xf0] }
 0x31d   : > { %6895 = vmatmul.bf16.gmra.mxu2 %v16004_v57  ;;  %6914 = vmatmul.bf16.gmra.mxu3 %v16016_v62  ;;  %v12423_v57 = vor.u32 %v13998_v14, %v12420_v13  ;;  %v12487_v62 = vor.u32 %v14014_v2, %v12484_v38  ;;  %v14011_v14 = vld [vmem:[#allocation7 + $0x2c4] sm:$0xf0]  ;;  %v13992_v38 = vld [vmem:[#allocation7 + $0x234] sm:$0xf] }
 0x31e   : > { %7413 = vmatpush.bf16.msra.mxu2 %v12431_v0  ;;  %7432 = vmatpush.bf16.msra.mxu3 %v12495_v50  ;;  %v13995_v0 = vld [vmem:[#allocation7 + $0x244] sm:$0xf0]  ;;  %v12466_v50 = vld [vmem:[#allocation7 + $0x2c0] sm:$0xf] }
 0x31f   : > { %v5827_v58 = vpop.f32.mrf.mxu2  ;;  %v5846_v55 = vpop.f32.mrf.mxu3  ;;  %7125 = vmatpush.bf16.msrb.mxu1 %v12307_v8  ;;  %7375 = vmatpush.bf16.msra.mxu0 %v12427_v48  ;;  %v12407_v48 = vor.u32 %v13994_v35, %v12404_v54  ;;  %v6541_v2 = vld [vmem:[#allocation4 + $0x48] sm:$0x77]  ;;  %v12403_v3 = vor.u32 %v13995_v0, %v12402_v37  ;;  %v12467_v43 = vor.u32 %v14011_v14, %v12466_v50  ;;  %v12450_v35 = vld [vmem:[#allocation7 + $0x2a0] sm:$0xf]  ;;  %v14004_v14 = vld [vmem:[#allocation7 + $0x294] sm:$0xf] }
 0x320   : > { %v5791_v27 = vpop.f32.mrf.mxu0  ;;  %v5810_v44 = vpop.f32.mrf.mxu1  ;;  %v14008_v58 = vld [vmem:[#allocation7 + $0x2b4] sm:$0xf]  ;;  %v12460_v55 = vld [vmem:[#allocation7 + $0x2b8] sm:$0xf0]  ;;  %v6921_v23 = vunpack.c.l.b16 %v6541_v2  ;;  %v6922_v42 = vunpack.c.h.b16 %v6541_v2  ;;  %v14007_v54 = vld [vmem:[#allocation7 + $0x2a4] sm:$0xf0] }
 0x321   : > { %v12394_v27 = vld [vmem:[#allocation7 + $0x230] sm:$0xf]  ;;  %v13993_v44 = vld [vmem:[#allocation7 + $0x234] sm:$0xf0]  ;;  %v12451_v50 = vor.u32 %v14007_v54, %v12450_v35 }
 0x322   : > { %7414 = vmatpush.bf16.msra.mxu2 %v12423_v57  ;;  %7433 = vmatpush.bf16.msra.mxu3 %v12487_v62  ;;  %v12458_v57 = vld [vmem:[#allocation7 + $0x2b0] sm:$0xf]  ;;  %v14009_v62 = vld [vmem:[#allocation7 + $0x2b4] sm:$0xf0]  ;;  %v12395_v12 = vor.u32 %v13993_v44, %v12394_v27  ;;  %v14002_v27 = vld [vmem:[#allocation7 + $0x284] sm:$0xf] }
 0x323   : > { %7394 = vmatpush.bf16.msra.mxu1 %v12491_v30  ;;  %7376 = vmatpush.bf16.msra.mxu0 %v12419_v53  ;;  %v12471_v30 = vor.u32 %v14010_v6, %v12468_v33  ;;  %v12463_v53 = vor.u32 %v14008_v58, %v12460_v55  ;;  %v12459_v19 = vor.u32 %v14009_v62, %v12458_v57  ;;  %v12442_v2 = vld [vmem:[#allocation7 + $0x290] sm:$0xf]  ;;  %v12372_v55 = vld [vmem:[#allocation7 + $0x208] sm:$0xf0]  ;;  %v14035_v54 = vld [vmem:[#allocation7 + $0x374] sm:$0xf0] }
 0x324   : > { %v12436_v44 = vld [vmem:[#allocation7 + $0x288] sm:$0xf0] }
 0x325   : > { %v12439_v35 = vor.u32 %v14002_v27, %v12436_v44  ;;  %v12548_v27 = vld [vmem:[#allocation7 + $0x358] sm:$0xf0] }
 0x326   : > { %7415 = vmatpush.bf16.msra.mxu2 %v12415_v11  ;;  %7434 = vmatpush.bf16.msra.mxu3 %v12479_v25  ;;  %v12452_v11 = vld [vmem:[#allocation7 + $0x2a8] sm:$0xf0]  ;;  %v12386_v25 = vld [vmem:[#allocation7 + $0x220] sm:$0xf] }
 0x327   : > { %7395 = vmatpush.bf16.msra.mxu1 %v12483_v18  ;;  %v5829_v20 = vpop.f32.mrf.mxu2  ;;  %v5848_v60 = vpop.f32.mrf.mxu3  ;;  %7377 = vmatpush.bf16.msra.mxu0 %v12411_v28  ;;  %v13990_v18 = vld [vmem:[#allocation7 + $0x224] sm:$0xf]  ;;  %v12455_v37 = vor.u32 %v14006_v32, %v12452_v11  ;;  %v14050_v32 = vld [vmem:[#allocation7 + $0x3f4] sm:$0xf]  ;;  %v12628_v11 = vld [vmem:[#allocation7 + $0x3f8] sm:$0xf0] }
 0x328   : > { %v5794_v34 = vpop.f32.mrf.mxu0  ;;  %v5813_v8 = vpop.f32.mrf.mxu1  ;;  %v6923_v20 = vpack.c.b16 %v6921_v23, %v6921_v23  ;;  %v6924_v60 = vpack.c.b16 %v6922_v42, %v6922_v42  ;;  %v12391_v33 = vor.u32 %v13990_v18, %v12388_v41  ;;  %v12434_v18 = vld [vmem:[#allocation7 + $0x280] sm:$0xf] }
 0x329   : > { %v5814_v13 = vadd.f32 %v5813_v8, %v5794_v34  ;;  %v13988_v34 = vld [vmem:[#allocation7 + $0x214] sm:$0xf]  ;;  %v12380_v8 = vld [vmem:[#allocation7 + $0x218] sm:$0xf0] }
 0x32a   : > { %7416 = vmatpush.bf16.msra.mxu2 %v12407_v48  ;;  %7435 = vmatpush.bf16.msra.mxu3 %v12471_v30  ;;  %v12378_v48 = vld [vmem:[#allocation7 + $0x210] sm:$0xf]  ;;  %v13989_v30 = vld [vmem:[#allocation7 + $0x214] sm:$0xf0] }
 0x32b   : > { %7396 = vmatpush.bf16.msra.mxu1 %v12475_v9  ;;  %v16047_v24 = vadd.f32 %v5814_v13, %v16023_v39  ;;  %v12399_v39 = vor.u32 %v13992_v38, %v12396_v46  ;;  %7378 = vmatpush.bf16.msra.mxu0 %v12403_v3  ;;  %v13991_v9 = vld [vmem:[#allocation7 + $0x224] sm:$0xf0]  ;;  %v12444_v13 = vld [vmem:[#allocation7 + $0x298] sm:$0xf0]  ;;  %v14005_v38 = vld [vmem:[#allocation7 + $0x294] sm:$0xf0]  ;;  %v12379_v23 = vor.u32 %v13989_v30, %v12378_v48 }
 0x32c   : > { %7107 = vmatmul.bf16.vlgmr.msrb.gmra.mxu0 %v16009_v63  ;;  %7126 = vmatmul.bf16.vlgmr.msrb.gmra.mxu1 %v16021_v36  ;;  %v12387_v0 = vor.u32 %v13991_v9, %v12386_v25  ;;  %v6931_v46 = vrot.slane %v6923_v20, 3  ;;  %v6933_v3 = vrot.slane %v6924_v60, 3  ;;  %v12447_v58 = vor.u32 %v14004_v14, %v12444_v13  ;;  %v12562_v25 = vld [vmem:[#allocation7 + $0x370] sm:$0xf]  ;;  %v14051_v60 = vld [vmem:[#allocation7 + $0x3f4] sm:$0xf0] }
 0x32d   : > { %7145 = vmatmul.bf16.vlgmr.msrb.gmra.mxu2 %v16009_v63  ;;  %7164 = vmatmul.bf16.vlgmr.msrb.gmra.mxu3 %v16021_v36  ;;  %v12443_v42 = vor.u32 %v14005_v38, %v12442_v2  ;;  %v12626_v20 = vld [vmem:[#allocation7 + $0x3f0] sm:$0xf]  ;;  %v14048_v13 = vld [vmem:[#allocation7 + $0x3e4] sm:$0xf]  ;;  %v12620_v48 = vld [vmem:[#allocation7 + $0x3e8] sm:$0xf0] }
 0x32e   : > { %7417 = vmatpush.bf16.msra.mxu2 %v12399_v39  ;;  %7436 = vmatpush.bf16.msra.mxu3 %v12463_v53  ;;  %v12370_v39 = vld [vmem:[#allocation7 + $0x200] sm:$0xf]  ;;  %v13987_v53 = vld [vmem:[#allocation7 + $0x204] sm:$0xf0]  ;;  %v12627_v14 = vor.u32 %v14051_v60, %v12626_v20 }
 0x32f   : > { %v5832_v1 = vpop.f32.mrf.mxu2  ;;  %v5851_v51 = vpop.f32.mrf.mxu3  ;;  %7397 = vmatpush.bf16.msra.mxu1 %v12467_v43  ;;  %7379 = vmatpush.bf16.msra.mxu0 %v12395_v12  ;;  %v12383_v43 = vor.u32 %v13988_v34, %v12380_v8  ;;  %v14034_v12 = vld [vmem:[#allocation7 + $0x374] sm:$0xf]  ;;  %v12631_v8 = vor.u32 %v14050_v32, %v12628_v11  ;;  %v12554_v30 = vld [vmem:[#allocation7 + $0x360] sm:$0xf]  ;;  %v14049_v2 = vld [vmem:[#allocation7 + $0x3e4] sm:$0xf0] }
 0x330   : > { %v5852_v63 = vadd.f32 %v5851_v51, %v5832_v1  ;;  %v16053_v28 = vpop.f32.mrf.mxu0  ;;  %v16055_v36 = vpop.f32.mrf.mxu1  ;;  %v14003_v51 = vld [vmem:[#allocation7 + $0x284] sm:$0xf0]  ;;  %v12555_v44 = vor.u32 %v14033_v56, %v12554_v30  ;;  %v14028_v11 = vld [vmem:[#allocation7 + $0x344] sm:$0xf]  ;;  %v12538_v20 = vld [vmem:[#allocation7 + $0x340] sm:$0xf] }
 0x331   : > { %v12435_v34 = vor.u32 %v14003_v51, %v12434_v18  ;;  %v14031_v18 = vld [vmem:[#allocation7 + $0x354] sm:$0xf0]  ;;  %v14029_v60 = vld [vmem:[#allocation7 + $0x344] sm:$0xf0]  ;;  %v12594_v56 = vld [vmem:[#allocation7 + $0x3b0] sm:$0xf] }
 0x332   : > { %v16058_v6 = vadd.f32 %v5852_v63, %v16034_v17  ;;  %v13986_v17 = vld [vmem:[#allocation7 + $0x204] sm:$0xf]  ;;  %7418 = vmatpush.bf16.msra.mxu2 %v12391_v33  ;;  %7437 = vmatpush.bf16.msra.mxu3 %v12455_v37  ;;  %v6932_v63 = vsel %vm740_vm2, %v6926_v61, %v6931_v46  ;;  %v6934_v33 = vsel %vm740_vm2, %v6929_v15, %v6933_v3  ;;  %v12618_v15 = vld [vmem:[#allocation7 + $0x3e0] sm:$0xf]  ;;  %v14027_v30 = vld [vmem:[#allocation7 + $0x334] sm:$0xf0] }
 0x333   : > { %7398 = vmatpush.bf16.msra.mxu1 %v12459_v19  ;;  %7380 = vmatpush.bf16.msra.mxu0 %v12387_v0  ;;  %v12564_v19 = vld [vmem:[#allocation7 + $0x378] sm:$0xf0]  ;;  %v12375_v9 = vor.u32 %v13986_v17, %v12372_v55  ;;  %v12371_v37 = vor.u32 %v13987_v53, %v12370_v39  ;;  %v14032_v61 = vld [vmem:[#allocation7 + $0x364] sm:$0xf]  ;;  %v12556_v0 = vld [vmem:[#allocation7 + $0x368] sm:$0xf0] }
 0x334   : > { %v12567_v49 = vor.u32 %v14034_v12, %v12564_v19  ;;  %v14030_v55 = vld [vmem:[#allocation7 + $0x354] sm:$0xf]  ;;  %v12612_v39 = vld [vmem:[#allocation7 + $0x3d8] sm:$0xf0]  ;;  %v12546_v53 = vld [vmem:[#allocation7 + $0x350] sm:$0xf] }
 0x335   : > { %v12551_v51 = vor.u32 %v14030_v55, %v12548_v27  ;;  %v12547_v19 = vor.u32 %v14031_v18, %v12546_v53  ;;  %v12588_v55 = vld [vmem:[#allocation7 + $0x3a8] sm:$0xf0]  ;;  %v12522_v27 = vld [vmem:[#allocation7 + $0x320] sm:$0xf]  ;;  %v12516_v53 = vld [vmem:[#allocation7 + $0x318] sm:$0xf0] }
 0x336   : > { %7419 = vmatpush.bf16.msra.mxu2 %v12383_v43  ;;  %7438 = vmatpush.bf16.msra.mxu3 %v12447_v58  ;;  %v12559_v43 = vor.u32 %v14032_v61, %v12556_v0  ;;  %v12623_v58 = vor.u32 %v14048_v13, %v12620_v48  ;;  %v12532_v61 = vld [vmem:[#allocation7 + $0x338] sm:$0xf0]  ;;  %v12539_v0 = vor.u32 %v14029_v60, %v12538_v20  ;;  %v12530_v48 = vld [vmem:[#allocation7 + $0x330] sm:$0xf] }
 0x337   : > { %v16060_v57 = vpop.f32.mrf.mxu2  ;;  %v16062_v62 = vpop.f32.mrf.mxu3  ;;  %7399 = vmatpush.bf16.msra.mxu1 %v12451_v50  ;;  %7381 = vmatpush.bf16.msra.mxu0 %v12379_v23  ;;  %v12563_v50 = vor.u32 %v14035_v54, %v12562_v25  ;;  %v12619_v23 = vor.u32 %v14049_v2, %v12618_v15  ;;  %v12540_v25 = vld [vmem:[#allocation7 + $0x348] sm:$0xf0]  ;;  %v12596_v13 = vld [vmem:[#allocation7 + $0x3b8] sm:$0xf0]  ;;  %v14043_v15 = vld [vmem:[#allocation7 + $0x3b4] sm:$0xf0] }
 0x338   : > { %v6136_v41 = vpop.f32.mrf.mxu0  ;;  %v6155_v1 = vpop.f32.mrf.mxu1  ;;  %v12604_v54 = vld [vmem:[#allocation7 + $0x3c8] sm:$0xf0]  ;;  %v7459_v18 = vld [vmem:[#allocation4 + $0x30] sm:$0xff] }
 0x339   : > { %v12610_v41 = vld [vmem:[#allocation7 + $0x3d0] sm:$0xf]  ;;  %v14047_v1 = vld [vmem:[#allocation7 + $0x3d4] sm:$0xf0] }
 0x33a   : > { %7420 = vmatpush.bf16.msra.mxu2 %v12375_v9  ;;  %7439 = vmatpush.bf16.msra.mxu3 %v12439_v35  ;;  %v12611_v32 = vor.u32 %v14047_v1, %v12610_v41  ;;  %v14044_v35 = vld [vmem:[#allocation7 + $0x3c4] sm:$0xf]  ;;  %v16074_v41 = vld [vmem:[#allocation4 + $0x38] sm:$0xff] }
 0x33b   : > { %7400 = vmatpush.bf16.msra.mxu1 %v12443_v42  ;;  %7382 = vmatpush.bf16.msra.mxu0 %v12371_v37  ;;  %v14046_v42 = vld [vmem:[#allocation7 + $0x3d4] sm:$0xf]  ;;  %v14045_v37 = vld [vmem:[#allocation7 + $0x3c4] sm:$0xf0] }
 0x33c   : > { %7112 = vmatmul.bf16.gmra.mxu0 %v6932_v63  ;;  %7131 = vmatmul.bf16.gmra.mxu1 %v6934_v33  ;;  %v12615_v12 = vor.u32 %v14046_v42, %v12612_v39  ;;  %v14041_v42 = vld [vmem:[#allocation7 + $0x3a4] sm:$0xf0]  ;;  %v14022_v39 = vld [vmem:[#allocation7 + $0x314] sm:$0xf] }
 0x33d   : > { %7150 = vmatmul.bf16.gmra.mxu2 %v6932_v63  ;;  %7169 = vmatmul.bf16.gmra.mxu3 %v6934_v33  ;;  %v12602_v33 = vld [vmem:[#allocation7 + $0x3c0] sm:$0xf]  ;;  %v12519_v20 = vor.u32 %v14022_v39, %v12516_v53 }
 0x33e   : > { %7759 = vmatpush.bf16.msrb.mxu2 %v12567_v49  ;;  %7778 = vmatpush.bf16.msrb.mxu3 %v12631_v8  ;;  %v12607_v49 = vor.u32 %v14044_v35, %v12604_v54  ;;  %v14026_v8 = vld [vmem:[#allocation7 + $0x334] sm:$0xf]  ;;  %v12508_v35 = vld [vmem:[#allocation7 + $0x308] sm:$0xf0]  ;;  %v7503_v54 = vunpack.c.l.b16 %v16074_v41 }
 0x33f   : > { %v6174_v38 = vpop.f32.mrf.mxu2  ;;  %v6193_v46 = vpop.f32.mrf.mxu3  ;;  %7401 = vmatpush.bf16.msra.mxu1 %v12435_v34  ;;  %7721 = vmatpush.bf16.msrb.mxu0 %v12563_v50  ;;  %v12543_v34 = vor.u32 %v14028_v11, %v12540_v25  ;;  %v12603_v50 = vor.u32 %v14045_v37, %v12602_v33  ;;  %v12535_v2 = vor.u32 %v14026_v8, %v12532_v61  ;;  %v14023_v11 = vld [vmem:[#allocation7 + $0x314] sm:$0xf0]  ;;  %v12578_v25 = vld [vmem:[#allocation7 + $0x390] sm:$0xf]  ;;  %v14036_v33 = vld [vmem:[#allocation7 + $0x384] sm:$0xf]  ;;  %v7504_v8 = vunpack.c.h.b16 %v16074_v41 }
 0x340   : > { %v6138_v3 = vpop.f32.mrf.mxu0  ;;  %v6157_v17 = vpop.f32.mrf.mxu1  ;;  %v14024_v46 = vld [vmem:[#allocation7 + $0x324] sm:$0xf]  ;;  %v12572_v37 = vld [vmem:[#allocation7 + $0x388] sm:$0xf0] }
 0x341   : > { %v12524_v3 = vld [vmem:[#allocation7 + $0x328] sm:$0xf0]  ;;  %v12531_v17 = vor.u32 %v14027_v30, %v12530_v48  ;;  %v14037_v30 = vld [vmem:[#allocation7 + $0x384] sm:$0xf0]  ;;  %v12575_v21 = vor.u32 %v14036_v33, %v12572_v37 }
 0x342   : > { %7760 = vmatpush.bf16.msrb.mxu2 %v12559_v43  ;;  %7779 = vmatpush.bf16.msrb.mxu3 %v12623_v58  ;;  %v12595_v43 = vor.u32 %v14043_v15, %v12594_v56  ;;  %v14040_v58 = vld [vmem:[#allocation7 + $0x3a4] sm:$0xf]  ;;  %v12500_v48 = vld [vmem:[#allocation4 + $0x48] sm:$0xf0]  ;;  %v12498_v56 = vld [vmem:[#allocation4 + $0x40] sm:$0xf]  ;;  %v7502_v15 = vunpack.c.h.b16 %v7459_v18 }
 0x343   : > { %7740 = vmatpush.bf16.msrb.mxu1 %v12627_v14  ;;  %7722 = vmatpush.bf16.msrb.mxu0 %v12555_v44  ;;  %v14042_v14 = vld [vmem:[#allocation7 + $0x3b4] sm:$0xf]  ;;  %v14025_v44 = vld [vmem:[#allocation7 + $0x324] sm:$0xf0] }
 0x344   : > { %v12599_v38 = vor.u32 %v14042_v14, %v12596_v13  ;;  %v12523_v1 = vor.u32 %v14025_v44, %v12522_v27  ;;  %v12570_v14 = vld [vmem:[#allocation7 + $0x380] sm:$0xf]  ;;  %v7501_v13 = vunpack.c.l.b16 %v7459_v18  ;;  %v16090_v44 = vpack.c.b16 %v7504_v8, %v7502_v15  ;;  %v14018_v18 = vld [vmem:[#allocation4 + $0x44] sm:$0xf]  ;;  %v14081_v33 = vld [vmem:[#allocation7 + $0x4e4] sm:$0xf0] }
 0x345   : > { %v12571_v39 = vor.u32 %v14037_v30, %v12570_v14  ;;  %v14062_v14 = vld [vmem:[#allocation7 + $0x454] sm:$0xf] }
 0x346   : > { %7761 = vmatpush.bf16.msrb.mxu2 %v12551_v51  ;;  %7780 = vmatpush.bf16.msrb.mxu3 %v12615_v12  ;;  %v14038_v12 = vld [vmem:[#allocation7 + $0x394] sm:$0xf] }
 0x347   : > { %7741 = vmatpush.bf16.msrb.mxu1 %v12619_v23  ;;  %v6176_v63 = vpop.f32.mrf.mxu2  ;;  %v6195_v9 = vpop.f32.mrf.mxu3  ;;  %7723 = vmatpush.bf16.msrb.mxu0 %v12547_v19  ;;  %v12586_v23 = vld [vmem:[#allocation7 + $0x3a0] sm:$0xf]  ;;  %v12580_v19 = vld [vmem:[#allocation7 + $0x398] sm:$0xf0] }
 0x348   : > { %v12587_v51 = vor.u32 %v14041_v42, %v12586_v23  ;;  %v14039_v63 = vld [vmem:[#allocation7 + $0x394] sm:$0xf0]  ;;  %v14020_v9 = vld [vmem:[#allocation7 + $0x304] sm:$0xf]  ;;  %v12583_v60 = vor.u32 %v14038_v12, %v12580_v19  ;;  %v12754_v42 = vld [vmem:[#allocation7 + $0x4f0] sm:$0xf] }
 0x349   : > { %v12511_v27 = vor.u32 %v14020_v9, %v12508_v35  ;;  %v14067_v23 = vld [vmem:[#allocation7 + $0x474] sm:$0xf0]  ;;  %v14064_v19 = vld [vmem:[#allocation7 + $0x464] sm:$0xf]  ;;  %v12748_v9 = vld [vmem:[#allocation7 + $0x4e8] sm:$0xf0] }
 0x34a   : > { %7762 = vmatpush.bf16.msrb.mxu2 %v12543_v34  ;;  %7781 = vmatpush.bf16.msrb.mxu3 %v12607_v49  ;;  %v12506_v34 = vld [vmem:[#allocation7 + $0x300] sm:$0xf]  ;;  %v14019_v49 = vld [vmem:[#allocation4 + $0x44] sm:$0xf0] }
 0x34b   : > { %7742 = vmatpush.bf16.msrb.mxu1 %v12611_v32  ;;  %7724 = vmatpush.bf16.msrb.mxu0 %v12539_v0  ;;  %v12514_v32 = vld [vmem:[#allocation7 + $0x310] sm:$0xf]  ;;  %v12579_v0 = vor.u32 %v14039_v63, %v12578_v25  ;;  %v16092_v53 = vor.u32 %v14019_v49, %v12498_v56  ;;  %v14080_v63 = vld [vmem:[#allocation7 + $0x4e4] sm:$0xf]  ;;  %v12682_v35 = vld [vmem:[#allocation7 + $0x460] sm:$0xf] }
 0x34c   : > { %7383 = vmatmul.bf16.vlgmr.msra.gmra.mxu0 %v15930_v31  ;;  %7402 = vmatmul.bf16.vlgmr.msra.gmra.mxu1 %v15933_v26  ;;  %v12515_v61 = vor.u32 %v14023_v11, %v12514_v32  ;;  %v12684_v32 = vld [vmem:[#allocation7 + $0x468] sm:$0xf0] }
 0x34d   : > { %7421 = vmatmul.bf16.vlgmr.msra.gmra.mxu2 %v15930_v31  ;;  %7440 = vmatmul.bf16.vlgmr.msra.gmra.mxu3 %v15933_v26  ;;  %v12527_v31 = vor.u32 %v14024_v46, %v12524_v3  ;;  %v12591_v26 = vor.u32 %v14040_v58, %v12588_v55  ;;  %v12756_v58 = vld [vmem:[#allocation7 + $0x4f8] sm:$0xf0]  ;;  %v12690_v55 = vld [vmem:[#allocation7 + $0x470] sm:$0xf] }
 0x34e   : > { %7763 = vmatpush.bf16.msrb.mxu2 %v12535_v2  ;;  %7782 = vmatpush.bf16.msrb.mxu3 %v12599_v38  ;;  %v14066_v2 = vld [vmem:[#allocation7 + $0x474] sm:$0xf]  ;;  %v12692_v38 = vld [vmem:[#allocation7 + $0x478] sm:$0xf0]  ;;  %v12691_v11 = vor.u32 %v14067_v23, %v12690_v55  ;;  %v14063_v55 = vld [vmem:[#allocation7 + $0x454] sm:$0xf0] }
 0x34f   : > { %7743 = vmatpush.bf16.msrb.mxu1 %v12603_v50  ;;  %7725 = vmatpush.bf16.msrb.mxu0 %v12531_v17  ;;  %v14021_v50 = vld [vmem:[#allocation7 + $0x304] sm:$0xf0]  ;;  %v16086_v17 = vpack.c.b16 %v7503_v54, %v7501_v13  ;;  %v12676_v13 = vld [vmem:[#allocation7 + $0x458] sm:$0xf0] }
 0x351   : > { %v7520_v37 = vshll.u32 %v16086_v17, 16  ;;  %v7518_v23 = vshrl.u32 %v16086_v17, 16  ;;  %v14076_v17 = vld [vmem:[#allocation7 + $0x4c4] sm:$0xf] }
 0x352   : > { %7764 = vmatpush.bf16.msrb.mxu2 %v12527_v31  ;;  %7783 = vmatpush.bf16.msrb.mxu3 %v12591_v26  ;;  %v14083_v31 = vld [vmem:[#allocation7 + $0x4f4] sm:$0xf0]  ;;  %v12507_v26 = vor.u32 %v14021_v50, %v12506_v34  ;;  %v7525_v34 = vshll.u32 %v16092_v53, 16  ;;  %v12751_v50 = vor.u32 %v14080_v63, %v12748_v9  ;;  %v7463_v63 = vld [vmem:[#allocation4 + $0x50] sm:$0x11] }
 0x353   : > { %7744 = vmatpush.bf16.msrb.mxu1 %v12595_v43  ;;  %7726 = vmatpush.bf16.msrb.mxu0 %v12523_v1  ;;  %v14082_v43 = vld [vmem:[#allocation7 + $0x4f4] sm:$0xf]  ;;  %v16096_v1 = vor.u32 %v14018_v18, %v12500_v48  ;;  %v12755_v25 = vor.u32 %v14083_v31, %v12754_v42  ;;  %v7522_v42 = vrot.slane %v7520_v37, 1  ;;  %v12732_v9 = vld [vmem:[#allocation7 + $0x4c8] sm:$0xf0] }
 0x354   : > { %v12759_v12 = vor.u32 %v14082_v43, %v12756_v58  ;;  %v12674_v43 = vld [vmem:[#allocation7 + $0x450] sm:$0xf]  ;;  %v16111_v31 = vrot.slane %v7525_v34, 1  ;;  %v12730_v37 = vld [vmem:[#allocation7 + $0x4c0] sm:$0xf] }
 0x355   : > { %v14077_v34 = vld [vmem:[#allocation7 + $0x4c4] sm:$0xf0] }
 0x356   : > { %7765 = vmatpush.bf16.msrb.mxu2 %v12519_v20  ;;  %7784 = vmatpush.bf16.msrb.mxu3 %v12583_v60  ;;  %v14065_v20 = vld [vmem:[#allocation7 + $0x464] sm:$0xf0]  ;;  %v12746_v60 = vld [vmem:[#allocation7 + $0x4e0] sm:$0xf] }
 0x357   : > { %7745 = vmatpush.bf16.msrb.mxu1 %v12587_v51  ;;  %7727 = vmatpush.bf16.msrb.mxu0 %v12515_v61  ;;  %v12695_v51 = vor.u32 %v14066_v2, %v12692_v38  ;;  %v7537_v61 = vshll.u32 %v16096_v1, 16  ;;  %v12683_v56 = vor.u32 %v14065_v20, %v12682_v35  ;;  %v12747_v15 = vor.u32 %v14081_v33, %v12746_v60  ;;  %v14078_v2 = vld [vmem:[#allocation7 + $0x4d4] sm:$0xf]  ;;  %v12740_v38 = vld [vmem:[#allocation7 + $0x4d8] sm:$0xf0] }
 0x358   : > { %v12743_v18 = vor.u32 %v14078_v2, %v12740_v38  ;;  %v12666_v35 = vld [vmem:[#allocation7 + $0x440] sm:$0xf]  ;;  %v14061_v33 = vld [vmem:[#allocation7 + $0x444] sm:$0xf0]  ;;  %v12731_v38 = vor.u32 %v14077_v34, %v12730_v37 }
 0x359   : > { %v16080_v46 = vpop.f32.mrf.mxu0  ;;  %v16082_v3 = vpop.f32.mrf.mxu1  ;;  %v12667_v2 = vor.u32 %v14061_v33, %v12666_v35  ;;  %v12716_v35 = vld [vmem:[#allocation7 + $0x4a8] sm:$0xf0]  ;;  %v14057_v33 = vld [vmem:[#allocation7 + $0x424] sm:$0xf0]  ;;  %v12714_v37 = vld [vmem:[#allocation7 + $0x4a0] sm:$0xf] }
 0x35a   : > { %7766 = vmatpush.bf16.msrb.mxu2 %v12511_v27  ;;  %7785 = vmatpush.bf16.msrb.mxu3 %v12575_v21  ;;  %v12738_v27 = vld [vmem:[#allocation7 + $0x4d0] sm:$0xf]  ;;  %v14079_v21 = vld [vmem:[#allocation7 + $0x4d4] sm:$0xf0]  ;;  %v14073_v34 = vld [vmem:[#allocation7 + $0x4a4] sm:$0xf0] }
 0x35b   : > { %7746 = vmatpush.bf16.msrb.mxu1 %v12579_v0  ;;  %7728 = vmatpush.bf16.msrb.mxu0 %v12507_v26  ;;  %v12687_v0 = vor.u32 %v14064_v19, %v12684_v32  ;;  %v7530_v26 = vshrl.u32 %v16090_v44, 16  ;;  %v12675_v19 = vor.u32 %v14063_v55, %v12674_v43  ;;  %v12739_v32 = vor.u32 %v14079_v21, %v12738_v27  ;;  %v14074_v55 = vld [vmem:[#allocation7 + $0x4b4] sm:$0xf]  ;;  %v12724_v27 = vld [vmem:[#allocation7 + $0x4b8] sm:$0xf0] }
 0x35c   : > { %7388 = vmatmul.bf16.gmra.mxu0 %v15994_v59  ;;  %7407 = vmatmul.bf16.gmra.mxu1 %v15998_v5  ;;  %v7509_v43 = vunpack.c.l.b16 %v7463_v63  ;;  %v12658_v21 = vld [vmem:[#allocation7 + $0x430] sm:$0xf] }
 0x35d   : > { %7426 = vmatmul.bf16.gmra.mxu2 %v15994_v59  ;;  %7445 = vmatmul.bf16.gmra.mxu3 %v15998_v5  ;;  %v7532_v5 = vshll.u32 %v16090_v44, 16  ;;  %v7523_v44 = vor.u32 %v7522_v42, %v7518_v23  ;;  %v7510_v23 = vunpack.c.h.b16 %v7463_v63  ;;  %v14059_v42 = vld [vmem:[#allocation7 + $0x434] sm:$0xf0]  ;;  %v12650_v63 = vld [vmem:[#allocation7 + $0x420] sm:$0xf] }
 0x35e   : > { %8055 = vmatpush.bf16.msra.mxu2 %v12695_v51  ;;  %8074 = vmatpush.bf16.msra.mxu3 %v12759_v12  ;;  %v16114_v12 = vrot.slane %v7537_v61, 1 }
 0x35f   : > { %7747 = vmatpush.bf16.msrb.mxu1 %v12571_v39  ;;  %8017 = vmatpush.bf16.msra.mxu0 %v12691_v11  ;;  %v12679_v39 = vor.u32 %v14062_v14, %v12676_v13  ;;  %v7534_v51 = vrot.slane %v7532_v5, 1  ;;  %v14060_v11 = vld [vmem:[#allocation7 + $0x444] sm:$0xf]  ;;  %v7528_v14 = vsel %vm888_vm4, %v7523_v44, %v16111_v31  ;;  %v16124_v44 = vpack.c.b16 %v7510_v23, %v7510_v23  ;;  %v14055_v23 = vld [vmem:[#allocation7 + $0x414] sm:$0xf0] }
 0x360   : > { %v16102_v49 = vpop.f32.mrf.mxu2  ;;  %v16104_v59 = vpop.f32.mrf.mxu3 }
 0x361   : > { %v6143_v48 = vpop.f32.mrf.mxu0  ;;  %v6162_v30 = vpop.f32.mrf.mxu1 }
 0x362   : > { %v16108_v58 = vadd.f32 %v6162_v30, %v6143_v48  ;;  %8056 = vmatpush.bf16.msra.mxu2 %v12687_v0  ;;  %8075 = vmatpush.bf16.msra.mxu3 %v12751_v50  ;;  %v7535_v50 = vor.u32 %v7534_v51, %v7530_v26  ;;  %v12735_v48 = vor.u32 %v14076_v17, %v12732_v9  ;;  %v14058_v30 = vld [vmem:[#allocation7 + $0x434] sm:$0xf]  ;;  %v12722_v26 = vld [vmem:[#allocation7 + $0x4b0] sm:$0xf]  ;;  %v14072_v9 = vld [vmem:[#allocation7 + $0x4a4] sm:$0xf] }
 0x363   : > { %8036 = vmatpush.bf16.msra.mxu1 %v12755_v25  ;;  %8018 = vmatpush.bf16.msra.mxu0 %v12683_v56  ;;  %v12668_v25 = vld [vmem:[#allocation7 + $0x448] sm:$0xf0]  ;;  %v12660_v56 = vld [vmem:[#allocation7 + $0x438] sm:$0xf0]  ;;  %v12727_v51 = vor.u32 %v14074_v55, %v12724_v27  ;;  %v14070_v55 = vld [vmem:[#allocation7 + $0x494] sm:$0xf] }
 0x364   : > { %v12671_v13 = vor.u32 %v14060_v11, %v12668_v25  ;;  %v16122_v11 = vpack.c.b16 %v7509_v43, %v7509_v43  ;;  %v12659_v25 = vor.u32 %v14059_v42, %v12658_v21  ;;  %v12715_v43 = vor.u32 %v14073_v34, %v12714_v37  ;;  %v12708_v27 = vld [vmem:[#allocation7 + $0x498] sm:$0xf0]  ;;  %v12642_v21 = vld [vmem:[#allocation7 + $0x410] sm:$0xf] }
 0x365   : > { %v12706_v42 = vld [vmem:[#allocation7 + $0x490] sm:$0xf] }
 0x366   : > { %8057 = vmatpush.bf16.msra.mxu2 %v12679_v39  ;;  %8076 = vmatpush.bf16.msra.mxu3 %v12743_v18  ;;  %v14075_v39 = vld [vmem:[#allocation7 + $0x4b4] sm:$0xf0]  ;;  %v12663_v18 = vor.u32 %v14058_v30, %v12660_v56  ;;  %v12719_v56 = vor.u32 %v14072_v9, %v12716_v35  ;;  %v12643_v9 = vor.u32 %v14055_v23, %v12642_v21  ;;  %v7805_v23 = vld [vmem:[#allocation4 + $0x30] sm:$0xee] }
 0x367   : > { %8037 = vmatpush.bf16.msra.mxu1 %v12747_v15  ;;  %8019 = vmatpush.bf16.msra.mxu0 %v12675_v19  ;;  %v7540_v15 = vsel %vm888_vm4, %v7535_v50, %v16114_v12  ;;  %v14056_v19 = vld [vmem:[#allocation7 + $0x424] sm:$0xf]  ;;  %v12723_v17 = vor.u32 %v14075_v39, %v12722_v26  ;;  %v7541_v50 = vshrl.u32 %v16092_v53, 16  ;;  %v14071_v26 = vld [vmem:[#allocation7 + $0x494] sm:$0xf0] }
 0x368   : > { %v6181_v20 = vpop.f32.mrf.mxu2  ;;  %v6200_v60 = vpop.f32.mrf.mxu3  ;;  %v12707_v35 = vor.u32 %v14071_v26, %v12706_v42 }
 0x369   : > { %v16116_v5 = vadd.f32 %v6200_v60, %v6181_v20  ;;  %v6433_v61 = vpop.f32.mrf.mxu0  ;;  %v6452_v0 = vpop.f32.mrf.mxu1  ;;  %v7543_v39 = vor.u32 %v7541_v50, %v16111_v31  ;;  %v14053_v31 = vld [vmem:[#allocation7 + $0x404] sm:$0xf0]  ;;  %v6161_v50 = vadd.f32 %v16082_v3, %v16080_v46  ;;  %v6199_v3 = vadd.f32 %v16104_v59, %v16102_v49 }
 0x36a   : > { %8058 = vmatpush.bf16.msra.mxu2 %v12671_v13  ;;  %8077 = vmatpush.bf16.msra.mxu3 %v12735_v48  ;;  %v7549_v13 = vshrl.u32 %v16096_v1, 16  ;;  %v7553_v48 = vshll.u32 %v16124_v44, 16 }
 0x36b   : > { %8038 = vmatpush.bf16.msra.mxu1 %v12739_v32  ;;  %v12652_v32 = vld [vmem:[#allocation7 + $0x428] sm:$0xf0]  ;;  %8020 = vmatpush.bf16.msra.mxu0 %v12667_v2  ;;  %v12644_v2 = vld [vmem:[#allocation7 + $0x418] sm:$0xf0]  ;;  %v6207_v46 = vadd.f32 %v6161_v50, %v16047_v24  ;;  %v6208_v26 = vadd.f32 %v6199_v3, %v16058_v6 }
 0x36c   : > { %7729 = vmatmul.bf16.vlgmr.msrb.gmra.mxu0 %v7528_v14  ;;  %7748 = vmatmul.bf16.vlgmr.msrb.gmra.mxu1 %v7540_v15  ;;  %v12655_v30 = vor.u32 %v14056_v19, %v12652_v32  ;;  %v12711_v32 = vor.u32 %v14070_v55, %v12708_v27  ;;  %v5816_v55 = vadd.f32 %v16055_v36, %v16053_v28 }
 0x36d   : > { %7767 = vmatmul.bf16.vlgmr.msrb.gmra.mxu2 %v7528_v14  ;;  %7786 = vmatmul.bf16.vlgmr.msrb.gmra.mxu3 %v7540_v15  ;;  %v7545_v14 = vshll.u32 %v16122_v11, 16  ;;  %v14054_v15 = vld [vmem:[#allocation7 + $0x414] sm:$0xf] }
 0x36e   : > { %8059 = vmatpush.bf16.msra.mxu2 %v12663_v18  ;;  %8078 = vmatpush.bf16.msra.mxu3 %v12727_v51  ;;  %v7551_v18 = vor.u32 %v7549_v13, %v16114_v12  ;;  %v7555_v51 = vrot.slane %v7553_v48, 1  ;;  %v12647_v19 = vor.u32 %v14054_v15, %v12644_v2  ;;  %v5284_v12 = vadd.f32 %v15951_v40, %v15949_v7  ;;  %v4939_v40 = vld [vmem:[%s16651_s8] sm:$0x3] }
 0x36f   : > { %8039 = vmatpush.bf16.msra.mxu1 %v12731_v38  ;;  %8021 = vmatpush.bf16.msra.mxu0 %v12659_v25  ;;  %v12651_v38 = vor.u32 %v14057_v33, %v12650_v63  ;;  %v14052_v25 = vld [vmem:[#allocation7 + $0x404] sm:$0xf]  ;;  %v12634_v33 = vld [vmem:[#allocation7 + $0x400] sm:$0xf]  ;;  %v16149_v27 = vperm.slane %v4939_v40, 0  ;;  %v16154_v28 = vperm.slane %v4939_v40, 1 }
 0x370   : > { %v6471_v20 = vpop.f32.mrf.mxu2  ;;  %v6490_v60 = vpop.f32.mrf.mxu3  ;;  %v14068_v63 = vld [vmem:[#allocation7 + $0x484] sm:$0xf]  ;;  %v5520_v7 = vadd.f32 %v16030_v10, %v5284_v12  ;;  %v5322_v10 = vadd.f32 %v15966_v29, %v15964_v45  ;;  %v7839_v29 = vunpack.c.l.b16 %v7805_v23  ;;  %v7851_v40 = vrot.slane %v16124_v44, 1 }
 0x371   : > { %v6435_v61 = vpop.f32.mrf.mxu0  ;;  %v6454_v0 = vpop.f32.mrf.mxu1  ;;  %v7547_v20 = vrot.slane %v7545_v14, 1  ;;  %v12700_v60 = vld [vmem:[#allocation7 + $0x488] sm:$0xf0]  ;;  %16677 = vst [vmem:[#allocation14_spill] sm:$0xff] %v16154_v28 }
 0x372   : > { %8060 = vmatpush.bf16.msra.mxu2 %v12655_v30  ;;  %8079 = vmatpush.bf16.msra.mxu3 %v12719_v56  ;;  %v12698_v61 = vld [vmem:[#allocation7 + $0x480] sm:$0xf]  ;;  %v14069_v0 = vld [vmem:[#allocation7 + $0x484] sm:$0xf0]  ;;  %v7556_v30 = vsel %vm888_vm4, %v7551_v18, %v7555_v51  ;;  %v12703_v15 = vor.u32 %v14068_v63, %v12700_v60  ;;  %v5539_v24 = vadd.f32 %v16032_v16, %v5520_v7  ;;  %v7840_v18 = vunpack.c.h.b16 %v7805_v23 }
 0x373   : > { %8040 = vmatpush.bf16.msra.mxu1 %v12723_v17  ;;  %v12636_v17 = vld [vmem:[#allocation7 + $0x408] sm:$0xf0]  ;;  %8022 = vmatpush.bf16.msra.mxu0 %v12651_v38  ;;  %v7548_v48 = vsel %vm888_vm4, %v7543_v39, %v7547_v20  ;;  %v12635_v38 = vor.u32 %v14053_v31, %v12634_v33  ;;  %v5558_v59 = vadd.f32 %v16036_v47, %v5322_v10  ;;  %v7849_v7 = vrot.slane %v16122_v11, 1 }
 0x374   : > { %v12639_v56 = vor.u32 %v14052_v25, %v12636_v17  ;;  %v5862_v45 = vadd.f32 %v5816_v55, %v5539_v24  ;;  %v5854_v51 = vadd.f32 %v16062_v62, %v16060_v57  ;;  %v7841_v47 = vpack.c.b16 %v7503_v54, %v7839_v29 }
 0x375   : > { %v5577_v6 = vadd.f32 %v16038_v4, %v5558_v59  ;;  %v7847_v57 = vrot.slane %v16096_v1, 1 }
 0x376   : > { %8061 = vmatpush.bf16.msra.mxu2 %v12647_v19  ;;  %8080 = vmatpush.bf16.msra.mxu3 %v12711_v32  ;;  %v6209_v25 = vadd.f32 %v16108_v58, %v5862_v45  ;;  %v7843_v54 = vrot.slane %v7841_v47, 1 }
 0x377   : > { %8041 = vmatpush.bf16.msra.mxu1 %v12715_v43  ;;  %8023 = vmatpush.bf16.msra.mxu0 %v12643_v9  ;;  %v12699_v43 = vor.u32 %v14069_v0, %v12698_v61  ;;  %v7842_v9 = vpack.c.b16 %v7504_v8, %v7840_v18  ;;  %v5863_v62 = vadd.f32 %v5854_v51, %v5577_v6 }
 0x378   : > { %v6473_v37 = vpop.f32.mrf.mxu2  ;;  %v6492_v34 = vpop.f32.mrf.mxu3  ;;  %v7852_v24 = vsel %vm978_vm5, %v7847_v57, %v7851_v40 }
 0x379   : > { %v6438_v14 = vpop.f32.mrf.mxu0  ;;  %v6457_v13 = vpop.f32.mrf.mxu1  ;;  %v6210_v4 = vadd.f32 %v16116_v5, %v5863_v62  ;;  %v7846_v12 = vrot.slane %v7842_v9, 1 }
 0x37a   : > { %v6458_v2 = vadd.f32 %v6457_v13, %v6438_v14  ;;  %8062 = vmatpush.bf16.msra.mxu2 %v12639_v56  ;;  %8081 = vmatpush.bf16.msra.mxu3 %v12703_v15 }
 0x37b   : > { %8042 = vmatpush.bf16.msra.mxu1 %v12707_v35  ;;  %8024 = vmatpush.bf16.msra.mxu0 %v12635_v38  ;;  %v7844_v35 = vrot.slane %v16092_v53, 1  ;;  %v7848_v14 = vsel %vm978_vm5, %v7846_v12, %v7847_v57 }
 0x37c   : > { %7734 = vmatmul.bf16.gmra.mxu0 %v7548_v48  ;;  %7753 = vmatmul.bf16.gmra.mxu1 %v7556_v30  ;;  %v6504_v21 = vadd.f32 %v6458_v2, %v6207_v46 }
 0x37d   : > { %7772 = vmatmul.bf16.gmra.mxu2 %v7548_v48  ;;  %7791 = vmatmul.bf16.gmra.mxu3 %v7556_v30  ;;  %v7845_v8 = vsel %vm978_vm5, %v7843_v54, %v7844_v35  ;;  %v7850_v23 = vsel %vm978_vm5, %v7844_v35, %v7849_v7 }
 0x37e   : > { %v6517_v19 = vadd.f32 %v16149_v27, %v6504_v21 }
 0x37f   : > { %8043 = vmatpush.bf16.msra.mxu1 %v12699_v43 }
 0x380   : > { %v6476_v42 = vpop.f32.mrf.mxu2  ;;  %v6495_v49 = vpop.f32.mrf.mxu3  ;;  %v6525_v63 = vmax.f32 %v6517_v19, 0.0 }
 0x381   : > { %v6496_v36 = vadd.f32 %v6495_v49, %v6476_v42  ;;  %v6440_v39 = vpop.f32.mrf.mxu0  ;;  %v6459_v20 = vpop.f32.mrf.mxu1 }
 0x382   : > { %v6460_v32 = vadd.f32 %v6459_v20, %v6440_v39 }
 0x383   : > { %v6505_v16 = vadd.f32 %v6496_v36, %v6208_v26 }
 0x384   : > { %v6506_v33 = vadd.f32 %v6460_v32, %v6209_v25 }
 0x385   : > { %v6518_v17 = vadd.f32 %v16154_v28, %v6505_v16 }
 0x386   : > { %v6519_v1 = vadd.f32 %v16149_v27, %v6506_v33 }
 0x387   : > { %v6526_v60 = vmax.f32 %v6518_v17, 0.0 }
 0x388   : > { %v6478_v37 = vpop.f32.mrf.mxu2  ;;  %v6497_v34 = vpop.f32.mrf.mxu3  ;;  %v6527_v13 = vmax.f32 %v6519_v1, 0.0 }
 0x389   : > { %v6531_v31 = vpack.c.bf16 %v6526_v60, %v6525_v63  ;;  %v6498_v58 = vadd.f32 %v6497_v34, %v6478_v37  ;;  %v6853_v61 = vpop.f32.mrf.mxu0  ;;  %v6872_v0 = vpop.f32.mrf.mxu1 }
 0x38a   : > { %v6873_v41 = vadd.f32 %v6872_v0, %v6853_v61 }
 0x38b   : > { %v16172_v53 = vsel %vm14886_vm7, %v6531_v31, 0  ;;  %v6507_v50 = vadd.f32 %v6498_v58, %v6210_v4 }
 0x38c   : > { %16678 = vst [vmem:[#allocation15_spill] sm:$0xff] %v16172_v53  ;;  %8025 = vmatmul.bf16.vlgmr.msra.gmra.mxu0 %v7845_v8  ;;  %8044 = vmatmul.bf16.vlgmr.msra.gmra.mxu1 %v7848_v14 }
 0x38d   : > { %8239 = vst [vmem:[#allocation3 + $0x20] sm:$0xff] %v16172_v53  ;;  %v6520_v5 = vadd.f32 %v16154_v28, %v6507_v50  ;;  %8063 = vmatmul.bf16.vlgmr.msra.gmra.mxu2 %v7845_v8  ;;  %8082 = vmatmul.bf16.vlgmr.msra.gmra.mxu3 %v7848_v14 }
 0x38f   : > { %v6528_v48 = vmax.f32 %v6520_v5, 0.0 }
 0x390   : > { %v6891_v30 = vpop.f32.mrf.mxu2  ;;  %v6910_v56 = vpop.f32.mrf.mxu3 }
 0x391   : > { %v6532_v15 = vpack.c.bf16 %v6528_v48, %v6527_v13  ;;  %v6911_v2 = vadd.f32 %v6910_v56, %v6891_v30  ;;  %v16178_v38 = vpop.f32.mrf.mxu0  ;;  %v16180_v43 = vpop.f32.mrf.mxu1 }
 0x393   : > { %v16214_v62 = vsel %vm14886_vm7, %v6532_v15, 0 }
 0x394   : > { %16680 = vst [vmem:[#allocation17_spill] sm:$0xff] %v16214_v62 }
 0x395   : > { %8240 = vst [vmem:[#allocation3 + $0x28] sm:$0xff] %v16214_v62  ;;  %v12876_v62 = vld [vmem:[#allocation9 + $0x1e8] sm:$0xf0] }
 0x398   : > { %v16184_v46 = vpop.f32.mrf.mxu2  ;;  %v16186_v3 = vpop.f32.mrf.mxu3 }
 0x399   : > { %v6858_v55 = vpop.f32.mrf.mxu0  ;;  %v6877_v10 = vpop.f32.mrf.mxu1  ;;  %v6913_v52 = vadd.f32 %v16186_v3, %v16184_v46  ;;  %v14129_v46 = vld [vmem:[#allocation9 + $0x164] sm:$0xf0]  ;;  %v12874_v3 = vld [vmem:[#allocation9 + $0x1e0] sm:$0xf] }
 0x39a   : > { %v6878_v21 = vadd.f32 %v6877_v10, %v6858_v55 }
 0x39c   : > { %8030 = vmatmul.bf16.gmra.mxu0 %v7850_v23  ;;  %8049 = vmatmul.bf16.gmra.mxu1 %v7852_v24 }
 0x39d   : > { %8068 = vmatmul.bf16.gmra.mxu2 %v7850_v23  ;;  %8087 = vmatmul.bf16.gmra.mxu3 %v7852_v24  ;;  %v8248_v23 = vld [vmem:[#allocation3 + $0x18] sm:$0x88] }
 0x39e   : > { %v8324_v24 = vunpack.c.l.b16 %v8248_v23 }
 0x3a0   : > { %v6896_v42 = vpop.f32.mrf.mxu2  ;;  %v6915_v49 = vpop.f32.mrf.mxu3 }
 0x3a1   : > { %v6916_v11 = vadd.f32 %v6915_v49, %v6896_v42  ;;  %v16190_v59 = vpop.f32.mrf.mxu0  ;;  %v16192_v44 = vpop.f32.mrf.mxu1  ;;  %v16656_v42 = vunpack.c.l.b16 %v16172_v53  ;;  %v8325_v49 = vunpack.c.h.b16 %v8248_v23 }
 0x3a8   : > { %v16194_v26 = vpop.f32.mrf.mxu2  ;;  %v16196_v36 = vpop.f32.mrf.mxu3 }
 0x3a9   : > { %v7108_v39 = vpop.f32.mrf.mxu0  ;;  %v7127_v20 = vpop.f32.mrf.mxu1 }
 0x3aa   : > { %v7109_v45 = vadd.f32 %v7108_v39, %v6873_v41 }
 0x3ac   : > { %v16198_v29 = vadd.f32 %v7127_v20, %v7109_v45 }
 0x3b0   : > { %v7146_v18 = vpop.f32.mrf.mxu2  ;;  %v7165_v51 = vpop.f32.mrf.mxu3 }
 0x3b1   : > { %v7147_v19 = vadd.f32 %v7146_v18, %v6911_v2  ;;  %v16200_v16 = vpop.f32.mrf.mxu0  ;;  %v16202_v32 = vpop.f32.mrf.mxu1 }
 0x3b3   : > { %v16204_v47 = vadd.f32 %v7165_v51, %v7147_v19  ;;  %v16283_v51 = vpack.c.b16 %v16656_v42, %v8324_v24 }
 0x3b5   : > { %v8341_v23 = vshrl.u32 %v16283_v51, 16 }
 0x3b8   : > { %v16206_v6 = vpop.f32.mrf.mxu2  ;;  %v16208_v25 = vpop.f32.mrf.mxu3 }
 0x3b9   : > { %v7113_v17 = vpop.f32.mrf.mxu0  ;;  %v7132_v9 = vpop.f32.mrf.mxu1 }
 0x3ba   : > { %v7114_v35 = vadd.f32 %v7113_v17, %v6878_v21  ;;  %v14130_v17 = vld [vmem:[#allocation9 + $0x174] sm:$0xf] }
 0x3bc   : > { %v16210_v57 = vadd.f32 %v7132_v9, %v7114_v35  ;;  %v12820_v9 = vld [vmem:[#allocation9 + $0x178] sm:$0xf0]  ;;  %v14146_v35 = vld [vmem:[#allocation9 + $0x1f4] sm:$0xf] }
 0x3be   : > { %16679 = vst [vmem:[#allocation16_spill] sm:$0xff] %v16210_v57  ;;  %v14144_v57 = vld [vmem:[#allocation9 + $0x1e4] sm:$0xf] }
 0x3c0   : > { %v7151_v63 = vpop.f32.mrf.mxu2  ;;  %v7170_v60 = vpop.f32.mrf.mxu3 }
 0x3c1   : > { %v7152_v33 = vadd.f32 %v7151_v63, %v6916_v11  ;;  %v16217_v37 = vpop.f32.mrf.mxu0  ;;  %v16219_v34 = vpop.f32.mrf.mxu1  ;;  %v16659_v11 = vunpack.c.h.b16 %v16172_v53  ;;  %v12823_v63 = vor.u32 %v14130_v17, %v12820_v9  ;;  %v16301_v17 = vrot.slane %v8341_v23, 3  ;;  %v12812_v23 = vld [vmem:[#allocation9 + $0x168] sm:$0xf0] }
 0x3c3   : > { %v16221_v54 = vadd.f32 %v7170_v60, %v7152_v33  ;;  %v16287_v19 = vpack.c.b16 %v16659_v11, %v8325_v49  ;;  %v12884_v60 = vld [vmem:[#allocation9 + $0x1f8] sm:$0xf0]  ;;  %8594 = vmatpush.bf16.msrb.mxu2 %v12823_v63 }
 0x3c4   : > { %v12887_v33 = vor.u32 %v14146_v35, %v12884_v60  ;;  %v6875_v60 = vadd.f32 %v16180_v43, %v16178_v38  ;;  %v12879_v43 = vor.u32 %v14144_v57, %v12876_v62  ;;  %v6918_v57 = vadd.f32 %v16196_v36, %v16194_v26 }
 0x3c5   : > { %16681 = vst [vmem:[#allocation18_spill] sm:$0xff] %v16221_v54  ;;  %v8361_v24 = vshll.u32 %v16287_v19, 16  ;;  %v14147_v54 = vld [vmem:[#allocation9 + $0x1f4] sm:$0xf0] }
 0x3c6   : > { %8613 = vmatpush.bf16.msrb.mxu3 %v12887_v33  ;;  %v14131_v33 = vld [vmem:[#allocation9 + $0x174] sm:$0xf0] }
 0x3c7   : > { %v16307_v63 = vrot.slane %v8361_v24, 4 }
 0x3c8   : > { %v16223_v4 = vpop.f32.mrf.mxu2  ;;  %v16225_v31 = vpop.f32.mrf.mxu3 }
 0x3c9   : > { %v16227_v58 = vpop.f32.mrf.mxu0  ;;  %v16229_v22 = vpop.f32.mrf.mxu1 }
 0x3ca   : > { %v7404_v38 = vadd.f32 %v16229_v22, %v16227_v58  ;;  %8614 = vmatpush.bf16.msrb.mxu3 %v12879_v43 }
 0x3d0   : > { %v16231_v61 = vpop.f32.mrf.mxu2  ;;  %v16233_v0 = vpop.f32.mrf.mxu3 }
 0x3d1   : > { %v16235_v12 = vpop.f32.mrf.mxu0  ;;  %v16237_v41 = vpop.f32.mrf.mxu1 }
 0x3d2   : > { %v7406_v26 = vadd.f32 %v16237_v41, %v16235_v12 }
 0x3d8   : > { %v16239_v8 = vpop.f32.mrf.mxu2  ;;  %v16241_v1 = vpop.f32.mrf.mxu3 }
 0x3d9   : > { %v16243_v50 = vpop.f32.mrf.mxu0  ;;  %v16245_v14 = vpop.f32.mrf.mxu1 }
 0x3e0   : > { %v16247_v5 = vpop.f32.mrf.mxu2  ;;  %v16249_v13 = vpop.f32.mrf.mxu3 }
 0x3e1   : > { %v16251_v48 = vpop.f32.mrf.mxu0  ;;  %v16253_v30 = vpop.f32.mrf.mxu1 }
 0x3e8   : > { %v16255_v56 = vpop.f32.mrf.mxu2  ;;  %v16257_v15 = vpop.f32.mrf.mxu3 }
 0x3e9   : > { %16682 = vst [vmem:[#allocation19_spill] sm:$0xff] %v16255_v56  ;;  %v16259_v2 = vpop.f32.mrf.mxu0  ;;  %v16261_v7 = vpop.f32.mrf.mxu1  ;;  %v8358_v56 = vshrl.u32 %v16287_v19, 16 }
 0x3ea   : > { %16683 = vst [vmem:[#allocation20_spill] sm:$0xff] %v16257_v15  ;;  %v8344_v15 = vshll.u32 %v16283_v51, 16  ;;  %v7750_v62 = vadd.f32 %v16261_v7, %v16259_v2  ;;  %v8637_v2 = vrot.slane %v16283_v51, 3  ;;  %v14106_v51 = vld [vmem:[#allocation9 + $0xb4] sm:$0xf] }
 0x3eb   : > { %v16305_v35 = vrot.slane %v8358_v56, 3  ;;  %v7149_v56 = vadd.f32 %v16206_v6, %v6913_v52  ;;  %v14126_v6 = vld [vmem:[#allocation9 + $0x154] sm:$0xf] }
 0x3ec   : > { %v16303_v9 = vrot.slane %v8344_v15, 4  ;;  %v7111_v15 = vadd.f32 %v16200_v16, %v6875_v60 }
 0x3ed   : > { %v16329_v60 = vadd.f32 %v16208_v25, %v7149_v56  ;;  %v14127_v25 = vld [vmem:[#allocation9 + $0x154] sm:$0xf0] }
 0x3f0   : > { %v16263_v40 = vpop.f32.mrf.mxu2  ;;  %v16265_v55 = vpop.f32.mrf.mxu3 }
 0x3f1   : > { %v16267_v10 = vpop.f32.mrf.mxu0  ;;  %v16269_v21 = vpop.f32.mrf.mxu1  ;;  %v7788_v41 = vadd.f32 %v16265_v55, %v16263_v40 }
 0x3f8   : > { %v16273_v39 = vpop.f32.mrf.mxu2  ;;  %v16275_v20 = vpop.f32.mrf.mxu3 }
 0x3f9   : > { %v16277_v45 = vpop.f32.mrf.mxu0  ;;  %v16279_v18 = vpop.f32.mrf.mxu1 }
 0x3fa   : > { %16684 = vst [vmem:[#allocation21_spill] sm:$0xff] %v16277_v45 }
 0x3fb   : > { %16685 = vst [vmem:[#allocation22_spill] sm:$0xff] %v16279_v18  ;;  %v12810_v18 = vld [vmem:[#allocation9 + $0x160] sm:$0xf] }
 0x3fc   : > { %v12811_v52 = vor.u32 %v14129_v46, %v12810_v18  ;;  %v7130_v18 = vadd.f32 %v16202_v32, %v7111_v15  ;;  %v12802_v32 = vld [vmem:[#allocation9 + $0x150] sm:$0xf]  ;;  %v7752_v46 = vadd.f32 %v16269_v21, %v16267_v10 }
 0x3fd   : > { %v12866_v15 = vld [vmem:[#allocation9 + $0x1d0] sm:$0xf]  ;;  %v12803_v56 = vor.u32 %v14127_v25, %v12802_v32 }
 0x400   : > { %v16293_v42 = vpop.f32.mrf.mxu2  ;;  %v16295_v53 = vpop.f32.mrf.mxu3 }
 0x401   : > { %16686 = vst [vmem:[#allocation23_spill] sm:$0xff] %v16293_v42  ;;  %v16297_v49 = vpop.f32.mrf.mxu0  ;;  %v16299_v11 = vpop.f32.mrf.mxu1  ;;  %v12882_v42 = vld [vmem:[#allocation9 + $0x1f0] sm:$0xf] }
 0x402   : > { %16687 = vst [vmem:[#allocation24_spill] sm:$0xff] %v16295_v53  ;;  %v12818_v53 = vld [vmem:[#allocation9 + $0x170] sm:$0xf]  ;;  %v12883_v28 = vor.u32 %v14147_v54, %v12882_v42  ;;  %v12804_v54 = vld [vmem:[#allocation9 + $0x158] sm:$0xf0] }
 0x403   : > { %16688 = vst [vmem:[#allocation25_spill] sm:$0xff] %v16297_v49  ;;  %v12819_v49 = vor.u32 %v14131_v33, %v12818_v53  ;;  %v14145_v53 = vld [vmem:[#allocation9 + $0x1e4] sm:$0xf0]  ;;  %v14142_v42 = vld [vmem:[#allocation9 + $0x1d4] sm:$0xf] }
 0x404   : > { %16689 = vst [vmem:[#allocation26_spill] sm:$0xff] %v16299_v11  ;;  %v14128_v11 = vld [vmem:[#allocation9 + $0x164] sm:$0xf]  ;;  %8575 = vmatpush.bf16.msrb.mxu1 %v12883_v28  ;;  %v12875_v16 = vor.u32 %v14145_v53, %v12874_v3  ;;  %v12868_v28 = vld [vmem:[#allocation9 + $0x1d8] sm:$0xf0] }
 0x405   : > { %v12815_v24 = vor.u32 %v14128_v11, %v12812_v23  ;;  %8556 = vmatpush.bf16.msrb.mxu0 %v12819_v49  ;;  %v6880_v11 = vadd.f32 %v16192_v44, %v16190_v59  ;;  %v12807_v49 = vor.u32 %v14126_v6, %v12804_v54  ;;  %v7442_v23 = vadd.f32 %v16233_v0, %v16231_v61  ;;  %v12794_v6 = vld [vmem:[#allocation9 + $0x140] sm:$0xf] }
 0x406   : > { %v12871_v59 = vor.u32 %v14142_v42, %v12868_v28  ;;  %v7451_v44 = vadd.f32 %v7404_v38, %v16198_v29  ;;  %v8347_v61 = vor.u32 %v16303_v9, %v16301_v17  ;;  %v8364_v29 = vor.u32 %v16307_v63, %v16305_v35  ;;  %v12796_v38 = vld [vmem:[#allocation9 + $0x148] sm:$0xf0]  ;;  %v14125_v42 = vld [vmem:[#allocation9 + $0x144] sm:$0xf0]  ;;  %v12932_v17 = vld [vmem:[#allocation9 + $0x58] sm:$0xf0] }
 0x407   : > { %8595 = vmatpush.bf16.msrb.mxu2 %v12815_v24  ;;  %v7116_v7 = vadd.f32 %v16217_v37, %v6880_v11  ;;  %v7154_v0 = vadd.f32 %v16223_v4, %v6918_v57  ;;  %v14143_v37 = vld [vmem:[#allocation9 + $0x1d4] sm:$0xf0]  ;;  %v14124_v24 = vld [vmem:[#allocation9 + $0x144] sm:$0xf]  ;;  %v7452_v43 = vadd.f32 %v7442_v23, %v16204_v47  ;;  %v7453_v4 = vadd.f32 %v7406_v26, %v7130_v18  ;;  %v12858_v11 = vld [vmem:[#allocation9 + $0x1c0] sm:$0xf] }
 0x408   : > { %v16317_v33 = vpop.f32.mrf.mxu2  ;;  %v16319_v45 = vpop.f32.mrf.mxu3  ;;  %8576 = vmatpush.bf16.msrb.mxu1 %v12875_v16  ;;  %v7797_v12 = vadd.f32 %v7750_v62, %v7451_v44  ;;  %8615 = vmatpush.bf16.msrb.mxu3 %v12871_v59  ;;  %v12867_v3 = vor.u32 %v14143_v37, %v12866_v15  ;;  %v12799_v53 = vor.u32 %v14124_v24, %v12796_v38  ;;  %v12860_v16 = vld [vmem:[#allocation9 + $0x1c8] sm:$0xf0]  ;;  %v14141_v57 = vld [vmem:[#allocation9 + $0x1c4] sm:$0xf0]  ;;  %v8640_v28 = vrot.slane %v16287_v19, 3 }
 0x409   : > { %v8026_v58 = vpop.f32.mrf.mxu0  ;;  %v8045_v22 = vpop.f32.mrf.mxu1  ;;  %8557 = vmatpush.bf16.msrb.mxu0 %v12811_v52  ;;  %v14140_v52 = vld [vmem:[#allocation9 + $0x1c4] sm:$0xf]  ;;  %v7444_v54 = vadd.f32 %v16241_v1, %v16239_v8  ;;  %v7409_v47 = vadd.f32 %v16245_v14, %v16243_v50  ;;  %v12795_v21 = vor.u32 %v14125_v42, %v12794_v6  ;;  %v7447_v8 = vadd.f32 %v16249_v13, %v16247_v5  ;;  %v14138_v50 = vld [vmem:[#allocation9 + $0x1b4] sm:$0xf]  ;;  %v12852_v14 = vld [vmem:[#allocation9 + $0x1b8] sm:$0xf0] }
 0x40a   : > { %v8046_v36 = vadd.f32 %v8045_v22, %v8026_v58  ;;  %v12863_v55 = vor.u32 %v14140_v52, %v12860_v16  ;;  %v12859_v58 = vor.u32 %v14141_v57, %v12858_v11  ;;  %v14122_v22 = vld [vmem:[#allocation9 + $0x134] sm:$0xf]  ;;  %v7798_v1 = vadd.f32 %v7788_v41, %v7452_v43  ;;  %v16691_v37 = vld [vmem:[#allocation22_spill] sm:$0xff]  ;;  %v12850_v43 = vld [vmem:[#allocation9 + $0x1b0] sm:$0xf] }
 0x40b   : > { %8596 = vmatpush.bf16.msrb.mxu2 %v12807_v49  ;;  %v12788_v49 = vld [vmem:[#allocation9 + $0x138] sm:$0xf0]  ;;  %v7411_v26 = vadd.f32 %v16253_v30, %v16251_v48  ;;  %v12855_v25 = vor.u32 %v14138_v50, %v12852_v14  ;;  %v7135_v15 = vadd.f32 %v16219_v34, %v7116_v7  ;;  %v7790_v41 = vadd.f32 %v16275_v20, %v16273_v39  ;;  %v12786_v48 = vld [vmem:[#allocation9 + $0x130] sm:$0xf]  ;;  %v14123_v30 = vld [vmem:[#allocation9 + $0x134] sm:$0xf0] }
 0x40c   : > { %v8093_v40 = vadd.f32 %v8046_v36, %v7797_v12  ;;  %8577 = vmatpush.bf16.msrb.mxu1 %v12867_v3  ;;  %8616 = vmatpush.bf16.msrb.mxu3 %v12863_v55  ;;  %v12791_v44 = vor.u32 %v14122_v22, %v12788_v49  ;;  %v7799_v36 = vadd.f32 %v7752_v46, %v7453_v4  ;;  %v16692_v34 = vld [vmem:[#allocation17_spill] sm:$0xff]  ;;  %v16694_v3 = vld [vmem:[#allocation14_spill] sm:$0xff]  ;;  %v14139_v20 = vld [vmem:[#allocation9 + $0x1b4] sm:$0xf0] }
 0x40d   : > { %8558 = vmatpush.bf16.msrb.mxu0 %v12803_v56  ;;  %v16359_v12 = vadd.f32 %v16225_v31, %v7154_v0  ;;  %v16690_v56 = vld [vmem:[#allocation21_spill] sm:$0xff]  ;;  %v16367_v7 = vunpack.c.l.b16 %v16692_v34  ;;  %v7454_v31 = vadd.f32 %v7444_v54, %v16329_v60  ;;  %v16693_v0 = vld [vmem:[#allocation16_spill] sm:$0xff]  ;;  %v12787_v39 = vor.u32 %v14123_v30, %v12786_v48  ;;  %v12780_v16 = vld [vmem:[#allocation9 + $0x128] sm:$0xf0] }
 0x40e   : > { %v8101_v5 = vadd.f32 %v8093_v40, %v16149_v27  ;;  %v7755_v24 = vadd.f32 %v16691_v37, %v16690_v56  ;;  %v7455_v46 = vadd.f32 %v7409_v47, %v16693_v0  ;;  %v14120_v52 = vld [vmem:[#allocation9 + $0x124] sm:$0xf]  ;;  %v16695_v6 = vld [vmem:[#allocation18_spill] sm:$0xff]  ;;  %v16373_v40 = vadd.f32 %v7411_v26, %v7135_v15  ;;  %v16696_v50 = vld [vmem:[#allocation23_spill] sm:$0xff] }
 0x40f   : > { %8597 = vmatpush.bf16.msrb.mxu2 %v12799_v53  ;;  %v7456_v4 = vadd.f32 %v7447_v8, %v16695_v6  ;;  %v12851_v55 = vor.u32 %v14139_v20, %v12850_v43  ;;  %v12783_v42 = vor.u32 %v14120_v52, %v12780_v16  ;;  %v14136_v11 = vld [vmem:[#allocation9 + $0x1a4] sm:$0xf]  ;;  %v12844_v57 = vld [vmem:[#allocation9 + $0x1a8] sm:$0xf0]  ;;  %v7800_v22 = vadd.f32 %v7790_v41, %v7454_v31  ;;  %v16697_v14 = vld [vmem:[#allocation24_spill] sm:$0xff] }
 0x410   : > { %v8064_v62 = vpop.f32.mrf.mxu2  ;;  %v8083_v10 = vpop.f32.mrf.mxu3  ;;  %8578 = vmatpush.bf16.msrb.mxu1 %v12859_v58  ;;  %8617 = vmatpush.bf16.msrb.mxu3 %v12855_v25  ;;  %v12847_v47 = vor.u32 %v14136_v11, %v12844_v57  ;;  %v12842_v58 = vld [vmem:[#allocation9 + $0x1a0] sm:$0xf]  ;;  %v7801_v49 = vadd.f32 %v7755_v24, %v7455_v46  ;;  %v7793_v26 = vadd.f32 %v16697_v14, %v16696_v50  ;;  %v14134_v41 = vld [vmem:[#allocation9 + $0x194] sm:$0xf]  ;;  %v12836_v56 = vld [vmem:[#allocation9 + $0x198] sm:$0xf0] }
 0x411   : > { %v8084_v18 = vadd.f32 %v8083_v10, %v8064_v62  ;;  %v8028_v23 = vpop.f32.mrf.mxu0  ;;  %v8047_v59 = vpop.f32.mrf.mxu1  ;;  %8559 = vmatpush.bf16.msrb.mxu0 %v12795_v21  ;;  %v12778_v62 = vld [vmem:[#allocation9 + $0x120] sm:$0xf]  ;;  %v8109_v10 = vmax.f32 %v8101_v5, 0.0  ;;  %v14121_v21 = vld [vmem:[#allocation9 + $0x124] sm:$0xf0]  ;;  %v12839_v43 = vor.u32 %v14134_v41, %v12836_v56 }
 0x412   : > { %v8048_v32 = vadd.f32 %v8047_v59, %v8028_v23  ;;  %v14137_v23 = vld [vmem:[#allocation9 + $0x1a4] sm:$0xf0]  ;;  %v14118_v59 = vld [vmem:[#allocation9 + $0x114] sm:$0xf]  ;;  %v16698_v37 = vld [vmem:[#allocation25_spill] sm:$0xff] }
 0x413   : > { %v8094_v13 = vadd.f32 %v8084_v18, %v7798_v1  ;;  %8598 = vmatpush.bf16.msrb.mxu2 %v12791_v44  ;;  %v12779_v18 = vor.u32 %v14121_v21, %v12778_v62  ;;  %v16379_v44 = vunpack.c.h.b16 %v16692_v34  ;;  %v12843_v5 = vor.u32 %v14137_v23, %v12842_v58  ;;  %v16699_v24 = vld [vmem:[#allocation26_spill] sm:$0xff]  ;;  %v12770_v34 = vld [vmem:[#allocation9 + $0x110] sm:$0xf]  ;;  %v14119_v31 = vld [vmem:[#allocation9 + $0x114] sm:$0xf0] }
 0x414   : > { %v8095_v38 = vadd.f32 %v8048_v32, %v7799_v36  ;;  %8579 = vmatpush.bf16.msrb.mxu1 %v12851_v55  ;;  %8618 = vmatpush.bf16.msrb.mxu3 %v12847_v47  ;;  %v12834_v0 = vld [vmem:[#allocation9 + $0x190] sm:$0xf]  ;;  %v12771_v52 = vor.u32 %v14119_v31, %v12770_v34  ;;  %v14135_v16 = vld [vmem:[#allocation9 + $0x194] sm:$0xf0]  ;;  %v14116_v6 = vld [vmem:[#allocation9 + $0x104] sm:$0xf]  ;;  %v7802_v21 = vadd.f32 %v7793_v26, %v7456_v4 }
 0x415   : > { %v8102_v53 = vadd.f32 %v8094_v13, %v16694_v3  ;;  %8560 = vmatpush.bf16.msrb.mxu0 %v12787_v39  ;;  %v12772_v13 = vld [vmem:[#allocation9 + $0x118] sm:$0xf0]  ;;  %v12764_v11 = vld [vmem:[#allocation9 + $0x108] sm:$0xf0]  ;;  %v14132_v57 = vld [vmem:[#allocation9 + $0x184] sm:$0xf]  ;;  %v16403_v23 = vadd.f32 %v16319_v45, %v16317_v33 }
 0x416   : > { %v16376_v54 = vadd.f32 %v8095_v38, %v16149_v27  ;;  %v7757_v38 = vadd.f32 %v16699_v24, %v16698_v37  ;;  %v12775_v30 = vor.u32 %v14118_v59, %v12772_v13  ;;  %v16702_v47 = vld [vmem:[#allocation20_spill] sm:$0xff]  ;;  %v12826_v50 = vld [vmem:[#allocation9 + $0x180] sm:$0xf]  ;;  %v14133_v14 = vld [vmem:[#allocation9 + $0x184] sm:$0xf0] }
 0x417   : > { %v8110_v60 = vmax.f32 %v8102_v53, 0.0  ;;  %8599 = vmatpush.bf16.msrb.mxu2 %v12783_v42  ;;  %v12835_v42 = vor.u32 %v14135_v16, %v12834_v0  ;;  %v14098_v26 = vld [vmem:[#allocation9 + $0x74] sm:$0xf]  ;;  %v12948_v33 = vld [vmem:[#allocation9 + $0x78] sm:$0xf0]  ;;  %v12827_v13 = vor.u32 %v14133_v14, %v12826_v50 }
 0x418   : > { %v8066_v1 = vpop.f32.mrf.mxu2  ;;  %v8085_v8 = vpop.f32.mrf.mxu3  ;;  %v8111_v39 = vmax.f32 %v16376_v54, 0.0  ;;  %8580 = vmatpush.bf16.msrb.mxu1 %v12843_v5  ;;  %8619 = vmatpush.bf16.msrb.mxu3 %v12839_v43  ;;  %v12951_v37 = vor.u32 %v14098_v26, %v12948_v33  ;;  %v13012_v24 = vld [vmem:[#allocation9 + $0xf8] sm:$0xf0]  ;;  %v12946_v0 = vld [vmem:[#allocation9 + $0x70] sm:$0xf] }
 0x419   : > { %v8117_v36 = vpack.c.bf16 %v8110_v60, %v8109_v10  ;;  %v8086_v32 = vadd.f32 %v8085_v8, %v8066_v1  ;;  %v8031_v25 = vpop.f32.mrf.mxu0  ;;  %v8050_v15 = vpop.f32.mrf.mxu1  ;;  %8561 = vmatpush.bf16.msrb.mxu0 %v12779_v18  ;;  %v16701_v60 = vld [vmem:[#allocation19_spill] sm:$0xff]  ;;  %v12828_v1 = vld [vmem:[#allocation9 + $0x188] sm:$0xf0]  ;;  %v14117_v8 = vld [vmem:[#allocation9 + $0x104] sm:$0xf0]  ;;  %v16399_v18 = vadd.f32 %v7757_v38, %v16373_v40 }
 0x41a   : > { %v8051_v48 = vadd.f32 %v8050_v15, %v8031_v25  ;;  %v16395_v54 = vadd.f32 %v16702_v47, %v16701_v60  ;;  %v12831_v59 = vor.u32 %v14132_v57, %v12828_v1  ;;  %v14114_v25 = vld [vmem:[#allocation9 + $0xf4] sm:$0xf]  ;;  %v14097_v33 = vld [vmem:[#allocation9 + $0x64] sm:$0xf0]  ;;  %v12900_v46 = vld [vmem:[#allocation9 + $0x18] sm:$0xf0] }
 0x41b   : > { %v16387_v53 = vsel %vm15037_vm9, %v8117_v36, 0  ;;  %v8096_v20 = vadd.f32 %v8086_v32, %v7800_v22  ;;  %8600 = vmatpush.bf16.msrb.mxu2 %v12775_v30  ;;  %v12767_v22 = vor.u32 %v14116_v6, %v12764_v11  ;;  %v14115_v11 = vld [vmem:[#allocation9 + $0xf4] sm:$0xf0]  ;;  %v14110_v9 = vld [vmem:[#allocation9 + $0xd4] sm:$0xf] }
 0x41c   : > { %8241 = vst [vmem:[#allocation3 + $0x30] sm:$0xff] %v16387_v53  ;;  %v8097_v55 = vadd.f32 %v8051_v48, %v7801_v49  ;;  %v8330_v62 = vunpack.c.l.b16 %v16387_v53  ;;  %v8331_v10 = vunpack.c.h.b16 %v16387_v53  ;;  %v12762_v49 = vld [vmem:[#allocation9 + $0x100] sm:$0xf]  ;;  %8581 = vmatpush.bf16.msrb.mxu1 %v12835_v42  ;;  %8620 = vmatpush.bf16.msrb.mxu3 %v12831_v59  ;;  %v13010_v42 = vld [vmem:[#allocation9 + $0xf0] sm:$0xf] }
 0x41d   : > { %v8104_v58 = vadd.f32 %v8096_v20, %v16694_v3  ;;  %8562 = vmatpush.bf16.msrb.mxu0 %v12771_v52  ;;  %v12763_v40 = vor.u32 %v14117_v8, %v12762_v49  ;;  %v14099_v20 = vld [vmem:[#allocation9 + $0x74] sm:$0xf0]  ;;  %v12940_v8 = vld [vmem:[#allocation9 + $0x68] sm:$0xf0]  ;;  %v14112_v59 = vld [vmem:[#allocation9 + $0xe4] sm:$0xf]  ;;  %v13011_v26 = vor.u32 %v14115_v11, %v13010_v42 }
 0x41e   : > { %v16408_v4 = vpack.c.b16 %v8330_v62, %v16367_v7  ;;  %v16411_v32 = vadd.f32 %v8097_v55, %v16149_v27  ;;  %v16416_v45 = vpack.c.b16 %v8331_v10, %v16379_v44  ;;  %v13015_v55 = vor.u32 %v14114_v25, %v13012_v24  ;;  %v14108_v42 = vld [vmem:[#allocation9 + $0xc4] sm:$0xf] }
 0x41f   : > { %v8112_v36 = vmax.f32 %v8104_v58, 0.0  ;;  %8601 = vmatpush.bf16.msrb.mxu2 %v12767_v22  ;;  %v14096_v58 = vld [vmem:[#allocation9 + $0x64] sm:$0xf]  ;;  %v12947_v49 = vor.u32 %v14099_v20, %v12946_v0  ;;  %v7458_v25 = vadd.f32 %v16395_v54, %v16359_v12  ;;  %v14095_v0 = vld [vmem:[#allocation9 + $0x54] sm:$0xf0] }
 0x420   : > { %v8069_v15 = vpop.f32.mrf.mxu2  ;;  %v8088_v5 = vpop.f32.mrf.mxu3  ;;  %v8349_v41 = vshrl.u32 %v16408_v4, 16  ;;  %v8352_v56 = vshll.u32 %v16408_v4, 16  ;;  %v8366_v34 = vshrl.u32 %v16416_v45, 16  ;;  %v8369_v31 = vshll.u32 %v16416_v45, 16  ;;  %8582 = vmatpush.bf16.msrb.mxu1 %v12827_v13  ;;  %8868 = vmatpush.bf16.msra.mxu3 %v13015_v55  ;;  %v13002_v13 = vld [vmem:[#allocation9 + $0xe0] sm:$0xf] }
 0x421   : > { %v8118_v38 = vpack.c.bf16 %v8112_v36, %v8111_v39  ;;  %v8089_v48 = vadd.f32 %v8088_v5, %v8069_v15  ;;  %v8033_v30 = vpop.f32.mrf.mxu0  ;;  %v8052_v43 = vpop.f32.mrf.mxu1  ;;  %8563 = vmatpush.bf16.msrb.mxu0 %v12763_v40  ;;  %v8113_v22 = vmax.f32 %v16411_v32, 0.0  ;;  %v13004_v36 = vld [vmem:[#allocation9 + $0xe8] sm:$0xf0]  ;;  %v12938_v40 = vld [vmem:[#allocation9 + $0x60] sm:$0xf]  ;;  %v7804_v54 = vadd.f32 %v16403_v23, %v7458_v25 }
 0x422   : > { %v8053_v52 = vadd.f32 %v8052_v43, %v8033_v30  ;;  %v8351_v16 = vrot.slane %v8349_v41, 3  ;;  %v8354_v6 = vrot.slane %v8352_v56, 4  ;;  %v8368_v60 = vrot.slane %v8366_v34, 3  ;;  %v14113_v41 = vld [vmem:[#allocation9 + $0xe4] sm:$0xf0] }
 0x423   : > { %8849 = vmatpush.bf16.msra.mxu2 %v12951_v37  ;;  %v8230_v39 = vsel %vm15037_vm9, %v8118_v38, 0  ;;  %v8098_v57 = vadd.f32 %v8089_v48, %v7802_v21  ;;  %v8371_v47 = vrot.slane %v8369_v31, 4  ;;  %v12943_v21 = vor.u32 %v14096_v58, %v12940_v8  ;;  %v14094_v56 = vld [vmem:[#allocation9 + $0x54] sm:$0xf]  ;;  %v12930_v43 = vld [vmem:[#allocation9 + $0x50] sm:$0xf] }
 0x424   : > { %8242 = vst [vmem:[#allocation3 + $0x38] sm:$0xff] %v8230_v39  ;;  %v16425_v1 = vor.u32 %v8354_v6, %v8351_v16  ;;  %v13007_v15 = vor.u32 %v14112_v59, %v13004_v36  ;;  %v12939_v5 = vor.u32 %v14097_v33, %v12938_v40  ;;  %v8099_v24 = vadd.f32 %v8053_v52, %v16399_v18  ;;  %v12996_v18 = vld [vmem:[#allocation9 + $0xd8] sm:$0xf0]  ;;  %v12994_v20 = vld [vmem:[#allocation9 + $0xd0] sm:$0xf] }
 0x425   : > { %v8106_v50 = vadd.f32 %v8098_v57, %v16694_v3  ;;  %v16428_v14 = vor.u32 %v8371_v47, %v8368_v60  ;;  %8811 = vmatpush.bf16.msra.mxu0 %v12947_v49  ;;  %v13003_v30 = vor.u32 %v14113_v41, %v13002_v13  ;;  %v16446_v34 = vunpack.c.h.b16 %v8230_v39  ;;  %8830 = vmatpush.bf16.msra.mxu1 %v13011_v26  ;;  %v14111_v52 = vld [vmem:[#allocation9 + $0xd4] sm:$0xf0]  ;;  %v14092_v6 = vld [vmem:[#allocation9 + $0x44] sm:$0xf]  ;;  %v12924_v55 = vld [vmem:[#allocation9 + $0x48] sm:$0xf0] }
 0x426   : > { %v8356_v32 = vsel %vm655_vm3, %v8347_v61, %v16425_v1  ;;  %v16443_v61 = vunpack.c.l.b16 %v8230_v39  ;;  %v8638_v35 = vrot.slane %v16408_v4, 3  ;;  %v12935_v31 = vor.u32 %v14094_v56, %v12932_v17  ;;  %8869 = vmatpush.bf16.msra.mxu3 %v13007_v15  ;;  %v12988_v47 = vld [vmem:[#allocation9 + $0xc8] sm:$0xf0]  ;;  %v12922_v58 = vld [vmem:[#allocation9 + $0x40] sm:$0xf] }
 0x427   : > { %v8114_v37 = vmax.f32 %v8106_v50, 0.0  ;;  %8564 = vmatmul.bf16.vlgmr.msrb.gmra.mxu0 %v8356_v32  ;;  %v8373_v12 = vsel %vm655_vm3, %v8364_v29, %v16428_v14  ;;  %8602 = vmatmul.bf16.vlgmr.msrb.gmra.mxu2 %v8356_v32  ;;  %v12999_v23 = vor.u32 %v14110_v9, %v12996_v18  ;;  %v12931_v16 = vor.u32 %v14095_v0, %v12930_v43  ;;  %v14093_v8 = vld [vmem:[#allocation9 + $0x44] sm:$0xf0]  ;;  %v12986_v59 = vld [vmem:[#allocation9 + $0xc0] sm:$0xf] }
 0x428   : > { %v8071_v38 = vpop.f32.mrf.mxu2  ;;  %v8090_v48 = vpop.f32.mrf.mxu3  ;;  %8583 = vmatmul.bf16.vlgmr.msrb.gmra.mxu1 %v8373_v12  ;;  %8621 = vmatmul.bf16.vlgmr.msrb.gmra.mxu3 %v8373_v12  ;;  %v8338_v11 = vpack.c.b16 %v16443_v61, %v16443_v61  ;;  %v8107_v57 = vadd.f32 %v8099_v24, %v16149_v27  ;;  %v12995_v49 = vor.u32 %v14111_v52, %v12994_v20  ;;  %v14109_v36 = vld [vmem:[#allocation9 + $0xc4] sm:$0xf0]  ;;  %v14090_v25 = vld [vmem:[#allocation9 + $0x34] sm:$0xf]  ;;  %v12916_v41 = vld [vmem:[#allocation9 + $0x38] sm:$0xf0] }
 0x429   : > { %v8119_v63 = vpack.c.bf16 %v8114_v37, %v8113_v22  ;;  %v8091_v29 = vadd.f32 %v8090_v48, %v8071_v38  ;;  %8850 = vmatpush.bf16.msra.mxu2 %v12943_v21  ;;  %8812 = vmatpush.bf16.msra.mxu0 %v12939_v5  ;;  %v8339_v22 = vpack.c.b16 %v16446_v34, %v16446_v34  ;;  %v12914_v9 = vld [vmem:[#allocation9 + $0x30] sm:$0xf]  ;;  %v8641_v38 = vrot.slane %v16416_v45, 3  ;;  %v12908_v20 = vld [vmem:[#allocation9 + $0x28] sm:$0xf0] }
 0x42a   : > { %v8375_v50 = vshrl.u32 %v8338_v11, 16  ;;  %v16461_v26 = vsel %vm740_vm2, %v8637_v2, %v8638_v35  ;;  %8831 = vmatpush.bf16.msra.mxu1 %v13003_v30  ;;  %v12927_v21 = vor.u32 %v14092_v6, %v12924_v55  ;;  %v8378_v40 = vshll.u32 %v8338_v11, 16  ;;  %8870 = vmatpush.bf16.msra.mxu3 %v12999_v23  ;;  %v12978_v43 = vld [vmem:[#allocation9 + $0xb0] sm:$0xf]  ;;  %v14104_v52 = vld [vmem:[#allocation9 + $0xa4] sm:$0xf] }
 0x42b   : > { %v8231_v39 = vsel %vm15037_vm9, %v8119_v63, 0  ;;  %v8100_v60 = vadd.f32 %v8091_v29, %v7804_v54  ;;  %v8384_v33 = vshrl.u32 %v8339_v22, 16  ;;  %v12991_v32 = vor.u32 %v14108_v42, %v12988_v47  ;;  %v14091_v54 = vld [vmem:[#allocation9 + $0x34] sm:$0xf0]  ;;  %v14088_v29 = vld [vmem:[#allocation9 + $0x24] sm:$0xf] }
 0x42c   : > { %8243 = vst [vmem:[#allocation3 + $0x40] sm:$0xff] %v8231_v39  ;;  %v12923_v15 = vor.u32 %v14093_v8, %v12922_v58  ;;  %v8377_v5 = vrot.slane %v8375_v50, 3  ;;  %v8387_v13 = vshll.u32 %v8339_v22, 16  ;;  %v8115_v56 = vmax.f32 %v8107_v57, 0.0  ;;  %v14107_v63 = vld [vmem:[#allocation9 + $0xb4] sm:$0xf0] }
 0x42d   : > { %v8108_v27 = vadd.f32 %v8100_v60, %v16694_v3  ;;  %8851 = vmatpush.bf16.msra.mxu2 %v12935_v31  ;;  %8813 = vmatpush.bf16.msra.mxu0 %v12931_v16  ;;  %v8380_v37 = vrot.slane %v8378_v40, 4  ;;  %v8386_v24 = vrot.slane %v8384_v33, 3  ;;  %v12980_v3 = vld [vmem:[#allocation9 + $0xb8] sm:$0xf0]  ;;  %v12987_v12 = vor.u32 %v14109_v36, %v12986_v59  ;;  %v12972_v23 = vld [vmem:[#allocation9 + $0xa8] sm:$0xf0] }
 0x42e   : > { %v8389_v17 = vrot.slane %v8387_v13, 4  ;;  %8832 = vmatpush.bf16.msra.mxu1 %v12995_v49  ;;  %v12919_v30 = vor.u32 %v14090_v25, %v12916_v41  ;;  %v12983_v18 = vor.u32 %v14106_v51, %v12980_v3  ;;  %8871 = vmatpush.bf16.msra.mxu3 %v12991_v32  ;;  %v12915_v0 = vor.u32 %v14091_v54, %v12914_v9  ;;  %v12906_v42 = vld [vmem:[#allocation9 + $0x20] sm:$0xf]  ;;  %v14089_v11 = vld [vmem:[#allocation9 + $0x24] sm:$0xf0] }
 0x42f   : > { %v8116_v2 = vmax.f32 %v8108_v27, 0.0  ;;  %v8381_v31 = vor.u32 %v8380_v37, %v8377_v5  ;;  %v16470_v16 = vsel %vm740_vm2, %v8640_v28, %v8641_v38  ;;  %v12979_v39 = vor.u32 %v14107_v63, %v12978_v43  ;;  %v12970_v60 = vld [vmem:[#allocation9 + $0xa0] sm:$0xf]  ;;  %v14105_v47 = vld [vmem:[#allocation9 + $0xa4] sm:$0xf0] }
 0x430   : > { %v8390_v55 = vor.u32 %v8389_v17, %v8386_v24  ;;  %v12911_v57 = vor.u32 %v14088_v29, %v12908_v20  ;;  %v12975_v19 = vor.u32 %v14104_v52, %v12972_v23  ;;  %v12907_v28 = vor.u32 %v14089_v11, %v12906_v42  ;;  %v14086_v22 = vld [vmem:[#allocation9 + $0x14] sm:$0xf]  ;;  %v12964_v59 = vld [vmem:[#allocation9 + $0x98] sm:$0xf0]  ;;  %v12898_v50 = vld [vmem:[#allocation9 + $0x10] sm:$0xf] }
 0x431   : > { %v8120_v48 = vpack.c.bf16 %v8116_v2, %v8115_v56  ;;  %8852 = vmatpush.bf16.msra.mxu2 %v12927_v21  ;;  %8814 = vmatpush.bf16.msra.mxu0 %v12923_v15  ;;  %v8382_v58 = vsel %vm655_vm3, %v16425_v1, %v8381_v31  ;;  %v14102_v49 = vld [vmem:[#allocation9 + $0x94] sm:$0xf]  ;;  %v14087_v27 = vld [vmem:[#allocation9 + $0x14] sm:$0xf0]  ;;  %v12971_v1 = vor.u32 %v14105_v47, %v12970_v60  ;;  %v12962_v36 = vld [vmem:[#allocation9 + $0x90] sm:$0xf] }
 0x432   : > { %8833 = vmatpush.bf16.msra.mxu1 %v12987_v12  ;;  %8872 = vmatpush.bf16.msra.mxu3 %v12983_v18  ;;  %v8391_v8 = vsel %vm655_vm3, %v16428_v14, %v8390_v55  ;;  %v12903_v21 = vor.u32 %v14086_v22, %v12900_v46  ;;  %v14103_v40 = vld [vmem:[#allocation9 + $0x94] sm:$0xf0]  ;;  %v14084_v33 = vld [vmem:[#allocation9 + $0x4] sm:$0xf]  ;;  %v12967_v25 = vor.u32 %v14102_v49, %v12964_v59  ;;  %v12892_v15 = vld [vmem:[#allocation9 + $0x8] sm:$0xf0] }
 0x433   : > { %v8232_v6 = vsel %vm15037_vm9, %v8120_v48, 0  ;;  %v12899_v32 = vor.u32 %v14087_v27, %v12898_v50  ;;  %v14100_v5 = vld [vmem:[#allocation9 + $0x84] sm:$0xf]  ;;  %v12956_v14 = vld [vmem:[#allocation9 + $0x88] sm:$0xf0]  ;;  %v12963_v24 = vor.u32 %v14103_v40, %v12962_v36  ;;  %v12895_v3 = vor.u32 %v14084_v33, %v12892_v15 }
 0x434   : > { %8244 = vst [vmem:[#allocation3 + $0x48] sm:$0xff] %v8232_v6  ;;  %v12890_v13 = vld [vmem:[#allocation9] sm:$0xf]  ;;  %v14085_v41 = vld [vmem:[#allocation9 + $0x4] sm:$0xf0]  ;;  %v12959_v9 = vor.u32 %v14100_v5, %v12956_v14 }
 0x435   : > { %8853 = vmatpush.bf16.msra.mxu2 %v12919_v30  ;;  %8815 = vmatpush.bf16.msra.mxu0 %v12915_v0  ;;  %v14162_v51 = vld [vmem:[#allocation9 + $0x274] sm:$0xf]  ;;  %v13076_v56 = vld [vmem:[#allocation9 + $0x278] sm:$0xf0]  ;;  %v13074_v12 = vld [vmem:[#allocation9 + $0x270] sm:$0xf]  ;;  %v12891_v54 = vor.u32 %v14085_v41, %v12890_v13 }
 0x436   : > { %8834 = vmatpush.bf16.msra.mxu1 %v12979_v39  ;;  %8873 = vmatpush.bf16.msra.mxu3 %v12975_v19  ;;  %v14178_v2 = vld [vmem:[#allocation9 + $0x2f4] sm:$0xf]  ;;  %v13140_v37 = vld [vmem:[#allocation9 + $0x2f8] sm:$0xf0]  ;;  %v14163_v17 = vld [vmem:[#allocation9 + $0x274] sm:$0xf0]  ;;  %v13079_v18 = vor.u32 %v14162_v51, %v13076_v56 }
 0x437   : > { %8569 = vmatmul.bf16.gmra.mxu0 %v8382_v58  ;;  %8607 = vmatmul.bf16.gmra.mxu2 %v8382_v58  ;;  %v12954_v48 = vld [vmem:[#allocation9 + $0x80] sm:$0xf]  ;;  %v14101_v30 = vld [vmem:[#allocation9 + $0x84] sm:$0xf0]  ;;  %v13143_v43 = vor.u32 %v14178_v2, %v13140_v37  ;;  %v13138_v63 = vld [vmem:[#allocation9 + $0x2f0] sm:$0xf]  ;;  %v13075_v31 = vor.u32 %v14163_v17, %v13074_v12 }
 0x438   : > { %8588 = vmatmul.bf16.gmra.mxu1 %v8391_v8  ;;  %8626 = vmatmul.bf16.gmra.mxu3 %v8391_v8  ;;  %v14179_v29 = vld [vmem:[#allocation9 + $0x2f4] sm:$0xf0]  ;;  %v12955_v0 = vor.u32 %v14101_v30, %v12954_v48  ;;  %v14160_v20 = vld [vmem:[#allocation9 + $0x264] sm:$0xf]  ;;  %v13068_v52 = vld [vmem:[#allocation9 + $0x268] sm:$0xf0] }
 0x439   : > { %8854 = vmatpush.bf16.msra.mxu2 %v12911_v57  ;;  %8816 = vmatpush.bf16.msra.mxu0 %v12907_v28  ;;  %v13139_v23 = vor.u32 %v14179_v29, %v13138_v63  ;;  %v14176_v6 = vld [vmem:[#allocation9 + $0x2e4] sm:$0xf]  ;;  %v13132_v55 = vld [vmem:[#allocation9 + $0x2e8] sm:$0xf0]  ;;  %v13066_v42 = vld [vmem:[#allocation9 + $0x260] sm:$0xf]  ;;  %v13071_v60 = vor.u32 %v14160_v20, %v13068_v52 }
 0x43a   : > { %8835 = vmatpush.bf16.msra.mxu1 %v12971_v1  ;;  %8874 = vmatpush.bf16.msra.mxu3 %v12967_v25  ;;  %v14161_v11 = vld [vmem:[#allocation9 + $0x264] sm:$0xf0]  ;;  %v13130_v39 = vld [vmem:[#allocation9 + $0x2e0] sm:$0xf]  ;;  %v13135_v47 = vor.u32 %v14176_v6, %v13132_v55  ;;  %v14158_v58 = vld [vmem:[#allocation9 + $0x254] sm:$0xf]  ;;  %v16485_v6 = vpack.c.b16 %v16443_v61, %v8330_v62 }
 0x43b   : > { %v14177_v57 = vld [vmem:[#allocation9 + $0x2e4] sm:$0xf0]  ;;  %v13060_v19 = vld [vmem:[#allocation9 + $0x258] sm:$0xf0]  ;;  %v14174_v28 = vld [vmem:[#allocation9 + $0x2d4] sm:$0xf]  ;;  %v13067_v22 = vor.u32 %v14161_v11, %v13066_v42 }
 0x43c   : > { %v13131_v46 = vor.u32 %v14177_v57, %v13130_v39  ;;  %v13124_v49 = vld [vmem:[#allocation9 + $0x2d8] sm:$0xf0]  ;;  %v13058_v8 = vld [vmem:[#allocation9 + $0x250] sm:$0xf]  ;;  %v14159_v59 = vld [vmem:[#allocation9 + $0x254] sm:$0xf0] }
 0x43d   : > { %8855 = vmatpush.bf16.msra.mxu2 %v12903_v21  ;;  %8817 = vmatpush.bf16.msra.mxu0 %v12899_v32  ;;  %v13122_v50 = vld [vmem:[#allocation9 + $0x2d0] sm:$0xf]  ;;  %v14175_v27 = vld [vmem:[#allocation9 + $0x2d4] sm:$0xf0]  ;;  %v13063_v21 = vor.u32 %v14158_v58, %v13060_v19  ;;  %v13127_v36 = vor.u32 %v14174_v28, %v13124_v49  ;;  %v14156_v40 = vld [vmem:[#allocation9 + $0x244] sm:$0xf]  ;;  %v13059_v25 = vor.u32 %v14159_v59, %v13058_v8 }
 0x43e   : > { %8836 = vmatpush.bf16.msra.mxu1 %v12963_v24  ;;  %8875 = vmatpush.bf16.msra.mxu3 %v12959_v9  ;;  %v8252_v1 = vld [vmem:[#allocation3 + $0x38] sm:$0x77]  ;;  %v13052_v33 = vld [vmem:[#allocation9 + $0x248] sm:$0xf0]  ;;  %v13123_v32 = vor.u32 %v14175_v27, %v13122_v50  ;;  %v14172_v15 = vld [vmem:[#allocation9 + $0x2c4] sm:$0xf] }
 0x43f   : > { %v13116_v5 = vld [vmem:[#allocation9 + $0x2c8] sm:$0xf0]  ;;  %v8633_v14 = vunpack.c.l.b16 %v8252_v1  ;;  %v14157_v13 = vld [vmem:[#allocation9 + $0x244] sm:$0xf0]  ;;  %v13114_v41 = vld [vmem:[#allocation9 + $0x2c0] sm:$0xf]  ;;  %v8634_v56 = vunpack.c.h.b16 %v8252_v1 }
 0x440   : > { %v14173_v51 = vld [vmem:[#allocation9 + $0x2c4] sm:$0xf0]  ;;  %v13119_v2 = vor.u32 %v14172_v15, %v13116_v5  ;;  %v14154_v37 = vld [vmem:[#allocation9 + $0x234] sm:$0xf]  ;;  %v13044_v24 = vld [vmem:[#allocation9 + $0x238] sm:$0xf0] }
 0x441   : > { %8856 = vmatpush.bf16.msra.mxu2 %v12895_v3  ;;  %8818 = vmatpush.bf16.msra.mxu0 %v12891_v54  ;;  %v13115_v12 = vor.u32 %v14173_v51, %v13114_v41  ;;  %v8635_v17 = vpack.c.b16 %v8633_v14, %v8633_v14  ;;  %v14170_v9 = vld [vmem:[#allocation9 + $0x2b4] sm:$0xf]  ;;  %v13108_v54 = vld [vmem:[#allocation9 + $0x2b8] sm:$0xf0]  ;;  %v13042_v48 = vld [vmem:[#allocation9 + $0x230] sm:$0xf]  ;;  %v8636_v30 = vpack.c.b16 %v8634_v56, %v8634_v56 }
 0x442   : > { %9145 = vmatpush.bf16.msrb.mxu3 %v13143_v43  ;;  %8837 = vmatpush.bf16.msra.mxu1 %v12955_v0  ;;  %v13106_v43 = vld [vmem:[#allocation9 + $0x2b0] sm:$0xf]  ;;  %v14171_v63 = vld [vmem:[#allocation9 + $0x2b4] sm:$0xf0]  ;;  %v14152_v29 = vld [vmem:[#allocation9 + $0x224] sm:$0xf]  ;;  %v13111_v0 = vor.u32 %v14170_v9, %v13108_v54 }
 0x443   : > { %v13036_v20 = vld [vmem:[#allocation9 + $0x228] sm:$0xf0]  ;;  %v14168_v52 = vld [vmem:[#allocation9 + $0x2a4] sm:$0xf]  ;;  %v8643_v55 = vrot.slane %v8635_v17, 3  ;;  %v13107_v11 = vor.u32 %v14171_v63, %v13106_v43 }
 0x444   : > { %v13034_v39 = vld [vmem:[#allocation9 + $0x220] sm:$0xf]  ;;  %v14153_v57 = vld [vmem:[#allocation9 + $0x224] sm:$0xf0]  ;;  %v13039_v28 = vor.u32 %v14152_v29, %v13036_v20  ;;  %v14150_v61 = vld [vmem:[#allocation9 + $0x214] sm:$0xf] }
 0x445   : > { %9126 = vmatpush.bf16.msrb.mxu2 %v13079_v18  ;;  %9088 = vmatpush.bf16.msrb.mxu0 %v13075_v31  ;;  %v14155_v18 = vld [vmem:[#allocation9 + $0x234] sm:$0xf0]  ;;  %v13047_v31 = vor.u32 %v14154_v37, %v13044_v24  ;;  %v13098_v58 = vld [vmem:[#allocation9 + $0x2a0] sm:$0xf]  ;;  %v14169_v19 = vld [vmem:[#allocation9 + $0x2a4] sm:$0xf0]  ;;  %v13035_v49 = vor.u32 %v14153_v57, %v13034_v39 }
 0x446   : > { %9107 = vmatpush.bf16.msrb.mxu1 %v13139_v23  ;;  %9146 = vmatpush.bf16.msrb.mxu3 %v13135_v47  ;;  %v13100_v23 = vld [vmem:[#allocation9 + $0x2a8] sm:$0xf0]  ;;  %v13043_v42 = vor.u32 %v14155_v18, %v13042_v48  ;;  %v8645_v47 = vrot.slane %v8636_v30, 3  ;;  %v13099_v53 = vor.u32 %v14169_v19, %v13098_v58  ;;  %v14166_v8 = vld [vmem:[#allocation9 + $0x294] sm:$0xf] }
 0x447   : > { %8819 = vmatmul.bf16.vlgmr.msra.gmra.mxu0 %v16461_v26  ;;  %8857 = vmatmul.bf16.vlgmr.msra.gmra.mxu2 %v16461_v26  ;;  %v13050_v26 = vld [vmem:[#allocation9 + $0x240] sm:$0xf]  ;;  %v13103_v62 = vor.u32 %v14168_v52, %v13100_v23  ;;  %v14151_v50 = vld [vmem:[#allocation9 + $0x214] sm:$0xf0]  ;;  %v13090_v27 = vld [vmem:[#allocation9 + $0x290] sm:$0xf] }
 0x448   : > { %8838 = vmatmul.bf16.vlgmr.msra.gmra.mxu1 %v16470_v16  ;;  %8876 = vmatmul.bf16.vlgmr.msra.gmra.mxu3 %v16470_v16  ;;  %v13055_v16 = vor.u32 %v14156_v40, %v13052_v33  ;;  %v13051_v3 = vor.u32 %v14157_v13, %v13050_v26  ;;  %v8646_v59 = vsel %vm740_vm2, %v8641_v38, %v8645_v47  ;;  %v14167_v1 = vld [vmem:[#allocation9 + $0x294] sm:$0xf0]  ;;  %v14148_v4 = vld [vmem:[#allocation9 + $0x204] sm:$0xf]  ;;  %v13084_v33 = vld [vmem:[#allocation9 + $0x288] sm:$0xf0] }
 0x449   : > { %9127 = vmatpush.bf16.msrb.mxu2 %v13071_v60  ;;  %9089 = vmatpush.bf16.msrb.mxu0 %v13067_v22  ;;  %v16490_v60 = vpack.c.b16 %v16446_v34, %v8331_v10  ;;  %v13028_v22 = vld [vmem:[#allocation9 + $0x218] sm:$0xf0]  ;;  %v13026_v34 = vld [vmem:[#allocation9 + $0x210] sm:$0xf]  ;;  %v14164_v40 = vld [vmem:[#allocation9 + $0x284] sm:$0xf]  ;;  %v13091_v45 = vor.u32 %v14167_v1, %v13090_v27 }
 0x44a   : > { %9108 = vmatpush.bf16.msrb.mxu1 %v13131_v46  ;;  %9147 = vmatpush.bf16.msrb.mxu3 %v13127_v36  ;;  %v8644_v46 = vsel %vm740_vm2, %v8638_v35, %v8643_v55  ;;  %v13092_v10 = vld [vmem:[#allocation9 + $0x298] sm:$0xf0]  ;;  %v13031_v35 = vor.u32 %v14150_v61, %v13028_v22  ;;  %v13020_v36 = vld [vmem:[#allocation9 + $0x208] sm:$0xf0]  ;;  %v14149_v38 = vld [vmem:[#allocation9 + $0x204] sm:$0xf0] }
 0x44b   : > { %v13082_v15 = vld [vmem:[#allocation9 + $0x280] sm:$0xf]  ;;  %v14165_v5 = vld [vmem:[#allocation9 + $0x284] sm:$0xf0]  ;;  %v14196_v26 = vld [vmem:[#allocation9 + $0x374] sm:$0xf]  ;;  %v13023_v56 = vor.u32 %v14148_v4, %v13020_v36 }
 0x44c   : > { %v13212_v14 = vld [vmem:[#allocation9 + $0x378] sm:$0xf0]  ;;  %v14212_v13 = vld [vmem:[#allocation9 + $0x3f4] sm:$0xf]  ;;  %v13210_v51 = vld [vmem:[#allocation9 + $0x370] sm:$0xf] }
 0x44d   : > { %9128 = vmatpush.bf16.msrb.mxu2 %v13063_v21  ;;  %9090 = vmatpush.bf16.msrb.mxu0 %v13059_v25  ;;  %v13095_v21 = vor.u32 %v14166_v8, %v13092_v10  ;;  %v13027_v25 = vor.u32 %v14151_v50, %v13026_v34  ;;  %v13276_v41 = vld [vmem:[#allocation9 + $0x3f8] sm:$0xf0]  ;;  %v13274_v37 = vld [vmem:[#allocation9 + $0x3f0] sm:$0xf]  ;;  %v14213_v24 = vld [vmem:[#allocation9 + $0x3f4] sm:$0xf0]  ;;  %v13215_v17 = vor.u32 %v14196_v26, %v13212_v14 }
 0x44e   : > { %9109 = vmatpush.bf16.msrb.mxu1 %v13123_v32  ;;  %9148 = vmatpush.bf16.msrb.mxu3 %v13119_v2  ;;  %v13018_v32 = vld [vmem:[#allocation9 + $0x200] sm:$0xf]  ;;  %v14197_v2 = vld [vmem:[#allocation9 + $0x374] sm:$0xf0]  ;;  %v13279_v9 = vor.u32 %v14212_v13, %v13276_v41  ;;  %v13275_v48 = vor.u32 %v14213_v24, %v13274_v37  ;;  %v14194_v30 = vld [vmem:[#allocation9 + $0x364] sm:$0xf] }
 0x44f   : > { %v13211_v54 = vor.u32 %v14197_v2, %v13210_v51  ;;  %v13204_v18 = vld [vmem:[#allocation9 + $0x368] sm:$0xf0]  ;;  %v14210_v43 = vld [vmem:[#allocation9 + $0x3e4] sm:$0xf]  ;;  %v13202_v29 = vld [vmem:[#allocation9 + $0x360] sm:$0xf] }
 0x450   : > { %v13268_v63 = vld [vmem:[#allocation9 + $0x3e8] sm:$0xf0]  ;;  %v14211_v20 = vld [vmem:[#allocation9 + $0x3e4] sm:$0xf0]  ;;  %v16703_v52 = vld [vmem:[#allocation15_spill] sm:$0xff] }
 0x451   : > { %9129 = vmatpush.bf16.msrb.mxu2 %v13055_v16  ;;  %9091 = vmatpush.bf16.msrb.mxu0 %v13051_v3  ;;  %v13087_v16 = vor.u32 %v14164_v40, %v13084_v33  ;;  %v13019_v3 = vor.u32 %v14149_v38, %v13018_v32  ;;  %v16704_v23 = vunpack.c.l.b16 %v16703_v52  ;;  %v14192_v39 = vld [vmem:[#allocation9 + $0x354] sm:$0xf]  ;;  %v13196_v57 = vld [vmem:[#allocation9 + $0x358] sm:$0xf0]  ;;  %v16705_v47 = vunpack.c.h.b16 %v16703_v52  ;;  %v13194_v22 = vld [vmem:[#allocation9 + $0x350] sm:$0xf] }
 0x452   : > { %9110 = vmatpush.bf16.msrb.mxu1 %v13115_v12  ;;  %9149 = vmatpush.bf16.msrb.mxu3 %v13111_v0  ;;  %v13083_v12 = vor.u32 %v14165_v5, %v13082_v15  ;;  %v13266_v0 = vld [vmem:[#allocation9 + $0x3e0] sm:$0xf]  ;;  %v13260_v61 = vld [vmem:[#allocation9 + $0x3d8] sm:$0xf0]  ;;  %v13199_v8 = vor.u32 %v14192_v39, %v13196_v57  ;;  %v14190_v34 = vld [vmem:[#allocation9 + $0x344] sm:$0xf] }
 0x453   : > { %v8920_v55 = vpack.c.b16 %v16367_v7, %v16704_v23  ;;  %v8921_v58 = vpack.c.b16 %v16379_v44, %v16705_v47  ;;  %v14206_v1 = vld [vmem:[#allocation9 + $0x3c4] sm:$0xf]  ;;  %v13252_v4 = vld [vmem:[#allocation9 + $0x3c8] sm:$0xf0]  ;;  %v13250_v36 = vld [vmem:[#allocation9 + $0x3c0] sm:$0xf] }
 0x454   : > { %v14207_v40 = vld [vmem:[#allocation9 + $0x3c4] sm:$0xf0]  ;;  %v13180_v32 = vld [vmem:[#allocation9 + $0x338] sm:$0xf0]  ;;  %v9172_v38 = vld [vmem:[#allocation3 + $0x20] sm:$0xff] }
 0x455   : > { %9130 = vmatpush.bf16.msrb.mxu2 %v13047_v31  ;;  %9092 = vmatpush.bf16.msrb.mxu0 %v13043_v42  ;;  %v14195_v31 = vld [vmem:[#allocation9 + $0x364] sm:$0xf0]  ;;  %v13207_v42 = vor.u32 %v14194_v30, %v13204_v18  ;;  %v13251_v5 = vor.u32 %v14207_v40, %v13250_v36  ;;  %v14204_v26 = vld [vmem:[#allocation9 + $0x3b4] sm:$0xf]  ;;  %v13244_v14 = vld [vmem:[#allocation9 + $0x3b8] sm:$0xf0]  ;;  %v9216_v2 = vunpack.c.h.b16 %v9172_v38 }
 0x456   : > { %9111 = vmatpush.bf16.msrb.mxu1 %v13107_v11  ;;  %9150 = vmatpush.bf16.msrb.mxu3 %v13103_v62  ;;  %v13271_v11 = vor.u32 %v14210_v43, %v13268_v63  ;;  %v13203_v19 = vor.u32 %v14195_v31, %v13202_v29  ;;  %v14208_v62 = vld [vmem:[#allocation9 + $0x3d4] sm:$0xf]  ;;  %v13178_v13 = vld [vmem:[#allocation9 + $0x330] sm:$0xf]  ;;  %v14189_v41 = vld [vmem:[#allocation9 + $0x334] sm:$0xf0]  ;;  %v13247_v24 = vor.u32 %v14204_v26, %v13244_v14 }
 0x457   : > { %8824 = vmatmul.bf16.gmra.mxu0 %v8644_v46  ;;  %8862 = vmatmul.bf16.gmra.mxu2 %v8644_v46  ;;  %v14193_v46 = vld [vmem:[#allocation9 + $0x354] sm:$0xf0]  ;;  %v13263_v10 = vor.u32 %v14208_v62, %v13260_v61  ;;  %v13242_v51 = vld [vmem:[#allocation9 + $0x3b0] sm:$0xf]  ;;  %v13170_v30 = vld [vmem:[#allocation9 + $0x320] sm:$0xf]  ;;  %v16508_v52 = vpack.c.b16 %v16379_v44, %v9216_v2 }
 0x458   : > { %8843 = vmatmul.bf16.gmra.mxu1 %v8646_v59  ;;  %8881 = vmatmul.bf16.gmra.mxu3 %v8646_v59  ;;  %v13188_v59 = vld [vmem:[#allocation9 + $0x348] sm:$0xf0]  ;;  %v13195_v50 = vor.u32 %v14193_v46, %v13194_v22  ;;  %v14187_v18 = vld [vmem:[#allocation9 + $0x324] sm:$0xf0]  ;;  %v13234_v43 = vld [vmem:[#allocation9 + $0x3a0] sm:$0xf] }
 0x459   : > { %9131 = vmatpush.bf16.msrb.mxu2 %v13039_v28  ;;  %9093 = vmatpush.bf16.msrb.mxu0 %v13035_v49  ;;  %v13267_v28 = vor.u32 %v14211_v20, %v13266_v0  ;;  %v13258_v49 = vld [vmem:[#allocation9 + $0x3d0] sm:$0xf]  ;;  %v13191_v33 = vor.u32 %v14190_v34, %v13188_v59  ;;  %v14203_v63 = vld [vmem:[#allocation9 + $0x3a4] sm:$0xf0]  ;;  %v14184_v29 = vld [vmem:[#allocation9 + $0x314] sm:$0xf]  ;;  %v13171_v57 = vor.u32 %v14187_v18, %v13170_v30 }
 0x45a   : > { %9112 = vmatpush.bf16.msrb.mxu1 %v13099_v53  ;;  %9151 = vmatpush.bf16.msrb.mxu3 %v13095_v21  ;;  %v14209_v53 = vld [vmem:[#allocation9 + $0x3d4] sm:$0xf0]  ;;  %v14191_v21 = vld [vmem:[#allocation9 + $0x344] sm:$0xf0]  ;;  %v13164_v31 = vld [vmem:[#allocation9 + $0x318] sm:$0xf0]  ;;  %v13235_v47 = vor.u32 %v14203_v63, %v13234_v43 }
 0x45b   : > { %v13259_v27 = vor.u32 %v14209_v53, %v13258_v49  ;;  %v14200_v0 = vld [vmem:[#allocation9 + $0x394] sm:$0xf]  ;;  %v13148_v39 = vld [vmem:[#allocation3 + $0x38] sm:$0xf0]  ;;  %v14201_v62 = vld [vmem:[#allocation9 + $0x394] sm:$0xf0] }
 0x45c   : > { %v13146_v61 = vld [vmem:[#allocation3 + $0x30] sm:$0xf]  ;;  %v14180_v22 = vld [vmem:[#allocation3 + $0x34] sm:$0xf]  ;;  %v14182_v46 = vld [vmem:[#allocation9 + $0x304] sm:$0xf] }
 0x45d   : > { %9132 = vmatpush.bf16.msrb.mxu2 %v13031_v35  ;;  %9094 = vmatpush.bf16.msrb.mxu0 %v13027_v25  ;;  %v13186_v35 = vld [vmem:[#allocation9 + $0x340] sm:$0xf]  ;;  %v13255_v25 = vor.u32 %v14206_v1, %v13252_v4  ;;  %v13156_v49 = vld [vmem:[#allocation9 + $0x308] sm:$0xf0]  ;;  %v9246_v34 = vshll.u32 %v16508_v52, 16  ;;  %v9244_v2 = vshrl.u32 %v16508_v52, 16 }
 0x45e   : > { %9113 = vmatpush.bf16.msrb.mxu1 %v13091_v45  ;;  %9152 = vmatpush.bf16.msrb.mxu3 %v13087_v16  ;;  %v14188_v45 = vld [vmem:[#allocation9 + $0x334] sm:$0xf]  ;;  %v13187_v15 = vor.u32 %v14191_v21, %v13186_v35  ;;  %v9215_v16 = vunpack.c.l.b16 %v9172_v38  ;;  %v13154_v1 = vld [vmem:[#allocation9 + $0x300] sm:$0xf]  ;;  %v14183_v35 = vld [vmem:[#allocation9 + $0x304] sm:$0xf0] }
 0x45f   : > { %v13183_v37 = vor.u32 %v14188_v45, %v13180_v32  ;;  %v13218_v21 = vld [vmem:[#allocation9 + $0x380] sm:$0xf]  ;;  %v14199_v36 = vld [vmem:[#allocation9 + $0x384] sm:$0xf0]  ;;  %v14228_v40 = vld [vmem:[#allocation9 + $0x474] sm:$0xf] }
 0x460   : > { %v16505_v20 = vpack.c.b16 %v16367_v7, %v9215_v16  ;;  %v13404_v38 = vld [vmem:[#allocation9 + $0x4f8] sm:$0xf0]  ;;  %v14229_v14 = vld [vmem:[#allocation9 + $0x474] sm:$0xf0]  ;;  %v14226_v18 = vld [vmem:[#allocation9 + $0x464] sm:$0xf] }
 0x461   : > { %9133 = vmatpush.bf16.msrb.mxu2 %v13023_v56  ;;  %9095 = vmatpush.bf16.msrb.mxu0 %v13019_v3  ;;  %v14205_v56 = vld [vmem:[#allocation9 + $0x3b4] sm:$0xf0]  ;;  %v14186_v3 = vld [vmem:[#allocation9 + $0x324] sm:$0xf]  ;;  %v13332_v43 = vld [vmem:[#allocation9 + $0x468] sm:$0xf0] }
 0x462   : > { %9114 = vmatpush.bf16.msrb.mxu1 %v13083_v12  ;;  %9492 = vmatpush.bf16.msra.mxu3 %v13279_v9  ;;  %v13172_v12 = vld [vmem:[#allocation9 + $0x328] sm:$0xf0]  ;;  %v13243_v9 = vor.u32 %v14205_v56, %v13242_v51  ;;  %v13155_v51 = vor.u32 %v14183_v35, %v13154_v1  ;;  %v13219_v56 = vor.u32 %v14199_v36, %v13218_v21  ;;  %v9232_v16 = vshrl.u32 %v16505_v20, 16  ;;  %v14242_v63 = vld [vmem:[#allocation9 + $0x4e4] sm:$0xf] }
 0x463   : > { %v13175_v23 = vor.u32 %v14186_v3, %v13172_v12  ;;  %v9248_v12 = vrot.slane %v9246_v34, 1  ;;  %v14243_v52 = vld [vmem:[#allocation9 + $0x4e4] sm:$0xf0]  ;;  %v13386_v34 = vld [vmem:[#allocation9 + $0x4d0] sm:$0xf] }
 0x464   : > { %v14222_v1 = vld [vmem:[#allocation9 + $0x444] sm:$0xf] }
 0x465   : > { %9473 = vmatpush.bf16.msra.mxu2 %v13215_v17  ;;  %9435 = vmatpush.bf16.msra.mxu0 %v13211_v54  ;;  %v13179_v17 = vor.u32 %v14189_v41, %v13178_v13  ;;  %v14202_v54 = vld [vmem:[#allocation9 + $0x3a4] sm:$0xf]  ;;  %v13402_v13 = vld [vmem:[#allocation9 + $0x4f0] sm:$0xf]  ;;  %v14245_v41 = vld [vmem:[#allocation9 + $0x4f4] sm:$0xf0] }
 0x466   : > { %9454 = vmatpush.bf16.msra.mxu1 %v13275_v48  ;;  %9493 = vmatpush.bf16.msra.mxu3 %v13271_v11  ;;  %v13236_v48 = vld [vmem:[#allocation9 + $0x3a8] sm:$0xf0]  ;;  %v14181_v11 = vld [vmem:[#allocation3 + $0x34] sm:$0xf0]  ;;  %v14238_v36 = vld [vmem:[#allocation9 + $0x4c4] sm:$0xf] }
 0x467   : > { %9096 = vmatmul.bf16.vlgmr.msrb.gmra.mxu0 %v8920_v55  ;;  %9134 = vmatmul.bf16.vlgmr.msrb.gmra.mxu2 %v8920_v55  ;;  %v13239_v55 = vor.u32 %v14202_v54, %v13236_v48  ;;  %v16514_v53 = vor.u32 %v14181_v11, %v13146_v61  ;;  %v9176_v54 = vld [vmem:[#allocation3 + $0x40] sm:$0x11]  ;;  %v13335_v11 = vor.u32 %v14226_v18, %v13332_v43  ;;  %v14240_v61 = vld [vmem:[#allocation9 + $0x4d4] sm:$0xf] }
 0x468   : > { %9115 = vmatmul.bf16.vlgmr.msrb.gmra.mxu1 %v8921_v58  ;;  %9153 = vmatmul.bf16.vlgmr.msrb.gmra.mxu3 %v8921_v58  ;;  %v13162_v58 = vld [vmem:[#allocation9 + $0x310] sm:$0xf] }
 0x469   : > { %9474 = vmatpush.bf16.msra.mxu2 %v13207_v42  ;;  %9436 = vmatpush.bf16.msra.mxu0 %v13203_v19  ;;  %v13228_v42 = vld [vmem:[#allocation9 + $0x398] sm:$0xf0]  ;;  %v14185_v19 = vld [vmem:[#allocation9 + $0x314] sm:$0xf0]  ;;  %v9239_v45 = vshll.u32 %v16514_v53, 16 }
 0x46a   : > { %9455 = vmatpush.bf16.msra.mxu1 %v13267_v28  ;;  %9494 = vmatpush.bf16.msra.mxu3 %v13263_v10  ;;  %v13226_v28 = vld [vmem:[#allocation9 + $0x390] sm:$0xf]  ;;  %v16517_v10 = vor.u32 %v14180_v22, %v13148_v39  ;;  %v13231_v59 = vor.u32 %v14200_v0, %v13228_v42  ;;  %v14227_v0 = vld [vmem:[#allocation9 + $0x464] sm:$0xf0]  ;;  %v9249_v42 = vor.u32 %v9248_v12, %v9244_v2  ;;  %v13388_v22 = vld [vmem:[#allocation9 + $0x4d8] sm:$0xf0] }
 0x46b   : > { %v13227_v4 = vor.u32 %v14201_v62, %v13226_v28  ;;  %v16524_v48 = vrot.slane %v9239_v45, 1  ;;  %v13378_v45 = vld [vmem:[#allocation9 + $0x4c0] sm:$0xf]  ;;  %v13306_v2 = vld [vmem:[#allocation9 + $0x430] sm:$0xf]  ;;  %v9255_v12 = vshrl.u32 %v16514_v53, 16 }
 0x46c   : > { %v9251_v32 = vshll.u32 %v16517_v10, 16 }
 0x46d   : > { %9475 = vmatpush.bf16.msra.mxu2 %v13199_v8  ;;  %9437 = vmatpush.bf16.msra.mxu0 %v13195_v50  ;;  %v9234_v8 = vshll.u32 %v16505_v20, 16  ;;  %v14198_v50 = vld [vmem:[#allocation9 + $0x384] sm:$0xf]  ;;  %v13394_v20 = vld [vmem:[#allocation9 + $0x4e0] sm:$0xf] }
 0x46e   : > { %9456 = vmatpush.bf16.msra.mxu1 %v13259_v27  ;;  %9495 = vmatpush.bf16.msra.mxu3 %v13255_v25  ;;  %v13220_v27 = vld [vmem:[#allocation9 + $0x388] sm:$0xf0]  ;;  %v14244_v25 = vld [vmem:[#allocation9 + $0x4f4] sm:$0xf]  ;;  %v16526_v30 = vrot.slane %v9251_v32, 1  ;;  %v13395_v62 = vor.u32 %v14243_v52, %v13394_v20 }
 0x46f   : > { %v13223_v26 = vor.u32 %v14198_v50, %v13220_v27  ;;  %v9236_v3 = vrot.slane %v9234_v8, 1  ;;  %v14225_v8 = vld [vmem:[#allocation9 + $0x454] sm:$0xf0]  ;;  %v13391_v27 = vor.u32 %v14240_v61, %v13388_v22  ;;  %v14239_v32 = vld [vmem:[#allocation9 + $0x4c4] sm:$0xf0] }
 0x470   : > { %v14234_v20 = vld [vmem:[#allocation9 + $0x4a4] sm:$0xf]  ;;  %v13364_v52 = vld [vmem:[#allocation9 + $0x4a8] sm:$0xf0] }
 0x471   : > { %9476 = vmatpush.bf16.msra.mxu2 %v13191_v33  ;;  %9438 = vmatpush.bf16.msra.mxu0 %v13187_v15  ;;  %v13340_v33 = vld [vmem:[#allocation9 + $0x478] sm:$0xf0]  ;;  %v13338_v15 = vld [vmem:[#allocation9 + $0x470] sm:$0xf] }
 0x472   : > { %9457 = vmatpush.bf16.msra.mxu1 %v13251_v5  ;;  %9496 = vmatpush.bf16.msra.mxu3 %v13247_v24  ;;  %v13159_v5 = vor.u32 %v14182_v46, %v13156_v49  ;;  %v13407_v24 = vor.u32 %v14244_v25, %v13404_v38  ;;  %v13322_v46 = vld [vmem:[#allocation9 + $0x450] sm:$0xf]  ;;  %v9254_v49 = vsel %vm888_vm4, %v9249_v42, %v16526_v30  ;;  %v14223_v25 = vld [vmem:[#allocation9 + $0x444] sm:$0xf0]  ;;  %v13362_v42 = vld [vmem:[#allocation9 + $0x4a0] sm:$0xf] }
 0x473   : > { %v13323_v35 = vor.u32 %v14225_v8, %v13322_v46  ;;  %v14232_v46 = vld [vmem:[#allocation9 + $0x494] sm:$0xf]  ;;  %v13290_v8 = vld [vmem:[#allocation9 + $0x410] sm:$0xf] }
 0x475   : > { %9477 = vmatpush.bf16.msra.mxu2 %v13183_v37  ;;  %9439 = vmatpush.bf16.msra.mxu0 %v13179_v17  ;;  %v13343_v37 = vor.u32 %v14228_v40, %v13340_v33  ;;  %v13339_v17 = vor.u32 %v14229_v14, %v13338_v15  ;;  %v13380_v40 = vld [vmem:[#allocation9 + $0x4c8] sm:$0xf0]  ;;  %v13314_v33 = vld [vmem:[#allocation9 + $0x440] sm:$0xf]  ;;  %v14220_v14 = vld [vmem:[#allocation9 + $0x434] sm:$0xf] }
 0x476   : > { %9458 = vmatpush.bf16.msra.mxu1 %v13243_v9  ;;  %9497 = vmatpush.bf16.msra.mxu3 %v13239_v55  ;;  %v13403_v9 = vor.u32 %v14245_v41, %v13402_v13  ;;  %v9223_v55 = vunpack.c.l.b16 %v9176_v54  ;;  %v13383_v15 = vor.u32 %v14238_v36, %v13380_v40  ;;  %v13308_v13 = vld [vmem:[#allocation9 + $0x438] sm:$0xf0]  ;;  %v13315_v41 = vor.u32 %v14223_v25, %v13314_v33  ;;  %v14230_v40 = vld [vmem:[#allocation9 + $0x484] sm:$0xf]  ;;  %v13348_v33 = vld [vmem:[#allocation9 + $0x488] sm:$0xf0] }
 0x477   : > { %9101 = vmatmul.bf16.gmra.mxu0 %v16485_v6  ;;  %9139 = vmatmul.bf16.gmra.mxu2 %v16485_v6  ;;  %v13167_v6 = vor.u32 %v14184_v29, %v13164_v31  ;;  %v13396_v29 = vld [vmem:[#allocation9 + $0x4e8] sm:$0xf0]  ;;  %v13330_v31 = vld [vmem:[#allocation9 + $0x460] sm:$0xf]  ;;  %v13311_v18 = vor.u32 %v14220_v14, %v13308_v13 }
 0x478   : > { %9120 = vmatmul.bf16.gmra.mxu1 %v16490_v60  ;;  %9158 = vmatmul.bf16.gmra.mxu3 %v16490_v60  ;;  %v13163_v60 = vor.u32 %v14185_v19, %v13162_v58  ;;  %v13399_v39 = vor.u32 %v14242_v63, %v13396_v29  ;;  %v9224_v58 = vunpack.c.h.b16 %v9176_v54  ;;  %v13331_v28 = vor.u32 %v14227_v0, %v13330_v31  ;;  %v14218_v63 = vld [vmem:[#allocation9 + $0x424] sm:$0xf]  ;;  %v13300_v29 = vld [vmem:[#allocation9 + $0x428] sm:$0xf0]  ;;  %v13282_v25 = vld [vmem:[#allocation9 + $0x400] sm:$0xf] }
 0x479   : > { %9478 = vmatpush.bf16.msra.mxu2 %v13175_v23  ;;  %9440 = vmatpush.bf16.msra.mxu0 %v13171_v57  ;;  %v9237_v23 = vor.u32 %v9236_v3, %v9232_v16  ;;  %v14224_v57 = vld [vmem:[#allocation9 + $0x454] sm:$0xf]  ;;  %v13372_v16 = vld [vmem:[#allocation9 + $0x4b8] sm:$0xf0]  ;;  %v14237_v3 = vld [vmem:[#allocation9 + $0x4b4] sm:$0xf0] }
 0x47a   : > { %9459 = vmatpush.bf16.msra.mxu1 %v13235_v47  ;;  %9498 = vmatpush.bf16.msra.mxu3 %v13231_v59  ;;  %v13324_v47 = vld [vmem:[#allocation9 + $0x458] sm:$0xf0]  ;;  %v16532_v59 = vpack.c.b16 %v9223_v55, %v9223_v55  ;;  %v14219_v55 = vld [vmem:[#allocation9 + $0x424] sm:$0xf0] }
 0x47b   : > { %v9242_v19 = vsel %vm888_vm4, %v9237_v23, %v16524_v48  ;;  %v13327_v50 = vor.u32 %v14224_v57, %v13324_v47  ;;  %v13298_v23 = vld [vmem:[#allocation9 + $0x420] sm:$0xf]  ;;  %v13303_v47 = vor.u32 %v14218_v63, %v13300_v29 }
 0x47c   : > { %v13299_v61 = vor.u32 %v14219_v55, %v13298_v23  ;;  %v9564_v29 = vrot.slane %v16532_v59, 1 }
 0x47d   : > { %9479 = vmatpush.bf16.msra.mxu2 %v13167_v6  ;;  %9441 = vmatpush.bf16.msra.mxu0 %v13163_v60  ;;  %v14241_v6 = vld [vmem:[#allocation9 + $0x4d4] sm:$0xf0]  ;;  %v13316_v60 = vld [vmem:[#allocation9 + $0x448] sm:$0xf0] }
 0x47e   : > { %9460 = vmatpush.bf16.msra.mxu1 %v13227_v4  ;;  %9499 = vmatpush.bf16.msra.mxu3 %v13223_v26  ;;  %v16534_v4 = vpack.c.b16 %v9224_v58, %v9224_v58  ;;  %v13387_v21 = vor.u32 %v14241_v6, %v13386_v34  ;;  %v13319_v38 = vor.u32 %v14222_v1, %v13316_v60  ;;  %v13354_v34 = vld [vmem:[#allocation9 + $0x490] sm:$0xf]  ;;  %v14233_v6 = vld [vmem:[#allocation9 + $0x494] sm:$0xf0]  ;;  %v14214_v1 = vld [vmem:[#allocation9 + $0x404] sm:$0xf] }
 0x47f   : > { %v13367_v58 = vor.u32 %v14234_v20, %v13364_v52  ;;  %v13284_v60 = vld [vmem:[#allocation9 + $0x408] sm:$0xf0]  ;;  %v13355_v36 = vor.u32 %v14233_v6, %v13354_v34 }
 0x480   : > { %v9267_v26 = vshll.u32 %v16534_v4, 16 }
 0x481   : > { %9480 = vmatpush.bf16.msra.mxu2 %v13159_v5  ;;  %9442 = vmatpush.bf16.msra.mxu0 %v13155_v51  ;;  %v9259_v5 = vshll.u32 %v16532_v59, 16  ;;  %v13379_v51 = vor.u32 %v14239_v32, %v13378_v45  ;;  %v14215_v45 = vld [vmem:[#allocation9 + $0x404] sm:$0xf0]  ;;  %v13346_v32 = vld [vmem:[#allocation9 + $0x480] sm:$0xf] }
 0x482   : > { %9461 = vmatpush.bf16.msra.mxu1 %v13219_v56  ;;  %9789 = vmatpush.bf16.msrb.mxu3 %v13407_v24  ;;  %v14236_v56 = vld [vmem:[#allocation9 + $0x4b4] sm:$0xf]  ;;  %v13370_v24 = vld [vmem:[#allocation9 + $0x4b0] sm:$0xf]  ;;  %v9269_v54 = vrot.slane %v9267_v26, 1  ;;  %v13351_v26 = vor.u32 %v14230_v40, %v13348_v33  ;;  %v13283_v13 = vor.u32 %v14215_v45, %v13282_v25 }
 0x483   : > { %v13375_v43 = vor.u32 %v14236_v56, %v13372_v16  ;;  %v13371_v0 = vor.u32 %v14237_v3, %v13370_v24  ;;  %v9559_v16 = vrot.slane %v16514_v53, 1 }
 0x485   : > { %9770 = vmatpush.bf16.msrb.mxu2 %v13343_v37  ;;  %9732 = vmatpush.bf16.msrb.mxu0 %v13339_v17  ;;  %v14221_v37 = vld [vmem:[#allocation9 + $0x434] sm:$0xf0]  ;;  %v9263_v17 = vshrl.u32 %v16517_v10, 16 }
 0x486   : > { %9751 = vmatpush.bf16.msrb.mxu1 %v13403_v9  ;;  %9790 = vmatpush.bf16.msrb.mxu3 %v13399_v39  ;;  %v9261_v9 = vrot.slane %v9259_v5, 1  ;;  %v13307_v31 = vor.u32 %v14221_v37, %v13306_v2  ;;  %v9257_v39 = vor.u32 %v9255_v12, %v16524_v48  ;;  %v13287_v5 = vor.u32 %v14214_v1, %v13284_v60 }
 0x487   : > { %9443 = vmatmul.bf16.vlgmr.msra.gmra.mxu0 %v9242_v19  ;;  %9481 = vmatmul.bf16.vlgmr.msra.gmra.mxu2 %v9242_v19  ;;  %v9265_v57 = vor.u32 %v9263_v17, %v16526_v30  ;;  %v14216_v19 = vld [vmem:[#allocation9 + $0x414] sm:$0xf]  ;;  %v14217_v30 = vld [vmem:[#allocation9 + $0x414] sm:$0xf0]  ;;  %v9562_v2 = vrot.slane %v16517_v10, 1 }
 0x488   : > { %9462 = vmatmul.bf16.vlgmr.msra.gmra.mxu1 %v9254_v49  ;;  %9500 = vmatmul.bf16.vlgmr.msra.gmra.mxu3 %v9254_v49  ;;  %v13356_v49 = vld [vmem:[#allocation9 + $0x498] sm:$0xf0] }
 0x489   : > { %9771 = vmatpush.bf16.msrb.mxu2 %v13335_v11  ;;  %9733 = vmatpush.bf16.msrb.mxu0 %v13331_v28  ;;  %v14235_v11 = vld [vmem:[#allocation9 + $0x4a4] sm:$0xf0]  ;;  %v13292_v28 = vld [vmem:[#allocation9 + $0x418] sm:$0xf0]  ;;  %v9270_v48 = vsel %vm888_vm4, %v9265_v57, %v9269_v54 }
 0x48a   : > { %9752 = vmatpush.bf16.msrb.mxu1 %v13395_v62  ;;  %9791 = vmatpush.bf16.msrb.mxu3 %v13391_v27  ;;  %v9262_v62 = vsel %vm888_vm4, %v9257_v39, %v9261_v9  ;;  %v13363_v22 = vor.u32 %v14235_v11, %v13362_v42  ;;  %v13359_v27 = vor.u32 %v14232_v46, %v13356_v49 }
 0x48b   : > { %v9565_v42 = vsel %vm978_vm5, %v9559_v16, %v9564_v29 }
 0x48d   : > { %9772 = vmatpush.bf16.msrb.mxu2 %v13327_v50  ;;  %9734 = vmatpush.bf16.msrb.mxu0 %v13323_v35  ;;  %v13295_v50 = vor.u32 %v14216_v19, %v13292_v28  ;;  %v9519_v35 = vld [vmem:[#allocation3 + $0x20] sm:$0xee] }
 0x48e   : > { %9753 = vmatpush.bf16.msrb.mxu1 %v13387_v21  ;;  %9792 = vmatpush.bf16.msrb.mxu3 %v13383_v15  ;;  %v13291_v21 = vor.u32 %v14217_v30, %v13290_v8  ;;  %v9554_v15 = vunpack.c.l.b16 %v9519_v35  ;;  %v9555_v14 = vunpack.c.h.b16 %v9519_v35 }
 0x490   : > { %v9557_v56 = vpack.c.b16 %v16379_v44, %v9555_v14 }
 0x491   : > { %9773 = vmatpush.bf16.msrb.mxu2 %v13319_v38  ;;  %9735 = vmatpush.bf16.msrb.mxu0 %v13315_v41  ;;  %v14231_v38 = vld [vmem:[#allocation9 + $0x484] sm:$0xf0] }
 0x492   : > { %9754 = vmatpush.bf16.msrb.mxu1 %v13379_v51  ;;  %9793 = vmatpush.bf16.msrb.mxu3 %v13375_v43  ;;  %v13347_v41 = vor.u32 %v14231_v38, %v13346_v32  ;;  %v9556_v51 = vpack.c.b16 %v16367_v7, %v9554_v15  ;;  %v9561_v12 = vrot.slane %v9557_v56, 1 }
 0x494   : > { %v9558_v24 = vrot.slane %v9556_v51, 1  ;;  %v9563_v7 = vsel %vm978_vm5, %v9561_v12, %v9562_v2 }
 0x495   : > { %9774 = vmatpush.bf16.msrb.mxu2 %v13311_v18  ;;  %9736 = vmatpush.bf16.msrb.mxu0 %v13307_v31 }
 0x496   : > { %9755 = vmatpush.bf16.msrb.mxu1 %v13371_v0  ;;  %9794 = vmatpush.bf16.msrb.mxu3 %v13367_v58  ;;  %v9560_v9 = vsel %vm978_vm5, %v9558_v24, %v9559_v16  ;;  %v9566_v0 = vrot.slane %v16534_v4, 1 }
 0x497   : > { %9448 = vmatmul.bf16.gmra.mxu0 %v9262_v62  ;;  %9486 = vmatmul.bf16.gmra.mxu2 %v9262_v62 }
 0x498   : > { %9467 = vmatmul.bf16.gmra.mxu1 %v9270_v48  ;;  %9505 = vmatmul.bf16.gmra.mxu3 %v9270_v48  ;;  %v9567_v11 = vsel %vm978_vm5, %v9562_v2, %v9566_v0 }
 0x499   : > { %9775 = vmatpush.bf16.msrb.mxu2 %v13303_v47  ;;  %9737 = vmatpush.bf16.msrb.mxu0 %v13299_v61 }
 0x49a   : > { %9756 = vmatpush.bf16.msrb.mxu1 %v13363_v22  ;;  %9795 = vmatpush.bf16.msrb.mxu3 %v13359_v27 }
 0x49d   : > { %9776 = vmatpush.bf16.msrb.mxu2 %v13295_v50  ;;  %9738 = vmatpush.bf16.msrb.mxu0 %v13291_v21 }
 0x49e   : > { %9757 = vmatpush.bf16.msrb.mxu1 %v13355_v36  ;;  %9796 = vmatpush.bf16.msrb.mxu3 %v13351_v26 }
 0x4a1   : > { %9777 = vmatpush.bf16.msrb.mxu2 %v13287_v5  ;;  %9739 = vmatpush.bf16.msrb.mxu0 %v13283_v13 }
 0x4a2   : > { %9758 = vmatpush.bf16.msrb.mxu1 %v13347_v41 }
 0x4a4   : > { %v8565_v37 = vpop.f32.mrf.mxu0 }
 0x4a5   : > { %v8584_v3 = vpop.f32.mrf.mxu1 }
 0x4a6   : > { %v8585_v17 = vadd.f32 %v8584_v3, %v8565_v37 }
 0x4a7   : > { %9740 = vmatmul.bf16.vlgmr.msrb.gmra.mxu0 %v9560_v9  ;;  %9778 = vmatmul.bf16.vlgmr.msrb.gmra.mxu2 %v9560_v9 }
 0x4a8   : > { %9759 = vmatmul.bf16.vlgmr.msrb.gmra.mxu1 %v9563_v7  ;;  %9797 = vmatmul.bf16.vlgmr.msrb.gmra.mxu3 %v9563_v7 }
 0x4aa   : > { %v8603_v44 = vpop.f32.mrf.mxu2 }
 0x4ab   : > { %v8622_v54 = vpop.f32.mrf.mxu3 }
 0x4ac   : > { %v8623_v18 = vadd.f32 %v8622_v54, %v8603_v44  ;;  %v8567_v43 = vpop.f32.mrf.mxu0 }
 0x4ad   : > { %v8586_v53 = vpop.f32.mrf.mxu1 }
 0x4ae   : > { %v8587_v63 = vadd.f32 %v8586_v53, %v8567_v43 }
 0x4b2   : > { %v8605_v10 = vpop.f32.mrf.mxu2 }
 0x4b3   : > { %v8624_v31 = vpop.f32.mrf.mxu3 }
 0x4b4   : > { %v8625_v20 = vadd.f32 %v8624_v31, %v8605_v10  ;;  %v8570_v52 = vpop.f32.mrf.mxu0 }
 0x4b5   : > { %v8589_v23 = vpop.f32.mrf.mxu1 }
 0x4b6   : > { %v8590_v55 = vadd.f32 %v8589_v23, %v8570_v52 }
 0x4b7   : > { %9745 = vmatmul.bf16.gmra.mxu0 %v9565_v42  ;;  %9783 = vmatmul.bf16.gmra.mxu2 %v9565_v42 }
 0x4b8   : > { %9764 = vmatmul.bf16.gmra.mxu1 %v9567_v11  ;;  %9802 = vmatmul.bf16.gmra.mxu3 %v9567_v11 }
 0x4ba   : > { %v8608_v39 = vpop.f32.mrf.mxu2 }
 0x4bb   : > { %v8627_v57 = vpop.f32.mrf.mxu3 }
 0x4bc   : > { %v8628_v47 = vadd.f32 %v8627_v57, %v8608_v39  ;;  %v8572_v58 = vpop.f32.mrf.mxu0 }
 0x4bd   : > { %v8591_v59 = vpop.f32.mrf.mxu1 }
 0x4be   : > { %v8592_v19 = vadd.f32 %v8591_v59, %v8572_v58 }
 0x4c2   : > { %v8610_v28 = vpop.f32.mrf.mxu2 }
 0x4c3   : > { %v8629_v4 = vpop.f32.mrf.mxu3 }
 0x4c4   : > { %v8630_v62 = vadd.f32 %v8629_v4, %v8610_v28  ;;  %v8820_v61 = vpop.f32.mrf.mxu0 }
 0x4c5   : > { %v8821_v22 = vadd.f32 %v8820_v61, %v8585_v17  ;;  %v8839_v46 = vpop.f32.mrf.mxu1 }
 0x4c7   : > { %v16554_v49 = vadd.f32 %v8839_v46, %v8821_v22  ;;  %v8247_v46 = vld [vmem:[%s16653_s10] sm:$0x3] }
 0x4ca   : > { %v8858_v8 = vpop.f32.mrf.mxu2 }
 0x4cb   : > { %v8859_v48 = vadd.f32 %v8858_v8, %v8623_v18  ;;  %v8877_v30 = vpop.f32.mrf.mxu3 }
 0x4cc   : > { %v8822_v34 = vpop.f32.mrf.mxu0 }
 0x4cd   : > { %v16556_v6 = vadd.f32 %v8877_v30, %v8859_v48  ;;  %v8823_v50 = vadd.f32 %v8822_v34, %v8587_v63  ;;  %v8841_v27 = vpop.f32.mrf.mxu1 }
 0x4cf   : > { %v16558_v1 = vadd.f32 %v8841_v27, %v8823_v50 }
 0x4d2   : > { %v8860_v60 = vpop.f32.mrf.mxu2 }
 0x4d3   : > { %v8861_v35 = vadd.f32 %v8860_v60, %v8625_v20  ;;  %v8879_v21 = vpop.f32.mrf.mxu3  ;;  %v16592_v60 = vperm.slane %v8247_v46, 0 }
 0x4d4   : > { %v8825_v36 = vpop.f32.mrf.mxu0 }
 0x4d5   : > { %v16560_v40 = vadd.f32 %v8879_v21, %v8861_v35  ;;  %v8826_v33 = vadd.f32 %v8825_v36, %v8590_v55  ;;  %v8844_v25 = vpop.f32.mrf.mxu1 }
 0x4d7   : > { %v16562_v45 = vadd.f32 %v8844_v25, %v8826_v33 }
 0x4da   : > { %v8863_v32 = vpop.f32.mrf.mxu2 }
 0x4db   : > { %v8864_v38 = vadd.f32 %v8863_v32, %v8628_v47  ;;  %v8882_v15 = vpop.f32.mrf.mxu3 }
 0x4dc   : > { %v8827_v5 = vpop.f32.mrf.mxu0 }
 0x4dd   : > { %v16564_v26 = vadd.f32 %v8882_v15, %v8864_v38  ;;  %v8828_v14 = vadd.f32 %v8827_v5, %v8592_v19  ;;  %v8846_v13 = vpop.f32.mrf.mxu1 }
 0x4df   : > { %v16566_v41 = vadd.f32 %v8846_v13, %v8828_v14 }
 0x4e2   : > { %v8865_v51 = vpop.f32.mrf.mxu2 }
 0x4e3   : > { %v8866_v56 = vadd.f32 %v8865_v51, %v8630_v62  ;;  %v8884_v16 = vpop.f32.mrf.mxu3  ;;  %v16603_v51 = vperm.slane %v8247_v46, 1 }
 0x4e4   : > { %v9097_v2 = vpop.f32.mrf.mxu0 }
 0x4e5   : > { %v16568_v37 = vadd.f32 %v8884_v16, %v8866_v56  ;;  %v9116_v24 = vpop.f32.mrf.mxu1 }
 0x4e6   : > { %v9117_v4 = vadd.f32 %v9116_v24, %v9097_v2 }
 0x4e8   : > { %v9164_v8 = vadd.f32 %v9117_v4, %v16554_v49 }
 0x4ea   : > { %v9135_v3 = vpop.f32.mrf.mxu2 }
 0x4eb   : > { %v9154_v12 = vpop.f32.mrf.mxu3 }
 0x4ec   : > { %v9099_v17 = vpop.f32.mrf.mxu0  ;;  %v9155_v34 = vadd.f32 %v9154_v12, %v9135_v3 }
 0x4ed   : > { %v9118_v9 = vpop.f32.mrf.mxu1 }
 0x4ee   : > { %v9119_v35 = vadd.f32 %v9118_v9, %v9099_v17  ;;  %v9165_v33 = vadd.f32 %v9155_v34, %v16556_v6 }
 0x4f0   : > { %v9166_v15 = vadd.f32 %v9119_v35, %v16558_v1 }
 0x4f2   : > { %v9137_v7 = vpop.f32.mrf.mxu2 }
 0x4f3   : > { %v9156_v44 = vpop.f32.mrf.mxu3 }
 0x4f4   : > { %v9102_v54 = vpop.f32.mrf.mxu0  ;;  %v9157_v16 = vadd.f32 %v9156_v44, %v9137_v7 }
 0x4f5   : > { %v9121_v18 = vpop.f32.mrf.mxu1 }
 0x4f6   : > { %v9122_v3 = vadd.f32 %v9121_v18, %v9102_v54 }
 0x4f8   : > { %v9168_v7 = vadd.f32 %v9122_v3, %v16562_v45 }
 0x4fa   : > { %v16570_v43 = vpop.f32.mrf.mxu2 }
 0x4fb   : > { %v16572_v53 = vpop.f32.mrf.mxu3 }
 0x4fc   : > { %v16574_v63 = vpop.f32.mrf.mxu0 }
 0x4fd   : > { %v16576_v10 = vpop.f32.mrf.mxu1 }
 0x502   : > { %v16578_v29 = vpop.f32.mrf.mxu2 }
 0x503   : > { %v16580_v31 = vpop.f32.mrf.mxu3 }
 0x504   : > { %v9444_v0 = vpop.f32.mrf.mxu0 }
 0x505   : > { %v9463_v20 = vpop.f32.mrf.mxu1 }
 0x506   : > { %v9464_v62 = vadd.f32 %v9463_v20, %v9444_v0  ;;  %v9167_v0 = vadd.f32 %v9157_v16, %v16560_v40 }
 0x508   : > { %v9511_v50 = vadd.f32 %v9464_v62, %v9164_v8 }
 0x50a   : > { %v9482_v52 = vpop.f32.mrf.mxu2 }
 0x50b   : > { %v9501_v23 = vpop.f32.mrf.mxu3 }
 0x50c   : > { %v9446_v55 = vpop.f32.mrf.mxu0  ;;  %v9502_v21 = vadd.f32 %v9501_v23, %v9482_v52 }
 0x50d   : > { %v9465_v42 = vpop.f32.mrf.mxu1 }
 0x50e   : > { %v9466_v25 = vadd.f32 %v9465_v42, %v9446_v55  ;;  %v9512_v5 = vadd.f32 %v9502_v21, %v9165_v33 }
 0x510   : > { %v9513_v2 = vadd.f32 %v9466_v25, %v9166_v15 }
 0x512   : > { %v9484_v11 = vpop.f32.mrf.mxu2 }
 0x513   : > { %v9503_v39 = vpop.f32.mrf.mxu3 }
 0x514   : > { %v9449_v57 = vpop.f32.mrf.mxu0  ;;  %v9504_v12 = vadd.f32 %v9503_v39, %v9484_v11  ;;  %v9160_v11 = vadd.f32 %v16572_v53, %v16570_v43 }
 0x515   : > { %v9468_v47 = vpop.f32.mrf.mxu1 }
 0x516   : > { %v9469_v20 = vadd.f32 %v9468_v47, %v9449_v57  ;;  %v9514_v44 = vadd.f32 %v9504_v12, %v9167_v0  ;;  %v9124_v47 = vadd.f32 %v16576_v10, %v16574_v63 }
 0x518   : > { %v9515_v39 = vadd.f32 %v9469_v20, %v9168_v7 }
 0x51a   : > { %v9487_v58 = vpop.f32.mrf.mxu2 }
 0x51b   : > { %v9506_v59 = vpop.f32.mrf.mxu3 }
 0x51c   : > { %v16582_v19 = vpop.f32.mrf.mxu0  ;;  %v9507_v46 = vadd.f32 %v9506_v59, %v9487_v58  ;;  %v9162_v59 = vadd.f32 %v16580_v31, %v16578_v29 }
 0x51d   : > { %v9470_v28 = vpop.f32.mrf.mxu1 }
 0x51e   : > { %v9171_v25 = vadd.f32 %v9162_v59, %v16568_v37 }
 0x522   : > { %v16584_v61 = vpop.f32.mrf.mxu2 }
 0x523   : > { %v16586_v22 = vpop.f32.mrf.mxu3 }
 0x524   : > { %v9741_v48 = vpop.f32.mrf.mxu0 }
 0x525   : > { %v9760_v30 = vpop.f32.mrf.mxu1 }
 0x526   : > { %v9761_v27 = vadd.f32 %v9760_v30, %v9741_v48  ;;  %v9169_v48 = vadd.f32 %v9160_v11, %v16564_v26  ;;  %v9471_v30 = vadd.f32 %v9470_v28, %v16582_v19 }
 0x528   : > { %v9808_v36 = vadd.f32 %v9761_v27, %v9511_v50  ;;  %v9170_v27 = vadd.f32 %v9124_v47, %v16566_v41  ;;  %v9516_v35 = vadd.f32 %v9507_v46, %v9169_v48 }
 0x52a   : > { %v9821_v32 = vadd.f32 %v16592_v60, %v9808_v36  ;;  %v9779_v38 = vpop.f32.mrf.mxu2  ;;  %v9517_v26 = vadd.f32 %v9471_v30, %v9170_v27  ;;  %v9509_v36 = vadd.f32 %v16586_v22, %v16584_v61 }
 0x52b   : > { %v9798_v49 = vpop.f32.mrf.mxu3 }
 0x52c   : > { %v9829_v14 = vmax.f32 %v9821_v32, 0.0  ;;  %v9799_v13 = vadd.f32 %v9798_v49, %v9779_v38  ;;  %v9743_v56 = vpop.f32.mrf.mxu0  ;;  %v9518_v29 = vadd.f32 %v9509_v36, %v9171_v25 }
 0x52d   : > { %v9762_v6 = vpop.f32.mrf.mxu1 }
 0x52e   : > { %9837 = vst [vmem:[%s16601_s21] sm:$0xff] %v9829_v14  ;;  %v9809_v24 = vadd.f32 %v9799_v13, %v9512_v5  ;;  %v9763_v1 = vadd.f32 %v9762_v6, %v9743_v56 }
 0x530   : > { %v9822_v17 = vadd.f32 %v16603_v51, %v9809_v24  ;;  %v9810_v9 = vadd.f32 %v9763_v1, %v9513_v2 }
 0x532   : > { %v9830_v52 = vmax.f32 %v9822_v17, 0.0  ;;  %v9823_v23 = vadd.f32 %v16592_v60, %v9810_v9  ;;  %v9781_v55 = vpop.f32.mrf.mxu2 }
 0x533   : > { %v9800_v42 = vpop.f32.mrf.mxu3 }
 0x534   : > { %9838 = vst [vmem:[%s16601_s21 + $0x8] sm:$0xff] %v9830_v52  ;;  %v9831_v4 = vmax.f32 %v9823_v23, 0.0  ;;  %v9801_v62 = vadd.f32 %v9800_v42, %v9781_v55  ;;  %v9746_v54 = vpop.f32.mrf.mxu0 }
 0x535   : > { %v9765_v18 = vpop.f32.mrf.mxu1 }
 0x536   : > { %9839 = vst [vmem:[%s16601_s21 + $0x10] sm:$0xff] %v9831_v4  ;;  %v9811_v40 = vadd.f32 %v9801_v62, %v9514_v44  ;;  %v9766_v57 = vadd.f32 %v9765_v18, %v9746_v54 }
 0x538   : > { %v9824_v45 = vadd.f32 %v16603_v51, %v9811_v40  ;;  %v9812_v8 = vadd.f32 %v9766_v57, %v9515_v39 }
 0x53a   : > { %v9832_v34 = vmax.f32 %v9824_v45, 0.0  ;;  %v9825_v43 = vadd.f32 %v16592_v60, %v9812_v8  ;;  %v9784_v53 = vpop.f32.mrf.mxu2 }
 0x53b   : > { %v9803_v50 = vpop.f32.mrf.mxu3 }
 0x53c   : > { %9840 = vst [vmem:[%s16601_s21 + $0x18] sm:$0xff] %v9832_v34  ;;  %v9833_v21 = vmax.f32 %v9825_v43, 0.0  ;;  %v9804_v63 = vadd.f32 %v9803_v50, %v9784_v53  ;;  %v9748_v10 = vpop.f32.mrf.mxu0 }
 0x53d   : > { %v9767_v58 = vpop.f32.mrf.mxu1 }
 0x53e   : > { %9841 = vst [vmem:[%s16601_s21 + $0x20] sm:$0xff] %v9833_v21  ;;  %v9813_v19 = vadd.f32 %v9804_v63, %v9516_v35  ;;  %v9768_v28 = vadd.f32 %v9767_v58, %v9748_v10 }
 0x540   : > { %v9826_v41 = vadd.f32 %v16603_v51, %v9813_v19  ;;  %v9814_v33 = vadd.f32 %v9768_v28, %v9517_v26 }
 0x542   : > { %v9834_v32 = vmax.f32 %v9826_v41, 0.0  ;;  %v9827_v38 = vadd.f32 %v16592_v60, %v9814_v33  ;;  %v9786_v15 = vpop.f32.mrf.mxu2 }
 0x543   : > { %v9805_v49 = vpop.f32.mrf.mxu3 }
 0x544   : > { %9842 = vst [vmem:[%s16601_s21 + $0x28] sm:$0xff] %v9834_v32  ;;  %v9835_v31 = vmax.f32 %v9827_v38, 0.0  ;;  %v9806_v5 = vadd.f32 %v9805_v49, %v9786_v15 }
 0x546   : > { %9843 = vst [vmem:[%s16601_s21 + $0x30] sm:$0xff] %v9835_v31  ;;  %v9815_v14 = vadd.f32 %v9806_v5, %v9518_v29 }
 0x548   : > { %v9828_v13 = vadd.f32 %v16603_v51, %v9815_v14 }
 0x54a   : > { %v9836_v61 = vmax.f32 %v9828_v13, 0.0 }
 0x54c   : > { %9844 = vst [vmem:[%s16601_s21 + $0x38] sm:$0xff] %v9836_v61 }
 0x54d PF: > { %s23_s19 = sadd.s32 1, %s14463_s19   ;;  %s16706_s17 = sld [smem:[#allocation12_spill]] }
 0x54e   : > { %p20_p8 = scmp.ge.s32.totalorder %s23_s19, 4   ;;  %s16707_s18 = smov %s16709_s29 }
 0x550   :  { %22 = sbr.rel (!%p20_p8) target bundleno = 5 (0x5), region = 157 }
 0x555   :  { %9877 = vsyncpa [#allocation6], 1 }
 0x556   :  { %9879 = vsyncpa [#allocation6 + $0x1], 1 }
 0x557   :  { %9880 = vsyncpa [#allocation8], 1 }

</bundles_post_ra>
